<compile_context>
chip_gen: v5e
topology: v5e:2x2
jax: 0.10.0
libtpu: 0.0.40
codegen_flags: <defaults>
</compile_context>

<pallas_src>
import functools

import jax
import jax.numpy as jnp
from jax import lax
from jax.experimental import pallas as pl
from jax.experimental.pallas import tpu as pltpu


# -----------------------------------------------------------------------------
# Fused Conv2d(5x5, stride 2, pad 2) + bias + LeakyReLU(0.2).
# im2col happens in VMEM; one grid step == one image.
# -----------------------------------------------------------------------------
def _conv5x5_s2_kernel(x_ref, w_ref, b_ref, o_ref, *, out_h, out_w,
                       negative_slope):
    """Refs (per grid step):
      x_ref : (1, Hp, 2, Cin, OWh) bf16  padded input; W split into even/odd
                                         column phases so stride-2 taps are
                                         unit-stride lane slices.
      w_ref : (25, Cout, Cin)      bf16  tap-major weights (ki*5+kj, co, ci).
      b_ref : (Cout, 1)            f32
      o_ref : (1, OH, Cout, OW)    bf16  channels on sublanes, width on lanes.
    """
    bias = b_ref[...]                                       # (Cout, 1) f32

    def row_body(oh, carry):
        acc = None
        for ki in range(5):
            # Both column phases of padded input row (2*oh + ki): (2, Cin, OWh)
            row = x_ref[0, 2 * oh + ki]
            for kj in range(5):
                q, dj = kj % 2, kj // 2
                tap = row[q, :, dj:dj + out_w]               # (Cin, OW) bf16
                w_t = w_ref[ki * 5 + kj]                     # (Cout, Cin) bf16
                part = jnp.dot(w_t, tap,
                               preferred_element_type=jnp.float32)
                acc = part if acc is None else acc + part    # (Cout, OW) f32
        acc = acc + bias
        acc = jnp.where(acc >= 0.0, acc, negative_slope * acc)
        o_ref[0, oh] = acc.astype(o_ref.dtype)
        return carry

    lax.fori_loop(0, out_h, row_body, 0)


def conv5x5_s2_lrelu(x_hcw, w_taps, bias_col, *, negative_slope=0.2):
    """x_hcw: (N, H, C, W) bf16 activation -> (N, H//2, Cout, W//2) bf16."""
    N, H, C, W = x_hcw.shape
    assert H % 2 == 0 and W % 2 == 0
    Cout = w_taps.shape[1]
    OH, OW = H // 2, W // 2

    # Cheap wrapper prep (~1x activation bytes, replaces the old 25x im2col):
    # pad H/W by 2 and split W into its two stride-2 phases.
    xp = jnp.pad(x_hcw, ((0, 0), (2, 2), (0, 0), (2, 2)))    # (N, Hp, C, Wp)
    Hp, Wp = H + 4, W + 4
    OWh = Wp // 2
    xp = xp.reshape(N, Hp, C, OWh, 2)
    xp = jnp.transpose(xp, (0, 1, 4, 2, 3))                  # (N, Hp, 2, C, OWh)

    kernel = functools.partial(_conv5x5_s2_kernel, out_h=OH, out_w=OW,
                               negative_slope=negative_slope)
    return pl.pallas_call(
        kernel,
        out_shape=jax.ShapeDtypeStruct((N, OH, Cout, OW), jnp.bfloat16),
        grid=(N,),
        in_specs=[
            pl.BlockSpec((1, Hp, 2, C, OWh), lambda n: (n, 0, 0, 0, 0)),
            pl.BlockSpec((25, Cout, C), lambda n: (0, 0, 0)),   # resident
            pl.BlockSpec((Cout, 1), lambda n: (0, 0)),          # resident
        ],
        out_specs=pl.BlockSpec((1, OH, Cout, OW), lambda n: (n, 0, 0, 0)),
        compiler_params=pltpu.CompilerParams(
            dimension_semantics=("parallel",)),
    )(xp, w_taps, bias_col)


# -----------------------------------------------------------------------------
# Final Linear(8*bnc*7*7 -> 1): lane-dense multiply + cross-lane reduction.
# -----------------------------------------------------------------------------
def _linear_kernel(x_ref, w_ref, b_ref, o_ref):
    x = x_ref[...].astype(jnp.float32)                        # (B, K)
    w = w_ref[...]                                            # (1, K) f32
    o_ref[...] = jnp.sum(x * w, axis=1, keepdims=True) + b_ref[...]


def linear_to_prob(feat, w_row, b):
    B, K = feat.shape
    return pl.pallas_call(
        _linear_kernel,
        out_shape=jax.ShapeDtypeStruct((B, 1), jnp.float32),
        grid=(1,),
        in_specs=[
            pl.BlockSpec((B, K), lambda i: (0, 0)),
            pl.BlockSpec((1, K), lambda i: (0, 0)),
            pl.BlockSpec((1, 1), lambda i: (0, 0)),
        ],
        out_specs=pl.BlockSpec((B, 1), lambda i: (0, 0)),
    )(feat, w_row, b)


# -----------------------------------------------------------------------------
# Parameters: torch-layout synthetic init + spectral norm + kernel repack.
# -----------------------------------------------------------------------------
def init_params(key, base_n_channels=8):
    bnc = base_n_channels
    chans = [(3, bnc), (bnc, 2 * bnc), (2 * bnc, 2 * bnc),
             (2 * bnc, 4 * bnc), (4 * bnc, 8 * bnc)]
    params = {"convs": []}
    for li, (cin, cout) in enumerate(chans):
        kw_, kb_, ku_ = jax.random.split(jax.random.fold_in(key, li), 3)
        fan_in = cin * 5 * 5
        bound = 1.0 / jnp.sqrt(fan_in)
        w = jax.random.uniform(kw_, (cout, cin, 5, 5), jnp.float32, -bound, bound)
        b = jax.random.uniform(kb_, (cout,), jnp.float32, -bound, bound)
        u = jax.random.normal(ku_, (cout,), jnp.float32)
        u = u / (jnp.linalg.norm(u) + 1e-12)
        params["convs"].append({"w": w, "b": b, "u": u})
    lin_in = 8 * bnc * 7 * 7
    klw, klb = jax.random.split(jax.random.fold_in(key, 100), 2)
    lbound = 1.0 / jnp.sqrt(lin_in)
    params["linear_w"] = jax.random.uniform(klw, (1, lin_in), jnp.float32,
                                            -lbound, lbound)
    params["linear_b"] = jax.random.uniform(klb, (1,), jnp.float32,
                                            -lbound, lbound)
    return params


def _spectral_norm_once(w, u, eps=1e-12):
    """One power iteration (torch spectral_norm default n_power_iterations=1)."""
    w2 = w.reshape(w.shape[0], -1)
    v = w2.T @ u
    v = v / (jnp.linalg.norm(v) + eps)
    u = w2 @ v
    u = u / (jnp.linalg.norm(u) + eps)
    sigma = u @ (w2 @ v)
    return w / sigma


def prepare_params(params):
    prep = {"convs": []}
    for layer in params["convs"]:
        w_sn = _spectral_norm_once(layer["w"], layer["u"])     # (Cout,Cin,5,5)
        cout, cin = w_sn.shape[0], w_sn.shape[1]
        # (Cout, Cin, kh, kw) -> (kh, kw, Cout, Cin) -> (25, Cout, Cin)
        w_taps = jnp.transpose(w_sn, (2, 3, 0, 1)).reshape(25, cout, cin)
        prep["convs"].append((w_taps.astype(jnp.bfloat16),
                              layer["b"].astype(jnp.float32).reshape(cout, 1)))
    # Linear: permute columns from torch's NCHW flatten order (c,h,w) to the
    # (h,c,w) order produced by flattening the kernel's (N, H, C, W) output,
    # so no activation transpose is needed before the Linear.
    lw = params["linear_w"]                                    # (1, C*7*7)
    C = lw.shape[1] // 49
    lw_hcw = lw.reshape(1, C, 7, 7).transpose(0, 2, 1, 3).reshape(1, 49 * C)
    prep["linear_w"] = lw_hcw.astype(jnp.float32)
    prep["linear_b"] = params["linear_b"].astype(jnp.float32).reshape(1, 1)
    return prep


# -----------------------------------------------------------------------------
# Forward pass == Discriminator.forward
# -----------------------------------------------------------------------------
def discriminator_forward(prep, x_nchw):
    batch_size = x_nchw.shape[0]
    # Cast to bf16 BEFORE the single input permutation (review item 8).
    h = jnp.transpose(x_nchw.astype(jnp.bfloat16), (0, 2, 1, 3))  # (N,H,C,W)
    for w_taps, bias_col in prep["convs"]:
        h = conv5x5_s2_lrelu(h, w_taps, bias_col)      # Conv(5,2,2)+LeakyReLU
    feat = h.reshape(batch_size, -1)                   # (h, c, w) flatten
    return linear_to_prob(feat, prep["linear_w"], prep["linear_b"])


if __name__ == "__main__":
    base_n_channels = 8            # small synthetic width (module default is 64)
    key = jax.random.PRNGKey(0)
    params = init_params(key, base_n_channels)
    prep = prepare_params(params)

    # The module's Linear expects 8*bnc*7*7 features, which forces 224x224
    # spatial input (five stride-2 convs: 224 -> 112 -> 56 -> 28 -> 14 -> 7).
    x = jax.random.normal(jax.random.PRNGKey(0), (2, 3, 224, 224), jnp.float32)

    fwd = jax.jit(discriminator_forward)
    out = jax.block_until_ready(fwd(prep, x))
    assert out.shape == (2, 1), out.shape
    assert out.dtype == jnp.float32
    print("KERNEL_OK")
</pallas_src>

<mosaic_0001>
module attributes {stable_mosaic.version = 11 : i64} {
  func.func @_conv5x5_s2_kernel(%arg0: i32, %arg1: memref<1x228x2x3x114xbf16, #tpu.memory_space<vmem>>, %arg2: memref<25x8x3xbf16, #tpu.memory_space<vmem>>, %arg3: memref<8x1xf32, #tpu.memory_space<vmem>>, %arg4: memref<1x112x8x112xbf16, #tpu.memory_space<vmem>>) attributes {dimension_semantics = [#tpu.dimension_semantics<parallel>], iteration_bounds = array<i64: 2>, scalar_prefetch = 0 : i64, scratch_operands = 0 : i64, tpu.core_type = #tpu.core_type<tc>, window_params = [{transform_indices = @transform_0, window_bounds = array<i64: 1, 228, 2, 3, 114>}, {pipeline_mode = #tpu.pipeline_mode<synchronous>, transform_indices = @transform_1, window_bounds = array<i64: 25, 8, 3>}, {pipeline_mode = #tpu.pipeline_mode<synchronous>, transform_indices = @transform_2, window_bounds = array<i64: 8, 1>}, {transform_indices = @transform_3, window_bounds = array<i64: 1, 112, 8, 112>}]} {
    %c0 = arith.constant 0 : index
    %c0_0 = arith.constant 0 : index
    %0 = vector.load %arg3[%c0, %c0_0] : memref<8x1xf32, #tpu.memory_space<vmem>>, vector<8x1xf32>
    %c0_i32 = arith.constant 0 : i32
    %c112_i32 = arith.constant 112 : i32
    %1 = arith.addi %c0_i32, %c112_i32 : i32
    %c1_i32 = arith.constant 1 : i32
    scf.for %arg5 = %c0_i32 to %1 step %c1_i32  : i32 {
      %c2_i32 = arith.constant 2 : i32
      %2 = arith.muli %c2_i32, %arg5 : i32
      %c0_i32_2 = arith.constant 0 : i32
      %3 = arith.addi %2, %c0_i32_2 : i32
      %c0_3 = arith.constant 0 : index
      %4 = arith.index_cast %3 : i32 to index
      %c0_4 = arith.constant 0 : index
      %c0_5 = arith.constant 0 : index
      %c0_6 = arith.constant 0 : index
      %5 = vector.load %arg1[%c0_3, %4, %c0_4, %c0_5, %c0_6] : memref<1x228x2x3x114xbf16, #tpu.memory_space<vmem>>, vector<1x1x2x3x114xbf16>
      %6 = vector.shape_cast %5 : vector<1x1x2x3x114xbf16> to vector<2x3x114xbf16>
      %7 = vector.extract_strided_slice %6 {offsets = [0, 0, 0], sizes = [1, 3, 112], strides = [1, 1, 1]} : vector<2x3x114xbf16> to vector<1x3x112xbf16>
      %8 = vector.shape_cast %7 : vector<1x3x112xbf16> to vector<3x112xbf16>
      %c0_7 = arith.constant 0 : index
      %c0_8 = arith.constant 0 : index
      %c0_9 = arith.constant 0 : index
      %9 = vector.load %arg2[%c0_7, %c0_8, %c0_9] : memref<25x8x3xbf16, #tpu.memory_space<vmem>>, vector<1x8x3xbf16>
      %10 = vector.shape_cast %9 : vector<1x8x3xbf16> to vector<8x3xbf16>
      %cst = arith.constant dense<0.000000e+00> : vector<8x112xf32>
      %11 = tpu.matmul %10, %8, %cst {dimension_numbers = #tpu.dot_dimension_numbers<[1], [0], [0], [1], [0, 0, 1, 1], [], []>} : vector<8x3xbf16>, vector<3x112xbf16>, vector<8x112xf32> -> vector<8x112xf32>
      %12 = vector.extract_strided_slice %6 {offsets = [1, 0, 0], sizes = [1, 3, 112], strides = [1, 1, 1]} : vector<2x3x114xbf16> to vector<1x3x112xbf16>
      %13 = vector.shape_cast %12 : vector<1x3x112xbf16> to vector<3x112xbf16>
      %c1 = arith.constant 1 : index
      %c0_10 = arith.constant 0 : index
      %c0_11 = arith.constant 0 : index
      %14 = vector.load %arg2[%c1, %c0_10, %c0_11] : memref<25x8x3xbf16, #tpu.memory_space<vmem>>, vector<1x8x3xbf16>
      %15 = vector.shape_cast %14 : vector<1x8x3xbf16> to vector<8x3xbf16>
      %cst_12 = arith.constant dense<0.000000e+00> : vector<8x112xf32>
      %16 = tpu.matmul %15, %13, %cst_12 {dimension_numbers = #tpu.dot_dimension_numbers<[1], [0], [0], [1], [0, 0, 1, 1], [], []>} : vector<8x3xbf16>, vector<3x112xbf16>, vector<8x112xf32> -> vector<8x112xf32>
      %17 = arith.addf %11, %16 : vector<8x112xf32>
      %18 = vector.extract_strided_slice %6 {offsets = [0, 0, 1], sizes = [1, 3, 112], strides = [1, 1, 1]} : vector<2x3x114xbf16> to vector<1x3x112xbf16>
      %19 = vector.shape_cast %18 : vector<1x3x112xbf16> to vector<3x112xbf16>
      %c2 = arith.constant 2 : index
      %c0_13 = arith.constant 0 : index
      %c0_14 = arith.constant 0 : index
      %20 = vector.load %arg2[%c2, %c0_13, %c0_14] : memref<25x8x3xbf16, #tpu.memory_space<vmem>>, vector<1x8x3xbf16>
      %21 = vector.shape_cast %20 : vector<1x8x3xbf16> to vector<8x3xbf16>
      %cst_15 = arith.constant dense<0.000000e+00> : vector<8x112xf32>
      %22 = tpu.matmul %21, %19, %cst_15 {dimension_numbers = #tpu.dot_dimension_numbers<[1], [0], [0], [1], [0, 0, 1, 1], [], []>} : vector<8x3xbf16>, vector<3x112xbf16>, vector<8x112xf32> -> vector<8x112xf32>
      %23 = arith.addf %17, %22 : vector<8x112xf32>
      %24 = vector.extract_strided_slice %6 {offsets = [1, 0, 1], sizes = [1, 3, 112], strides = [1, 1, 1]} : vector<2x3x114xbf16> to vector<1x3x112xbf16>
      %25 = vector.shape_cast %24 : vector<1x3x112xbf16> to vector<3x112xbf16>
      %c3 = arith.constant 3 : index
      %c0_16 = arith.constant 0 : index
      %c0_17 = arith.constant 0 : index
      %26 = vector.load %arg2[%c3, %c0_16, %c0_17] : memref<25x8x3xbf16, #tpu.memory_space<vmem>>, vector<1x8x3xbf16>
      %27 = vector.shape_cast %26 : vector<1x8x3xbf16> to vector<8x3xbf16>
      %cst_18 = arith.constant dense<0.000000e+00> : vector<8x112xf32>
      %28 = tpu.matmul %27, %25, %cst_18 {dimension_numbers = #tpu.dot_dimension_numbers<[1], [0], [0], [1], [0, 0, 1, 1], [], []>} : vector<8x3xbf16>, vector<3x112xbf16>, vector<8x112xf32> -> vector<8x112xf32>
      %29 = arith.addf %23, %28 : vector<8x112xf32>
      %30 = vector.extract_strided_slice %6 {offsets = [0, 0, 2], sizes = [1, 3, 112], strides = [1, 1, 1]} : vector<2x3x114xbf16> to vector<1x3x112xbf16>
      %31 = vector.shape_cast %30 : vector<1x3x112xbf16> to vector<3x112xbf16>
      %c4 = arith.constant 4 : index
      %c0_19 = arith.constant 0 : index
      %c0_20 = arith.constant 0 : index
      %32 = vector.load %arg2[%c4, %c0_19, %c0_20] : memref<25x8x3xbf16, #tpu.memory_space<vmem>>, vector<1x8x3xbf16>
      %33 = vector.shape_cast %32 : vector<1x8x3xbf16> to vector<8x3xbf16>
      %cst_21 = arith.constant dense<0.000000e+00> : vector<8x112xf32>
      %34 = tpu.matmul %33, %31, %cst_21 {dimension_numbers = #tpu.dot_dimension_numbers<[1], [0], [0], [1], [0, 0, 1, 1], [], []>} : vector<8x3xbf16>, vector<3x112xbf16>, vector<8x112xf32> -> vector<8x112xf32>
      %35 = arith.addf %29, %34 : vector<8x112xf32>
      %c2_i32_22 = arith.constant 2 : i32
      %36 = arith.muli %c2_i32_22, %arg5 : i32
      %c1_i32_23 = arith.constant 1 : i32
      %37 = arith.addi %36, %c1_i32_23 : i32
      %c0_24 = arith.constant 0 : index
      %38 = arith.index_cast %37 : i32 to index
      %c0_25 = arith.constant 0 : index
      %c0_26 = arith.constant 0 : index
      %c0_27 = arith.constant 0 : index
      %39 = vector.load %arg1[%c0_24, %38, %c0_25, %c0_26, %c0_27] : memref<1x228x2x3x114xbf16, #tpu.memory_space<vmem>>, vector<1x1x2x3x114xbf16>
      %40 = vector.shape_cast %39 : vector<1x1x2x3x114xbf16> to vector<2x3x114xbf16>
      %41 = vector.extract_strided_slice %40 {offsets = [0, 0, 0], sizes = [1, 3, 112], strides = [1, 1, 1]} : vector<2x3x114xbf16> to vector<1x3x112xbf16>
      %42 = vector.shape_cast %41 : vector<1x3x112xbf16> to vector<3x112xbf16>
      %c5 = arith.constant 5 : index
      %c0_28 = arith.constant 0 : index
      %c0_29 = arith.constant 0 : index
      %43 = vector.load %arg2[%c5, %c0_28, %c0_29] : memref<25x8x3xbf16, #tpu.memory_space<vmem>>, vector<1x8x3xbf16>
      %44 = vector.shape_cast %43 : vector<1x8x3xbf16> to vector<8x3xbf16>
      %cst_30 = arith.constant dense<0.000000e+00> : vector<8x112xf32>
      %45 = tpu.matmul %44, %42, %cst_30 {dimension_numbers = #tpu.dot_dimension_numbers<[1], [0], [0], [1], [0, 0, 1, 1], [], []>} : vector<8x3xbf16>, vector<3x112xbf16>, vector<8x112xf32> -> vector<8x112xf32>
      %46 = arith.addf %35, %45 : vector<8x112xf32>
      %47 = vector.extract_strided_slice %40 {offsets = [1, 0, 0], sizes = [1, 3, 112], strides = [1, 1, 1]} : vector<2x3x114xbf16> to vector<1x3x112xbf16>
      %48 = vector.shape_cast %47 : vector<1x3x112xbf16> to vector<3x112xbf16>
      %c6 = arith.constant 6 : index
      %c0_31 = arith.constant 0 : index
      %c0_32 = arith.constant 0 : index
      %49 = vector.load %arg2[%c6, %c0_31, %c0_32] : memref<25x8x3xbf16, #tpu.memory_space<vmem>>, vector<1x8x3xbf16>
      %50 = vector.shape_cast %49 : vector<1x8x3xbf16> to vector<8x3xbf16>
      %cst_33 = arith.constant dense<0.000000e+00> : vector<8x112xf32>
      %51 = tpu.matmul %50, %48, %cst_33 {dimension_numbers = #tpu.dot_dimension_numbers<[1], [0], [0], [1], [0, 0, 1, 1], [], []>} : vector<8x3xbf16>, vector<3x112xbf16>, vector<8x112xf32> -> vector<8x112xf32>
      %52 = arith.addf %46, %51 : vector<8x112xf32>
      %53 = vector.extract_strided_slice %40 {offsets = [0, 0, 1], sizes = [1, 3, 112], strides = [1, 1, 1]} : vector<2x3x114xbf16> to vector<1x3x112xbf16>
      %54 = vector.shape_cast %53 : vector<1x3x112xbf16> to vector<3x112xbf16>
      %c7 = arith.constant 7 : index
      %c0_34 = arith.constant 0 : index
      %c0_35 = arith.constant 0 : index
      %55 = vector.load %arg2[%c7, %c0_34, %c0_35] : memref<25x8x3xbf16, #tpu.memory_space<vmem>>, vector<1x8x3xbf16>
      %56 = vector.shape_cast %55 : vector<1x8x3xbf16> to vector<8x3xbf16>
      %cst_36 = arith.constant dense<0.000000e+00> : vector<8x112xf32>
      %57 = tpu.matmul %56, %54, %cst_36 {dimension_numbers = #tpu.dot_dimension_numbers<[1], [0], [0], [1], [0, 0, 1, 1], [], []>} : vector<8x3xbf16>, vector<3x112xbf16>, vector<8x112xf32> -> vector<8x112xf32>
      %58 = arith.addf %52, %57 : vector<8x112xf32>
      %59 = vector.extract_strided_slice %40 {offsets = [1, 0, 1], sizes = [1, 3, 112], strides = [1, 1, 1]} : vector<2x3x114xbf16> to vector<1x3x112xbf16>
      %60 = vector.shape_cast %59 : vector<1x3x112xbf16> to vector<3x112xbf16>
      %c8 = arith.constant 8 : index
      %c0_37 = arith.constant 0 : index
      %c0_38 = arith.constant 0 : index
      %61 = vector.load %arg2[%c8, %c0_37, %c0_38] : memref<25x8x3xbf16, #tpu.memory_space<vmem>>, vector<1x8x3xbf16>
      %62 = vector.shape_cast %61 : vector<1x8x3xbf16> to vector<8x3xbf16>
      %cst_39 = arith.constant dense<0.000000e+00> : vector<8x112xf32>
      %63 = tpu.matmul %62, %60, %cst_39 {dimension_numbers = #tpu.dot_dimension_numbers<[1], [0], [0], [1], [0, 0, 1, 1], [], []>} : vector<8x3xbf16>, vector<3x112xbf16>, vector<8x112xf32> -> vector<8x112xf32>
      %64 = arith.addf %58, %63 : vector<8x112xf32>
      %65 = vector.extract_strided_slice %40 {offsets = [0, 0, 2], sizes = [1, 3, 112], strides = [1, 1, 1]} : vector<2x3x114xbf16> to vector<1x3x112xbf16>
      %66 = vector.shape_cast %65 : vector<1x3x112xbf16> to vector<3x112xbf16>
      %c9 = arith.constant 9 : index
      %c0_40 = arith.constant 0 : index
      %c0_41 = arith.constant 0 : index
      %67 = vector.load %arg2[%c9, %c0_40, %c0_41] : memref<25x8x3xbf16, #tpu.memory_space<vmem>>, vector<1x8x3xbf16>
      %68 = vector.shape_cast %67 : vector<1x8x3xbf16> to vector<8x3xbf16>
      %cst_42 = arith.constant dense<0.000000e+00> : vector<8x112xf32>
      %69 = tpu.matmul %68, %66, %cst_42 {dimension_numbers = #tpu.dot_dimension_numbers<[1], [0], [0], [1], [0, 0, 1, 1], [], []>} : vector<8x3xbf16>, vector<3x112xbf16>, vector<8x112xf32> -> vector<8x112xf32>
      %70 = arith.addf %64, %69 : vector<8x112xf32>
      %c2_i32_43 = arith.constant 2 : i32
      %71 = arith.muli %c2_i32_43, %arg5 : i32
      %c2_i32_44 = arith.constant 2 : i32
      %72 = arith.addi %71, %c2_i32_44 : i32
      %c0_45 = arith.constant 0 : index
      %73 = arith.index_cast %72 : i32 to index
      %c0_46 = arith.constant 0 : index
      %c0_47 = arith.constant 0 : index
      %c0_48 = arith.constant 0 : index
      %74 = vector.load %arg1[%c0_45, %73, %c0_46, %c0_47, %c0_48] : memref<1x228x2x3x114xbf16, #tpu.memory_space<vmem>>, vector<1x1x2x3x114xbf16>
      %75 = vector.shape_cast %74 : vector<1x1x2x3x114xbf16> to vector<2x3x114xbf16>
      %76 = vector.extract_strided_slice %75 {offsets = [0, 0, 0], sizes = [1, 3, 112], strides = [1, 1, 1]} : vector<2x3x114xbf16> to vector<1x3x112xbf16>
      %77 = vector.shape_cast %76 : vector<1x3x112xbf16> to vector<3x112xbf16>
      %c10 = arith.constant 10 : index
      %c0_49 = arith.constant 0 : index
      %c0_50 = arith.constant 0 : index
      %78 = vector.load %arg2[%c10, %c0_49, %c0_50] : memref<25x8x3xbf16, #tpu.memory_space<vmem>>, vector<1x8x3xbf16>
      %79 = vector.shape_cast %78 : vector<1x8x3xbf16> to vector<8x3xbf16>
      %cst_51 = arith.constant dense<0.000000e+00> : vector<8x112xf32>
      %80 = tpu.matmul %79, %77, %cst_51 {dimension_numbers = #tpu.dot_dimension_numbers<[1], [0], [0], [1], [0, 0, 1, 1], [], []>} : vector<8x3xbf16>, vector<3x112xbf16>, vector<8x112xf32> -> vector<8x112xf32>
      %81 = arith.addf %70, %80 : vector<8x112xf32>
      %82 = vector.extract_strided_slice %75 {offsets = [1, 0, 0], sizes = [1, 3, 112], strides = [1, 1, 1]} : vector<2x3x114xbf16> to vector<1x3x112xbf16>
      %83 = vector.shape_cast %82 : vector<1x3x112xbf16> to vector<3x112xbf16>
      %c11 = arith.constant 11 : index
      %c0_52 = arith.constant 0 : index
      %c0_53 = arith.constant 0 : index
      %84 = vector.load %arg2[%c11, %c0_52, %c0_53] : memref<25x8x3xbf16, #tpu.memory_space<vmem>>, vector<1x8x3xbf16>
      %85 = vector.shape_cast %84 : vector<1x8x3xbf16> to vector<8x3xbf16>
      %cst_54 = arith.constant dense<0.000000e+00> : vector<8x112xf32>
      %86 = tpu.matmul %85, %83, %cst_54 {dimension_numbers = #tpu.dot_dimension_numbers<[1], [0], [0], [1], [0, 0, 1, 1], [], []>} : vector<8x3xbf16>, vector<3x112xbf16>, vector<8x112xf32> -> vector<8x112xf32>
      %87 = arith.addf %81, %86 : vector<8x112xf32>
      %88 = vector.extract_strided_slice %75 {offsets = [0, 0, 1], sizes = [1, 3, 112], strides = [1, 1, 1]} : vector<2x3x114xbf16> to vector<1x3x112xbf16>
      %89 = vector.shape_cast %88 : vector<1x3x112xbf16> to vector<3x112xbf16>
      %c12 = arith.constant 12 : index
      %c0_55 = arith.constant 0 : index
      %c0_56 = arith.constant 0 : index
      %90 = vector.load %arg2[%c12, %c0_55, %c0_56] : memref<25x8x3xbf16, #tpu.memory_space<vmem>>, vector<1x8x3xbf16>
      %91 = vector.shape_cast %90 : vector<1x8x3xbf16> to vector<8x3xbf16>
      %cst_57 = arith.constant dense<0.000000e+00> : vector<8x112xf32>
      %92 = tpu.matmul %91, %89, %cst_57 {dimension_numbers = #tpu.dot_dimension_numbers<[1], [0], [0], [1], [0, 0, 1, 1], [], []>} : vector<8x3xbf16>, vector<3x112xbf16>, vector<8x112xf32> -> vector<8x112xf32>
      %93 = arith.addf %87, %92 : vector<8x112xf32>
      %94 = vector.extract_strided_slice %75 {offsets = [1, 0, 1], sizes = [1, 3, 112], strides = [1, 1, 1]} : vector<2x3x114xbf16> to vector<1x3x112xbf16>
      %95 = vector.shape_cast %94 : vector<1x3x112xbf16> to vector<3x112xbf16>
      %c13 = arith.constant 13 : index
      %c0_58 = arith.constant 0 : index
      %c0_59 = arith.constant 0 : index
      %96 = vector.load %arg2[%c13, %c0_58, %c0_59] : memref<25x8x3xbf16, #tpu.memory_space<vmem>>, vector<1x8x3xbf16>
      %97 = vector.shape_cast %96 : vector<1x8x3xbf16> to vector<8x3xbf16>
      %cst_60 = arith.constant dense<0.000000e+00> : vector<8x112xf32>
      %98 = tpu.matmul %97, %95, %cst_60 {dimension_numbers = #tpu.dot_dimension_numbers<[1], [0], [0], [1], [0, 0, 1, 1], [], []>} : vector<8x3xbf16>, vector<3x112xbf16>, vector<8x112xf32> -> vector<8x112xf32>
      %99 = arith.addf %93, %98 : vector<8x112xf32>
      %100 = vector.extract_strided_slice %75 {offsets = [0, 0, 2], sizes = [1, 3, 112], strides = [1, 1, 1]} : vector<2x3x114xbf16> to vector<1x3x112xbf16>
      %101 = vector.shape_cast %100 : vector<1x3x112xbf16> to vector<3x112xbf16>
      %c14 = arith.constant 14 : index
      %c0_61 = arith.constant 0 : index
      %c0_62 = arith.constant 0 : index
      %102 = vector.load %arg2[%c14, %c0_61, %c0_62] : memref<25x8x3xbf16, #tpu.memory_space<vmem>>, vector<1x8x3xbf16>
      %103 = vector.shape_cast %102 : vector<1x8x3xbf16> to vector<8x3xbf16>
      %cst_63 = arith.constant dense<0.000000e+00> : vector<8x112xf32>
      %104 = tpu.matmul %103, %101, %cst_63 {dimension_numbers = #tpu.dot_dimension_numbers<[1], [0], [0], [1], [0, 0, 1, 1], [], []>} : vector<8x3xbf16>, vector<3x112xbf16>, vector<8x112xf32> -> vector<8x112xf32>
      %105 = arith.addf %99, %104 : vector<8x112xf32>
      %c2_i32_64 = arith.constant 2 : i32
      %106 = arith.muli %c2_i32_64, %arg5 : i32
      %c3_i32 = arith.constant 3 : i32
      %107 = arith.addi %106, %c3_i32 : i32
      %c0_65 = arith.constant 0 : index
      %108 = arith.index_cast %107 : i32 to index
      %c0_66 = arith.constant 0 : index
      %c0_67 = arith.constant 0 : index
      %c0_68 = arith.constant 0 : index
      %109 = vector.load %arg1[%c0_65, %108, %c0_66, %c0_67, %c0_68] : memref<1x228x2x3x114xbf16, #tpu.memory_space<vmem>>, vector<1x1x2x3x114xbf16>
      %110 = vector.shape_cast %109 : vector<1x1x2x3x114xbf16> to vector<2x3x114xbf16>
      %111 = vector.extract_strided_slice %110 {offsets = [0, 0, 0], sizes = [1, 3, 112], strides = [1, 1, 1]} : vector<2x3x114xbf16> to vector<1x3x112xbf16>
      %112 = vector.shape_cast %111 : vector<1x3x112xbf16> to vector<3x112xbf16>
      %c15 = arith.constant 15 : index
      %c0_69 = arith.constant 0 : index
      %c0_70 = arith.constant 0 : index
      %113 = vector.load %arg2[%c15, %c0_69, %c0_70] : memref<25x8x3xbf16, #tpu.memory_space<vmem>>, vector<1x8x3xbf16>
      %114 = vector.shape_cast %113 : vector<1x8x3xbf16> to vector<8x3xbf16>
      %cst_71 = arith.constant dense<0.000000e+00> : vector<8x112xf32>
      %115 = tpu.matmul %114, %112, %cst_71 {dimension_numbers = #tpu.dot_dimension_numbers<[1], [0], [0], [1], [0, 0, 1, 1], [], []>} : vector<8x3xbf16>, vector<3x112xbf16>, vector<8x112xf32> -> vector<8x112xf32>
      %116 = arith.addf %105, %115 : vector<8x112xf32>
      %117 = vector.extract_strided_slice %110 {offsets = [1, 0, 0], sizes = [1, 3, 112], strides = [1, 1, 1]} : vector<2x3x114xbf16> to vector<1x3x112xbf16>
      %118 = vector.shape_cast %117 : vector<1x3x112xbf16> to vector<3x112xbf16>
      %c16 = arith.constant 16 : index
      %c0_72 = arith.constant 0 : index
      %c0_73 = arith.constant 0 : index
      %119 = vector.load %arg2[%c16, %c0_72, %c0_73] : memref<25x8x3xbf16, #tpu.memory_space<vmem>>, vector<1x8x3xbf16>
      %120 = vector.shape_cast %119 : vector<1x8x3xbf16> to vector<8x3xbf16>
      %cst_74 = arith.constant dense<0.000000e+00> : vector<8x112xf32>
      %121 = tpu.matmul %120, %118, %cst_74 {dimension_numbers = #tpu.dot_dimension_numbers<[1], [0], [0], [1], [0, 0, 1, 1], [], []>} : vector<8x3xbf16>, vector<3x112xbf16>, vector<8x112xf32> -> vector<8x112xf32>
      %122 = arith.addf %116, %121 : vector<8x112xf32>
      %123 = vector.extract_strided_slice %110 {offsets = [0, 0, 1], sizes = [1, 3, 112], strides = [1, 1, 1]} : vector<2x3x114xbf16> to vector<1x3x112xbf16>
      %124 = vector.shape_cast %123 : vector<1x3x112xbf16> to vector<3x112xbf16>
      %c17 = arith.constant 17 : index
      %c0_75 = arith.constant 0 : index
      %c0_76 = arith.constant 0 : index
      %125 = vector.load %arg2[%c17, %c0_75, %c0_76] : memref<25x8x3xbf16, #tpu.memory_space<vmem>>, vector<1x8x3xbf16>
      %126 = vector.shape_cast %125 : vector<1x8x3xbf16> to vector<8x3xbf16>
      %cst_77 = arith.constant dense<0.000000e+00> : vector<8x112xf32>
      %127 = tpu.matmul %126, %124, %cst_77 {dimension_numbers = #tpu.dot_dimension_numbers<[1], [0], [0], [1], [0, 0, 1, 1], [], []>} : vector<8x3xbf16>, vector<3x112xbf16>, vector<8x112xf32> -> vector<8x112xf32>
      %128 = arith.addf %122, %127 : vector<8x112xf32>
      %129 = vector.extract_strided_slice %110 {offsets = [1, 0, 1], sizes = [1, 3, 112], strides = [1, 1, 1]} : vector<2x3x114xbf16> to vector<1x3x112xbf16>
      %130 = vector.shape_cast %129 : vector<1x3x112xbf16> to vector<3x112xbf16>
      %c18 = arith.constant 18 : index
      %c0_78 = arith.constant 0 : index
      %c0_79 = arith.constant 0 : index
      %131 = vector.load %arg2[%c18, %c0_78, %c0_79] : memref<25x8x3xbf16, #tpu.memory_space<vmem>>, vector<1x8x3xbf16>
      %132 = vector.shape_cast %131 : vector<1x8x3xbf16> to vector<8x3xbf16>
      %cst_80 = arith.constant dense<0.000000e+00> : vector<8x112xf32>
      %133 = tpu.matmul %132, %130, %cst_80 {dimension_numbers = #tpu.dot_dimension_numbers<[1], [0], [0], [1], [0, 0, 1, 1], [], []>} : vector<8x3xbf16>, vector<3x112xbf16>, vector<8x112xf32> -> vector<8x112xf32>
      %134 = arith.addf %128, %133 : vector<8x112xf32>
      %135 = vector.extract_strided_slice %110 {offsets = [0, 0, 2], sizes = [1, 3, 112], strides = [1, 1, 1]} : vector<2x3x114xbf16> to vector<1x3x112xbf16>
      %136 = vector.shape_cast %135 : vector<1x3x112xbf16> to vector<3x112xbf16>
      %c19 = arith.constant 19 : index
      %c0_81 = arith.constant 0 : index
      %c0_82 = arith.constant 0 : index
      %137 = vector.load %arg2[%c19, %c0_81, %c0_82] : memref<25x8x3xbf16, #tpu.memory_space<vmem>>, vector<1x8x3xbf16>
      %138 = vector.shape_cast %137 : vector<1x8x3xbf16> to vector<8x3xbf16>
      %cst_83 = arith.constant dense<0.000000e+00> : vector<8x112xf32>
      %139 = tpu.matmul %138, %136, %cst_83 {dimension_numbers = #tpu.dot_dimension_numbers<[1], [0], [0], [1], [0, 0, 1, 1], [], []>} : vector<8x3xbf16>, vector<3x112xbf16>, vector<8x112xf32> -> vector<8x112xf32>
      %140 = arith.addf %134, %139 : vector<8x112xf32>
      %c2_i32_84 = arith.constant 2 : i32
      %141 = arith.muli %c2_i32_84, %arg5 : i32
      %c4_i32 = arith.constant 4 : i32
      %142 = arith.addi %141, %c4_i32 : i32
      %c0_85 = arith.constant 0 : index
      %143 = arith.index_cast %142 : i32 to index
      %c0_86 = arith.constant 0 : index
      %c0_87 = arith.constant 0 : index
      %c0_88 = arith.constant 0 : index
      %144 = vector.load %arg1[%c0_85, %143, %c0_86, %c0_87, %c0_88] : memref<1x228x2x3x114xbf16, #tpu.memory_space<vmem>>, vector<1x1x2x3x114xbf16>
      %145 = vector.shape_cast %144 : vector<1x1x2x3x114xbf16> to vector<2x3x114xbf16>
      %146 = vector.extract_strided_slice %145 {offsets = [0, 0, 0], sizes = [1, 3, 112], strides = [1, 1, 1]} : vector<2x3x114xbf16> to vector<1x3x112xbf16>
      %147 = vector.shape_cast %146 : vector<1x3x112xbf16> to vector<3x112xbf16>
      %c20 = arith.constant 20 : index
      %c0_89 = arith.constant 0 : index
      %c0_90 = arith.constant 0 : index
      %148 = vector.load %arg2[%c20, %c0_89, %c0_90] : memref<25x8x3xbf16, #tpu.memory_space<vmem>>, vector<1x8x3xbf16>
      %149 = vector.shape_cast %148 : vector<1x8x3xbf16> to vector<8x3xbf16>
      %cst_91 = arith.constant dense<0.000000e+00> : vector<8x112xf32>
      %150 = tpu.matmul %149, %147, %cst_91 {dimension_numbers = #tpu.dot_dimension_numbers<[1], [0], [0], [1], [0, 0, 1, 1], [], []>} : vector<8x3xbf16>, vector<3x112xbf16>, vector<8x112xf32> -> vector<8x112xf32>
      %151 = arith.addf %140, %150 : vector<8x112xf32>
      %152 = vector.extract_strided_slice %145 {offsets = [1, 0, 0], sizes = [1, 3, 112], strides = [1, 1, 1]} : vector<2x3x114xbf16> to vector<1x3x112xbf16>
      %153 = vector.shape_cast %152 : vector<1x3x112xbf16> to vector<3x112xbf16>
      %c21 = arith.constant 21 : index
      %c0_92 = arith.constant 0 : index
      %c0_93 = arith.constant 0 : index
      %154 = vector.load %arg2[%c21, %c0_92, %c0_93] : memref<25x8x3xbf16, #tpu.memory_space<vmem>>, vector<1x8x3xbf16>
      %155 = vector.shape_cast %154 : vector<1x8x3xbf16> to vector<8x3xbf16>
      %cst_94 = arith.constant dense<0.000000e+00> : vector<8x112xf32>
      %156 = tpu.matmul %155, %153, %cst_94 {dimension_numbers = #tpu.dot_dimension_numbers<[1], [0], [0], [1], [0, 0, 1, 1], [], []>} : vector<8x3xbf16>, vector<3x112xbf16>, vector<8x112xf32> -> vector<8x112xf32>
      %157 = arith.addf %151, %156 : vector<8x112xf32>
      %158 = vector.extract_strided_slice %145 {offsets = [0, 0, 1], sizes = [1, 3, 112], strides = [1, 1, 1]} : vector<2x3x114xbf16> to vector<1x3x112xbf16>
      %159 = vector.shape_cast %158 : vector<1x3x112xbf16> to vector<3x112xbf16>
      %c22 = arith.constant 22 : index
      %c0_95 = arith.constant 0 : index
      %c0_96 = arith.constant 0 : index
      %160 = vector.load %arg2[%c22, %c0_95, %c0_96] : memref<25x8x3xbf16, #tpu.memory_space<vmem>>, vector<1x8x3xbf16>
      %161 = vector.shape_cast %160 : vector<1x8x3xbf16> to vector<8x3xbf16>
      %cst_97 = arith.constant dense<0.000000e+00> : vector<8x112xf32>
      %162 = tpu.matmul %161, %159, %cst_97 {dimension_numbers = #tpu.dot_dimension_numbers<[1], [0], [0], [1], [0, 0, 1, 1], [], []>} : vector<8x3xbf16>, vector<3x112xbf16>, vector<8x112xf32> -> vector<8x112xf32>
      %163 = arith.addf %157, %162 : vector<8x112xf32>
      %164 = vector.extract_strided_slice %145 {offsets = [1, 0, 1], sizes = [1, 3, 112], strides = [1, 1, 1]} : vector<2x3x114xbf16> to vector<1x3x112xbf16>
      %165 = vector.shape_cast %164 : vector<1x3x112xbf16> to vector<3x112xbf16>
      %c23 = arith.constant 23 : index
      %c0_98 = arith.constant 0 : index
      %c0_99 = arith.constant 0 : index
      %166 = vector.load %arg2[%c23, %c0_98, %c0_99] : memref<25x8x3xbf16, #tpu.memory_space<vmem>>, vector<1x8x3xbf16>
      %167 = vector.shape_cast %166 : vector<1x8x3xbf16> to vector<8x3xbf16>
      %cst_100 = arith.constant dense<0.000000e+00> : vector<8x112xf32>
      %168 = tpu.matmul %167, %165, %cst_100 {dimension_numbers = #tpu.dot_dimension_numbers<[1], [0], [0], [1], [0, 0, 1, 1], [], []>} : vector<8x3xbf16>, vector<3x112xbf16>, vector<8x112xf32> -> vector<8x112xf32>
      %169 = arith.addf %163, %168 : vector<8x112xf32>
      %170 = vector.extract_strided_slice %145 {offsets = [0, 0, 2], sizes = [1, 3, 112], strides = [1, 1, 1]} : vector<2x3x114xbf16> to vector<1x3x112xbf16>
      %171 = vector.shape_cast %170 : vector<1x3x112xbf16> to vector<3x112xbf16>
      %c24 = arith.constant 24 : index
      %c0_101 = arith.constant 0 : index
      %c0_102 = arith.constant 0 : index
      %172 = vector.load %arg2[%c24, %c0_101, %c0_102] : memref<25x8x3xbf16, #tpu.memory_space<vmem>>, vector<1x8x3xbf16>
      %173 = vector.shape_cast %172 : vector<1x8x3xbf16> to vector<8x3xbf16>
      %cst_103 = arith.constant dense<0.000000e+00> : vector<8x112xf32>
      %174 = tpu.matmul %173, %171, %cst_103 {dimension_numbers = #tpu.dot_dimension_numbers<[1], [0], [0], [1], [0, 0, 1, 1], [], []>} : vector<8x3xbf16>, vector<3x112xbf16>, vector<8x112xf32> -> vector<8x112xf32>
      %175 = arith.addf %169, %174 : vector<8x112xf32>
      %176 = vector.broadcast %0 : vector<8x1xf32> to vector<8x112xf32>
      %177 = arith.addf %175, %176 : vector<8x112xf32>
      %cst_104 = arith.constant 0.000000e+00 : f32
      %178 = vector.broadcast %cst_104 : f32 to vector<8x112xf32>
      %179 = arith.cmpf oge, %177, %178 : vector<8x112xf32>
      %cst_105 = arith.constant 2.000000e-01 : f32
      %180 = vector.broadcast %cst_105 : f32 to vector<8x112xf32>
      %181 = arith.mulf %180, %177 : vector<8x112xf32>
      %182 = arith.select %179, %177, %181 : vector<8x112xi1>, vector<8x112xf32>
      %183 = arith.truncf %182 : vector<8x112xf32> to vector<8x112xbf16>
      %c0_106 = arith.constant 0 : index
      %184 = arith.index_cast %arg5 : i32 to index
      %c0_107 = arith.constant 0 : index
      %c0_108 = arith.constant 0 : index
      %185 = vector.load %arg4[%c0_106, %184, %c0_107, %c0_108] : memref<1x112x8x112xbf16, #tpu.memory_space<vmem>>, vector<1x1x8x112xbf16>
      %186 = vector.shape_cast %185 : vector<1x1x8x112xbf16> to vector<8x112xbf16>
      %187 = vector.shape_cast %183 : vector<8x112xbf16> to vector<1x1x8x112xbf16>
      tpu.vector_store %arg4[%c0_106, %184, %c0_107, %c0_108], %187 {strides = array<i32>} : memref<1x112x8x112xbf16, #tpu.memory_space<vmem>>, vector<1x1x8x112xbf16>,
    }
    %c112_i32_1 = arith.constant 112 : i32
    return
  }
  func.func @transform_0(%arg0: i32) -> (i32, i32, i32, i32, i32) {
    %c0_i32 = arith.constant 0 : i32
    %c0_i32_0 = arith.constant 0 : i32
    %c0_i32_1 = arith.constant 0 : i32
    %c0_i32_2 = arith.constant 0 : i32
    %c0_i32_3 = arith.constant 0 : i32
    return %arg0, %c0_i32, %c0_i32_0, %c0_i32_1, %c0_i32_2 : i32, i32, i32, i32, i32
  }
  func.func @transform_1(%arg0: i32) -> (i32, i32, i32) {
    %c0_i32 = arith.constant 0 : i32
    %c0_i32_0 = arith.constant 0 : i32
    %c0_i32_1 = arith.constant 0 : i32
    %c0_i32_2 = arith.constant 0 : i32
    return %c0_i32, %c0_i32_0, %c0_i32_1 : i32, i32, i32
  }
  func.func @transform_2(%arg0: i32) -> (i32, i32) {
    %c0_i32 = arith.constant 0 : i32
    %c0_i32_0 = arith.constant 0 : i32
    %c0_i32_1 = arith.constant 0 : i32
    return %c0_i32, %c0_i32_0 : i32, i32
  }
  func.func @transform_3(%arg0: i32) -> (i32, i32, i32, i32) {
    %c0_i32 = arith.constant 0 : i32
    %c0_i32_0 = arith.constant 0 : i32
    %c0_i32_1 = arith.constant 0 : i32
    %c0_i32_2 = arith.constant 0 : i32
    return %arg0, %c0_i32, %c0_i32_0, %c0_i32_1 : i32, i32, i32, i32
  }
}

module attributes {stable_mosaic.version = 11 : i64} {
  func.func @_conv5x5_s2_kernel(%arg0: i32, %arg1: memref<1x116x2x8x58xbf16, #tpu.memory_space<vmem>>, %arg2: memref<25x16x8xbf16, #tpu.memory_space<vmem>>, %arg3: memref<16x1xf32, #tpu.memory_space<vmem>>, %arg4: memref<1x56x16x56xbf16, #tpu.memory_space<vmem>>) attributes {dimension_semantics = [#tpu.dimension_semantics<parallel>], iteration_bounds = array<i64: 2>, scalar_prefetch = 0 : i64, scratch_operands = 0 : i64, tpu.core_type = #tpu.core_type<tc>, window_params = [{transform_indices = @transform_0, window_bounds = array<i64: 1, 116, 2, 8, 58>}, {pipeline_mode = #tpu.pipeline_mode<synchronous>, transform_indices = @transform_1, window_bounds = array<i64: 25, 16, 8>}, {pipeline_mode = #tpu.pipeline_mode<synchronous>, transform_indices = @transform_2, window_bounds = array<i64: 16, 1>}, {transform_indices = @transform_3, window_bounds = array<i64: 1, 56, 16, 56>}]} {
    %c0 = arith.constant 0 : index
    %c0_0 = arith.constant 0 : index
    %0 = vector.load %arg3[%c0, %c0_0] : memref<16x1xf32, #tpu.memory_space<vmem>>, vector<16x1xf32>
    %c0_i32 = arith.constant 0 : i32
    %c56_i32 = arith.constant 56 : i32
    %1 = arith.addi %c0_i32, %c56_i32 : i32
    %c1_i32 = arith.constant 1 : i32
    scf.for %arg5 = %c0_i32 to %1 step %c1_i32  : i32 {
      %c2_i32 = arith.constant 2 : i32
      %2 = arith.muli %c2_i32, %arg5 : i32
      %c0_i32_2 = arith.constant 0 : i32
      %3 = arith.addi %2, %c0_i32_2 : i32
      %c0_3 = arith.constant 0 : index
      %4 = arith.index_cast %3 : i32 to index
      %c0_4 = arith.constant 0 : index
      %c0_5 = arith.constant 0 : index
      %c0_6 = arith.constant 0 : index
      %5 = vector.load %arg1[%c0_3, %4, %c0_4, %c0_5, %c0_6] : memref<1x116x2x8x58xbf16, #tpu.memory_space<vmem>>, vector<1x1x2x8x58xbf16>
      %6 = vector.shape_cast %5 : vector<1x1x2x8x58xbf16> to vector<2x8x58xbf16>
      %7 = vector.extract_strided_slice %6 {offsets = [0, 0, 0], sizes = [1, 8, 56], strides = [1, 1, 1]} : vector<2x8x58xbf16> to vector<1x8x56xbf16>
      %8 = vector.shape_cast %7 : vector<1x8x56xbf16> to vector<8x56xbf16>
      %c0_7 = arith.constant 0 : index
      %c0_8 = arith.constant 0 : index
      %c0_9 = arith.constant 0 : index
      %9 = vector.load %arg2[%c0_7, %c0_8, %c0_9] : memref<25x16x8xbf16, #tpu.memory_space<vmem>>, vector<1x16x8xbf16>
      %10 = vector.shape_cast %9 : vector<1x16x8xbf16> to vector<16x8xbf16>
      %cst = arith.constant dense<0.000000e+00> : vector<16x56xf32>
      %11 = tpu.matmul %10, %8, %cst {dimension_numbers = #tpu.dot_dimension_numbers<[1], [0], [0], [1], [0, 0, 1, 1], [], []>} : vector<16x8xbf16>, vector<8x56xbf16>, vector<16x56xf32> -> vector<16x56xf32>
      %12 = vector.extract_strided_slice %6 {offsets = [1, 0, 0], sizes = [1, 8, 56], strides = [1, 1, 1]} : vector<2x8x58xbf16> to vector<1x8x56xbf16>
      %13 = vector.shape_cast %12 : vector<1x8x56xbf16> to vector<8x56xbf16>
      %c1 = arith.constant 1 : index
      %c0_10 = arith.constant 0 : index
      %c0_11 = arith.constant 0 : index
      %14 = vector.load %arg2[%c1, %c0_10, %c0_11] : memref<25x16x8xbf16, #tpu.memory_space<vmem>>, vector<1x16x8xbf16>
      %15 = vector.shape_cast %14 : vector<1x16x8xbf16> to vector<16x8xbf16>
      %cst_12 = arith.constant dense<0.000000e+00> : vector<16x56xf32>
      %16 = tpu.matmul %15, %13, %cst_12 {dimension_numbers = #tpu.dot_dimension_numbers<[1], [0], [0], [1], [0, 0, 1, 1], [], []>} : vector<16x8xbf16>, vector<8x56xbf16>, vector<16x56xf32> -> vector<16x56xf32>
      %17 = arith.addf %11, %16 : vector<16x56xf32>
      %18 = vector.extract_strided_slice %6 {offsets = [0, 0, 1], sizes = [1, 8, 56], strides = [1, 1, 1]} : vector<2x8x58xbf16> to vector<1x8x56xbf16>
      %19 = vector.shape_cast %18 : vector<1x8x56xbf16> to vector<8x56xbf16>
      %c2 = arith.constant 2 : index
      %c0_13 = arith.constant 0 : index
      %c0_14 = arith.constant 0 : index
      %20 = vector.load %arg2[%c2, %c0_13, %c0_14] : memref<25x16x8xbf16, #tpu.memory_space<vmem>>, vector<1x16x8xbf16>
      %21 = vector.shape_cast %20 : vector<1x16x8xbf16> to vector<16x8xbf16>
      %cst_15 = arith.constant dense<0.000000e+00> : vector<16x56xf32>
      %22 = tpu.matmul %21, %19, %cst_15 {dimension_numbers = #tpu.dot_dimension_numbers<[1], [0], [0], [1], [0, 0, 1, 1], [], []>} : vector<16x8xbf16>, vector<8x56xbf16>, vector<16x56xf32> -> vector<16x56xf32>
      %23 = arith.addf %17, %22 : vector<16x56xf32>
      %24 = vector.extract_strided_slice %6 {offsets = [1, 0, 1], sizes = [1, 8, 56], strides = [1, 1, 1]} : vector<2x8x58xbf16> to vector<1x8x56xbf16>
      %25 = vector.shape_cast %24 : vector<1x8x56xbf16> to vector<8x56xbf16>
      %c3 = arith.constant 3 : index
      %c0_16 = arith.constant 0 : index
      %c0_17 = arith.constant 0 : index
      %26 = vector.load %arg2[%c3, %c0_16, %c0_17] : memref<25x16x8xbf16, #tpu.memory_space<vmem>>, vector<1x16x8xbf16>
      %27 = vector.shape_cast %26 : vector<1x16x8xbf16> to vector<16x8xbf16>
      %cst_18 = arith.constant dense<0.000000e+00> : vector<16x56xf32>
      %28 = tpu.matmul %27, %25, %cst_18 {dimension_numbers = #tpu.dot_dimension_numbers<[1], [0], [0], [1], [0, 0, 1, 1], [], []>} : vector<16x8xbf16>, vector<8x56xbf16>, vector<16x56xf32> -> vector<16x56xf32>
      %29 = arith.addf %23, %28 : vector<16x56xf32>
      %30 = vector.extract_strided_slice %6 {offsets = [0, 0, 2], sizes = [1, 8, 56], strides = [1, 1, 1]} : vector<2x8x58xbf16> to vector<1x8x56xbf16>
      %31 = vector.shape_cast %30 : vector<1x8x56xbf16> to vector<8x56xbf16>
      %c4 = arith.constant 4 : index
      %c0_19 = arith.constant 0 : index
      %c0_20 = arith.constant 0 : index
      %32 = vector.load %arg2[%c4, %c0_19, %c0_20] : memref<25x16x8xbf16, #tpu.memory_space<vmem>>, vector<1x16x8xbf16>
      %33 = vector.shape_cast %32 : vector<1x16x8xbf16> to vector<16x8xbf16>
      %cst_21 = arith.constant dense<0.000000e+00> : vector<16x56xf32>
      %34 = tpu.matmul %33, %31, %cst_21 {dimension_numbers = #tpu.dot_dimension_numbers<[1], [0], [0], [1], [0, 0, 1, 1], [], []>} : vector<16x8xbf16>, vector<8x56xbf16>, vector<16x56xf32> -> vector<16x56xf32>
      %35 = arith.addf %29, %34 : vector<16x56xf32>
      %c2_i32_22 = arith.constant 2 : i32
      %36 = arith.muli %c2_i32_22, %arg5 : i32
      %c1_i32_23 = arith.constant 1 : i32
      %37 = arith.addi %36, %c1_i32_23 : i32
      %c0_24 = arith.constant 0 : index
      %38 = arith.index_cast %37 : i32 to index
      %c0_25 = arith.constant 0 : index
      %c0_26 = arith.constant 0 : index
      %c0_27 = arith.constant 0 : index
      %39 = vector.load %arg1[%c0_24, %38, %c0_25, %c0_26, %c0_27] : memref<1x116x2x8x58xbf16, #tpu.memory_space<vmem>>, vector<1x1x2x8x58xbf16>
      %40 = vector.shape_cast %39 : vector<1x1x2x8x58xbf16> to vector<2x8x58xbf16>
      %41 = vector.extract_strided_slice %40 {offsets = [0, 0, 0], sizes = [1, 8, 56], strides = [1, 1, 1]} : vector<2x8x58xbf16> to vector<1x8x56xbf16>
      %42 = vector.shape_cast %41 : vector<1x8x56xbf16> to vector<8x56xbf16>
      %c5 = arith.constant 5 : index
      %c0_28 = arith.constant 0 : index
      %c0_29 = arith.constant 0 : index
      %43 = vector.load %arg2[%c5, %c0_28, %c0_29] : memref<25x16x8xbf16, #tpu.memory_space<vmem>>, vector<1x16x8xbf16>
      %44 = vector.shape_cast %43 : vector<1x16x8xbf16> to vector<16x8xbf16>
      %cst_30 = arith.constant dense<0.000000e+00> : vector<16x56xf32>
      %45 = tpu.matmul %44, %42, %cst_30 {dimension_numbers = #tpu.dot_dimension_numbers<[1], [0], [0], [1], [0, 0, 1, 1], [], []>} : vector<16x8xbf16>, vector<8x56xbf16>, vector<16x56xf32> -> vector<16x56xf32>
      %46 = arith.addf %35, %45 : vector<16x56xf32>
      %47 = vector.extract_strided_slice %40 {offsets = [1, 0, 0], sizes = [1, 8, 56], strides = [1, 1, 1]} : vector<2x8x58xbf16> to vector<1x8x56xbf16>
      %48 = vector.shape_cast %47 : vector<1x8x56xbf16> to vector<8x56xbf16>
      %c6 = arith.constant 6 : index
      %c0_31 = arith.constant 0 : index
      %c0_32 = arith.constant 0 : index
      %49 = vector.load %arg2[%c6, %c0_31, %c0_32] : memref<25x16x8xbf16, #tpu.memory_space<vmem>>, vector<1x16x8xbf16>
      %50 = vector.shape_cast %49 : vector<1x16x8xbf16> to vector<16x8xbf16>
      %cst_33 = arith.constant dense<0.000000e+00> : vector<16x56xf32>
      %51 = tpu.matmul %50, %48, %cst_33 {dimension_numbers = #tpu.dot_dimension_numbers<[1], [0], [0], [1], [0, 0, 1, 1], [], []>} : vector<16x8xbf16>, vector<8x56xbf16>, vector<16x56xf32> -> vector<16x56xf32>
      %52 = arith.addf %46, %51 : vector<16x56xf32>
      %53 = vector.extract_strided_slice %40 {offsets = [0, 0, 1], sizes = [1, 8, 56], strides = [1, 1, 1]} : vector<2x8x58xbf16> to vector<1x8x56xbf16>
      %54 = vector.shape_cast %53 : vector<1x8x56xbf16> to vector<8x56xbf16>
      %c7 = arith.constant 7 : index
      %c0_34 = arith.constant 0 : index
      %c0_35 = arith.constant 0 : index
      %55 = vector.load %arg2[%c7, %c0_34, %c0_35] : memref<25x16x8xbf16, #tpu.memory_space<vmem>>, vector<1x16x8xbf16>
      %56 = vector.shape_cast %55 : vector<1x16x8xbf16> to vector<16x8xbf16>
      %cst_36 = arith.constant dense<0.000000e+00> : vector<16x56xf32>
      %57 = tpu.matmul %56, %54, %cst_36 {dimension_numbers = #tpu.dot_dimension_numbers<[1], [0], [0], [1], [0, 0, 1, 1], [], []>} : vector<16x8xbf16>, vector<8x56xbf16>, vector<16x56xf32> -> vector<16x56xf32>
      %58 = arith.addf %52, %57 : vector<16x56xf32>
      %59 = vector.extract_strided_slice %40 {offsets = [1, 0, 1], sizes = [1, 8, 56], strides = [1, 1, 1]} : vector<2x8x58xbf16> to vector<1x8x56xbf16>
      %60 = vector.shape_cast %59 : vector<1x8x56xbf16> to vector<8x56xbf16>
      %c8 = arith.constant 8 : index
      %c0_37 = arith.constant 0 : index
      %c0_38 = arith.constant 0 : index
      %61 = vector.load %arg2[%c8, %c0_37, %c0_38] : memref<25x16x8xbf16, #tpu.memory_space<vmem>>, vector<1x16x8xbf16>
      %62 = vector.shape_cast %61 : vector<1x16x8xbf16> to vector<16x8xbf16>
      %cst_39 = arith.constant dense<0.000000e+00> : vector<16x56xf32>
      %63 = tpu.matmul %62, %60, %cst_39 {dimension_numbers = #tpu.dot_dimension_numbers<[1], [0], [0], [1], [0, 0, 1, 1], [], []>} : vector<16x8xbf16>, vector<8x56xbf16>, vector<16x56xf32> -> vector<16x56xf32>
      %64 = arith.addf %58, %63 : vector<16x56xf32>
      %65 = vector.extract_strided_slice %40 {offsets = [0, 0, 2], sizes = [1, 8, 56], strides = [1, 1, 1]} : vector<2x8x58xbf16> to vector<1x8x56xbf16>
      %66 = vector.shape_cast %65 : vector<1x8x56xbf16> to vector<8x56xbf16>
      %c9 = arith.constant 9 : index
      %c0_40 = arith.constant 0 : index
      %c0_41 = arith.constant 0 : index
      %67 = vector.load %arg2[%c9, %c0_40, %c0_41] : memref<25x16x8xbf16, #tpu.memory_space<vmem>>, vector<1x16x8xbf16>
      %68 = vector.shape_cast %67 : vector<1x16x8xbf16> to vector<16x8xbf16>
      %cst_42 = arith.constant dense<0.000000e+00> : vector<16x56xf32>
      %69 = tpu.matmul %68, %66, %cst_42 {dimension_numbers = #tpu.dot_dimension_numbers<[1], [0], [0], [1], [0, 0, 1, 1], [], []>} : vector<16x8xbf16>, vector<8x56xbf16>, vector<16x56xf32> -> vector<16x56xf32>
      %70 = arith.addf %64, %69 : vector<16x56xf32>
      %c2_i32_43 = arith.constant 2 : i32
      %71 = arith.muli %c2_i32_43, %arg5 : i32
      %c2_i32_44 = arith.constant 2 : i32
      %72 = arith.addi %71, %c2_i32_44 : i32
      %c0_45 = arith.constant 0 : index
      %73 = arith.index_cast %72 : i32 to index
      %c0_46 = arith.constant 0 : index
      %c0_47 = arith.constant 0 : index
      %c0_48 = arith.constant 0 : index
      %74 = vector.load %arg1[%c0_45, %73, %c0_46, %c0_47, %c0_48] : memref<1x116x2x8x58xbf16, #tpu.memory_space<vmem>>, vector<1x1x2x8x58xbf16>
      %75 = vector.shape_cast %74 : vector<1x1x2x8x58xbf16> to vector<2x8x58xbf16>
      %76 = vector.extract_strided_slice %75 {offsets = [0, 0, 0], sizes = [1, 8, 56], strides = [1, 1, 1]} : vector<2x8x58xbf16> to vector<1x8x56xbf16>
      %77 = vector.shape_cast %76 : vector<1x8x56xbf16> to vector<8x56xbf16>
      %c10 = arith.constant 10 : index
      %c0_49 = arith.constant 0 : index
      %c0_50 = arith.constant 0 : index
      %78 = vector.load %arg2[%c10, %c0_49, %c0_50] : memref<25x16x8xbf16, #tpu.memory_space<vmem>>, vector<1x16x8xbf16>
      %79 = vector.shape_cast %78 : vector<1x16x8xbf16> to vector<16x8xbf16>
      %cst_51 = arith.constant dense<0.000000e+00> : vector<16x56xf32>
      %80 = tpu.matmul %79, %77, %cst_51 {dimension_numbers = #tpu.dot_dimension_numbers<[1], [0], [0], [1], [0, 0, 1, 1], [], []>} : vector<16x8xbf16>, vector<8x56xbf16>, vector<16x56xf32> -> vector<16x56xf32>
      %81 = arith.addf %70, %80 : vector<16x56xf32>
      %82 = vector.extract_strided_slice %75 {offsets = [1, 0, 0], sizes = [1, 8, 56], strides = [1, 1, 1]} : vector<2x8x58xbf16> to vector<1x8x56xbf16>
      %83 = vector.shape_cast %82 : vector<1x8x56xbf16> to vector<8x56xbf16>
      %c11 = arith.constant 11 : index
      %c0_52 = arith.constant 0 : index
      %c0_53 = arith.constant 0 : index
      %84 = vector.load %arg2[%c11, %c0_52, %c0_53] : memref<25x16x8xbf16, #tpu.memory_space<vmem>>, vector<1x16x8xbf16>
      %85 = vector.shape_cast %84 : vector<1x16x8xbf16> to vector<16x8xbf16>
      %cst_54 = arith.constant dense<0.000000e+00> : vector<16x56xf32>
      %86 = tpu.matmul %85, %83, %cst_54 {dimension_numbers = #tpu.dot_dimension_numbers<[1], [0], [0], [1], [0, 0, 1, 1], [], []>} : vector<16x8xbf16>, vector<8x56xbf16>, vector<16x56xf32> -> vector<16x56xf32>
      %87 = arith.addf %81, %86 : vector<16x56xf32>
      %88 = vector.extract_strided_slice %75 {offsets = [0, 0, 1], sizes = [1, 8, 56], strides = [1, 1, 1]} : vector<2x8x58xbf16> to vector<1x8x56xbf16>
      %89 = vector.shape_cast %88 : vector<1x8x56xbf16> to vector<8x56xbf16>
      %c12 = arith.constant 12 : index
      %c0_55 = arith.constant 0 : index
      %c0_56 = arith.constant 0 : index
      %90 = vector.load %arg2[%c12, %c0_55, %c0_56] : memref<25x16x8xbf16, #tpu.memory_space<vmem>>, vector<1x16x8xbf16>
      %91 = vector.shape_cast %90 : vector<1x16x8xbf16> to vector<16x8xbf16>
      %cst_57 = arith.constant dense<0.000000e+00> : vector<16x56xf32>
      %92 = tpu.matmul %91, %89, %cst_57 {dimension_numbers = #tpu.dot_dimension_numbers<[1], [0], [0], [1], [0, 0, 1, 1], [], []>} : vector<16x8xbf16>, vector<8x56xbf16>, vector<16x56xf32> -> vector<16x56xf32>
      %93 = arith.addf %87, %92 : vector<16x56xf32>
      %94 = vector.extract_strided_slice %75 {offsets = [1, 0, 1], sizes = [1, 8, 56], strides = [1, 1, 1]} : vector<2x8x58xbf16> to vector<1x8x56xbf16>
      %95 = vector.shape_cast %94 : vector<1x8x56xbf16> to vector<8x56xbf16>
      %c13 = arith.constant 13 : index
      %c0_58 = arith.constant 0 : index
      %c0_59 = arith.constant 0 : index
      %96 = vector.load %arg2[%c13, %c0_58, %c0_59] : memref<25x16x8xbf16, #tpu.memory_space<vmem>>, vector<1x16x8xbf16>
      %97 = vector.shape_cast %96 : vector<1x16x8xbf16> to vector<16x8xbf16>
      %cst_60 = arith.constant dense<0.000000e+00> : vector<16x56xf32>
      %98 = tpu.matmul %97, %95, %cst_60 {dimension_numbers = #tpu.dot_dimension_numbers<[1], [0], [0], [1], [0, 0, 1, 1], [], []>} : vector<16x8xbf16>, vector<8x56xbf16>, vector<16x56xf32> -> vector<16x56xf32>
      %99 = arith.addf %93, %98 : vector<16x56xf32>
      %100 = vector.extract_strided_slice %75 {offsets = [0, 0, 2], sizes = [1, 8, 56], strides = [1, 1, 1]} : vector<2x8x58xbf16> to vector<1x8x56xbf16>
      %101 = vector.shape_cast %100 : vector<1x8x56xbf16> to vector<8x56xbf16>
      %c14 = arith.constant 14 : index
      %c0_61 = arith.constant 0 : index
      %c0_62 = arith.constant 0 : index
      %102 = vector.load %arg2[%c14, %c0_61, %c0_62] : memref<25x16x8xbf16, #tpu.memory_space<vmem>>, vector<1x16x8xbf16>
      %103 = vector.shape_cast %102 : vector<1x16x8xbf16> to vector<16x8xbf16>
      %cst_63 = arith.constant dense<0.000000e+00> : vector<16x56xf32>
      %104 = tpu.matmul %103, %101, %cst_63 {dimension_numbers = #tpu.dot_dimension_numbers<[1], [0], [0], [1], [0, 0, 1, 1], [], []>} : vector<16x8xbf16>, vector<8x56xbf16>, vector<16x56xf32> -> vector<16x56xf32>
      %105 = arith.addf %99, %104 : vector<16x56xf32>
      %c2_i32_64 = arith.constant 2 : i32
      %106 = arith.muli %c2_i32_64, %arg5 : i32
      %c3_i32 = arith.constant 3 : i32
      %107 = arith.addi %106, %c3_i32 : i32
      %c0_65 = arith.constant 0 : index
      %108 = arith.index_cast %107 : i32 to index
      %c0_66 = arith.constant 0 : index
      %c0_67 = arith.constant 0 : index
      %c0_68 = arith.constant 0 : index
      %109 = vector.load %arg1[%c0_65, %108, %c0_66, %c0_67, %c0_68] : memref<1x116x2x8x58xbf16, #tpu.memory_space<vmem>>, vector<1x1x2x8x58xbf16>
      %110 = vector.shape_cast %109 : vector<1x1x2x8x58xbf16> to vector<2x8x58xbf16>
      %111 = vector.extract_strided_slice %110 {offsets = [0, 0, 0], sizes = [1, 8, 56], strides = [1, 1, 1]} : vector<2x8x58xbf16> to vector<1x8x56xbf16>
      %112 = vector.shape_cast %111 : vector<1x8x56xbf16> to vector<8x56xbf16>
      %c15 = arith.constant 15 : index
      %c0_69 = arith.constant 0 : index
      %c0_70 = arith.constant 0 : index
      %113 = vector.load %arg2[%c15, %c0_69, %c0_70] : memref<25x16x8xbf16, #tpu.memory_space<vmem>>, vector<1x16x8xbf16>
      %114 = vector.shape_cast %113 : vector<1x16x8xbf16> to vector<16x8xbf16>
      %cst_71 = arith.constant dense<0.000000e+00> : vector<16x56xf32>
      %115 = tpu.matmul %114, %112, %cst_71 {dimension_numbers = #tpu.dot_dimension_numbers<[1], [0], [0], [1], [0, 0, 1, 1], [], []>} : vector<16x8xbf16>, vector<8x56xbf16>, vector<16x56xf32> -> vector<16x56xf32>
      %116 = arith.addf %105, %115 : vector<16x56xf32>
      %117 = vector.extract_strided_slice %110 {offsets = [1, 0, 0], sizes = [1, 8, 56], strides = [1, 1, 1]} : vector<2x8x58xbf16> to vector<1x8x56xbf16>
      %118 = vector.shape_cast %117 : vector<1x8x56xbf16> to vector<8x56xbf16>
      %c16 = arith.constant 16 : index
      %c0_72 = arith.constant 0 : index
      %c0_73 = arith.constant 0 : index
      %119 = vector.load %arg2[%c16, %c0_72, %c0_73] : memref<25x16x8xbf16, #tpu.memory_space<vmem>>, vector<1x16x8xbf16>
      %120 = vector.shape_cast %119 : vector<1x16x8xbf16> to vector<16x8xbf16>
      %cst_74 = arith.constant dense<0.000000e+00> : vector<16x56xf32>
      %121 = tpu.matmul %120, %118, %cst_74 {dimension_numbers = #tpu.dot_dimension_numbers<[1], [0], [0], [1], [0, 0, 1, 1], [], []>} : vector<16x8xbf16>, vector<8x56xbf16>, vector<16x56xf32> -> vector<16x56xf32>
      %122 = arith.addf %116, %121 : vector<16x56xf32>
      %123 = vector.extract_strided_slice %110 {offsets = [0, 0, 1], sizes = [1, 8, 56], strides = [1, 1, 1]} : vector<2x8x58xbf16> to vector<1x8x56xbf16>
      %124 = vector.shape_cast %123 : vector<1x8x56xbf16> to vector<8x56xbf16>
      %c17 = arith.constant 17 : index
      %c0_75 = arith.constant 0 : index
      %c0_76 = arith.constant 0 : index
      %125 = vector.load %arg2[%c17, %c0_75, %c0_76] : memref<25x16x8xbf16, #tpu.memory_space<vmem>>, vector<1x16x8xbf16>
      %126 = vector.shape_cast %125 : vector<1x16x8xbf16> to vector<16x8xbf16>
      %cst_77 = arith.constant dense<0.000000e+00> : vector<16x56xf32>
      %127 = tpu.matmul %126, %124, %cst_77 {dimension_numbers = #tpu.dot_dimension_numbers<[1], [0], [0], [1], [0, 0, 1, 1], [], []>} : vector<16x8xbf16>, vector<8x56xbf16>, vector<16x56xf32> -> vector<16x56xf32>
      %128 = arith.addf %122, %127 : vector<16x56xf32>
      %129 = vector.extract_strided_slice %110 {offsets = [1, 0, 1], sizes = [1, 8, 56], strides = [1, 1, 1]} : vector<2x8x58xbf16> to vector<1x8x56xbf16>
      %130 = vector.shape_cast %129 : vector<1x8x56xbf16> to vector<8x56xbf16>
      %c18 = arith.constant 18 : index
      %c0_78 = arith.constant 0 : index
      %c0_79 = arith.constant 0 : index
      %131 = vector.load %arg2[%c18, %c0_78, %c0_79] : memref<25x16x8xbf16, #tpu.memory_space<vmem>>, vector<1x16x8xbf16>
      %132 = vector.shape_cast %131 : vector<1x16x8xbf16> to vector<16x8xbf16>
      %cst_80 = arith.constant dense<0.000000e+00> : vector<16x56xf32>
      %133 = tpu.matmul %132, %130, %cst_80 {dimension_numbers = #tpu.dot_dimension_numbers<[1], [0], [0], [1], [0, 0, 1, 1], [], []>} : vector<16x8xbf16>, vector<8x56xbf16>, vector<16x56xf32> -> vector<16x56xf32>
      %134 = arith.addf %128, %133 : vector<16x56xf32>
      %135 = vector.extract_strided_slice %110 {offsets = [0, 0, 2], sizes = [1, 8, 56], strides = [1, 1, 1]} : vector<2x8x58xbf16> to vector<1x8x56xbf16>
      %136 = vector.shape_cast %135 : vector<1x8x56xbf16> to vector<8x56xbf16>
      %c19 = arith.constant 19 : index
      %c0_81 = arith.constant 0 : index
      %c0_82 = arith.constant 0 : index
      %137 = vector.load %arg2[%c19, %c0_81, %c0_82] : memref<25x16x8xbf16, #tpu.memory_space<vmem>>, vector<1x16x8xbf16>
      %138 = vector.shape_cast %137 : vector<1x16x8xbf16> to vector<16x8xbf16>
      %cst_83 = arith.constant dense<0.000000e+00> : vector<16x56xf32>
      %139 = tpu.matmul %138, %136, %cst_83 {dimension_numbers = #tpu.dot_dimension_numbers<[1], [0], [0], [1], [0, 0, 1, 1], [], []>} : vector<16x8xbf16>, vector<8x56xbf16>, vector<16x56xf32> -> vector<16x56xf32>
      %140 = arith.addf %134, %139 : vector<16x56xf32>
      %c2_i32_84 = arith.constant 2 : i32
      %141 = arith.muli %c2_i32_84, %arg5 : i32
      %c4_i32 = arith.constant 4 : i32
      %142 = arith.addi %141, %c4_i32 : i32
      %c0_85 = arith.constant 0 : index
      %143 = arith.index_cast %142 : i32 to index
      %c0_86 = arith.constant 0 : index
      %c0_87 = arith.constant 0 : index
      %c0_88 = arith.constant 0 : index
      %144 = vector.load %arg1[%c0_85, %143, %c0_86, %c0_87, %c0_88] : memref<1x116x2x8x58xbf16, #tpu.memory_space<vmem>>, vector<1x1x2x8x58xbf16>
      %145 = vector.shape_cast %144 : vector<1x1x2x8x58xbf16> to vector<2x8x58xbf16>
      %146 = vector.extract_strided_slice %145 {offsets = [0, 0, 0], sizes = [1, 8, 56], strides = [1, 1, 1]} : vector<2x8x58xbf16> to vector<1x8x56xbf16>
      %147 = vector.shape_cast %146 : vector<1x8x56xbf16> to vector<8x56xbf16>
      %c20 = arith.constant 20 : index
      %c0_89 = arith.constant 0 : index
      %c0_90 = arith.constant 0 : index
      %148 = vector.load %arg2[%c20, %c0_89, %c0_90] : memref<25x16x8xbf16, #tpu.memory_space<vmem>>, vector<1x16x8xbf16>
      %149 = vector.shape_cast %148 : vector<1x16x8xbf16> to vector<16x8xbf16>
      %cst_91 = arith.constant dense<0.000000e+00> : vector<16x56xf32>
      %150 = tpu.matmul %149, %147, %cst_91 {dimension_numbers = #tpu.dot_dimension_numbers<[1], [0], [0], [1], [0, 0, 1, 1], [], []>} : vector<16x8xbf16>, vector<8x56xbf16>, vector<16x56xf32> -> vector<16x56xf32>
      %151 = arith.addf %140, %150 : vector<16x56xf32>
      %152 = vector.extract_strided_slice %145 {offsets = [1, 0, 0], sizes = [1, 8, 56], strides = [1, 1, 1]} : vector<2x8x58xbf16> to vector<1x8x56xbf16>
      %153 = vector.shape_cast %152 : vector<1x8x56xbf16> to vector<8x56xbf16>
      %c21 = arith.constant 21 : index
      %c0_92 = arith.constant 0 : index
      %c0_93 = arith.constant 0 : index
      %154 = vector.load %arg2[%c21, %c0_92, %c0_93] : memref<25x16x8xbf16, #tpu.memory_space<vmem>>, vector<1x16x8xbf16>
      %155 = vector.shape_cast %154 : vector<1x16x8xbf16> to vector<16x8xbf16>
      %cst_94 = arith.constant dense<0.000000e+00> : vector<16x56xf32>
      %156 = tpu.matmul %155, %153, %cst_94 {dimension_numbers = #tpu.dot_dimension_numbers<[1], [0], [0], [1], [0, 0, 1, 1], [], []>} : vector<16x8xbf16>, vector<8x56xbf16>, vector<16x56xf32> -> vector<16x56xf32>
      %157 = arith.addf %151, %156 : vector<16x56xf32>
      %158 = vector.extract_strided_slice %145 {offsets = [0, 0, 1], sizes = [1, 8, 56], strides = [1, 1, 1]} : vector<2x8x58xbf16> to vector<1x8x56xbf16>
      %159 = vector.shape_cast %158 : vector<1x8x56xbf16> to vector<8x56xbf16>
      %c22 = arith.constant 22 : index
      %c0_95 = arith.constant 0 : index
      %c0_96 = arith.constant 0 : index
      %160 = vector.load %arg2[%c22, %c0_95, %c0_96] : memref<25x16x8xbf16, #tpu.memory_space<vmem>>, vector<1x16x8xbf16>
      %161 = vector.shape_cast %160 : vector<1x16x8xbf16> to vector<16x8xbf16>
      %cst_97 = arith.constant dense<0.000000e+00> : vector<16x56xf32>
      %162 = tpu.matmul %161, %159, %cst_97 {dimension_numbers = #tpu.dot_dimension_numbers<[1], [0], [0], [1], [0, 0, 1, 1], [], []>} : vector<16x8xbf16>, vector<8x56xbf16>, vector<16x56xf32> -> vector<16x56xf32>
      %163 = arith.addf %157, %162 : vector<16x56xf32>
      %164 = vector.extract_strided_slice %145 {offsets = [1, 0, 1], sizes = [1, 8, 56], strides = [1, 1, 1]} : vector<2x8x58xbf16> to vector<1x8x56xbf16>
      %165 = vector.shape_cast %164 : vector<1x8x56xbf16> to vector<8x56xbf16>
      %c23 = arith.constant 23 : index
      %c0_98 = arith.constant 0 : index
      %c0_99 = arith.constant 0 : index
      %166 = vector.load %arg2[%c23, %c0_98, %c0_99] : memref<25x16x8xbf16, #tpu.memory_space<vmem>>, vector<1x16x8xbf16>
      %167 = vector.shape_cast %166 : vector<1x16x8xbf16> to vector<16x8xbf16>
      %cst_100 = arith.constant dense<0.000000e+00> : vector<16x56xf32>
      %168 = tpu.matmul %167, %165, %cst_100 {dimension_numbers = #tpu.dot_dimension_numbers<[1], [0], [0], [1], [0, 0, 1, 1], [], []>} : vector<16x8xbf16>, vector<8x56xbf16>, vector<16x56xf32> -> vector<16x56xf32>
      %169 = arith.addf %163, %168 : vector<16x56xf32>
      %170 = vector.extract_strided_slice %145 {offsets = [0, 0, 2], sizes = [1, 8, 56], strides = [1, 1, 1]} : vector<2x8x58xbf16> to vector<1x8x56xbf16>
      %171 = vector.shape_cast %170 : vector<1x8x56xbf16> to vector<8x56xbf16>
      %c24 = arith.constant 24 : index
      %c0_101 = arith.constant 0 : index
      %c0_102 = arith.constant 0 : index
      %172 = vector.load %arg2[%c24, %c0_101, %c0_102] : memref<25x16x8xbf16, #tpu.memory_space<vmem>>, vector<1x16x8xbf16>
      %173 = vector.shape_cast %172 : vector<1x16x8xbf16> to vector<16x8xbf16>
      %cst_103 = arith.constant dense<0.000000e+00> : vector<16x56xf32>
      %174 = tpu.matmul %173, %171, %cst_103 {dimension_numbers = #tpu.dot_dimension_numbers<[1], [0], [0], [1], [0, 0, 1, 1], [], []>} : vector<16x8xbf16>, vector<8x56xbf16>, vector<16x56xf32> -> vector<16x56xf32>
      %175 = arith.addf %169, %174 : vector<16x56xf32>
      %176 = vector.broadcast %0 : vector<16x1xf32> to vector<16x56xf32>
      %177 = arith.addf %175, %176 : vector<16x56xf32>
      %cst_104 = arith.constant 0.000000e+00 : f32
      %178 = vector.broadcast %cst_104 : f32 to vector<16x56xf32>
      %179 = arith.cmpf oge, %177, %178 : vector<16x56xf32>
      %cst_105 = arith.constant 2.000000e-01 : f32
      %180 = vector.broadcast %cst_105 : f32 to vector<16x56xf32>
      %181 = arith.mulf %180, %177 : vector<16x56xf32>
      %182 = arith.select %179, %177, %181 : vector<16x56xi1>, vector<16x56xf32>
      %183 = arith.truncf %182 : vector<16x56xf32> to vector<16x56xbf16>
      %c0_106 = arith.constant 0 : index
      %184 = arith.index_cast %arg5 : i32 to index
      %c0_107 = arith.constant 0 : index
      %c0_108 = arith.constant 0 : index
      %185 = vector.load %arg4[%c0_106, %184, %c0_107, %c0_108] : memref<1x56x16x56xbf16, #tpu.memory_space<vmem>>, vector<1x1x16x56xbf16>
      %186 = vector.shape_cast %185 : vector<1x1x16x56xbf16> to vector<16x56xbf16>
      %187 = vector.shape_cast %183 : vector<16x56xbf16> to vector<1x1x16x56xbf16>
      tpu.vector_store %arg4[%c0_106, %184, %c0_107, %c0_108], %187 {strides = array<i32>} : memref<1x56x16x56xbf16, #tpu.memory_space<vmem>>, vector<1x1x16x56xbf16>,
    }
    %c56_i32_1 = arith.constant 56 : i32
    return
  }
  func.func @transform_0(%arg0: i32) -> (i32, i32, i32, i32, i32) {
    %c0_i32 = arith.constant 0 : i32
    %c0_i32_0 = arith.constant 0 : i32
    %c0_i32_1 = arith.constant 0 : i32
    %c0_i32_2 = arith.constant 0 : i32
    %c0_i32_3 = arith.constant 0 : i32
    return %arg0, %c0_i32, %c0_i32_0, %c0_i32_1, %c0_i32_2 : i32, i32, i32, i32, i32
  }
  func.func @transform_1(%arg0: i32) -> (i32, i32, i32) {
    %c0_i32 = arith.constant 0 : i32
    %c0_i32_0 = arith.constant 0 : i32
    %c0_i32_1 = arith.constant 0 : i32
    %c0_i32_2 = arith.constant 0 : i32
    return %c0_i32, %c0_i32_0, %c0_i32_1 : i32, i32, i32
  }
  func.func @transform_2(%arg0: i32) -> (i32, i32) {
    %c0_i32 = arith.constant 0 : i32
    %c0_i32_0 = arith.constant 0 : i32
    %c0_i32_1 = arith.constant 0 : i32
    return %c0_i32, %c0_i32_0 : i32, i32
  }
  func.func @transform_3(%arg0: i32) -> (i32, i32, i32, i32) {
    %c0_i32 = arith.constant 0 : i32
    %c0_i32_0 = arith.constant 0 : i32
    %c0_i32_1 = arith.constant 0 : i32
    %c0_i32_2 = arith.constant 0 : i32
    return %arg0, %c0_i32, %c0_i32_0, %c0_i32_1 : i32, i32, i32, i32
  }
}

module attributes {stable_mosaic.version = 11 : i64} {
  func.func @_conv5x5_s2_kernel(%arg0: i32, %arg1: memref<1x60x2x16x30xbf16, #tpu.memory_space<vmem>>, %arg2: memref<25x16x16xbf16, #tpu.memory_space<vmem>>, %arg3: memref<16x1xf32, #tpu.memory_space<vmem>>, %arg4: memref<1x28x16x28xbf16, #tpu.memory_space<vmem>>) attributes {dimension_semantics = [#tpu.dimension_semantics<parallel>], iteration_bounds = array<i64: 2>, scalar_prefetch = 0 : i64, scratch_operands = 0 : i64, tpu.core_type = #tpu.core_type<tc>, window_params = [{transform_indices = @transform_0, window_bounds = array<i64: 1, 60, 2, 16, 30>}, {pipeline_mode = #tpu.pipeline_mode<synchronous>, transform_indices = @transform_1, window_bounds = array<i64: 25, 16, 16>}, {pipeline_mode = #tpu.pipeline_mode<synchronous>, transform_indices = @transform_2, window_bounds = array<i64: 16, 1>}, {transform_indices = @transform_3, window_bounds = array<i64: 1, 28, 16, 28>}]} {
    %c0 = arith.constant 0 : index
    %c0_0 = arith.constant 0 : index
    %0 = vector.load %arg3[%c0, %c0_0] : memref<16x1xf32, #tpu.memory_space<vmem>>, vector<16x1xf32>
    %c0_i32 = arith.constant 0 : i32
    %c28_i32 = arith.constant 28 : i32
    %1 = arith.addi %c0_i32, %c28_i32 : i32
    %c1_i32 = arith.constant 1 : i32
    scf.for %arg5 = %c0_i32 to %1 step %c1_i32  : i32 {
      %c2_i32 = arith.constant 2 : i32
      %2 = arith.muli %c2_i32, %arg5 : i32
      %c0_i32_2 = arith.constant 0 : i32
      %3 = arith.addi %2, %c0_i32_2 : i32
      %c0_3 = arith.constant 0 : index
      %4 = arith.index_cast %3 : i32 to index
      %c0_4 = arith.constant 0 : index
      %c0_5 = arith.constant 0 : index
      %c0_6 = arith.constant 0 : index
      %5 = vector.load %arg1[%c0_3, %4, %c0_4, %c0_5, %c0_6] : memref<1x60x2x16x30xbf16, #tpu.memory_space<vmem>>, vector<1x1x2x16x30xbf16>
      %6 = vector.shape_cast %5 : vector<1x1x2x16x30xbf16> to vector<2x16x30xbf16>
      %7 = vector.extract_strided_slice %6 {offsets = [0, 0, 0], sizes = [1, 16, 28], strides = [1, 1, 1]} : vector<2x16x30xbf16> to vector<1x16x28xbf16>
      %8 = vector.shape_cast %7 : vector<1x16x28xbf16> to vector<16x28xbf16>
      %c0_7 = arith.constant 0 : index
      %c0_8 = arith.constant 0 : index
      %c0_9 = arith.constant 0 : index
      %9 = vector.load %arg2[%c0_7, %c0_8, %c0_9] : memref<25x16x16xbf16, #tpu.memory_space<vmem>>, vector<1x16x16xbf16>
      %10 = vector.shape_cast %9 : vector<1x16x16xbf16> to vector<16x16xbf16>
      %cst = arith.constant dense<0.000000e+00> : vector<16x28xf32>
      %11 = tpu.matmul %10, %8, %cst {dimension_numbers = #tpu.dot_dimension_numbers<[1], [0], [0], [1], [0, 0, 1, 1], [], []>} : vector<16x16xbf16>, vector<16x28xbf16>, vector<16x28xf32> -> vector<16x28xf32>
      %12 = vector.extract_strided_slice %6 {offsets = [1, 0, 0], sizes = [1, 16, 28], strides = [1, 1, 1]} : vector<2x16x30xbf16> to vector<1x16x28xbf16>
      %13 = vector.shape_cast %12 : vector<1x16x28xbf16> to vector<16x28xbf16>
      %c1 = arith.constant 1 : index
      %c0_10 = arith.constant 0 : index
      %c0_11 = arith.constant 0 : index
      %14 = vector.load %arg2[%c1, %c0_10, %c0_11] : memref<25x16x16xbf16, #tpu.memory_space<vmem>>, vector<1x16x16xbf16>
      %15 = vector.shape_cast %14 : vector<1x16x16xbf16> to vector<16x16xbf16>
      %cst_12 = arith.constant dense<0.000000e+00> : vector<16x28xf32>
      %16 = tpu.matmul %15, %13, %cst_12 {dimension_numbers = #tpu.dot_dimension_numbers<[1], [0], [0], [1], [0, 0, 1, 1], [], []>} : vector<16x16xbf16>, vector<16x28xbf16>, vector<16x28xf32> -> vector<16x28xf32>
      %17 = arith.addf %11, %16 : vector<16x28xf32>
      %18 = vector.extract_strided_slice %6 {offsets = [0, 0, 1], sizes = [1, 16, 28], strides = [1, 1, 1]} : vector<2x16x30xbf16> to vector<1x16x28xbf16>
      %19 = vector.shape_cast %18 : vector<1x16x28xbf16> to vector<16x28xbf16>
      %c2 = arith.constant 2 : index
      %c0_13 = arith.constant 0 : index
      %c0_14 = arith.constant 0 : index
      %20 = vector.load %arg2[%c2, %c0_13, %c0_14] : memref<25x16x16xbf16, #tpu.memory_space<vmem>>, vector<1x16x16xbf16>
      %21 = vector.shape_cast %20 : vector<1x16x16xbf16> to vector<16x16xbf16>
      %cst_15 = arith.constant dense<0.000000e+00> : vector<16x28xf32>
      %22 = tpu.matmul %21, %19, %cst_15 {dimension_numbers = #tpu.dot_dimension_numbers<[1], [0], [0], [1], [0, 0, 1, 1], [], []>} : vector<16x16xbf16>, vector<16x28xbf16>, vector<16x28xf32> -> vector<16x28xf32>
      %23 = arith.addf %17, %22 : vector<16x28xf32>
      %24 = vector.extract_strided_slice %6 {offsets = [1, 0, 1], sizes = [1, 16, 28], strides = [1, 1, 1]} : vector<2x16x30xbf16> to vector<1x16x28xbf16>
      %25 = vector.shape_cast %24 : vector<1x16x28xbf16> to vector<16x28xbf16>
      %c3 = arith.constant 3 : index
      %c0_16 = arith.constant 0 : index
      %c0_17 = arith.constant 0 : index
      %26 = vector.load %arg2[%c3, %c0_16, %c0_17] : memref<25x16x16xbf16, #tpu.memory_space<vmem>>, vector<1x16x16xbf16>
      %27 = vector.shape_cast %26 : vector<1x16x16xbf16> to vector<16x16xbf16>
      %cst_18 = arith.constant dense<0.000000e+00> : vector<16x28xf32>
      %28 = tpu.matmul %27, %25, %cst_18 {dimension_numbers = #tpu.dot_dimension_numbers<[1], [0], [0], [1], [0, 0, 1, 1], [], []>} : vector<16x16xbf16>, vector<16x28xbf16>, vector<16x28xf32> -> vector<16x28xf32>
      %29 = arith.addf %23, %28 : vector<16x28xf32>
      %30 = vector.extract_strided_slice %6 {offsets = [0, 0, 2], sizes = [1, 16, 28], strides = [1, 1, 1]} : vector<2x16x30xbf16> to vector<1x16x28xbf16>
      %31 = vector.shape_cast %30 : vector<1x16x28xbf16> to vector<16x28xbf16>
      %c4 = arith.constant 4 : index
      %c0_19 = arith.constant 0 : index
      %c0_20 = arith.constant 0 : index
      %32 = vector.load %arg2[%c4, %c0_19, %c0_20] : memref<25x16x16xbf16, #tpu.memory_space<vmem>>, vector<1x16x16xbf16>
      %33 = vector.shape_cast %32 : vector<1x16x16xbf16> to vector<16x16xbf16>
      %cst_21 = arith.constant dense<0.000000e+00> : vector<16x28xf32>
      %34 = tpu.matmul %33, %31, %cst_21 {dimension_numbers = #tpu.dot_dimension_numbers<[1], [0], [0], [1], [0, 0, 1, 1], [], []>} : vector<16x16xbf16>, vector<16x28xbf16>, vector<16x28xf32> -> vector<16x28xf32>
      %35 = arith.addf %29, %34 : vector<16x28xf32>
      %c2_i32_22 = arith.constant 2 : i32
      %36 = arith.muli %c2_i32_22, %arg5 : i32
      %c1_i32_23 = arith.constant 1 : i32
      %37 = arith.addi %36, %c1_i32_23 : i32
      %c0_24 = arith.constant 0 : index
      %38 = arith.index_cast %37 : i32 to index
      %c0_25 = arith.constant 0 : index
      %c0_26 = arith.constant 0 : index
      %c0_27 = arith.constant 0 : index
      %39 = vector.load %arg1[%c0_24, %38, %c0_25, %c0_26, %c0_27] : memref<1x60x2x16x30xbf16, #tpu.memory_space<vmem>>, vector<1x1x2x16x30xbf16>
      %40 = vector.shape_cast %39 : vector<1x1x2x16x30xbf16> to vector<2x16x30xbf16>
      %41 = vector.extract_strided_slice %40 {offsets = [0, 0, 0], sizes = [1, 16, 28], strides = [1, 1, 1]} : vector<2x16x30xbf16> to vector<1x16x28xbf16>
      %42 = vector.shape_cast %41 : vector<1x16x28xbf16> to vector<16x28xbf16>
      %c5 = arith.constant 5 : index
      %c0_28 = arith.constant 0 : index
      %c0_29 = arith.constant 0 : index
      %43 = vector.load %arg2[%c5, %c0_28, %c0_29] : memref<25x16x16xbf16, #tpu.memory_space<vmem>>, vector<1x16x16xbf16>
      %44 = vector.shape_cast %43 : vector<1x16x16xbf16> to vector<16x16xbf16>
      %cst_30 = arith.constant dense<0.000000e+00> : vector<16x28xf32>
      %45 = tpu.matmul %44, %42, %cst_30 {dimension_numbers = #tpu.dot_dimension_numbers<[1], [0], [0], [1], [0, 0, 1, 1], [], []>} : vector<16x16xbf16>, vector<16x28xbf16>, vector<16x28xf32> -> vector<16x28xf32>
      %46 = arith.addf %35, %45 : vector<16x28xf32>
      %47 = vector.extract_strided_slice %40 {offsets = [1, 0, 0], sizes = [1, 16, 28], strides = [1, 1, 1]} : vector<2x16x30xbf16> to vector<1x16x28xbf16>
      %48 = vector.shape_cast %47 : vector<1x16x28xbf16> to vector<16x28xbf16>
      %c6 = arith.constant 6 : index
      %c0_31 = arith.constant 0 : index
      %c0_32 = arith.constant 0 : index
      %49 = vector.load %arg2[%c6, %c0_31, %c0_32] : memref<25x16x16xbf16, #tpu.memory_space<vmem>>, vector<1x16x16xbf16>
      %50 = vector.shape_cast %49 : vector<1x16x16xbf16> to vector<16x16xbf16>
      %cst_33 = arith.constant dense<0.000000e+00> : vector<16x28xf32>
      %51 = tpu.matmul %50, %48, %cst_33 {dimension_numbers = #tpu.dot_dimension_numbers<[1], [0], [0], [1], [0, 0, 1, 1], [], []>} : vector<16x16xbf16>, vector<16x28xbf16>, vector<16x28xf32> -> vector<16x28xf32>
      %52 = arith.addf %46, %51 : vector<16x28xf32>
      %53 = vector.extract_strided_slice %40 {offsets = [0, 0, 1], sizes = [1, 16, 28], strides = [1, 1, 1]} : vector<2x16x30xbf16> to vector<1x16x28xbf16>
      %54 = vector.shape_cast %53 : vector<1x16x28xbf16> to vector<16x28xbf16>
      %c7 = arith.constant 7 : index
      %c0_34 = arith.constant 0 : index
      %c0_35 = arith.constant 0 : index
      %55 = vector.load %arg2[%c7, %c0_34, %c0_35] : memref<25x16x16xbf16, #tpu.memory_space<vmem>>, vector<1x16x16xbf16>
      %56 = vector.shape_cast %55 : vector<1x16x16xbf16> to vector<16x16xbf16>
      %cst_36 = arith.constant dense<0.000000e+00> : vector<16x28xf32>
      %57 = tpu.matmul %56, %54, %cst_36 {dimension_numbers = #tpu.dot_dimension_numbers<[1], [0], [0], [1], [0, 0, 1, 1], [], []>} : vector<16x16xbf16>, vector<16x28xbf16>, vector<16x28xf32> -> vector<16x28xf32>
      %58 = arith.addf %52, %57 : vector<16x28xf32>
      %59 = vector.extract_strided_slice %40 {offsets = [1, 0, 1], sizes = [1, 16, 28], strides = [1, 1, 1]} : vector<2x16x30xbf16> to vector<1x16x28xbf16>
      %60 = vector.shape_cast %59 : vector<1x16x28xbf16> to vector<16x28xbf16>
      %c8 = arith.constant 8 : index
      %c0_37 = arith.constant 0 : index
      %c0_38 = arith.constant 0 : index
      %61 = vector.load %arg2[%c8, %c0_37, %c0_38] : memref<25x16x16xbf16, #tpu.memory_space<vmem>>, vector<1x16x16xbf16>
      %62 = vector.shape_cast %61 : vector<1x16x16xbf16> to vector<16x16xbf16>
      %cst_39 = arith.constant dense<0.000000e+00> : vector<16x28xf32>
      %63 = tpu.matmul %62, %60, %cst_39 {dimension_numbers = #tpu.dot_dimension_numbers<[1], [0], [0], [1], [0, 0, 1, 1], [], []>} : vector<16x16xbf16>, vector<16x28xbf16>, vector<16x28xf32> -> vector<16x28xf32>
      %64 = arith.addf %58, %63 : vector<16x28xf32>
      %65 = vector.extract_strided_slice %40 {offsets = [0, 0, 2], sizes = [1, 16, 28], strides = [1, 1, 1]} : vector<2x16x30xbf16> to vector<1x16x28xbf16>
      %66 = vector.shape_cast %65 : vector<1x16x28xbf16> to vector<16x28xbf16>
      %c9 = arith.constant 9 : index
      %c0_40 = arith.constant 0 : index
      %c0_41 = arith.constant 0 : index
      %67 = vector.load %arg2[%c9, %c0_40, %c0_41] : memref<25x16x16xbf16, #tpu.memory_space<vmem>>, vector<1x16x16xbf16>
      %68 = vector.shape_cast %67 : vector<1x16x16xbf16> to vector<16x16xbf16>
      %cst_42 = arith.constant dense<0.000000e+00> : vector<16x28xf32>
      %69 = tpu.matmul %68, %66, %cst_42 {dimension_numbers = #tpu.dot_dimension_numbers<[1], [0], [0], [1], [0, 0, 1, 1], [], []>} : vector<16x16xbf16>, vector<16x28xbf16>, vector<16x28xf32> -> vector<16x28xf32>
      %70 = arith.addf %64, %69 : vector<16x28xf32>
      %c2_i32_43 = arith.constant 2 : i32
      %71 = arith.muli %c2_i32_43, %arg5 : i32
      %c2_i32_44 = arith.constant 2 : i32
      %72 = arith.addi %71, %c2_i32_44 : i32
      %c0_45 = arith.constant 0 : index
      %73 = arith.index_cast %72 : i32 to index
      %c0_46 = arith.constant 0 : index
      %c0_47 = arith.constant 0 : index
      %c0_48 = arith.constant 0 : index
      %74 = vector.load %arg1[%c0_45, %73, %c0_46, %c0_47, %c0_48] : memref<1x60x2x16x30xbf16, #tpu.memory_space<vmem>>, vector<1x1x2x16x30xbf16>
      %75 = vector.shape_cast %74 : vector<1x1x2x16x30xbf16> to vector<2x16x30xbf16>
      %76 = vector.extract_strided_slice %75 {offsets = [0, 0, 0], sizes = [1, 16, 28], strides = [1, 1, 1]} : vector<2x16x30xbf16> to vector<1x16x28xbf16>
      %77 = vector.shape_cast %76 : vector<1x16x28xbf16> to vector<16x28xbf16>
      %c10 = arith.constant 10 : index
      %c0_49 = arith.constant 0 : index
      %c0_50 = arith.constant 0 : index
      %78 = vector.load %arg2[%c10, %c0_49, %c0_50] : memref<25x16x16xbf16, #tpu.memory_space<vmem>>, vector<1x16x16xbf16>
      %79 = vector.shape_cast %78 : vector<1x16x16xbf16> to vector<16x16xbf16>
      %cst_51 = arith.constant dense<0.000000e+00> : vector<16x28xf32>
      %80 = tpu.matmul %79, %77, %cst_51 {dimension_numbers = #tpu.dot_dimension_numbers<[1], [0], [0], [1], [0, 0, 1, 1], [], []>} : vector<16x16xbf16>, vector<16x28xbf16>, vector<16x28xf32> -> vector<16x28xf32>
      %81 = arith.addf %70, %80 : vector<16x28xf32>
      %82 = vector.extract_strided_slice %75 {offsets = [1, 0, 0], sizes = [1, 16, 28], strides = [1, 1, 1]} : vector<2x16x30xbf16> to vector<1x16x28xbf16>
      %83 = vector.shape_cast %82 : vector<1x16x28xbf16> to vector<16x28xbf16>
      %c11 = arith.constant 11 : index
      %c0_52 = arith.constant 0 : index
      %c0_53 = arith.constant 0 : index
      %84 = vector.load %arg2[%c11, %c0_52, %c0_53] : memref<25x16x16xbf16, #tpu.memory_space<vmem>>, vector<1x16x16xbf16>
      %85 = vector.shape_cast %84 : vector<1x16x16xbf16> to vector<16x16xbf16>
      %cst_54 = arith.constant dense<0.000000e+00> : vector<16x28xf32>
      %86 = tpu.matmul %85, %83, %cst_54 {dimension_numbers = #tpu.dot_dimension_numbers<[1], [0], [0], [1], [0, 0, 1, 1], [], []>} : vector<16x16xbf16>, vector<16x28xbf16>, vector<16x28xf32> -> vector<16x28xf32>
      %87 = arith.addf %81, %86 : vector<16x28xf32>
      %88 = vector.extract_strided_slice %75 {offsets = [0, 0, 1], sizes = [1, 16, 28], strides = [1, 1, 1]} : vector<2x16x30xbf16> to vector<1x16x28xbf16>
      %89 = vector.shape_cast %88 : vector<1x16x28xbf16> to vector<16x28xbf16>
      %c12 = arith.constant 12 : index
      %c0_55 = arith.constant 0 : index
      %c0_56 = arith.constant 0 : index
      %90 = vector.load %arg2[%c12, %c0_55, %c0_56] : memref<25x16x16xbf16, #tpu.memory_space<vmem>>, vector<1x16x16xbf16>
      %91 = vector.shape_cast %90 : vector<1x16x16xbf16> to vector<16x16xbf16>
      %cst_57 = arith.constant dense<0.000000e+00> : vector<16x28xf32>
      %92 = tpu.matmul %91, %89, %cst_57 {dimension_numbers = #tpu.dot_dimension_numbers<[1], [0], [0], [1], [0, 0, 1, 1], [], []>} : vector<16x16xbf16>, vector<16x28xbf16>, vector<16x28xf32> -> vector<16x28xf32>
      %93 = arith.addf %87, %92 : vector<16x28xf32>
      %94 = vector.extract_strided_slice %75 {offsets = [1, 0, 1], sizes = [1, 16, 28], strides = [1, 1, 1]} : vector<2x16x30xbf16> to vector<1x16x28xbf16>
      %95 = vector.shape_cast %94 : vector<1x16x28xbf16> to vector<16x28xbf16>
      %c13 = arith.constant 13 : index
      %c0_58 = arith.constant 0 : index
      %c0_59 = arith.constant 0 : index
      %96 = vector.load %arg2[%c13, %c0_58, %c0_59] : memref<25x16x16xbf16, #tpu.memory_space<vmem>>, vector<1x16x16xbf16>
      %97 = vector.shape_cast %96 : vector<1x16x16xbf16> to vector<16x16xbf16>
      %cst_60 = arith.constant dense<0.000000e+00> : vector<16x28xf32>
      %98 = tpu.matmul %97, %95, %cst_60 {dimension_numbers = #tpu.dot_dimension_numbers<[1], [0], [0], [1], [0, 0, 1, 1], [], []>} : vector<16x16xbf16>, vector<16x28xbf16>, vector<16x28xf32> -> vector<16x28xf32>
      %99 = arith.addf %93, %98 : vector<16x28xf32>
      %100 = vector.extract_strided_slice %75 {offsets = [0, 0, 2], sizes = [1, 16, 28], strides = [1, 1, 1]} : vector<2x16x30xbf16> to vector<1x16x28xbf16>
      %101 = vector.shape_cast %100 : vector<1x16x28xbf16> to vector<16x28xbf16>
      %c14 = arith.constant 14 : index
      %c0_61 = arith.constant 0 : index
      %c0_62 = arith.constant 0 : index
      %102 = vector.load %arg2[%c14, %c0_61, %c0_62] : memref<25x16x16xbf16, #tpu.memory_space<vmem>>, vector<1x16x16xbf16>
      %103 = vector.shape_cast %102 : vector<1x16x16xbf16> to vector<16x16xbf16>
      %cst_63 = arith.constant dense<0.000000e+00> : vector<16x28xf32>
      %104 = tpu.matmul %103, %101, %cst_63 {dimension_numbers = #tpu.dot_dimension_numbers<[1], [0], [0], [1], [0, 0, 1, 1], [], []>} : vector<16x16xbf16>, vector<16x28xbf16>, vector<16x28xf32> -> vector<16x28xf32>
      %105 = arith.addf %99, %104 : vector<16x28xf32>
      %c2_i32_64 = arith.constant 2 : i32
      %106 = arith.muli %c2_i32_64, %arg5 : i32
      %c3_i32 = arith.constant 3 : i32
      %107 = arith.addi %106, %c3_i32 : i32
      %c0_65 = arith.constant 0 : index
      %108 = arith.index_cast %107 : i32 to index
      %c0_66 = arith.constant 0 : index
      %c0_67 = arith.constant 0 : index
      %c0_68 = arith.constant 0 : index
      %109 = vector.load %arg1[%c0_65, %108, %c0_66, %c0_67, %c0_68] : memref<1x60x2x16x30xbf16, #tpu.memory_space<vmem>>, vector<1x1x2x16x30xbf16>
      %110 = vector.shape_cast %109 : vector<1x1x2x16x30xbf16> to vector<2x16x30xbf16>
      %111 = vector.extract_strided_slice %110 {offsets = [0, 0, 0], sizes = [1, 16, 28], strides = [1, 1, 1]} : vector<2x16x30xbf16> to vector<1x16x28xbf16>
      %112 = vector.shape_cast %111 : vector<1x16x28xbf16> to vector<16x28xbf16>
      %c15 = arith.constant 15 : index
      %c0_69 = arith.constant 0 : index
      %c0_70 = arith.constant 0 : index
      %113 = vector.load %arg2[%c15, %c0_69, %c0_70] : memref<25x16x16xbf16, #tpu.memory_space<vmem>>, vector<1x16x16xbf16>
      %114 = vector.shape_cast %113 : vector<1x16x16xbf16> to vector<16x16xbf16>
      %cst_71 = arith.constant dense<0.000000e+00> : vector<16x28xf32>
      %115 = tpu.matmul %114, %112, %cst_71 {dimension_numbers = #tpu.dot_dimension_numbers<[1], [0], [0], [1], [0, 0, 1, 1], [], []>} : vector<16x16xbf16>, vector<16x28xbf16>, vector<16x28xf32> -> vector<16x28xf32>
      %116 = arith.addf %105, %115 : vector<16x28xf32>
      %117 = vector.extract_strided_slice %110 {offsets = [1, 0, 0], sizes = [1, 16, 28], strides = [1, 1, 1]} : vector<2x16x30xbf16> to vector<1x16x28xbf16>
      %118 = vector.shape_cast %117 : vector<1x16x28xbf16> to vector<16x28xbf16>
      %c16 = arith.constant 16 : index
      %c0_72 = arith.constant 0 : index
      %c0_73 = arith.constant 0 : index
      %119 = vector.load %arg2[%c16, %c0_72, %c0_73] : memref<25x16x16xbf16, #tpu.memory_space<vmem>>, vector<1x16x16xbf16>
      %120 = vector.shape_cast %119 : vector<1x16x16xbf16> to vector<16x16xbf16>
      %cst_74 = arith.constant dense<0.000000e+00> : vector<16x28xf32>
      %121 = tpu.matmul %120, %118, %cst_74 {dimension_numbers = #tpu.dot_dimension_numbers<[1], [0], [0], [1], [0, 0, 1, 1], [], []>} : vector<16x16xbf16>, vector<16x28xbf16>, vector<16x28xf32> -> vector<16x28xf32>
      %122 = arith.addf %116, %121 : vector<16x28xf32>
      %123 = vector.extract_strided_slice %110 {offsets = [0, 0, 1], sizes = [1, 16, 28], strides = [1, 1, 1]} : vector<2x16x30xbf16> to vector<1x16x28xbf16>
      %124 = vector.shape_cast %123 : vector<1x16x28xbf16> to vector<16x28xbf16>
      %c17 = arith.constant 17 : index
      %c0_75 = arith.constant 0 : index
      %c0_76 = arith.constant 0 : index
      %125 = vector.load %arg2[%c17, %c0_75, %c0_76] : memref<25x16x16xbf16, #tpu.memory_space<vmem>>, vector<1x16x16xbf16>
      %126 = vector.shape_cast %125 : vector<1x16x16xbf16> to vector<16x16xbf16>
      %cst_77 = arith.constant dense<0.000000e+00> : vector<16x28xf32>
      %127 = tpu.matmul %126, %124, %cst_77 {dimension_numbers = #tpu.dot_dimension_numbers<[1], [0], [0], [1], [0, 0, 1, 1], [], []>} : vector<16x16xbf16>, vector<16x28xbf16>, vector<16x28xf32> -> vector<16x28xf32>
      %128 = arith.addf %122, %127 : vector<16x28xf32>
      %129 = vector.extract_strided_slice %110 {offsets = [1, 0, 1], sizes = [1, 16, 28], strides = [1, 1, 1]} : vector<2x16x30xbf16> to vector<1x16x28xbf16>
      %130 = vector.shape_cast %129 : vector<1x16x28xbf16> to vector<16x28xbf16>
      %c18 = arith.constant 18 : index
      %c0_78 = arith.constant 0 : index
      %c0_79 = arith.constant 0 : index
      %131 = vector.load %arg2[%c18, %c0_78, %c0_79] : memref<25x16x16xbf16, #tpu.memory_space<vmem>>, vector<1x16x16xbf16>
      %132 = vector.shape_cast %131 : vector<1x16x16xbf16> to vector<16x16xbf16>
      %cst_80 = arith.constant dense<0.000000e+00> : vector<16x28xf32>
      %133 = tpu.matmul %132, %130, %cst_80 {dimension_numbers = #tpu.dot_dimension_numbers<[1], [0], [0], [1], [0, 0, 1, 1], [], []>} : vector<16x16xbf16>, vector<16x28xbf16>, vector<16x28xf32> -> vector<16x28xf32>
      %134 = arith.addf %128, %133 : vector<16x28xf32>
      %135 = vector.extract_strided_slice %110 {offsets = [0, 0, 2], sizes = [1, 16, 28], strides = [1, 1, 1]} : vector<2x16x30xbf16> to vector<1x16x28xbf16>
      %136 = vector.shape_cast %135 : vector<1x16x28xbf16> to vector<16x28xbf16>
      %c19 = arith.constant 19 : index
      %c0_81 = arith.constant 0 : index
      %c0_82 = arith.constant 0 : index
      %137 = vector.load %arg2[%c19, %c0_81, %c0_82] : memref<25x16x16xbf16, #tpu.memory_space<vmem>>, vector<1x16x16xbf16>
      %138 = vector.shape_cast %137 : vector<1x16x16xbf16> to vector<16x16xbf16>
      %cst_83 = arith.constant dense<0.000000e+00> : vector<16x28xf32>
      %139 = tpu.matmul %138, %136, %cst_83 {dimension_numbers = #tpu.dot_dimension_numbers<[1], [0], [0], [1], [0, 0, 1, 1], [], []>} : vector<16x16xbf16>, vector<16x28xbf16>, vector<16x28xf32> -> vector<16x28xf32>
      %140 = arith.addf %134, %139 : vector<16x28xf32>
      %c2_i32_84 = arith.constant 2 : i32
      %141 = arith.muli %c2_i32_84, %arg5 : i32
      %c4_i32 = arith.constant 4 : i32
      %142 = arith.addi %141, %c4_i32 : i32
      %c0_85 = arith.constant 0 : index
      %143 = arith.index_cast %142 : i32 to index
      %c0_86 = arith.constant 0 : index
      %c0_87 = arith.constant 0 : index
      %c0_88 = arith.constant 0 : index
      %144 = vector.load %arg1[%c0_85, %143, %c0_86, %c0_87, %c0_88] : memref<1x60x2x16x30xbf16, #tpu.memory_space<vmem>>, vector<1x1x2x16x30xbf16>
      %145 = vector.shape_cast %144 : vector<1x1x2x16x30xbf16> to vector<2x16x30xbf16>
      %146 = vector.extract_strided_slice %145 {offsets = [0, 0, 0], sizes = [1, 16, 28], strides = [1, 1, 1]} : vector<2x16x30xbf16> to vector<1x16x28xbf16>
      %147 = vector.shape_cast %146 : vector<1x16x28xbf16> to vector<16x28xbf16>
      %c20 = arith.constant 20 : index
      %c0_89 = arith.constant 0 : index
      %c0_90 = arith.constant 0 : index
      %148 = vector.load %arg2[%c20, %c0_89, %c0_90] : memref<25x16x16xbf16, #tpu.memory_space<vmem>>, vector<1x16x16xbf16>
      %149 = vector.shape_cast %148 : vector<1x16x16xbf16> to vector<16x16xbf16>
      %cst_91 = arith.constant dense<0.000000e+00> : vector<16x28xf32>
      %150 = tpu.matmul %149, %147, %cst_91 {dimension_numbers = #tpu.dot_dimension_numbers<[1], [0], [0], [1], [0, 0, 1, 1], [], []>} : vector<16x16xbf16>, vector<16x28xbf16>, vector<16x28xf32> -> vector<16x28xf32>
      %151 = arith.addf %140, %150 : vector<16x28xf32>
      %152 = vector.extract_strided_slice %145 {offsets = [1, 0, 0], sizes = [1, 16, 28], strides = [1, 1, 1]} : vector<2x16x30xbf16> to vector<1x16x28xbf16>
      %153 = vector.shape_cast %152 : vector<1x16x28xbf16> to vector<16x28xbf16>
      %c21 = arith.constant 21 : index
      %c0_92 = arith.constant 0 : index
      %c0_93 = arith.constant 0 : index
      %154 = vector.load %arg2[%c21, %c0_92, %c0_93] : memref<25x16x16xbf16, #tpu.memory_space<vmem>>, vector<1x16x16xbf16>
      %155 = vector.shape_cast %154 : vector<1x16x16xbf16> to vector<16x16xbf16>
      %cst_94 = arith.constant dense<0.000000e+00> : vector<16x28xf32>
      %156 = tpu.matmul %155, %153, %cst_94 {dimension_numbers = #tpu.dot_dimension_numbers<[1], [0], [0], [1], [0, 0, 1, 1], [], []>} : vector<16x16xbf16>, vector<16x28xbf16>, vector<16x28xf32> -> vector<16x28xf32>
      %157 = arith.addf %151, %156 : vector<16x28xf32>
      %158 = vector.extract_strided_slice %145 {offsets = [0, 0, 1], sizes = [1, 16, 28], strides = [1, 1, 1]} : vector<2x16x30xbf16> to vector<1x16x28xbf16>
      %159 = vector.shape_cast %158 : vector<1x16x28xbf16> to vector<16x28xbf16>
      %c22 = arith.constant 22 : index
      %c0_95 = arith.constant 0 : index
      %c0_96 = arith.constant 0 : index
      %160 = vector.load %arg2[%c22, %c0_95, %c0_96] : memref<25x16x16xbf16, #tpu.memory_space<vmem>>, vector<1x16x16xbf16>
      %161 = vector.shape_cast %160 : vector<1x16x16xbf16> to vector<16x16xbf16>
      %cst_97 = arith.constant dense<0.000000e+00> : vector<16x28xf32>
      %162 = tpu.matmul %161, %159, %cst_97 {dimension_numbers = #tpu.dot_dimension_numbers<[1], [0], [0], [1], [0, 0, 1, 1], [], []>} : vector<16x16xbf16>, vector<16x28xbf16>, vector<16x28xf32> -> vector<16x28xf32>
      %163 = arith.addf %157, %162 : vector<16x28xf32>
      %164 = vector.extract_strided_slice %145 {offsets = [1, 0, 1], sizes = [1, 16, 28], strides = [1, 1, 1]} : vector<2x16x30xbf16> to vector<1x16x28xbf16>
      %165 = vector.shape_cast %164 : vector<1x16x28xbf16> to vector<16x28xbf16>
      %c23 = arith.constant 23 : index
      %c0_98 = arith.constant 0 : index
      %c0_99 = arith.constant 0 : index
      %166 = vector.load %arg2[%c23, %c0_98, %c0_99] : memref<25x16x16xbf16, #tpu.memory_space<vmem>>, vector<1x16x16xbf16>
      %167 = vector.shape_cast %166 : vector<1x16x16xbf16> to vector<16x16xbf16>
      %cst_100 = arith.constant dense<0.000000e+00> : vector<16x28xf32>
      %168 = tpu.matmul %167, %165, %cst_100 {dimension_numbers = #tpu.dot_dimension_numbers<[1], [0], [0], [1], [0, 0, 1, 1], [], []>} : vector<16x16xbf16>, vector<16x28xbf16>, vector<16x28xf32> -> vector<16x28xf32>
      %169 = arith.addf %163, %168 : vector<16x28xf32>
      %170 = vector.extract_strided_slice %145 {offsets = [0, 0, 2], sizes = [1, 16, 28], strides = [1, 1, 1]} : vector<2x16x30xbf16> to vector<1x16x28xbf16>
      %171 = vector.shape_cast %170 : vector<1x16x28xbf16> to vector<16x28xbf16>
      %c24 = arith.constant 24 : index
      %c0_101 = arith.constant 0 : index
      %c0_102 = arith.constant 0 : index
      %172 = vector.load %arg2[%c24, %c0_101, %c0_102] : memref<25x16x16xbf16, #tpu.memory_space<vmem>>, vector<1x16x16xbf16>
      %173 = vector.shape_cast %172 : vector<1x16x16xbf16> to vector<16x16xbf16>
      %cst_103 = arith.constant dense<0.000000e+00> : vector<16x28xf32>
      %174 = tpu.matmul %173, %171, %cst_103 {dimension_numbers = #tpu.dot_dimension_numbers<[1], [0], [0], [1], [0, 0, 1, 1], [], []>} : vector<16x16xbf16>, vector<16x28xbf16>, vector<16x28xf32> -> vector<16x28xf32>
      %175 = arith.addf %169, %174 : vector<16x28xf32>
      %176 = vector.broadcast %0 : vector<16x1xf32> to vector<16x28xf32>
      %177 = arith.addf %175, %176 : vector<16x28xf32>
      %cst_104 = arith.constant 0.000000e+00 : f32
      %178 = vector.broadcast %cst_104 : f32 to vector<16x28xf32>
      %179 = arith.cmpf oge, %177, %178 : vector<16x28xf32>
      %cst_105 = arith.constant 2.000000e-01 : f32
      %180 = vector.broadcast %cst_105 : f32 to vector<16x28xf32>
      %181 = arith.mulf %180, %177 : vector<16x28xf32>
      %182 = arith.select %179, %177, %181 : vector<16x28xi1>, vector<16x28xf32>
      %183 = arith.truncf %182 : vector<16x28xf32> to vector<16x28xbf16>
      %c0_106 = arith.constant 0 : index
      %184 = arith.index_cast %arg5 : i32 to index
      %c0_107 = arith.constant 0 : index
      %c0_108 = arith.constant 0 : index
      %185 = vector.load %arg4[%c0_106, %184, %c0_107, %c0_108] : memref<1x28x16x28xbf16, #tpu.memory_space<vmem>>, vector<1x1x16x28xbf16>
      %186 = vector.shape_cast %185 : vector<1x1x16x28xbf16> to vector<16x28xbf16>
      %187 = vector.shape_cast %183 : vector<16x28xbf16> to vector<1x1x16x28xbf16>
      tpu.vector_store %arg4[%c0_106, %184, %c0_107, %c0_108], %187 {strides = array<i32>} : memref<1x28x16x28xbf16, #tpu.memory_space<vmem>>, vector<1x1x16x28xbf16>,
    }
    %c28_i32_1 = arith.constant 28 : i32
    return
  }
  func.func @transform_0(%arg0: i32) -> (i32, i32, i32, i32, i32) {
    %c0_i32 = arith.constant 0 : i32
    %c0_i32_0 = arith.constant 0 : i32
    %c0_i32_1 = arith.constant 0 : i32
    %c0_i32_2 = arith.constant 0 : i32
    %c0_i32_3 = arith.constant 0 : i32
    return %arg0, %c0_i32, %c0_i32_0, %c0_i32_1, %c0_i32_2 : i32, i32, i32, i32, i32
  }
  func.func @transform_1(%arg0: i32) -> (i32, i32, i32) {
    %c0_i32 = arith.constant 0 : i32
    %c0_i32_0 = arith.constant 0 : i32
    %c0_i32_1 = arith.constant 0 : i32
    %c0_i32_2 = arith.constant 0 : i32
    return %c0_i32, %c0_i32_0, %c0_i32_1 : i32, i32, i32
  }
  func.func @transform_2(%arg0: i32) -> (i32, i32) {
    %c0_i32 = arith.constant 0 : i32
    %c0_i32_0 = arith.constant 0 : i32
    %c0_i32_1 = arith.constant 0 : i32
    return %c0_i32, %c0_i32_0 : i32, i32
  }
  func.func @transform_3(%arg0: i32) -> (i32, i32, i32, i32) {
    %c0_i32 = arith.constant 0 : i32
    %c0_i32_0 = arith.constant 0 : i32
    %c0_i32_1 = arith.constant 0 : i32
    %c0_i32_2 = arith.constant 0 : i32
    return %arg0, %c0_i32, %c0_i32_0, %c0_i32_1 : i32, i32, i32, i32
  }
}

module attributes {stable_mosaic.version = 11 : i64} {
  func.func @_conv5x5_s2_kernel(%arg0: i32, %arg1: memref<1x32x2x16x16xbf16, #tpu.memory_space<vmem>>, %arg2: memref<25x32x16xbf16, #tpu.memory_space<vmem>>, %arg3: memref<32x1xf32, #tpu.memory_space<vmem>>, %arg4: memref<1x14x32x14xbf16, #tpu.memory_space<vmem>>) attributes {dimension_semantics = [#tpu.dimension_semantics<parallel>], iteration_bounds = array<i64: 2>, scalar_prefetch = 0 : i64, scratch_operands = 0 : i64, tpu.core_type = #tpu.core_type<tc>, window_params = [{transform_indices = @transform_0, window_bounds = array<i64: 1, 32, 2, 16, 16>}, {pipeline_mode = #tpu.pipeline_mode<synchronous>, transform_indices = @transform_1, window_bounds = array<i64: 25, 32, 16>}, {pipeline_mode = #tpu.pipeline_mode<synchronous>, transform_indices = @transform_2, window_bounds = array<i64: 32, 1>}, {transform_indices = @transform_3, window_bounds = array<i64: 1, 14, 32, 14>}]} {
    %c0 = arith.constant 0 : index
    %c0_0 = arith.constant 0 : index
    %0 = vector.load %arg3[%c0, %c0_0] : memref<32x1xf32, #tpu.memory_space<vmem>>, vector<32x1xf32>
    %c0_i32 = arith.constant 0 : i32
    %c14_i32 = arith.constant 14 : i32
    %1 = arith.addi %c0_i32, %c14_i32 : i32
    %c1_i32 = arith.constant 1 : i32
    scf.for %arg5 = %c0_i32 to %1 step %c1_i32  : i32 {
      %c2_i32 = arith.constant 2 : i32
      %2 = arith.muli %c2_i32, %arg5 : i32
      %c0_i32_2 = arith.constant 0 : i32
      %3 = arith.addi %2, %c0_i32_2 : i32
      %c0_3 = arith.constant 0 : index
      %4 = arith.index_cast %3 : i32 to index
      %c0_4 = arith.constant 0 : index
      %c0_5 = arith.constant 0 : index
      %c0_6 = arith.constant 0 : index
      %5 = vector.load %arg1[%c0_3, %4, %c0_4, %c0_5, %c0_6] : memref<1x32x2x16x16xbf16, #tpu.memory_space<vmem>>, vector<1x1x2x16x16xbf16>
      %6 = vector.shape_cast %5 : vector<1x1x2x16x16xbf16> to vector<2x16x16xbf16>
      %7 = vector.extract_strided_slice %6 {offsets = [0, 0, 0], sizes = [1, 16, 14], strides = [1, 1, 1]} : vector<2x16x16xbf16> to vector<1x16x14xbf16>
      %8 = vector.shape_cast %7 : vector<1x16x14xbf16> to vector<16x14xbf16>
      %c0_7 = arith.constant 0 : index
      %c0_8 = arith.constant 0 : index
      %c0_9 = arith.constant 0 : index
      %9 = vector.load %arg2[%c0_7, %c0_8, %c0_9] : memref<25x32x16xbf16, #tpu.memory_space<vmem>>, vector<1x32x16xbf16>
      %10 = vector.shape_cast %9 : vector<1x32x16xbf16> to vector<32x16xbf16>
      %cst = arith.constant dense<0.000000e+00> : vector<32x14xf32>
      %11 = tpu.matmul %10, %8, %cst {dimension_numbers = #tpu.dot_dimension_numbers<[1], [0], [0], [1], [0, 0, 1, 1], [], []>} : vector<32x16xbf16>, vector<16x14xbf16>, vector<32x14xf32> -> vector<32x14xf32>
      %12 = vector.extract_strided_slice %6 {offsets = [1, 0, 0], sizes = [1, 16, 14], strides = [1, 1, 1]} : vector<2x16x16xbf16> to vector<1x16x14xbf16>
      %13 = vector.shape_cast %12 : vector<1x16x14xbf16> to vector<16x14xbf16>
      %c1 = arith.constant 1 : index
      %c0_10 = arith.constant 0 : index
      %c0_11 = arith.constant 0 : index
      %14 = vector.load %arg2[%c1, %c0_10, %c0_11] : memref<25x32x16xbf16, #tpu.memory_space<vmem>>, vector<1x32x16xbf16>
      %15 = vector.shape_cast %14 : vector<1x32x16xbf16> to vector<32x16xbf16>
      %cst_12 = arith.constant dense<0.000000e+00> : vector<32x14xf32>
      %16 = tpu.matmul %15, %13, %cst_12 {dimension_numbers = #tpu.dot_dimension_numbers<[1], [0], [0], [1], [0, 0, 1, 1], [], []>} : vector<32x16xbf16>, vector<16x14xbf16>, vector<32x14xf32> -> vector<32x14xf32>
      %17 = arith.addf %11, %16 : vector<32x14xf32>
      %18 = vector.extract_strided_slice %6 {offsets = [0, 0, 1], sizes = [1, 16, 14], strides = [1, 1, 1]} : vector<2x16x16xbf16> to vector<1x16x14xbf16>
      %19 = vector.shape_cast %18 : vector<1x16x14xbf16> to vector<16x14xbf16>
      %c2 = arith.constant 2 : index
      %c0_13 = arith.constant 0 : index
      %c0_14 = arith.constant 0 : index
      %20 = vector.load %arg2[%c2, %c0_13, %c0_14] : memref<25x32x16xbf16, #tpu.memory_space<vmem>>, vector<1x32x16xbf16>
      %21 = vector.shape_cast %20 : vector<1x32x16xbf16> to vector<32x16xbf16>
      %cst_15 = arith.constant dense<0.000000e+00> : vector<32x14xf32>
      %22 = tpu.matmul %21, %19, %cst_15 {dimension_numbers = #tpu.dot_dimension_numbers<[1], [0], [0], [1], [0, 0, 1, 1], [], []>} : vector<32x16xbf16>, vector<16x14xbf16>, vector<32x14xf32> -> vector<32x14xf32>
      %23 = arith.addf %17, %22 : vector<32x14xf32>
      %24 = vector.extract_strided_slice %6 {offsets = [1, 0, 1], sizes = [1, 16, 14], strides = [1, 1, 1]} : vector<2x16x16xbf16> to vector<1x16x14xbf16>
      %25 = vector.shape_cast %24 : vector<1x16x14xbf16> to vector<16x14xbf16>
      %c3 = arith.constant 3 : index
      %c0_16 = arith.constant 0 : index
      %c0_17 = arith.constant 0 : index
      %26 = vector.load %arg2[%c3, %c0_16, %c0_17] : memref<25x32x16xbf16, #tpu.memory_space<vmem>>, vector<1x32x16xbf16>
      %27 = vector.shape_cast %26 : vector<1x32x16xbf16> to vector<32x16xbf16>
      %cst_18 = arith.constant dense<0.000000e+00> : vector<32x14xf32>
      %28 = tpu.matmul %27, %25, %cst_18 {dimension_numbers = #tpu.dot_dimension_numbers<[1], [0], [0], [1], [0, 0, 1, 1], [], []>} : vector<32x16xbf16>, vector<16x14xbf16>, vector<32x14xf32> -> vector<32x14xf32>
      %29 = arith.addf %23, %28 : vector<32x14xf32>
      %30 = vector.extract_strided_slice %6 {offsets = [0, 0, 2], sizes = [1, 16, 14], strides = [1, 1, 1]} : vector<2x16x16xbf16> to vector<1x16x14xbf16>
      %31 = vector.shape_cast %30 : vector<1x16x14xbf16> to vector<16x14xbf16>
      %c4 = arith.constant 4 : index
      %c0_19 = arith.constant 0 : index
      %c0_20 = arith.constant 0 : index
      %32 = vector.load %arg2[%c4, %c0_19, %c0_20] : memref<25x32x16xbf16, #tpu.memory_space<vmem>>, vector<1x32x16xbf16>
      %33 = vector.shape_cast %32 : vector<1x32x16xbf16> to vector<32x16xbf16>
      %cst_21 = arith.constant dense<0.000000e+00> : vector<32x14xf32>
      %34 = tpu.matmul %33, %31, %cst_21 {dimension_numbers = #tpu.dot_dimension_numbers<[1], [0], [0], [1], [0, 0, 1, 1], [], []>} : vector<32x16xbf16>, vector<16x14xbf16>, vector<32x14xf32> -> vector<32x14xf32>
      %35 = arith.addf %29, %34 : vector<32x14xf32>
      %c2_i32_22 = arith.constant 2 : i32
      %36 = arith.muli %c2_i32_22, %arg5 : i32
      %c1_i32_23 = arith.constant 1 : i32
      %37 = arith.addi %36, %c1_i32_23 : i32
      %c0_24 = arith.constant 0 : index
      %38 = arith.index_cast %37 : i32 to index
      %c0_25 = arith.constant 0 : index
      %c0_26 = arith.constant 0 : index
      %c0_27 = arith.constant 0 : index
      %39 = vector.load %arg1[%c0_24, %38, %c0_25, %c0_26, %c0_27] : memref<1x32x2x16x16xbf16, #tpu.memory_space<vmem>>, vector<1x1x2x16x16xbf16>
      %40 = vector.shape_cast %39 : vector<1x1x2x16x16xbf16> to vector<2x16x16xbf16>
      %41 = vector.extract_strided_slice %40 {offsets = [0, 0, 0], sizes = [1, 16, 14], strides = [1, 1, 1]} : vector<2x16x16xbf16> to vector<1x16x14xbf16>
      %42 = vector.shape_cast %41 : vector<1x16x14xbf16> to vector<16x14xbf16>
      %c5 = arith.constant 5 : index
      %c0_28 = arith.constant 0 : index
      %c0_29 = arith.constant 0 : index
      %43 = vector.load %arg2[%c5, %c0_28, %c0_29] : memref<25x32x16xbf16, #tpu.memory_space<vmem>>, vector<1x32x16xbf16>
      %44 = vector.shape_cast %43 : vector<1x32x16xbf16> to vector<32x16xbf16>
      %cst_30 = arith.constant dense<0.000000e+00> : vector<32x14xf32>
      %45 = tpu.matmul %44, %42, %cst_30 {dimension_numbers = #tpu.dot_dimension_numbers<[1], [0], [0], [1], [0, 0, 1, 1], [], []>} : vector<32x16xbf16>, vector<16x14xbf16>, vector<32x14xf32> -> vector<32x14xf32>
      %46 = arith.addf %35, %45 : vector<32x14xf32>
      %47 = vector.extract_strided_slice %40 {offsets = [1, 0, 0], sizes = [1, 16, 14], strides = [1, 1, 1]} : vector<2x16x16xbf16> to vector<1x16x14xbf16>
      %48 = vector.shape_cast %47 : vector<1x16x14xbf16> to vector<16x14xbf16>
      %c6 = arith.constant 6 : index
      %c0_31 = arith.constant 0 : index
      %c0_32 = arith.constant 0 : index
      %49 = vector.load %arg2[%c6, %c0_31, %c0_32] : memref<25x32x16xbf16, #tpu.memory_space<vmem>>, vector<1x32x16xbf16>
      %50 = vector.shape_cast %49 : vector<1x32x16xbf16> to vector<32x16xbf16>
      %cst_33 = arith.constant dense<0.000000e+00> : vector<32x14xf32>
      %51 = tpu.matmul %50, %48, %cst_33 {dimension_numbers = #tpu.dot_dimension_numbers<[1], [0], [0], [1], [0, 0, 1, 1], [], []>} : vector<32x16xbf16>, vector<16x14xbf16>, vector<32x14xf32> -> vector<32x14xf32>
      %52 = arith.addf %46, %51 : vector<32x14xf32>
      %53 = vector.extract_strided_slice %40 {offsets = [0, 0, 1], sizes = [1, 16, 14], strides = [1, 1, 1]} : vector<2x16x16xbf16> to vector<1x16x14xbf16>
      %54 = vector.shape_cast %53 : vector<1x16x14xbf16> to vector<16x14xbf16>
      %c7 = arith.constant 7 : index
      %c0_34 = arith.constant 0 : index
      %c0_35 = arith.constant 0 : index
      %55 = vector.load %arg2[%c7, %c0_34, %c0_35] : memref<25x32x16xbf16, #tpu.memory_space<vmem>>, vector<1x32x16xbf16>
      %56 = vector.shape_cast %55 : vector<1x32x16xbf16> to vector<32x16xbf16>
      %cst_36 = arith.constant dense<0.000000e+00> : vector<32x14xf32>
      %57 = tpu.matmul %56, %54, %cst_36 {dimension_numbers = #tpu.dot_dimension_numbers<[1], [0], [0], [1], [0, 0, 1, 1], [], []>} : vector<32x16xbf16>, vector<16x14xbf16>, vector<32x14xf32> -> vector<32x14xf32>
      %58 = arith.addf %52, %57 : vector<32x14xf32>
      %59 = vector.extract_strided_slice %40 {offsets = [1, 0, 1], sizes = [1, 16, 14], strides = [1, 1, 1]} : vector<2x16x16xbf16> to vector<1x16x14xbf16>
      %60 = vector.shape_cast %59 : vector<1x16x14xbf16> to vector<16x14xbf16>
      %c8 = arith.constant 8 : index
      %c0_37 = arith.constant 0 : index
      %c0_38 = arith.constant 0 : index
      %61 = vector.load %arg2[%c8, %c0_37, %c0_38] : memref<25x32x16xbf16, #tpu.memory_space<vmem>>, vector<1x32x16xbf16>
      %62 = vector.shape_cast %61 : vector<1x32x16xbf16> to vector<32x16xbf16>
      %cst_39 = arith.constant dense<0.000000e+00> : vector<32x14xf32>
      %63 = tpu.matmul %62, %60, %cst_39 {dimension_numbers = #tpu.dot_dimension_numbers<[1], [0], [0], [1], [0, 0, 1, 1], [], []>} : vector<32x16xbf16>, vector<16x14xbf16>, vector<32x14xf32> -> vector<32x14xf32>
      %64 = arith.addf %58, %63 : vector<32x14xf32>
      %65 = vector.extract_strided_slice %40 {offsets = [0, 0, 2], sizes = [1, 16, 14], strides = [1, 1, 1]} : vector<2x16x16xbf16> to vector<1x16x14xbf16>
      %66 = vector.shape_cast %65 : vector<1x16x14xbf16> to vector<16x14xbf16>
      %c9 = arith.constant 9 : index
      %c0_40 = arith.constant 0 : index
      %c0_41 = arith.constant 0 : index
      %67 = vector.load %arg2[%c9, %c0_40, %c0_41] : memref<25x32x16xbf16, #tpu.memory_space<vmem>>, vector<1x32x16xbf16>
      %68 = vector.shape_cast %67 : vector<1x32x16xbf16> to vector<32x16xbf16>
      %cst_42 = arith.constant dense<0.000000e+00> : vector<32x14xf32>
      %69 = tpu.matmul %68, %66, %cst_42 {dimension_numbers = #tpu.dot_dimension_numbers<[1], [0], [0], [1], [0, 0, 1, 1], [], []>} : vector<32x16xbf16>, vector<16x14xbf16>, vector<32x14xf32> -> vector<32x14xf32>
      %70 = arith.addf %64, %69 : vector<32x14xf32>
      %c2_i32_43 = arith.constant 2 : i32
      %71 = arith.muli %c2_i32_43, %arg5 : i32
      %c2_i32_44 = arith.constant 2 : i32
      %72 = arith.addi %71, %c2_i32_44 : i32
      %c0_45 = arith.constant 0 : index
      %73 = arith.index_cast %72 : i32 to index
      %c0_46 = arith.constant 0 : index
      %c0_47 = arith.constant 0 : index
      %c0_48 = arith.constant 0 : index
      %74 = vector.load %arg1[%c0_45, %73, %c0_46, %c0_47, %c0_48] : memref<1x32x2x16x16xbf16, #tpu.memory_space<vmem>>, vector<1x1x2x16x16xbf16>
      %75 = vector.shape_cast %74 : vector<1x1x2x16x16xbf16> to vector<2x16x16xbf16>
      %76 = vector.extract_strided_slice %75 {offsets = [0, 0, 0], sizes = [1, 16, 14], strides = [1, 1, 1]} : vector<2x16x16xbf16> to vector<1x16x14xbf16>
      %77 = vector.shape_cast %76 : vector<1x16x14xbf16> to vector<16x14xbf16>
      %c10 = arith.constant 10 : index
      %c0_49 = arith.constant 0 : index
      %c0_50 = arith.constant 0 : index
      %78 = vector.load %arg2[%c10, %c0_49, %c0_50] : memref<25x32x16xbf16, #tpu.memory_space<vmem>>, vector<1x32x16xbf16>
      %79 = vector.shape_cast %78 : vector<1x32x16xbf16> to vector<32x16xbf16>
      %cst_51 = arith.constant dense<0.000000e+00> : vector<32x14xf32>
      %80 = tpu.matmul %79, %77, %cst_51 {dimension_numbers = #tpu.dot_dimension_numbers<[1], [0], [0], [1], [0, 0, 1, 1], [], []>} : vector<32x16xbf16>, vector<16x14xbf16>, vector<32x14xf32> -> vector<32x14xf32>
      %81 = arith.addf %70, %80 : vector<32x14xf32>
      %82 = vector.extract_strided_slice %75 {offsets = [1, 0, 0], sizes = [1, 16, 14], strides = [1, 1, 1]} : vector<2x16x16xbf16> to vector<1x16x14xbf16>
      %83 = vector.shape_cast %82 : vector<1x16x14xbf16> to vector<16x14xbf16>
      %c11 = arith.constant 11 : index
      %c0_52 = arith.constant 0 : index
      %c0_53 = arith.constant 0 : index
      %84 = vector.load %arg2[%c11, %c0_52, %c0_53] : memref<25x32x16xbf16, #tpu.memory_space<vmem>>, vector<1x32x16xbf16>
      %85 = vector.shape_cast %84 : vector<1x32x16xbf16> to vector<32x16xbf16>
      %cst_54 = arith.constant dense<0.000000e+00> : vector<32x14xf32>
      %86 = tpu.matmul %85, %83, %cst_54 {dimension_numbers = #tpu.dot_dimension_numbers<[1], [0], [0], [1], [0, 0, 1, 1], [], []>} : vector<32x16xbf16>, vector<16x14xbf16>, vector<32x14xf32> -> vector<32x14xf32>
      %87 = arith.addf %81, %86 : vector<32x14xf32>
      %88 = vector.extract_strided_slice %75 {offsets = [0, 0, 1], sizes = [1, 16, 14], strides = [1, 1, 1]} : vector<2x16x16xbf16> to vector<1x16x14xbf16>
      %89 = vector.shape_cast %88 : vector<1x16x14xbf16> to vector<16x14xbf16>
      %c12 = arith.constant 12 : index
      %c0_55 = arith.constant 0 : index
      %c0_56 = arith.constant 0 : index
      %90 = vector.load %arg2[%c12, %c0_55, %c0_56] : memref<25x32x16xbf16, #tpu.memory_space<vmem>>, vector<1x32x16xbf16>
      %91 = vector.shape_cast %90 : vector<1x32x16xbf16> to vector<32x16xbf16>
      %cst_57 = arith.constant dense<0.000000e+00> : vector<32x14xf32>
      %92 = tpu.matmul %91, %89, %cst_57 {dimension_numbers = #tpu.dot_dimension_numbers<[1], [0], [0], [1], [0, 0, 1, 1], [], []>} : vector<32x16xbf16>, vector<16x14xbf16>, vector<32x14xf32> -> vector<32x14xf32>
      %93 = arith.addf %87, %92 : vector<32x14xf32>
      %94 = vector.extract_strided_slice %75 {offsets = [1, 0, 1], sizes = [1, 16, 14], strides = [1, 1, 1]} : vector<2x16x16xbf16> to vector<1x16x14xbf16>
      %95 = vector.shape_cast %94 : vector<1x16x14xbf16> to vector<16x14xbf16>
      %c13 = arith.constant 13 : index
      %c0_58 = arith.constant 0 : index
      %c0_59 = arith.constant 0 : index
      %96 = vector.load %arg2[%c13, %c0_58, %c0_59] : memref<25x32x16xbf16, #tpu.memory_space<vmem>>, vector<1x32x16xbf16>
      %97 = vector.shape_cast %96 : vector<1x32x16xbf16> to vector<32x16xbf16>
      %cst_60 = arith.constant dense<0.000000e+00> : vector<32x14xf32>
      %98 = tpu.matmul %97, %95, %cst_60 {dimension_numbers = #tpu.dot_dimension_numbers<[1], [0], [0], [1], [0, 0, 1, 1], [], []>} : vector<32x16xbf16>, vector<16x14xbf16>, vector<32x14xf32> -> vector<32x14xf32>
      %99 = arith.addf %93, %98 : vector<32x14xf32>
      %100 = vector.extract_strided_slice %75 {offsets = [0, 0, 2], sizes = [1, 16, 14], strides = [1, 1, 1]} : vector<2x16x16xbf16> to vector<1x16x14xbf16>
      %101 = vector.shape_cast %100 : vector<1x16x14xbf16> to vector<16x14xbf16>
      %c14 = arith.constant 14 : index
      %c0_61 = arith.constant 0 : index
      %c0_62 = arith.constant 0 : index
      %102 = vector.load %arg2[%c14, %c0_61, %c0_62] : memref<25x32x16xbf16, #tpu.memory_space<vmem>>, vector<1x32x16xbf16>
      %103 = vector.shape_cast %102 : vector<1x32x16xbf16> to vector<32x16xbf16>
      %cst_63 = arith.constant dense<0.000000e+00> : vector<32x14xf32>
      %104 = tpu.matmul %103, %101, %cst_63 {dimension_numbers = #tpu.dot_dimension_numbers<[1], [0], [0], [1], [0, 0, 1, 1], [], []>} : vector<32x16xbf16>, vector<16x14xbf16>, vector<32x14xf32> -> vector<32x14xf32>
      %105 = arith.addf %99, %104 : vector<32x14xf32>
      %c2_i32_64 = arith.constant 2 : i32
      %106 = arith.muli %c2_i32_64, %arg5 : i32
      %c3_i32 = arith.constant 3 : i32
      %107 = arith.addi %106, %c3_i32 : i32
      %c0_65 = arith.constant 0 : index
      %108 = arith.index_cast %107 : i32 to index
      %c0_66 = arith.constant 0 : index
      %c0_67 = arith.constant 0 : index
      %c0_68 = arith.constant 0 : index
      %109 = vector.load %arg1[%c0_65, %108, %c0_66, %c0_67, %c0_68] : memref<1x32x2x16x16xbf16, #tpu.memory_space<vmem>>, vector<1x1x2x16x16xbf16>
      %110 = vector.shape_cast %109 : vector<1x1x2x16x16xbf16> to vector<2x16x16xbf16>
      %111 = vector.extract_strided_slice %110 {offsets = [0, 0, 0], sizes = [1, 16, 14], strides = [1, 1, 1]} : vector<2x16x16xbf16> to vector<1x16x14xbf16>
      %112 = vector.shape_cast %111 : vector<1x16x14xbf16> to vector<16x14xbf16>
      %c15 = arith.constant 15 : index
      %c0_69 = arith.constant 0 : index
      %c0_70 = arith.constant 0 : index
      %113 = vector.load %arg2[%c15, %c0_69, %c0_70] : memref<25x32x16xbf16, #tpu.memory_space<vmem>>, vector<1x32x16xbf16>
      %114 = vector.shape_cast %113 : vector<1x32x16xbf16> to vector<32x16xbf16>
      %cst_71 = arith.constant dense<0.000000e+00> : vector<32x14xf32>
      %115 = tpu.matmul %114, %112, %cst_71 {dimension_numbers = #tpu.dot_dimension_numbers<[1], [0], [0], [1], [0, 0, 1, 1], [], []>} : vector<32x16xbf16>, vector<16x14xbf16>, vector<32x14xf32> -> vector<32x14xf32>
      %116 = arith.addf %105, %115 : vector<32x14xf32>
      %117 = vector.extract_strided_slice %110 {offsets = [1, 0, 0], sizes = [1, 16, 14], strides = [1, 1, 1]} : vector<2x16x16xbf16> to vector<1x16x14xbf16>
      %118 = vector.shape_cast %117 : vector<1x16x14xbf16> to vector<16x14xbf16>
      %c16 = arith.constant 16 : index
      %c0_72 = arith.constant 0 : index
      %c0_73 = arith.constant 0 : index
      %119 = vector.load %arg2[%c16, %c0_72, %c0_73] : memref<25x32x16xbf16, #tpu.memory_space<vmem>>, vector<1x32x16xbf16>
      %120 = vector.shape_cast %119 : vector<1x32x16xbf16> to vector<32x16xbf16>
      %cst_74 = arith.constant dense<0.000000e+00> : vector<32x14xf32>
      %121 = tpu.matmul %120, %118, %cst_74 {dimension_numbers = #tpu.dot_dimension_numbers<[1], [0], [0], [1], [0, 0, 1, 1], [], []>} : vector<32x16xbf16>, vector<16x14xbf16>, vector<32x14xf32> -> vector<32x14xf32>
      %122 = arith.addf %116, %121 : vector<32x14xf32>
      %123 = vector.extract_strided_slice %110 {offsets = [0, 0, 1], sizes = [1, 16, 14], strides = [1, 1, 1]} : vector<2x16x16xbf16> to vector<1x16x14xbf16>
      %124 = vector.shape_cast %123 : vector<1x16x14xbf16> to vector<16x14xbf16>
      %c17 = arith.constant 17 : index
      %c0_75 = arith.constant 0 : index
      %c0_76 = arith.constant 0 : index
      %125 = vector.load %arg2[%c17, %c0_75, %c0_76] : memref<25x32x16xbf16, #tpu.memory_space<vmem>>, vector<1x32x16xbf16>
      %126 = vector.shape_cast %125 : vector<1x32x16xbf16> to vector<32x16xbf16>
      %cst_77 = arith.constant dense<0.000000e+00> : vector<32x14xf32>
      %127 = tpu.matmul %126, %124, %cst_77 {dimension_numbers = #tpu.dot_dimension_numbers<[1], [0], [0], [1], [0, 0, 1, 1], [], []>} : vector<32x16xbf16>, vector<16x14xbf16>, vector<32x14xf32> -> vector<32x14xf32>
      %128 = arith.addf %122, %127 : vector<32x14xf32>
      %129 = vector.extract_strided_slice %110 {offsets = [1, 0, 1], sizes = [1, 16, 14], strides = [1, 1, 1]} : vector<2x16x16xbf16> to vector<1x16x14xbf16>
      %130 = vector.shape_cast %129 : vector<1x16x14xbf16> to vector<16x14xbf16>
      %c18 = arith.constant 18 : index
      %c0_78 = arith.constant 0 : index
      %c0_79 = arith.constant 0 : index
      %131 = vector.load %arg2[%c18, %c0_78, %c0_79] : memref<25x32x16xbf16, #tpu.memory_space<vmem>>, vector<1x32x16xbf16>
      %132 = vector.shape_cast %131 : vector<1x32x16xbf16> to vector<32x16xbf16>
      %cst_80 = arith.constant dense<0.000000e+00> : vector<32x14xf32>
      %133 = tpu.matmul %132, %130, %cst_80 {dimension_numbers = #tpu.dot_dimension_numbers<[1], [0], [0], [1], [0, 0, 1, 1], [], []>} : vector<32x16xbf16>, vector<16x14xbf16>, vector<32x14xf32> -> vector<32x14xf32>
      %134 = arith.addf %128, %133 : vector<32x14xf32>
      %135 = vector.extract_strided_slice %110 {offsets = [0, 0, 2], sizes = [1, 16, 14], strides = [1, 1, 1]} : vector<2x16x16xbf16> to vector<1x16x14xbf16>
      %136 = vector.shape_cast %135 : vector<1x16x14xbf16> to vector<16x14xbf16>
      %c19 = arith.constant 19 : index
      %c0_81 = arith.constant 0 : index
      %c0_82 = arith.constant 0 : index
      %137 = vector.load %arg2[%c19, %c0_81, %c0_82] : memref<25x32x16xbf16, #tpu.memory_space<vmem>>, vector<1x32x16xbf16>
      %138 = vector.shape_cast %137 : vector<1x32x16xbf16> to vector<32x16xbf16>
      %cst_83 = arith.constant dense<0.000000e+00> : vector<32x14xf32>
      %139 = tpu.matmul %138, %136, %cst_83 {dimension_numbers = #tpu.dot_dimension_numbers<[1], [0], [0], [1], [0, 0, 1, 1], [], []>} : vector<32x16xbf16>, vector<16x14xbf16>, vector<32x14xf32> -> vector<32x14xf32>
      %140 = arith.addf %134, %139 : vector<32x14xf32>
      %c2_i32_84 = arith.constant 2 : i32
      %141 = arith.muli %c2_i32_84, %arg5 : i32
      %c4_i32 = arith.constant 4 : i32
      %142 = arith.addi %141, %c4_i32 : i32
      %c0_85 = arith.constant 0 : index
      %143 = arith.index_cast %142 : i32 to index
      %c0_86 = arith.constant 0 : index
      %c0_87 = arith.constant 0 : index
      %c0_88 = arith.constant 0 : index
      %144 = vector.load %arg1[%c0_85, %143, %c0_86, %c0_87, %c0_88] : memref<1x32x2x16x16xbf16, #tpu.memory_space<vmem>>, vector<1x1x2x16x16xbf16>
      %145 = vector.shape_cast %144 : vector<1x1x2x16x16xbf16> to vector<2x16x16xbf16>
      %146 = vector.extract_strided_slice %145 {offsets = [0, 0, 0], sizes = [1, 16, 14], strides = [1, 1, 1]} : vector<2x16x16xbf16> to vector<1x16x14xbf16>
      %147 = vector.shape_cast %146 : vector<1x16x14xbf16> to vector<16x14xbf16>
      %c20 = arith.constant 20 : index
      %c0_89 = arith.constant 0 : index
      %c0_90 = arith.constant 0 : index
      %148 = vector.load %arg2[%c20, %c0_89, %c0_90] : memref<25x32x16xbf16, #tpu.memory_space<vmem>>, vector<1x32x16xbf16>
      %149 = vector.shape_cast %148 : vector<1x32x16xbf16> to vector<32x16xbf16>
      %cst_91 = arith.constant dense<0.000000e+00> : vector<32x14xf32>
      %150 = tpu.matmul %149, %147, %cst_91 {dimension_numbers = #tpu.dot_dimension_numbers<[1], [0], [0], [1], [0, 0, 1, 1], [], []>} : vector<32x16xbf16>, vector<16x14xbf16>, vector<32x14xf32> -> vector<32x14xf32>
      %151 = arith.addf %140, %150 : vector<32x14xf32>
      %152 = vector.extract_strided_slice %145 {offsets = [1, 0, 0], sizes = [1, 16, 14], strides = [1, 1, 1]} : vector<2x16x16xbf16> to vector<1x16x14xbf16>
      %153 = vector.shape_cast %152 : vector<1x16x14xbf16> to vector<16x14xbf16>
      %c21 = arith.constant 21 : index
      %c0_92 = arith.constant 0 : index
      %c0_93 = arith.constant 0 : index
      %154 = vector.load %arg2[%c21, %c0_92, %c0_93] : memref<25x32x16xbf16, #tpu.memory_space<vmem>>, vector<1x32x16xbf16>
      %155 = vector.shape_cast %154 : vector<1x32x16xbf16> to vector<32x16xbf16>
      %cst_94 = arith.constant dense<0.000000e+00> : vector<32x14xf32>
      %156 = tpu.matmul %155, %153, %cst_94 {dimension_numbers = #tpu.dot_dimension_numbers<[1], [0], [0], [1], [0, 0, 1, 1], [], []>} : vector<32x16xbf16>, vector<16x14xbf16>, vector<32x14xf32> -> vector<32x14xf32>
      %157 = arith.addf %151, %156 : vector<32x14xf32>
      %158 = vector.extract_strided_slice %145 {offsets = [0, 0, 1], sizes = [1, 16, 14], strides = [1, 1, 1]} : vector<2x16x16xbf16> to vector<1x16x14xbf16>
      %159 = vector.shape_cast %158 : vector<1x16x14xbf16> to vector<16x14xbf16>
      %c22 = arith.constant 22 : index
      %c0_95 = arith.constant 0 : index
      %c0_96 = arith.constant 0 : index
      %160 = vector.load %arg2[%c22, %c0_95, %c0_96] : memref<25x32x16xbf16, #tpu.memory_space<vmem>>, vector<1x32x16xbf16>
      %161 = vector.shape_cast %160 : vector<1x32x16xbf16> to vector<32x16xbf16>
      %cst_97 = arith.constant dense<0.000000e+00> : vector<32x14xf32>
      %162 = tpu.matmul %161, %159, %cst_97 {dimension_numbers = #tpu.dot_dimension_numbers<[1], [0], [0], [1], [0, 0, 1, 1], [], []>} : vector<32x16xbf16>, vector<16x14xbf16>, vector<32x14xf32> -> vector<32x14xf32>
      %163 = arith.addf %157, %162 : vector<32x14xf32>
      %164 = vector.extract_strided_slice %145 {offsets = [1, 0, 1], sizes = [1, 16, 14], strides = [1, 1, 1]} : vector<2x16x16xbf16> to vector<1x16x14xbf16>
      %165 = vector.shape_cast %164 : vector<1x16x14xbf16> to vector<16x14xbf16>
      %c23 = arith.constant 23 : index
      %c0_98 = arith.constant 0 : index
      %c0_99 = arith.constant 0 : index
      %166 = vector.load %arg2[%c23, %c0_98, %c0_99] : memref<25x32x16xbf16, #tpu.memory_space<vmem>>, vector<1x32x16xbf16>
      %167 = vector.shape_cast %166 : vector<1x32x16xbf16> to vector<32x16xbf16>
      %cst_100 = arith.constant dense<0.000000e+00> : vector<32x14xf32>
      %168 = tpu.matmul %167, %165, %cst_100 {dimension_numbers = #tpu.dot_dimension_numbers<[1], [0], [0], [1], [0, 0, 1, 1], [], []>} : vector<32x16xbf16>, vector<16x14xbf16>, vector<32x14xf32> -> vector<32x14xf32>
      %169 = arith.addf %163, %168 : vector<32x14xf32>
      %170 = vector.extract_strided_slice %145 {offsets = [0, 0, 2], sizes = [1, 16, 14], strides = [1, 1, 1]} : vector<2x16x16xbf16> to vector<1x16x14xbf16>
      %171 = vector.shape_cast %170 : vector<1x16x14xbf16> to vector<16x14xbf16>
      %c24 = arith.constant 24 : index
      %c0_101 = arith.constant 0 : index
      %c0_102 = arith.constant 0 : index
      %172 = vector.load %arg2[%c24, %c0_101, %c0_102] : memref<25x32x16xbf16, #tpu.memory_space<vmem>>, vector<1x32x16xbf16>
      %173 = vector.shape_cast %172 : vector<1x32x16xbf16> to vector<32x16xbf16>
      %cst_103 = arith.constant dense<0.000000e+00> : vector<32x14xf32>
      %174 = tpu.matmul %173, %171, %cst_103 {dimension_numbers = #tpu.dot_dimension_numbers<[1], [0], [0], [1], [0, 0, 1, 1], [], []>} : vector<32x16xbf16>, vector<16x14xbf16>, vector<32x14xf32> -> vector<32x14xf32>
      %175 = arith.addf %169, %174 : vector<32x14xf32>
      %176 = vector.broadcast %0 : vector<32x1xf32> to vector<32x14xf32>
      %177 = arith.addf %175, %176 : vector<32x14xf32>
      %cst_104 = arith.constant 0.000000e+00 : f32
      %178 = vector.broadcast %cst_104 : f32 to vector<32x14xf32>
      %179 = arith.cmpf oge, %177, %178 : vector<32x14xf32>
      %cst_105 = arith.constant 2.000000e-01 : f32
      %180 = vector.broadcast %cst_105 : f32 to vector<32x14xf32>
      %181 = arith.mulf %180, %177 : vector<32x14xf32>
      %182 = arith.select %179, %177, %181 : vector<32x14xi1>, vector<32x14xf32>
      %183 = arith.truncf %182 : vector<32x14xf32> to vector<32x14xbf16>
      %c0_106 = arith.constant 0 : index
      %184 = arith.index_cast %arg5 : i32 to index
      %c0_107 = arith.constant 0 : index
      %c0_108 = arith.constant 0 : index
      %185 = vector.load %arg4[%c0_106, %184, %c0_107, %c0_108] : memref<1x14x32x14xbf16, #tpu.memory_space<vmem>>, vector<1x1x32x14xbf16>
      %186 = vector.shape_cast %185 : vector<1x1x32x14xbf16> to vector<32x14xbf16>
      %187 = vector.shape_cast %183 : vector<32x14xbf16> to vector<1x1x32x14xbf16>
      tpu.vector_store %arg4[%c0_106, %184, %c0_107, %c0_108], %187 {strides = array<i32>} : memref<1x14x32x14xbf16, #tpu.memory_space<vmem>>, vector<1x1x32x14xbf16>,
    }
    %c14_i32_1 = arith.constant 14 : i32
    return
  }
  func.func @transform_0(%arg0: i32) -> (i32, i32, i32, i32, i32) {
    %c0_i32 = arith.constant 0 : i32
    %c0_i32_0 = arith.constant 0 : i32
    %c0_i32_1 = arith.constant 0 : i32
    %c0_i32_2 = arith.constant 0 : i32
    %c0_i32_3 = arith.constant 0 : i32
    return %arg0, %c0_i32, %c0_i32_0, %c0_i32_1, %c0_i32_2 : i32, i32, i32, i32, i32
  }
  func.func @transform_1(%arg0: i32) -> (i32, i32, i32) {
    %c0_i32 = arith.constant 0 : i32
    %c0_i32_0 = arith.constant 0 : i32
    %c0_i32_1 = arith.constant 0 : i32
    %c0_i32_2 = arith.constant 0 : i32
    return %c0_i32, %c0_i32_0, %c0_i32_1 : i32, i32, i32
  }
  func.func @transform_2(%arg0: i32) -> (i32, i32) {
    %c0_i32 = arith.constant 0 : i32
    %c0_i32_0 = arith.constant 0 : i32
    %c0_i32_1 = arith.constant 0 : i32
    return %c0_i32, %c0_i32_0 : i32, i32
  }
  func.func @transform_3(%arg0: i32) -> (i32, i32, i32, i32) {
    %c0_i32 = arith.constant 0 : i32
    %c0_i32_0 = arith.constant 0 : i32
    %c0_i32_1 = arith.constant 0 : i32
    %c0_i32_2 = arith.constant 0 : i32
    return %arg0, %c0_i32, %c0_i32_0, %c0_i32_1 : i32, i32, i32, i32
  }
}

module attributes {stable_mosaic.version = 11 : i64} {
  func.func @_conv5x5_s2_kernel(%arg0: i32, %arg1: memref<1x18x2x32x9xbf16, #tpu.memory_space<vmem>>, %arg2: memref<25x64x32xbf16, #tpu.memory_space<vmem>>, %arg3: memref<64x1xf32, #tpu.memory_space<vmem>>, %arg4: memref<1x7x64x7xbf16, #tpu.memory_space<vmem>>) attributes {dimension_semantics = [#tpu.dimension_semantics<parallel>], iteration_bounds = array<i64: 2>, scalar_prefetch = 0 : i64, scratch_operands = 0 : i64, tpu.core_type = #tpu.core_type<tc>, window_params = [{transform_indices = @transform_0, window_bounds = array<i64: 1, 18, 2, 32, 9>}, {pipeline_mode = #tpu.pipeline_mode<synchronous>, transform_indices = @transform_1, window_bounds = array<i64: 25, 64, 32>}, {pipeline_mode = #tpu.pipeline_mode<synchronous>, transform_indices = @transform_2, window_bounds = array<i64: 64, 1>}, {transform_indices = @transform_3, window_bounds = array<i64: 1, 7, 64, 7>}]} {
    %c0 = arith.constant 0 : index
    %c0_0 = arith.constant 0 : index
    %0 = vector.load %arg3[%c0, %c0_0] : memref<64x1xf32, #tpu.memory_space<vmem>>, vector<64x1xf32>
    %c0_i32 = arith.constant 0 : i32
    %c7_i32 = arith.constant 7 : i32
    %1 = arith.addi %c0_i32, %c7_i32 : i32
    %c1_i32 = arith.constant 1 : i32
    scf.for %arg5 = %c0_i32 to %1 step %c1_i32  : i32 {
      %c2_i32 = arith.constant 2 : i32
      %2 = arith.muli %c2_i32, %arg5 : i32
      %c0_i32_2 = arith.constant 0 : i32
      %3 = arith.addi %2, %c0_i32_2 : i32
      %c0_3 = arith.constant 0 : index
      %4 = arith.index_cast %3 : i32 to index
      %c0_4 = arith.constant 0 : index
      %c0_5 = arith.constant 0 : index
      %c0_6 = arith.constant 0 : index
      %5 = vector.load %arg1[%c0_3, %4, %c0_4, %c0_5, %c0_6] : memref<1x18x2x32x9xbf16, #tpu.memory_space<vmem>>, vector<1x1x2x32x9xbf16>
      %6 = vector.shape_cast %5 : vector<1x1x2x32x9xbf16> to vector<2x32x9xbf16>
      %7 = vector.extract_strided_slice %6 {offsets = [0, 0, 0], sizes = [1, 32, 7], strides = [1, 1, 1]} : vector<2x32x9xbf16> to vector<1x32x7xbf16>
      %8 = vector.shape_cast %7 : vector<1x32x7xbf16> to vector<32x7xbf16>
      %c0_7 = arith.constant 0 : index
      %c0_8 = arith.constant 0 : index
      %c0_9 = arith.constant 0 : index
      %9 = vector.load %arg2[%c0_7, %c0_8, %c0_9] : memref<25x64x32xbf16, #tpu.memory_space<vmem>>, vector<1x64x32xbf16>
      %10 = vector.shape_cast %9 : vector<1x64x32xbf16> to vector<64x32xbf16>
      %cst = arith.constant dense<0.000000e+00> : vector<64x7xf32>
      %11 = tpu.matmul %10, %8, %cst {dimension_numbers = #tpu.dot_dimension_numbers<[1], [0], [0], [1], [0, 0, 1, 1], [], []>} : vector<64x32xbf16>, vector<32x7xbf16>, vector<64x7xf32> -> vector<64x7xf32>
      %12 = vector.extract_strided_slice %6 {offsets = [1, 0, 0], sizes = [1, 32, 7], strides = [1, 1, 1]} : vector<2x32x9xbf16> to vector<1x32x7xbf16>
      %13 = vector.shape_cast %12 : vector<1x32x7xbf16> to vector<32x7xbf16>
      %c1 = arith.constant 1 : index
      %c0_10 = arith.constant 0 : index
      %c0_11 = arith.constant 0 : index
      %14 = vector.load %arg2[%c1, %c0_10, %c0_11] : memref<25x64x32xbf16, #tpu.memory_space<vmem>>, vector<1x64x32xbf16>
      %15 = vector.shape_cast %14 : vector<1x64x32xbf16> to vector<64x32xbf16>
      %cst_12 = arith.constant dense<0.000000e+00> : vector<64x7xf32>
      %16 = tpu.matmul %15, %13, %cst_12 {dimension_numbers = #tpu.dot_dimension_numbers<[1], [0], [0], [1], [0, 0, 1, 1], [], []>} : vector<64x32xbf16>, vector<32x7xbf16>, vector<64x7xf32> -> vector<64x7xf32>
      %17 = arith.addf %11, %16 : vector<64x7xf32>
      %18 = vector.extract_strided_slice %6 {offsets = [0, 0, 1], sizes = [1, 32, 7], strides = [1, 1, 1]} : vector<2x32x9xbf16> to vector<1x32x7xbf16>
      %19 = vector.shape_cast %18 : vector<1x32x7xbf16> to vector<32x7xbf16>
      %c2 = arith.constant 2 : index
      %c0_13 = arith.constant 0 : index
      %c0_14 = arith.constant 0 : index
      %20 = vector.load %arg2[%c2, %c0_13, %c0_14] : memref<25x64x32xbf16, #tpu.memory_space<vmem>>, vector<1x64x32xbf16>
      %21 = vector.shape_cast %20 : vector<1x64x32xbf16> to vector<64x32xbf16>
      %cst_15 = arith.constant dense<0.000000e+00> : vector<64x7xf32>
      %22 = tpu.matmul %21, %19, %cst_15 {dimension_numbers = #tpu.dot_dimension_numbers<[1], [0], [0], [1], [0, 0, 1, 1], [], []>} : vector<64x32xbf16>, vector<32x7xbf16>, vector<64x7xf32> -> vector<64x7xf32>
      %23 = arith.addf %17, %22 : vector<64x7xf32>
      %24 = vector.extract_strided_slice %6 {offsets = [1, 0, 1], sizes = [1, 32, 7], strides = [1, 1, 1]} : vector<2x32x9xbf16> to vector<1x32x7xbf16>
      %25 = vector.shape_cast %24 : vector<1x32x7xbf16> to vector<32x7xbf16>
      %c3 = arith.constant 3 : index
      %c0_16 = arith.constant 0 : index
      %c0_17 = arith.constant 0 : index
      %26 = vector.load %arg2[%c3, %c0_16, %c0_17] : memref<25x64x32xbf16, #tpu.memory_space<vmem>>, vector<1x64x32xbf16>
      %27 = vector.shape_cast %26 : vector<1x64x32xbf16> to vector<64x32xbf16>
      %cst_18 = arith.constant dense<0.000000e+00> : vector<64x7xf32>
      %28 = tpu.matmul %27, %25, %cst_18 {dimension_numbers = #tpu.dot_dimension_numbers<[1], [0], [0], [1], [0, 0, 1, 1], [], []>} : vector<64x32xbf16>, vector<32x7xbf16>, vector<64x7xf32> -> vector<64x7xf32>
      %29 = arith.addf %23, %28 : vector<64x7xf32>
      %30 = vector.extract_strided_slice %6 {offsets = [0, 0, 2], sizes = [1, 32, 7], strides = [1, 1, 1]} : vector<2x32x9xbf16> to vector<1x32x7xbf16>
      %31 = vector.shape_cast %30 : vector<1x32x7xbf16> to vector<32x7xbf16>
      %c4 = arith.constant 4 : index
      %c0_19 = arith.constant 0 : index
      %c0_20 = arith.constant 0 : index
      %32 = vector.load %arg2[%c4, %c0_19, %c0_20] : memref<25x64x32xbf16, #tpu.memory_space<vmem>>, vector<1x64x32xbf16>
      %33 = vector.shape_cast %32 : vector<1x64x32xbf16> to vector<64x32xbf16>
      %cst_21 = arith.constant dense<0.000000e+00> : vector<64x7xf32>
      %34 = tpu.matmul %33, %31, %cst_21 {dimension_numbers = #tpu.dot_dimension_numbers<[1], [0], [0], [1], [0, 0, 1, 1], [], []>} : vector<64x32xbf16>, vector<32x7xbf16>, vector<64x7xf32> -> vector<64x7xf32>
      %35 = arith.addf %29, %34 : vector<64x7xf32>
      %c2_i32_22 = arith.constant 2 : i32
      %36 = arith.muli %c2_i32_22, %arg5 : i32
      %c1_i32_23 = arith.constant 1 : i32
      %37 = arith.addi %36, %c1_i32_23 : i32
      %c0_24 = arith.constant 0 : index
      %38 = arith.index_cast %37 : i32 to index
      %c0_25 = arith.constant 0 : index
      %c0_26 = arith.constant 0 : index
      %c0_27 = arith.constant 0 : index
      %39 = vector.load %arg1[%c0_24, %38, %c0_25, %c0_26, %c0_27] : memref<1x18x2x32x9xbf16, #tpu.memory_space<vmem>>, vector<1x1x2x32x9xbf16>
      %40 = vector.shape_cast %39 : vector<1x1x2x32x9xbf16> to vector<2x32x9xbf16>
      %41 = vector.extract_strided_slice %40 {offsets = [0, 0, 0], sizes = [1, 32, 7], strides = [1, 1, 1]} : vector<2x32x9xbf16> to vector<1x32x7xbf16>
      %42 = vector.shape_cast %41 : vector<1x32x7xbf16> to vector<32x7xbf16>
      %c5 = arith.constant 5 : index
      %c0_28 = arith.constant 0 : index
      %c0_29 = arith.constant 0 : index
      %43 = vector.load %arg2[%c5, %c0_28, %c0_29] : memref<25x64x32xbf16, #tpu.memory_space<vmem>>, vector<1x64x32xbf16>
      %44 = vector.shape_cast %43 : vector<1x64x32xbf16> to vector<64x32xbf16>
      %cst_30 = arith.constant dense<0.000000e+00> : vector<64x7xf32>
      %45 = tpu.matmul %44, %42, %cst_30 {dimension_numbers = #tpu.dot_dimension_numbers<[1], [0], [0], [1], [0, 0, 1, 1], [], []>} : vector<64x32xbf16>, vector<32x7xbf16>, vector<64x7xf32> -> vector<64x7xf32>
      %46 = arith.addf %35, %45 : vector<64x7xf32>
      %47 = vector.extract_strided_slice %40 {offsets = [1, 0, 0], sizes = [1, 32, 7], strides = [1, 1, 1]} : vector<2x32x9xbf16> to vector<1x32x7xbf16>
      %48 = vector.shape_cast %47 : vector<1x32x7xbf16> to vector<32x7xbf16>
      %c6 = arith.constant 6 : index
      %c0_31 = arith.constant 0 : index
      %c0_32 = arith.constant 0 : index
      %49 = vector.load %arg2[%c6, %c0_31, %c0_32] : memref<25x64x32xbf16, #tpu.memory_space<vmem>>, vector<1x64x32xbf16>
      %50 = vector.shape_cast %49 : vector<1x64x32xbf16> to vector<64x32xbf16>
      %cst_33 = arith.constant dense<0.000000e+00> : vector<64x7xf32>
      %51 = tpu.matmul %50, %48, %cst_33 {dimension_numbers = #tpu.dot_dimension_numbers<[1], [0], [0], [1], [0, 0, 1, 1], [], []>} : vector<64x32xbf16>, vector<32x7xbf16>, vector<64x7xf32> -> vector<64x7xf32>
      %52 = arith.addf %46, %51 : vector<64x7xf32>
      %53 = vector.extract_strided_slice %40 {offsets = [0, 0, 1], sizes = [1, 32, 7], strides = [1, 1, 1]} : vector<2x32x9xbf16> to vector<1x32x7xbf16>
      %54 = vector.shape_cast %53 : vector<1x32x7xbf16> to vector<32x7xbf16>
      %c7 = arith.constant 7 : index
      %c0_34 = arith.constant 0 : index
      %c0_35 = arith.constant 0 : index
      %55 = vector.load %arg2[%c7, %c0_34, %c0_35] : memref<25x64x32xbf16, #tpu.memory_space<vmem>>, vector<1x64x32xbf16>
      %56 = vector.shape_cast %55 : vector<1x64x32xbf16> to vector<64x32xbf16>
      %cst_36 = arith.constant dense<0.000000e+00> : vector<64x7xf32>
      %57 = tpu.matmul %56, %54, %cst_36 {dimension_numbers = #tpu.dot_dimension_numbers<[1], [0], [0], [1], [0, 0, 1, 1], [], []>} : vector<64x32xbf16>, vector<32x7xbf16>, vector<64x7xf32> -> vector<64x7xf32>
      %58 = arith.addf %52, %57 : vector<64x7xf32>
      %59 = vector.extract_strided_slice %40 {offsets = [1, 0, 1], sizes = [1, 32, 7], strides = [1, 1, 1]} : vector<2x32x9xbf16> to vector<1x32x7xbf16>
      %60 = vector.shape_cast %59 : vector<1x32x7xbf16> to vector<32x7xbf16>
      %c8 = arith.constant 8 : index
      %c0_37 = arith.constant 0 : index
      %c0_38 = arith.constant 0 : index
      %61 = vector.load %arg2[%c8, %c0_37, %c0_38] : memref<25x64x32xbf16, #tpu.memory_space<vmem>>, vector<1x64x32xbf16>
      %62 = vector.shape_cast %61 : vector<1x64x32xbf16> to vector<64x32xbf16>
      %cst_39 = arith.constant dense<0.000000e+00> : vector<64x7xf32>
      %63 = tpu.matmul %62, %60, %cst_39 {dimension_numbers = #tpu.dot_dimension_numbers<[1], [0], [0], [1], [0, 0, 1, 1], [], []>} : vector<64x32xbf16>, vector<32x7xbf16>, vector<64x7xf32> -> vector<64x7xf32>
      %64 = arith.addf %58, %63 : vector<64x7xf32>
      %65 = vector.extract_strided_slice %40 {offsets = [0, 0, 2], sizes = [1, 32, 7], strides = [1, 1, 1]} : vector<2x32x9xbf16> to vector<1x32x7xbf16>
      %66 = vector.shape_cast %65 : vector<1x32x7xbf16> to vector<32x7xbf16>
      %c9 = arith.constant 9 : index
      %c0_40 = arith.constant 0 : index
      %c0_41 = arith.constant 0 : index
      %67 = vector.load %arg2[%c9, %c0_40, %c0_41] : memref<25x64x32xbf16, #tpu.memory_space<vmem>>, vector<1x64x32xbf16>
      %68 = vector.shape_cast %67 : vector<1x64x32xbf16> to vector<64x32xbf16>
      %cst_42 = arith.constant dense<0.000000e+00> : vector<64x7xf32>
      %69 = tpu.matmul %68, %66, %cst_42 {dimension_numbers = #tpu.dot_dimension_numbers<[1], [0], [0], [1], [0, 0, 1, 1], [], []>} : vector<64x32xbf16>, vector<32x7xbf16>, vector<64x7xf32> -> vector<64x7xf32>
      %70 = arith.addf %64, %69 : vector<64x7xf32>
      %c2_i32_43 = arith.constant 2 : i32
      %71 = arith.muli %c2_i32_43, %arg5 : i32
      %c2_i32_44 = arith.constant 2 : i32
      %72 = arith.addi %71, %c2_i32_44 : i32
      %c0_45 = arith.constant 0 : index
      %73 = arith.index_cast %72 : i32 to index
      %c0_46 = arith.constant 0 : index
      %c0_47 = arith.constant 0 : index
      %c0_48 = arith.constant 0 : index
      %74 = vector.load %arg1[%c0_45, %73, %c0_46, %c0_47, %c0_48] : memref<1x18x2x32x9xbf16, #tpu.memory_space<vmem>>, vector<1x1x2x32x9xbf16>
      %75 = vector.shape_cast %74 : vector<1x1x2x32x9xbf16> to vector<2x32x9xbf16>
      %76 = vector.extract_strided_slice %75 {offsets = [0, 0, 0], sizes = [1, 32, 7], strides = [1, 1, 1]} : vector<2x32x9xbf16> to vector<1x32x7xbf16>
      %77 = vector.shape_cast %76 : vector<1x32x7xbf16> to vector<32x7xbf16>
      %c10 = arith.constant 10 : index
      %c0_49 = arith.constant 0 : index
      %c0_50 = arith.constant 0 : index
      %78 = vector.load %arg2[%c10, %c0_49, %c0_50] : memref<25x64x32xbf16, #tpu.memory_space<vmem>>, vector<1x64x32xbf16>
      %79 = vector.shape_cast %78 : vector<1x64x32xbf16> to vector<64x32xbf16>
      %cst_51 = arith.constant dense<0.000000e+00> : vector<64x7xf32>
      %80 = tpu.matmul %79, %77, %cst_51 {dimension_numbers = #tpu.dot_dimension_numbers<[1], [0], [0], [1], [0, 0, 1, 1], [], []>} : vector<64x32xbf16>, vector<32x7xbf16>, vector<64x7xf32> -> vector<64x7xf32>
      %81 = arith.addf %70, %80 : vector<64x7xf32>
      %82 = vector.extract_strided_slice %75 {offsets = [1, 0, 0], sizes = [1, 32, 7], strides = [1, 1, 1]} : vector<2x32x9xbf16> to vector<1x32x7xbf16>
      %83 = vector.shape_cast %82 : vector<1x32x7xbf16> to vector<32x7xbf16>
      %c11 = arith.constant 11 : index
      %c0_52 = arith.constant 0 : index
      %c0_53 = arith.constant 0 : index
      %84 = vector.load %arg2[%c11, %c0_52, %c0_53] : memref<25x64x32xbf16, #tpu.memory_space<vmem>>, vector<1x64x32xbf16>
      %85 = vector.shape_cast %84 : vector<1x64x32xbf16> to vector<64x32xbf16>
      %cst_54 = arith.constant dense<0.000000e+00> : vector<64x7xf32>
      %86 = tpu.matmul %85, %83, %cst_54 {dimension_numbers = #tpu.dot_dimension_numbers<[1], [0], [0], [1], [0, 0, 1, 1], [], []>} : vector<64x32xbf16>, vector<32x7xbf16>, vector<64x7xf32> -> vector<64x7xf32>
      %87 = arith.addf %81, %86 : vector<64x7xf32>
      %88 = vector.extract_strided_slice %75 {offsets = [0, 0, 1], sizes = [1, 32, 7], strides = [1, 1, 1]} : vector<2x32x9xbf16> to vector<1x32x7xbf16>
      %89 = vector.shape_cast %88 : vector<1x32x7xbf16> to vector<32x7xbf16>
      %c12 = arith.constant 12 : index
      %c0_55 = arith.constant 0 : index
      %c0_56 = arith.constant 0 : index
      %90 = vector.load %arg2[%c12, %c0_55, %c0_56] : memref<25x64x32xbf16, #tpu.memory_space<vmem>>, vector<1x64x32xbf16>
      %91 = vector.shape_cast %90 : vector<1x64x32xbf16> to vector<64x32xbf16>
      %cst_57 = arith.constant dense<0.000000e+00> : vector<64x7xf32>
      %92 = tpu.matmul %91, %89, %cst_57 {dimension_numbers = #tpu.dot_dimension_numbers<[1], [0], [0], [1], [0, 0, 1, 1], [], []>} : vector<64x32xbf16>, vector<32x7xbf16>, vector<64x7xf32> -> vector<64x7xf32>
      %93 = arith.addf %87, %92 : vector<64x7xf32>
      %94 = vector.extract_strided_slice %75 {offsets = [1, 0, 1], sizes = [1, 32, 7], strides = [1, 1, 1]} : vector<2x32x9xbf16> to vector<1x32x7xbf16>
      %95 = vector.shape_cast %94 : vector<1x32x7xbf16> to vector<32x7xbf16>
      %c13 = arith.constant 13 : index
      %c0_58 = arith.constant 0 : index
      %c0_59 = arith.constant 0 : index
      %96 = vector.load %arg2[%c13, %c0_58, %c0_59] : memref<25x64x32xbf16, #tpu.memory_space<vmem>>, vector<1x64x32xbf16>
      %97 = vector.shape_cast %96 : vector<1x64x32xbf16> to vector<64x32xbf16>
      %cst_60 = arith.constant dense<0.000000e+00> : vector<64x7xf32>
      %98 = tpu.matmul %97, %95, %cst_60 {dimension_numbers = #tpu.dot_dimension_numbers<[1], [0], [0], [1], [0, 0, 1, 1], [], []>} : vector<64x32xbf16>, vector<32x7xbf16>, vector<64x7xf32> -> vector<64x7xf32>
      %99 = arith.addf %93, %98 : vector<64x7xf32>
      %100 = vector.extract_strided_slice %75 {offsets = [0, 0, 2], sizes = [1, 32, 7], strides = [1, 1, 1]} : vector<2x32x9xbf16> to vector<1x32x7xbf16>
      %101 = vector.shape_cast %100 : vector<1x32x7xbf16> to vector<32x7xbf16>
      %c14 = arith.constant 14 : index
      %c0_61 = arith.constant 0 : index
      %c0_62 = arith.constant 0 : index
      %102 = vector.load %arg2[%c14, %c0_61, %c0_62] : memref<25x64x32xbf16, #tpu.memory_space<vmem>>, vector<1x64x32xbf16>
      %103 = vector.shape_cast %102 : vector<1x64x32xbf16> to vector<64x32xbf16>
      %cst_63 = arith.constant dense<0.000000e+00> : vector<64x7xf32>
      %104 = tpu.matmul %103, %101, %cst_63 {dimension_numbers = #tpu.dot_dimension_numbers<[1], [0], [0], [1], [0, 0, 1, 1], [], []>} : vector<64x32xbf16>, vector<32x7xbf16>, vector<64x7xf32> -> vector<64x7xf32>
      %105 = arith.addf %99, %104 : vector<64x7xf32>
      %c2_i32_64 = arith.constant 2 : i32
      %106 = arith.muli %c2_i32_64, %arg5 : i32
      %c3_i32 = arith.constant 3 : i32
      %107 = arith.addi %106, %c3_i32 : i32
      %c0_65 = arith.constant 0 : index
      %108 = arith.index_cast %107 : i32 to index
      %c0_66 = arith.constant 0 : index
      %c0_67 = arith.constant 0 : index
      %c0_68 = arith.constant 0 : index
      %109 = vector.load %arg1[%c0_65, %108, %c0_66, %c0_67, %c0_68] : memref<1x18x2x32x9xbf16, #tpu.memory_space<vmem>>, vector<1x1x2x32x9xbf16>
      %110 = vector.shape_cast %109 : vector<1x1x2x32x9xbf16> to vector<2x32x9xbf16>
      %111 = vector.extract_strided_slice %110 {offsets = [0, 0, 0], sizes = [1, 32, 7], strides = [1, 1, 1]} : vector<2x32x9xbf16> to vector<1x32x7xbf16>
      %112 = vector.shape_cast %111 : vector<1x32x7xbf16> to vector<32x7xbf16>
      %c15 = arith.constant 15 : index
      %c0_69 = arith.constant 0 : index
      %c0_70 = arith.constant 0 : index
      %113 = vector.load %arg2[%c15, %c0_69, %c0_70] : memref<25x64x32xbf16, #tpu.memory_space<vmem>>, vector<1x64x32xbf16>
      %114 = vector.shape_cast %113 : vector<1x64x32xbf16> to vector<64x32xbf16>
      %cst_71 = arith.constant dense<0.000000e+00> : vector<64x7xf32>
      %115 = tpu.matmul %114, %112, %cst_71 {dimension_numbers = #tpu.dot_dimension_numbers<[1], [0], [0], [1], [0, 0, 1, 1], [], []>} : vector<64x32xbf16>, vector<32x7xbf16>, vector<64x7xf32> -> vector<64x7xf32>
      %116 = arith.addf %105, %115 : vector<64x7xf32>
      %117 = vector.extract_strided_slice %110 {offsets = [1, 0, 0], sizes = [1, 32, 7], strides = [1, 1, 1]} : vector<2x32x9xbf16> to vector<1x32x7xbf16>
      %118 = vector.shape_cast %117 : vector<1x32x7xbf16> to vector<32x7xbf16>
      %c16 = arith.constant 16 : index
      %c0_72 = arith.constant 0 : index
      %c0_73 = arith.constant 0 : index
      %119 = vector.load %arg2[%c16, %c0_72, %c0_73] : memref<25x64x32xbf16, #tpu.memory_space<vmem>>, vector<1x64x32xbf16>
      %120 = vector.shape_cast %119 : vector<1x64x32xbf16> to vector<64x32xbf16>
      %cst_74 = arith.constant dense<0.000000e+00> : vector<64x7xf32>
      %121 = tpu.matmul %120, %118, %cst_74 {dimension_numbers = #tpu.dot_dimension_numbers<[1], [0], [0], [1], [0, 0, 1, 1], [], []>} : vector<64x32xbf16>, vector<32x7xbf16>, vector<64x7xf32> -> vector<64x7xf32>
      %122 = arith.addf %116, %121 : vector<64x7xf32>
      %123 = vector.extract_strided_slice %110 {offsets = [0, 0, 1], sizes = [1, 32, 7], strides = [1, 1, 1]} : vector<2x32x9xbf16> to vector<1x32x7xbf16>
      %124 = vector.shape_cast %123 : vector<1x32x7xbf16> to vector<32x7xbf16>
      %c17 = arith.constant 17 : index
      %c0_75 = arith.constant 0 : index
      %c0_76 = arith.constant 0 : index
      %125 = vector.load %arg2[%c17, %c0_75, %c0_76] : memref<25x64x32xbf16, #tpu.memory_space<vmem>>, vector<1x64x32xbf16>
      %126 = vector.shape_cast %125 : vector<1x64x32xbf16> to vector<64x32xbf16>
      %cst_77 = arith.constant dense<0.000000e+00> : vector<64x7xf32>
      %127 = tpu.matmul %126, %124, %cst_77 {dimension_numbers = #tpu.dot_dimension_numbers<[1], [0], [0], [1], [0, 0, 1, 1], [], []>} : vector<64x32xbf16>, vector<32x7xbf16>, vector<64x7xf32> -> vector<64x7xf32>
      %128 = arith.addf %122, %127 : vector<64x7xf32>
      %129 = vector.extract_strided_slice %110 {offsets = [1, 0, 1], sizes = [1, 32, 7], strides = [1, 1, 1]} : vector<2x32x9xbf16> to vector<1x32x7xbf16>
      %130 = vector.shape_cast %129 : vector<1x32x7xbf16> to vector<32x7xbf16>
      %c18 = arith.constant 18 : index
      %c0_78 = arith.constant 0 : index
      %c0_79 = arith.constant 0 : index
      %131 = vector.load %arg2[%c18, %c0_78, %c0_79] : memref<25x64x32xbf16, #tpu.memory_space<vmem>>, vector<1x64x32xbf16>
      %132 = vector.shape_cast %131 : vector<1x64x32xbf16> to vector<64x32xbf16>
      %cst_80 = arith.constant dense<0.000000e+00> : vector<64x7xf32>
      %133 = tpu.matmul %132, %130, %cst_80 {dimension_numbers = #tpu.dot_dimension_numbers<[1], [0], [0], [1], [0, 0, 1, 1], [], []>} : vector<64x32xbf16>, vector<32x7xbf16>, vector<64x7xf32> -> vector<64x7xf32>
      %134 = arith.addf %128, %133 : vector<64x7xf32>
      %135 = vector.extract_strided_slice %110 {offsets = [0, 0, 2], sizes = [1, 32, 7], strides = [1, 1, 1]} : vector<2x32x9xbf16> to vector<1x32x7xbf16>
      %136 = vector.shape_cast %135 : vector<1x32x7xbf16> to vector<32x7xbf16>
      %c19 = arith.constant 19 : index
      %c0_81 = arith.constant 0 : index
      %c0_82 = arith.constant 0 : index
      %137 = vector.load %arg2[%c19, %c0_81, %c0_82] : memref<25x64x32xbf16, #tpu.memory_space<vmem>>, vector<1x64x32xbf16>
      %138 = vector.shape_cast %137 : vector<1x64x32xbf16> to vector<64x32xbf16>
      %cst_83 = arith.constant dense<0.000000e+00> : vector<64x7xf32>
      %139 = tpu.matmul %138, %136, %cst_83 {dimension_numbers = #tpu.dot_dimension_numbers<[1], [0], [0], [1], [0, 0, 1, 1], [], []>} : vector<64x32xbf16>, vector<32x7xbf16>, vector<64x7xf32> -> vector<64x7xf32>
      %140 = arith.addf %134, %139 : vector<64x7xf32>
      %c2_i32_84 = arith.constant 2 : i32
      %141 = arith.muli %c2_i32_84, %arg5 : i32
      %c4_i32 = arith.constant 4 : i32
      %142 = arith.addi %141, %c4_i32 : i32
      %c0_85 = arith.constant 0 : index
      %143 = arith.index_cast %142 : i32 to index
      %c0_86 = arith.constant 0 : index
      %c0_87 = arith.constant 0 : index
      %c0_88 = arith.constant 0 : index
      %144 = vector.load %arg1[%c0_85, %143, %c0_86, %c0_87, %c0_88] : memref<1x18x2x32x9xbf16, #tpu.memory_space<vmem>>, vector<1x1x2x32x9xbf16>
      %145 = vector.shape_cast %144 : vector<1x1x2x32x9xbf16> to vector<2x32x9xbf16>
      %146 = vector.extract_strided_slice %145 {offsets = [0, 0, 0], sizes = [1, 32, 7], strides = [1, 1, 1]} : vector<2x32x9xbf16> to vector<1x32x7xbf16>
      %147 = vector.shape_cast %146 : vector<1x32x7xbf16> to vector<32x7xbf16>
      %c20 = arith.constant 20 : index
      %c0_89 = arith.constant 0 : index
      %c0_90 = arith.constant 0 : index
      %148 = vector.load %arg2[%c20, %c0_89, %c0_90] : memref<25x64x32xbf16, #tpu.memory_space<vmem>>, vector<1x64x32xbf16>
      %149 = vector.shape_cast %148 : vector<1x64x32xbf16> to vector<64x32xbf16>
      %cst_91 = arith.constant dense<0.000000e+00> : vector<64x7xf32>
      %150 = tpu.matmul %149, %147, %cst_91 {dimension_numbers = #tpu.dot_dimension_numbers<[1], [0], [0], [1], [0, 0, 1, 1], [], []>} : vector<64x32xbf16>, vector<32x7xbf16>, vector<64x7xf32> -> vector<64x7xf32>
      %151 = arith.addf %140, %150 : vector<64x7xf32>
      %152 = vector.extract_strided_slice %145 {offsets = [1, 0, 0], sizes = [1, 32, 7], strides = [1, 1, 1]} : vector<2x32x9xbf16> to vector<1x32x7xbf16>
      %153 = vector.shape_cast %152 : vector<1x32x7xbf16> to vector<32x7xbf16>
      %c21 = arith.constant 21 : index
      %c0_92 = arith.constant 0 : index
      %c0_93 = arith.constant 0 : index
      %154 = vector.load %arg2[%c21, %c0_92, %c0_93] : memref<25x64x32xbf16, #tpu.memory_space<vmem>>, vector<1x64x32xbf16>
      %155 = vector.shape_cast %154 : vector<1x64x32xbf16> to vector<64x32xbf16>
      %cst_94 = arith.constant dense<0.000000e+00> : vector<64x7xf32>
      %156 = tpu.matmul %155, %153, %cst_94 {dimension_numbers = #tpu.dot_dimension_numbers<[1], [0], [0], [1], [0, 0, 1, 1], [], []>} : vector<64x32xbf16>, vector<32x7xbf16>, vector<64x7xf32> -> vector<64x7xf32>
      %157 = arith.addf %151, %156 : vector<64x7xf32>
      %158 = vector.extract_strided_slice %145 {offsets = [0, 0, 1], sizes = [1, 32, 7], strides = [1, 1, 1]} : vector<2x32x9xbf16> to vector<1x32x7xbf16>
      %159 = vector.shape_cast %158 : vector<1x32x7xbf16> to vector<32x7xbf16>
      %c22 = arith.constant 22 : index
      %c0_95 = arith.constant 0 : index
      %c0_96 = arith.constant 0 : index
      %160 = vector.load %arg2[%c22, %c0_95, %c0_96] : memref<25x64x32xbf16, #tpu.memory_space<vmem>>, vector<1x64x32xbf16>
      %161 = vector.shape_cast %160 : vector<1x64x32xbf16> to vector<64x32xbf16>
      %cst_97 = arith.constant dense<0.000000e+00> : vector<64x7xf32>
      %162 = tpu.matmul %161, %159, %cst_97 {dimension_numbers = #tpu.dot_dimension_numbers<[1], [0], [0], [1], [0, 0, 1, 1], [], []>} : vector<64x32xbf16>, vector<32x7xbf16>, vector<64x7xf32> -> vector<64x7xf32>
      %163 = arith.addf %157, %162 : vector<64x7xf32>
      %164 = vector.extract_strided_slice %145 {offsets = [1, 0, 1], sizes = [1, 32, 7], strides = [1, 1, 1]} : vector<2x32x9xbf16> to vector<1x32x7xbf16>
      %165 = vector.shape_cast %164 : vector<1x32x7xbf16> to vector<32x7xbf16>
      %c23 = arith.constant 23 : index
      %c0_98 = arith.constant 0 : index
      %c0_99 = arith.constant 0 : index
      %166 = vector.load %arg2[%c23, %c0_98, %c0_99] : memref<25x64x32xbf16, #tpu.memory_space<vmem>>, vector<1x64x32xbf16>
      %167 = vector.shape_cast %166 : vector<1x64x32xbf16> to vector<64x32xbf16>
      %cst_100 = arith.constant dense<0.000000e+00> : vector<64x7xf32>
      %168 = tpu.matmul %167, %165, %cst_100 {dimension_numbers = #tpu.dot_dimension_numbers<[1], [0], [0], [1], [0, 0, 1, 1], [], []>} : vector<64x32xbf16>, vector<32x7xbf16>, vector<64x7xf32> -> vector<64x7xf32>
      %169 = arith.addf %163, %168 : vector<64x7xf32>
      %170 = vector.extract_strided_slice %145 {offsets = [0, 0, 2], sizes = [1, 32, 7], strides = [1, 1, 1]} : vector<2x32x9xbf16> to vector<1x32x7xbf16>
      %171 = vector.shape_cast %170 : vector<1x32x7xbf16> to vector<32x7xbf16>
      %c24 = arith.constant 24 : index
      %c0_101 = arith.constant 0 : index
      %c0_102 = arith.constant 0 : index
      %172 = vector.load %arg2[%c24, %c0_101, %c0_102] : memref<25x64x32xbf16, #tpu.memory_space<vmem>>, vector<1x64x32xbf16>
      %173 = vector.shape_cast %172 : vector<1x64x32xbf16> to vector<64x32xbf16>
      %cst_103 = arith.constant dense<0.000000e+00> : vector<64x7xf32>
      %174 = tpu.matmul %173, %171, %cst_103 {dimension_numbers = #tpu.dot_dimension_numbers<[1], [0], [0], [1], [0, 0, 1, 1], [], []>} : vector<64x32xbf16>, vector<32x7xbf16>, vector<64x7xf32> -> vector<64x7xf32>
      %175 = arith.addf %169, %174 : vector<64x7xf32>
      %176 = vector.broadcast %0 : vector<64x1xf32> to vector<64x7xf32>
      %177 = arith.addf %175, %176 : vector<64x7xf32>
      %cst_104 = arith.constant 0.000000e+00 : f32
      %178 = vector.broadcast %cst_104 : f32 to vector<64x7xf32>
      %179 = arith.cmpf oge, %177, %178 : vector<64x7xf32>
      %cst_105 = arith.constant 2.000000e-01 : f32
      %180 = vector.broadcast %cst_105 : f32 to vector<64x7xf32>
      %181 = arith.mulf %180, %177 : vector<64x7xf32>
      %182 = arith.select %179, %177, %181 : vector<64x7xi1>, vector<64x7xf32>
      %183 = arith.truncf %182 : vector<64x7xf32> to vector<64x7xbf16>
      %c0_106 = arith.constant 0 : index
      %184 = arith.index_cast %arg5 : i32 to index
      %c0_107 = arith.constant 0 : index
      %c0_108 = arith.constant 0 : index
      %185 = vector.load %arg4[%c0_106, %184, %c0_107, %c0_108] : memref<1x7x64x7xbf16, #tpu.memory_space<vmem>>, vector<1x1x64x7xbf16>
      %186 = vector.shape_cast %185 : vector<1x1x64x7xbf16> to vector<64x7xbf16>
      %187 = vector.shape_cast %183 : vector<64x7xbf16> to vector<1x1x64x7xbf16>
      tpu.vector_store %arg4[%c0_106, %184, %c0_107, %c0_108], %187 {strides = array<i32>} : memref<1x7x64x7xbf16, #tpu.memory_space<vmem>>, vector<1x1x64x7xbf16>,
    }
    %c7_i32_1 = arith.constant 7 : i32
    return
  }
  func.func @transform_0(%arg0: i32) -> (i32, i32, i32, i32, i32) {
    %c0_i32 = arith.constant 0 : i32
    %c0_i32_0 = arith.constant 0 : i32
    %c0_i32_1 = arith.constant 0 : i32
    %c0_i32_2 = arith.constant 0 : i32
    %c0_i32_3 = arith.constant 0 : i32
    return %arg0, %c0_i32, %c0_i32_0, %c0_i32_1, %c0_i32_2 : i32, i32, i32, i32, i32
  }
  func.func @transform_1(%arg0: i32) -> (i32, i32, i32) {
    %c0_i32 = arith.constant 0 : i32
    %c0_i32_0 = arith.constant 0 : i32
    %c0_i32_1 = arith.constant 0 : i32
    %c0_i32_2 = arith.constant 0 : i32
    return %c0_i32, %c0_i32_0, %c0_i32_1 : i32, i32, i32
  }
  func.func @transform_2(%arg0: i32) -> (i32, i32) {
    %c0_i32 = arith.constant 0 : i32
    %c0_i32_0 = arith.constant 0 : i32
    %c0_i32_1 = arith.constant 0 : i32
    return %c0_i32, %c0_i32_0 : i32, i32
  }
  func.func @transform_3(%arg0: i32) -> (i32, i32, i32, i32) {
    %c0_i32 = arith.constant 0 : i32
    %c0_i32_0 = arith.constant 0 : i32
    %c0_i32_1 = arith.constant 0 : i32
    %c0_i32_2 = arith.constant 0 : i32
    return %arg0, %c0_i32, %c0_i32_0, %c0_i32_1 : i32, i32, i32, i32
  }
}

module attributes {stable_mosaic.version = 11 : i64} {
  func.func @_linear_kernel(%arg0: i32, %arg1: memref<2x3136xbf16, #tpu.memory_space<vmem>>, %arg2: memref<1x3136xf32, #tpu.memory_space<vmem>>, %arg3: memref<1x1xf32, #tpu.memory_space<vmem>>, %arg4: memref<2x1xf32, #tpu.memory_space<vmem>>) attributes {dimension_semantics = [#tpu.dimension_semantics<arbitrary>], iteration_bounds = array<i64: 1>, scalar_prefetch = 0 : i64, scratch_operands = 0 : i64, tpu.core_type = #tpu.core_type<tc>, window_params = [{pipeline_mode = #tpu.pipeline_mode<synchronous>, transform_indices = @transform_0, window_bounds = array<i64: 2, 3136>}, {pipeline_mode = #tpu.pipeline_mode<synchronous>, transform_indices = @transform_1, window_bounds = array<i64: 1, 3136>}, {pipeline_mode = #tpu.pipeline_mode<synchronous>, transform_indices = @transform_2, window_bounds = array<i64: 1, 1>}, {pipeline_mode = #tpu.pipeline_mode<synchronous>, transform_indices = @transform_3, window_bounds = array<i64: 2, 1>}]} {
    %c0 = arith.constant 0 : index
    %c0_0 = arith.constant 0 : index
    %0 = vector.load %arg1[%c0, %c0_0] : memref<2x3136xbf16, #tpu.memory_space<vmem>>, vector<2x3136xbf16>
    %1 = arith.extf %0 : vector<2x3136xbf16> to vector<2x3136xf32>
    %c0_1 = arith.constant 0 : index
    %c0_2 = arith.constant 0 : index
    %2 = vector.load %arg2[%c0_1, %c0_2] : memref<1x3136xf32, #tpu.memory_space<vmem>>, vector<1x3136xf32>
    %3 = vector.broadcast %2 : vector<1x3136xf32> to vector<2x3136xf32>
    %4 = arith.mulf %1, %3 : vector<2x3136xf32>
    %cst = arith.constant dense<0.000000e+00> : vector<2xf32>
    %5 = vector.multi_reduction <add>, %4, %cst [1] : vector<2x3136xf32> to vector<2xf32>
    %6 = vector.shape_cast %5 : vector<2xf32> to vector<2x1xf32>
    %c0_3 = arith.constant 0 : index
    %c0_4 = arith.constant 0 : index
    %7 = vector.load %arg3[%c0_3, %c0_4] : memref<1x1xf32, #tpu.memory_space<vmem>>, vector<1x1xf32>
    %8 = vector.broadcast %7 : vector<1x1xf32> to vector<2x1xf32>
    %9 = arith.addf %6, %8 : vector<2x1xf32>
    %c0_5 = arith.constant 0 : index
    %c0_6 = arith.constant 0 : index
    %10 = vector.load %arg4[%c0_5, %c0_6] : memref<2x1xf32, #tpu.memory_space<vmem>>, vector<2x1xf32>
    tpu.vector_store %arg4[%c0_5, %c0_6], %9 {strides = array<i32>} : memref<2x1xf32, #tpu.memory_space<vmem>>, vector<2x1xf32>,
    return
  }
  func.func @transform_0(%arg0: i32) -> (i32, i32) {
    %c0_i32 = arith.constant 0 : i32
    %c0_i32_0 = arith.constant 0 : i32
    %c0_i32_1 = arith.constant 0 : i32
    return %c0_i32, %c0_i32_0 : i32, i32
  }
  func.func @transform_1(%arg0: i32) -> (i32, i32) {
    %c0_i32 = arith.constant 0 : i32
    %c0_i32_0 = arith.constant 0 : i32
    %c0_i32_1 = arith.constant 0 : i32
    return %c0_i32, %c0_i32_0 : i32, i32
  }
  func.func @transform_2(%arg0: i32) -> (i32, i32) {
    %c0_i32 = arith.constant 0 : i32
    %c0_i32_0 = arith.constant 0 : i32
    %c0_i32_1 = arith.constant 0 : i32
    return %c0_i32, %c0_i32_0 : i32, i32
  }
  func.func @transform_3(%arg0: i32) -> (i32, i32) {
    %c0_i32 = arith.constant 0 : i32
    %c0_i32_0 = arith.constant 0 : i32
    %c0_i32_1 = arith.constant 0 : i32
    return %c0_i32, %c0_i32_0 : i32, i32
  }
}

</mosaic_0001>

<bundles_post_ra>
// kernel: discriminator_forward.6
= control target key start
LH: loop header
LB: loop body
LE: loop exit
PB: predicated region body
PF: predicated region fallthrough
CT: control target
= control target key end

     0   :  { %s1077_s12 = smov 0   ;;  %s1296_s0 = inlined_call_operand.vmem [shape: bf16[2,228,2,3,114], index: 0, kind: input, shape index: {}]   ;;  %s1297_s1 = inlined_call_operand.vmem [shape: bf16[25,8,3], index: 1, kind: input, shape index: {}]   ;;  %s1298_s2 = inlined_call_operand.vmem [shape: f32[8,1], index: 2, kind: input, shape index: {}]   ;;  %s1299_s3 = inlined_call_operand.vmem [shape: bf16[2,112,8,112], index: 3, kind: output, shape index: {}]  }
   0x1 LB: > { %s930_s13 = sadd.s32 4294967295, %s1047_s12   ;;  %p934_p0 = scmp.ge.s32.totalorder %s1047_s12, 1  ;;  %s1047_s12 = sphi %s1077_s12, %s13_s12  }
   0x2   : > { %p137_p1 = scmp.lt.s32.totalorder %s1047_s12, 3 }
   0x4   : > { %p138_p2 = pnand %p934_p0, %p137_p1 }
   0x5   : > { %p161_p3 = scmp.lt.s32.totalorder (!%p138_p2), %s930_s13, 1  ;;  %s1100_s24 = smov (!%p138_p2), 0  }
   0x6   : > { %141 = sbr.rel (%p138_p2) target bundleno = 395 (0x18b), region = 32 }
   0xb   : > { %v1088_v0 = vld [vmem:[%s1298_s2] sm:$0xff]  ;;  %s1301_s13 = smov (!%p161_p3, %s930_s13), 1 }
   0xc   : > { %s1014_s16 = smul.u32 912, %s1301_s13 }
   0xd   : > { %s1015_s17 = smul.u32 448, %s1301_s13 }
   0xe   : > { %s1093_s20 = scalar_lea.vmem %s1296_s0, %s1014_s16 }
   0xf   : > { %s1098_s23 = scalar_lea.vmem %s1299_s3, %s1015_s17 }
  0x10 LB: >> { %s1009_s25 = sshll.u32 %s1051_s24, 3  ;;  %s1053_s27 = smov 127   ;;  %vm192_vm0 = vcmask 1040384   ;;  %vm193_vm1 = vcmask 1041408   ;;  %v1055_v20 = vmov 65535   ;;  %vm188_vm2 = vcmask 23552   ;;  %s1051_s24 = sphi %s1100_s24, %s178_s24  }
  0x11   : >> { %s1107_s26 = scalar_lea.vmem %s1093_s20, %s1009_s25  ;;  %s1054_s28 = smov 126   ;;  %v194_v21 = vsel %vm192_vm0, 4294967295, %v1055_v20  ;;  %v940_v26 = vld [vmem:[%s1297_s1 + $0x4] sm:$0xf]  ;;  %v185_v28 = vld [vmem:[%s1297_s1] sm:$0xf] }
  0x12   : >> { %v183_v1 = vld [vmem:[%s1107_s26] sm:$0x3]  ;;  %v184_v2 = vld [vmem:[%s1107_s26 + $0x2] sm:$0x3]  ;;  %v951_v5 = vld [vmem:[%s1107_s26 + $0x4] sm:$0x3] }
  0x13   : >> { %233 = vst [vmem:[#allocation1] ss:$4 sm:$0xff] %v183_v1  ;;  %v1116_v7 = vld [vmem:[%s1107_s26 + $0x6] sm:$0x3]  ;;  %v965_v10 = vld [vmem:[%s1107_s26 + $0x8] sm:$0x3] }
  0x14   : >> { %v1124_v12 = vld [vmem:[%s1107_s26 + $0xa] sm:$0x3]  ;;  %v1130_v15 = vld [vmem:[%s1107_s26 + $0xc] sm:$0x3]  ;;  %v1135_v17 = vld [vmem:[%s1107_s26 + $0xe] sm:$0x3] }
  0x15   : >> { %v1141_v22 = vsel %vm193_vm1, %v194_v21, 0  ;;  %v1146_v25 = vld [vmem:[%s1107_s26 + $0x10] sm:$0x3]  ;;  %v1159_v29 = vld [vmem:[%s1107_s26 + $0x12] sm:$0x3]  ;;  %s1005_s6 = sshll.u32 %s1051_s24, 2 }
  0x16   : >> { %v197_v23 = vand.u32 %v1141_v22, %v184_v2  ;;  %v216_v24 = vand.u32 %v1141_v22, %v183_v1  ;;  %v324_v31 = vand.u32 %v951_v5, %v1141_v22  ;;  %v953_v33 = vld [vmem:[%s1297_s1 + $0x14] sm:$0xf]  ;;  %v346_v36 = vand.u32 %v1116_v7, %v1141_v22  ;;  %v943_v38 = vld [vmem:[%s1297_s1 + $0x8] sm:$0xf]  ;;  %v945_v43 = vld [vmem:[%s1297_s1 + $0xc] sm:$0xf]  ;;  %s847_s7 = scalar_lea.vmem %s1098_s23, %s1005_s6 }
  0x17   : >> { %v455_v39 = vand.u32 %v965_v10, %v1141_v22  ;;  %v947_v49 = vld [vmem:[%s1297_s1 + $0x10] sm:$0xf]  ;;  %v955_v50 = vld [vmem:[%s1297_s1 + $0x18] sm:$0xf]  ;;  %v961_v51 = vld [vmem:[%s1297_s1 + $0x24] sm:$0xf]  ;;  %v477_v53 = vand.u32 %v1124_v12, %v1141_v22  ;;  %v586_v58 = vand.u32 %v1130_v15, %v1141_v22 }
  0x18   : >> { %206 = vmatpush.bf16.msra.mxu0 %v197_v23  ;;  %225 = vmatpush.bf16.msra.mxu1 %v216_v24  ;;  %v957_v55 = vld [vmem:[%s1297_s1 + $0x1c] sm:$0xf]  ;;  %v959_v59 = vld [vmem:[%s1297_s1 + $0x20] sm:$0xf]  ;;  %v967_v60 = vld [vmem:[%s1297_s1 + $0x28] sm:$0xf] }
  0x19   : >> { %v973_v61 = vld [vmem:[%s1297_s1 + $0x34] sm:$0xf]  ;;  %v969_v62 = vld [vmem:[%s1297_s1 + $0x2c] sm:$0xf]  ;;  %vm848_vm4 = vcmask 912384   ;;  %s178_s24 = sadd.s32 1, %s1051_s24  }
  0x1a   : >> { %v234_v3 = vld.sshfl [vmem:[#allocation1] sm:$0xff pattern:$0x73625140]  ;;  %p175_p4 = scmp.ge.s32.totalorder %s178_s24, 112  }
  0x1b   : >> { %236 = vrot.lane.b32.xlu0 %v234_v3, %s1053_s27  ;;  %260 = vst [vmem:[#allocation1] ss:$4 sm:$0xff] %v184_v2  ;;  %941 = vmatmul.msk.bf16.vlgmr.msra.gmra.mxu0 %vm188_vm2, %v940_v26  ;;  %v608_v2 = vand.u32 %v1135_v17, %v1141_v22 }
  0x1c   : >> { %942 = vmatmul.msk.bf16.vlgmr.msra.gmra.mxu1 %vm188_vm2, %v185_v28  ;;  %v999_v28 = vld [vmem:[%s1297_s1 + $0x58] sm:$0xf] }
  0x1d   : >> { %333 = vmatpush.bf16.msrb.mxu1 %v324_v31 }
  0x22   : >> { %v261_v4 = vld.sshfl [vmem:[#allocation1] sm:$0xff pattern:$0x73625140] }
  0x23   : >> { %263 = vrot.lane.b32.xlu0 %v261_v4, %s1053_s27  ;;  %287 = vst [vmem:[#allocation1] ss:$4 sm:$0xff] %v183_v1 }
  0x2a   : >> { %v288_v6 = vld.sshfl [vmem:[#allocation1] sm:$0xff pattern:$0x73625140] }
  0x2b   : >> { %290 = vrot.lane.b32.xlu1 %v288_v6, %s1054_s28  ;;  %364 = vst [vmem:[#allocation1] ss:$4 sm:$0xff] %v951_v5  ;;  %v985_v6 = vld [vmem:[%s1297_s1 + $0x44] sm:$0xf] }
  0x2c   : >> { %954 = vmatmul.msk.bf16.vlgmr.msrb.gmra.mxu1 %vm188_vm2, %v953_v33 }
  0x32   : >> { %v365_v8 = vld.sshfl [vmem:[#allocation1] sm:$0xff pattern:$0x73625140] }
  0x33   : >> { %367 = vrot.lane.b32.xlu1 %v365_v8, %s1053_s27  ;;  %391 = vst [vmem:[#allocation1] ss:$4 sm:$0xff] %v1116_v7  ;;  %v717_v7 = vand.u32 %v1146_v25, %v1141_v22  ;;  %v981_v8 = vld [vmem:[%s1297_s1 + $0x3c] sm:$0xf] }
  0x3a   : >> { %v392_v9 = vld.sshfl [vmem:[#allocation1] sm:$0xff pattern:$0x73625140] }
  0x3b   : >> { %418 = vst [vmem:[#allocation1] ss:$4 sm:$0xff] %v951_v5  ;;  %394 = vrot.lane.b32.xlu2 %v392_v9, %s1053_s27  ;;  %v971_v5 = vld [vmem:[%s1297_s1 + $0x30] sm:$0xf] }
  0x42   : >> { %v419_v11 = vld.sshfl [vmem:[#allocation1] sm:$0xff pattern:$0x73625140] }
  0x43   : >> { %495 = vst [vmem:[#allocation1] ss:$4 sm:$0xff] %v965_v10  ;;  %421 = vrot.lane.b32.xlu2 %v419_v11, %s1054_s28  ;;  %v975_v11 = vld [vmem:[%s1297_s1 + $0x38] sm:$0xf] }
  0x4a   : >> { %v496_v13 = vld.sshfl [vmem:[#allocation1] sm:$0xff pattern:$0x73625140] }
  0x4b   : >> { %498 = vrot.lane.b32.xlu0 %v496_v13, %s1053_s27  ;;  %522 = vst [vmem:[#allocation1] ss:$4 sm:$0xff] %v1124_v12  ;;  %v983_v12 = vld [vmem:[%s1297_s1 + $0x40] sm:$0xf]  ;;  %v739_v13 = vand.u32 %v1159_v29, %v1141_v22 }
  0x52   : >> { %v523_v14 = vld.sshfl [vmem:[#allocation1] sm:$0xff pattern:$0x73625140] }
  0x53   : >> { %549 = vst [vmem:[#allocation1] ss:$4 sm:$0xff] %v965_v10  ;;  %525 = vrot.lane.b32.xlu2 %v523_v14, %s1053_s27  ;;  %v997_v14 = vld [vmem:[%s1297_s1 + $0x54] sm:$0xf] }
  0x5a   : >> { %v550_v16 = vld.sshfl [vmem:[#allocation1] sm:$0xff pattern:$0x73625140] }
  0x5b   : >> { %552 = vrot.lane.b32.xlu1 %v550_v16, %s1054_s28  ;;  %626 = vst [vmem:[#allocation1] ss:$4 sm:$0xff] %v1130_v15 }
  0x62   : >> { %v627_v18 = vld.sshfl [vmem:[#allocation1] sm:$0xff pattern:$0x73625140] }
  0x63   : >> { %653 = vst [vmem:[#allocation1] ss:$4 sm:$0xff] %v1135_v17  ;;  %629 = vrot.lane.b32.xlu2 %v627_v18, %s1053_s27  ;;  %v987_v18 = vld [vmem:[%s1297_s1 + $0x48] sm:$0xf] }
  0x6a   : >> { %v654_v19 = vld.sshfl [vmem:[#allocation1] sm:$0xff pattern:$0x73625140] }
  0x6b   : >> { %656 = vrot.lane.b32.xlu0 %v654_v19, %s1053_s27  ;;  %680 = vst [vmem:[#allocation1] ss:$4 sm:$0xff] %v1130_v15  ;;  %v1056_v15 = vmov 0   ;;  %v995_v19 = vld [vmem:[%s1297_s1 + $0x50] sm:$0xf] }
  0x6c   : >> { %1036 = vset.pattern.permute.xlu0 %v1056_v15 }
  0x72   : >> { %v681_v27 = vld.sshfl [vmem:[#allocation1] sm:$0xff pattern:$0x73625140] }
  0x73   : >> { %683 = vrot.lane.b32.xlu1 %v681_v27, %s1054_s28  ;;  %757 = vst [vmem:[#allocation1] ss:$4 sm:$0xff] %v1146_v25 }
  0x7a   : >> { %v758_v30 = vld.sshfl [vmem:[#allocation1] sm:$0xff pattern:$0x73625140] }
  0x7b   : >> { %760 = vrot.lane.b32.xlu0 %v758_v30, %s1053_s27  ;;  %784 = vst [vmem:[#allocation1] ss:$4 sm:$0xff] %v1159_v29  ;;  %v1003_v29 = vld [vmem:[%s1297_s1 + $0x60] sm:$0xf] }
  0x82   : >> { %v785_v32 = vld.sshfl [vmem:[#allocation1] sm:$0xff pattern:$0x73625140] }
  0x83   : >> { %787 = vrot.lane.b32.xlu1 %v785_v32, %s1053_s27  ;;  %811 = vst [vmem:[#allocation1] ss:$4 sm:$0xff] %v1146_v25  ;;  %838 = vperm.xlu0 %1036, %v1088_v0   ;;  %v989_v25 = vld [vmem:[%s1297_s1 + $0x4c] sm:$0xf] }
  0x8a   : >> { %v812_v34 = vld.sshfl [vmem:[#allocation1] sm:$0xff pattern:$0x73625140] }
  0x8b   : >> { %814 = vrot.lane.b32.xlu2 %v812_v34, %s1054_s28 }
  0x8d   : >> { %v237_v35 = vpop.permute.xlu0 %236 }
  0x8e   : >> { %v242_v37 = vand.u32 %v237_v35, %v1141_v22  ;;  %v1001_v35 = vld [vmem:[%s1297_s1 + $0x5c] sm:$0xf] }
  0x90   : >> { %251 = vmatpush.bf16.msra.mxu2 %v242_v37 }
  0x93   : >> { %944 = vmatmul.msk.bf16.vlgmr.msra.gmra.mxu2 %vm188_vm2, %v943_v38 }
  0x94   : >> { %355 = vmatpush.bf16.msrb.mxu2 %v346_v36 }
  0x95   : >> { %v264_v40 = vpop.permute.xlu0 %263  ;;  %v395_v41 = vpop.permute.xlu2 %394 }
  0x96   : >> { %v269_v42 = vand.u32 %v264_v40, %v1141_v22  ;;  %v400_v45 = vand.u32 %v395_v41, %v1141_v22 }
  0x98   : >> { %464 = vmatpush.bf16.msra.mxu2 %v455_v39  ;;  %278 = vmatpush.bf16.msra.mxu3 %v269_v42  ;;  %v208_v30 = vpop.f32.mrf.mxu0 }
  0x99   : >> { %v227_v31 = vpop.f32.mrf.mxu1 }
  0x9a   : >> { %v228_v32 = vadd.f32 %v227_v31, %v208_v30 }
  0x9b   : >> { %946 = vmatmul.msk.bf16.vlgmr.msra.gmra.mxu3 %vm188_vm2, %v945_v43 }
  0x9d   : >> { %v291_v44 = vpop.permute.xlu1 %290  ;;  %v422_v46 = vpop.permute.xlu2 %421 }
  0x9e   : >> { %v296_v47 = vand.u32 %v291_v44, %v1141_v22  ;;  %v427_v48 = vand.u32 %v422_v46, %v1141_v22 }
  0xa0   : >> { %305 = vmatpush.bf16.msrb.mxu0 %v296_v47  ;;  %436 = vmatpush.bf16.msra.mxu1 %v427_v48  ;;  %v210_v36 = vpop.f32.mrf.mxu0 }
  0xa1   : >> { %v229_v37 = vpop.f32.mrf.mxu1 }
  0xa3   : >> { %948 = vmatmul.msk.bf16.vlgmr.msrb.gmra.mxu0 %vm188_vm2, %v947_v49  ;;  %956 = vmatmul.msk.bf16.vlgmr.msrb.gmra.mxu2 %vm188_vm2, %v955_v50 }
  0xa4   : >> { %409 = vmatpush.bf16.msra.mxu0 %v400_v45  ;;  %962 = vmatmul.msk.bf16.vlgmr.msra.gmra.mxu1 %vm188_vm2, %v961_v51 }
  0xa5   : >> { %v368_v52 = vpop.permute.xlu1 %367 }
  0xa6   : >> { %v373_v54 = vand.u32 %v368_v52, %v1141_v22 }
  0xa8   : >> { %382 = vmatpush.bf16.msrb.mxu3 %v373_v54 }
  0xa9   : >> { %v335_v38 = vpop.f32.mrf.mxu1 }
  0xab   : >> { %958 = vmatmul.msk.bf16.vlgmr.msrb.gmra.mxu3 %vm188_vm2, %v957_v55 }
  0xac   : >> { %486 = vmatpush.bf16.msra.mxu3 %v477_v53 }
  0xad   : >> { %v526_v56 = vpop.permute.xlu2 %525 }
  0xae   : >> { %v531_v57 = vand.u32 %v526_v56, %v1141_v22 }
  0xb0   : >> { %540 = vmatpush.bf16.msrb.mxu1 %v531_v57  ;;  %595 = vmatpush.bf16.msrb.mxu3 %v586_v58 }
  0xb1   : >> { %v337_v39 = vpop.f32.mrf.mxu1 }
  0xb3   : >> { %960 = vmatmul.msk.bf16.vlgmr.msra.gmra.mxu0 %vm188_vm2, %v959_v59  ;;  %968 = vmatmul.msk.bf16.vlgmr.msra.gmra.mxu2 %vm188_vm2, %v967_v60 }
  0xb4   : >> { %974 = vmatmul.msk.bf16.vlgmr.msrb.gmra.mxu1 %vm188_vm2, %v973_v61 }
  0xbb   : >> { %970 = vmatmul.msk.bf16.vlgmr.msra.gmra.mxu3 %vm188_vm2, %v969_v62 }
  0xbd   : >> { %v499_v63 = vpop.permute.xlu0 %498  ;;  %v630_v1 = vpop.permute.xlu2 %629 }
  0xbe   : >> { %v504_v3 = vand.u32 %v499_v63, %v1141_v22  ;;  %v635_v4 = vand.u32 %v630_v1, %v1141_v22 }
  0xc0   : >> { %513 = vmatpush.bf16.msrb.mxu0 %v504_v3  ;;  %644 = vmatpush.bf16.msra.mxu1 %v635_v4 }
  0xc3   : >> { %972 = vmatmul.msk.bf16.vlgmr.msrb.gmra.mxu0 %vm188_vm2, %v971_v5 }
  0xc4   : >> { %617 = vmatpush.bf16.msra.mxu0 %v608_v2  ;;  %986 = vmatmul.msk.bf16.vlgmr.msra.gmra.mxu1 %vm188_vm2, %v985_v6 }
  0xc5   : >> { %748 = vmatpush.bf16.msrb.mxu1 %v739_v13 }
  0xc8   : >> { %726 = vmatpush.bf16.msrb.mxu0 %v717_v7 }
  0xcb   : >> { %982 = vmatmul.msk.bf16.vlgmr.msrb.gmra.mxu3 %vm188_vm2, %v981_v8 }
  0xcd   : >> { %v553_v9 = vpop.permute.xlu1 %552 }
  0xce   : >> { %v558_v10 = vand.u32 %v553_v9, %v1141_v22 }
  0xd0   : >> { %567 = vmatpush.bf16.msrb.mxu2 %v558_v10 }
  0xd3   : >> { %976 = vmatmul.msk.bf16.vlgmr.msrb.gmra.mxu2 %vm188_vm2, %v975_v11  ;;  %984 = vmatmul.msk.bf16.vlgmr.msra.gmra.mxu0 %vm188_vm2, %v983_v12 }
  0xd4   : >> { %998 = vmatmul.msk.bf16.vlgmr.msrb.gmra.mxu1 %vm188_vm2, %v997_v14 }
  0xdd   : >> { %v657_v16 = vpop.permute.xlu0 %656 }
  0xde   : >> { %v662_v17 = vand.u32 %v657_v16, %v1141_v22 }
  0xe0   : >> { %671 = vmatpush.bf16.msra.mxu2 %v662_v17 }
  0xe3   : >> { %988 = vmatmul.msk.bf16.vlgmr.msra.gmra.mxu2 %vm188_vm2, %v987_v18  ;;  %996 = vmatmul.msk.bf16.vlgmr.msrb.gmra.mxu0 %vm188_vm2, %v995_v19 }
  0xe5   : >> { %v684_v20 = vpop.permute.xlu1 %683  ;;  %v815_v21 = vpop.permute.xlu2 %814 }
  0xe6   : >> { %v689_v23 = vand.u32 %v684_v20, %v1141_v22  ;;  %v820_v24 = vand.u32 %v815_v21, %v1141_v22 }
  0xe8   : >> { %698 = vmatpush.bf16.msra.mxu3 %v689_v23  ;;  %829 = vmatpush.bf16.msra.mxu0 %v820_v24 }
  0xeb   : >> { %990 = vmatmul.msk.bf16.vlgmr.msra.gmra.mxu3 %vm188_vm2, %v989_v25 }
  0xed   : >> { %v761_v26 = vpop.permute.xlu0 %760 }
  0xee   : >> { %v766_v27 = vand.u32 %v761_v26, %v1141_v22 }
  0xf0   : >> { %775 = vmatpush.bf16.msrb.mxu2 %v766_v27 }
  0xf3   : >> { %1000 = vmatmul.msk.bf16.vlgmr.msrb.gmra.mxu2 %vm188_vm2, %v999_v28  ;;  %1004 = vmatmul.msk.bf16.vlgmr.msra.gmra.mxu0 %vm188_vm2, %v1003_v29 }
  0xf5   : >> { %v788_v33 = vpop.permute.xlu1 %787 }
  0xf6   : >> { %v793_v34 = vand.u32 %v788_v33, %v1141_v22 }
  0xf8   : >> { %802 = vmatpush.bf16.msrb.mxu3 %v793_v34 }
  0xfb   : >> { %1002 = vmatmul.msk.bf16.vlgmr.msrb.gmra.mxu3 %vm188_vm2, %v1001_v35 }
 0x116   : >> { %v253_v40 = vpop.f32.mrf.mxu2 }
 0x117   : >> { %v257_v41 = vadd.f32 %v253_v40, %v228_v32 }
 0x11e   : >> { %v280_v42 = vpop.f32.mrf.mxu3  ;;  %v255_v43 = vpop.f32.mrf.mxu2 }
 0x11f   : >> { %v284_v44 = vadd.f32 %v280_v42, %v257_v41  ;;  %v839_v42 = vpop.permute.xlu0 %838 }
 0x120   : >> { %v307_v45 = vpop.f32.mrf.mxu0 }
 0x121   : >> { %v311_v46 = vadd.f32 %v307_v45, %v284_v44  ;;  %v438_v47 = vpop.f32.mrf.mxu1 }
 0x123   : >> { %v339_v22 = vadd.f32 %v335_v38, %v311_v46 }
 0x126   : >> { %v282_v48 = vpop.f32.mrf.mxu3  ;;  %v357_v49 = vpop.f32.mrf.mxu2 }
 0x127   : >> { %v361_v52 = vadd.f32 %v357_v49, %v339_v22 }
 0x128   : >> { %v309_v50 = vpop.f32.mrf.mxu0 }
 0x129   : >> { %v440_v51 = vpop.f32.mrf.mxu1 }
 0x12e   : >> { %v384_v53 = vpop.f32.mrf.mxu3  ;;  %v359_v54 = vpop.f32.mrf.mxu2 }
 0x12f   : >> { %v388_v55 = vadd.f32 %v384_v53, %v361_v52 }
 0x130   : >> { %v411_v56 = vpop.f32.mrf.mxu0 }
 0x131   : >> { %v415_v57 = vadd.f32 %v411_v56, %v388_v55  ;;  %v542_v58 = vpop.f32.mrf.mxu1 }
 0x133   : >> { %v442_v59 = vadd.f32 %v438_v47, %v415_v57 }
 0x136   : >> { %v386_v60 = vpop.f32.mrf.mxu3  ;;  %v466_v61 = vpop.f32.mrf.mxu2 }
 0x137   : >> { %v470_v13 = vadd.f32 %v466_v61, %v442_v59 }
 0x138   : >> { %v413_v62 = vpop.f32.mrf.mxu0 }
 0x139   : >> { %v544_v63 = vpop.f32.mrf.mxu1 }
 0x13e   : >> { %v488_v1 = vpop.f32.mrf.mxu3  ;;  %v468_v2 = vpop.f32.mrf.mxu2 }
 0x13f   : >> { %v492_v15 = vadd.f32 %v488_v1, %v470_v13 }
 0x140   : >> { %v515_v3 = vpop.f32.mrf.mxu0 }
 0x141   : >> { %v646_v4 = vpop.f32.mrf.mxu1  ;;  %v519_v17 = vadd.f32 %v515_v3, %v492_v15 }
 0x143   : >> { %v546_v20 = vadd.f32 %v542_v58, %v519_v17 }
 0x146   : >> { %v490_v5 = vpop.f32.mrf.mxu3 }
 0x148   : >> { %v517_v6 = vpop.f32.mrf.mxu0 }
 0x149   : >> { %v648_v7 = vpop.f32.mrf.mxu1 }
 0x14e   : >> { %v597_v8 = vpop.f32.mrf.mxu3 }
 0x150   : >> { %v619_v9 = vpop.f32.mrf.mxu0 }
 0x151   : >> { %v750_v10 = vpop.f32.mrf.mxu1 }
 0x156   : >> { %v569_v11 = vpop.f32.mrf.mxu2  ;;  %v599_v12 = vpop.f32.mrf.mxu3 }
 0x157   : >> { %v573_v21 = vadd.f32 %v569_v11, %v546_v20 }
 0x158   : >> { %v621_v14 = vpop.f32.mrf.mxu0 }
 0x159   : >> { %v752_v16 = vpop.f32.mrf.mxu1  ;;  %v601_v24 = vadd.f32 %v597_v8, %v573_v21 }
 0x15b   : >> { %v623_v26 = vadd.f32 %v619_v9, %v601_v24 }
 0x15d   : >> { %v650_v29 = vadd.f32 %v646_v4, %v623_v26 }
 0x15e   : >> { %v571_v18 = vpop.f32.mrf.mxu2 }
 0x160   : >> { %v728_v19 = vpop.f32.mrf.mxu0 }
 0x166   : >> { %v673_v23 = vpop.f32.mrf.mxu2 }
 0x167   : >> { %v677_v31 = vadd.f32 %v673_v23, %v650_v29 }
 0x168   : >> { %v730_v25 = vpop.f32.mrf.mxu0 }
 0x16e   : >> { %v675_v27 = vpop.f32.mrf.mxu2  ;;  %v700_v28 = vpop.f32.mrf.mxu3 }
 0x16f   : >> { %v704_v32 = vadd.f32 %v700_v28, %v677_v31 }
 0x170   : >> { %v831_v30 = vpop.f32.mrf.mxu0 }
 0x171   : >> { %v732_v35 = vadd.f32 %v728_v19, %v704_v32 }
 0x173   : >> { %v754_v37 = vadd.f32 %v750_v10, %v732_v35 }
 0x176   : >> { %v702_v33 = vpop.f32.mrf.mxu3  ;;  %v777_v34 = vpop.f32.mrf.mxu2 }
 0x177   : >> { %v781_v38 = vadd.f32 %v777_v34, %v754_v37 }
 0x178   : >> { %v833_v36 = vpop.f32.mrf.mxu0 }
 0x17e   : >> { %v804_v39 = vpop.f32.mrf.mxu3  ;;  %v779_v40 = vpop.f32.mrf.mxu2 }
 0x17f   : >> { %v808_v41 = vadd.f32 %v804_v39, %v781_v38 }
 0x181   : >> { %v835_v43 = vadd.f32 %v831_v30, %v808_v41 }
 0x183   : >> { %v841_v44 = vadd.f32 %v839_v42, %v835_v43 }
 0x185   : >> { %vm842_vm3 = vcmp.ge.f32.partialorder %v841_v44, 0.0  ;;  %v843_v45 = vmul.f32 0.2, %v841_v44 }
 0x186   : >> { %v806_v46 = vpop.f32.mrf.mxu3  ;;  %177 = sbr.rel (!%p175_p4) target bundleno = 16 (0x10), region = 99 }
 0x187   : >> { %v844_v47 = vsel %vm842_vm3, %v841_v44, %v843_v45 }
 0x188   : >> { %v845_v22 = vpack.c.bf16 %v844_v47, %v844_v47 }
 0x18a   : >> { %849 = vst.msk [vmem:[%s847_s7] sm:$0xf] %vm848_vm4, %v845_v22 }
 0x18b PF: > { %s13_s12 = sadd.s32 1, %s1047_s12  }
 0x18c   : > { %p10_p5 = scmp.ge.s32.totalorder %s13_s12, 4  }
 0x18e   :  { %12 = sbr.rel (!%p10_p5) target bundleno = 1 (0x1), region = 110 }

// kernel: discriminator_forward.7
= control target key start
LH: loop header
LB: loop body
LE: loop exit
PB: predicated region body
PF: predicated region fallthrough
CT: control target
= control target key end

     0   :  { %s1418_s12 = smov 0   ;;  %s1639_s0 = inlined_call_operand.vmem [shape: bf16[2,116,2,8,58], index: 0, kind: input, shape index: {}]   ;;  %s1640_s1 = inlined_call_operand.vmem [shape: bf16[25,16,8], index: 1, kind: input, shape index: {}]   ;;  %s1641_s2 = inlined_call_operand.vmem [shape: f32[16,1], index: 2, kind: input, shape index: {}]   ;;  %s1642_s3 = inlined_call_operand.vmem [shape: bf16[2,56,16,56], index: 3, kind: output, shape index: {}]  }
   0x1 LB: > { %s1122_s13 = sadd.s32 4294967295, %s1389_s12   ;;  %p1126_p0 = scmp.ge.s32.totalorder %s1389_s12, 1  ;;  %s1389_s12 = sphi %s1418_s12, %s13_s12  }
   0x2   : > { %p137_p1 = scmp.lt.s32.totalorder %s1389_s12, 3 }
   0x4   : > { %p138_p2 = pnand %p1126_p0, %p137_p1 }
   0x5   : > { %p161_p3 = scmp.lt.s32.totalorder (!%p138_p2), %s1122_s13, 1  ;;  %s1446_s26 = smov (!%p138_p2), 0  }
   0x6   : > { %141 = sbr.rel (%p138_p2) target bundleno = 382 (0x17e), region = 32 }
   0xb   : > { %v1429_v0 = vld [vmem:[%s1641_s2] sm:$0xff]  ;;  %v1434_v1 = vld [vmem:[%s1641_s2 + $0x8] sm:$0xff]  ;;  %s1644_s13 = smov (!%p161_p3, %s1122_s13), 1 }
   0xc   : > { %s1356_s18 = smul.u32 928, %s1644_s13 }
   0xd   : > { %s1357_s19 = smul.u32 448, %s1644_s13 }
   0xe   : > { %s1439_s22 = scalar_lea.vmem %s1639_s0, %s1356_s18 }
   0xf   : > { %s1444_s25 = scalar_lea.vmem %s1642_s3, %s1357_s19 }
  0x10 LB: >> { %s1325_s27 = sshll.u32 %s1393_s26, 4  ;;  %s1395_s29 = smov 127   ;;  %vm200_vm0 = vcmask 1043456   ;;  %v1327_v14 = vld [vmem:[%s1640_s1 + $0x8] sm:$0xff]  ;;  %v1326_v15 = vld [vmem:[%s1640_s1] sm:$0xff]  ;;  %vm196_vm1 = vcmask 64512   ;;  %s1393_s26 = sphi %s1446_s26, %s179_s26  }
  0x11   : >> { %s1453_s28 = scalar_lea.vmem %s1439_s22, %s1325_s27  ;;  %s1396_s30 = smov 126   ;;  %v1332_v38 = vld [vmem:[%s1640_s1 + $0x28] sm:$0xff]  ;;  %v1328_v46 = vld [vmem:[%s1640_s1 + $0x10] sm:$0xff]  ;;  %v1330_v48 = vld [vmem:[%s1640_s1 + $0x20] sm:$0xff]  ;;  %vm1039_vm3 = vcmask 453632  }
  0x12   : >> { %v184_v2 = vld [vmem:[%s1453_s28] sm:$0xf]  ;;  %v1457_v4 = vld [vmem:[%s1453_s28 + $0xc] sm:$0xf]  ;;  %v185_v5 = vld [vmem:[%s1453_s28 + $0x4] sm:$0xf] }
  0x13   : >> { %v252_v3 = vunpack.c.l.b16 %v184_v2  ;;  %v1167_v6 = vld [vmem:[%s1453_s28 + $0x8] sm:$0xf]  ;;  %v455_v7 = vunpack.c.l.b16 %v1457_v4  ;;  %v287_v10 = vunpack.c.l.b16 %v185_v5  ;;  %v202_v12 = vsel %vm200_vm0, %v185_v5, 0  ;;  %v1206_v18 = vld [vmem:[%s1453_s28 + $0x10] sm:$0xf]  ;;  %v1329_v56 = vld [vmem:[%s1640_s1 + $0x18] sm:$0xff] }
  0x14   : >> { %v420_v11 = vunpack.c.l.b16 %v1167_v6  ;;  %v227_v13 = vsel %vm200_vm0, %v184_v2, 0  ;;  %211 = vmatpush.bf16.msra.mxu0 %v202_v12  ;;  %v1475_v19 = vld [vmem:[%s1453_s28 + $0x14] sm:$0xf]  ;;  %v588_v20 = vunpack.c.l.b16 %v1206_v18  ;;  %v1484_v23 = vld [vmem:[%s1453_s28 + $0x1c] sm:$0xf]  ;;  %v363_v36 = vsel %vm200_vm0, %v1167_v6, 0 }
  0x15   : >> { %v253_v8 = vpack.c.b16 %v252_v3, %v252_v3  ;;  %v456_v9 = vpack.c.b16 %v455_v7, %v455_v7  ;;  %236 = vmatpush.bf16.msra.mxu1 %v227_v13  ;;  %v288_v16 = vpack.c.b16 %v287_v10, %v287_v10  ;;  %v623_v21 = vunpack.c.l.b16 %v1475_v19  ;;  %v1487_v24 = vld [vmem:[%s1453_s28 + $0x18] sm:$0xf]  ;;  %v1495_v30 = vld [vmem:[%s1453_s28 + $0x20] sm:$0xf]  ;;  %v1498_v31 = vld [vmem:[%s1453_s28 + $0x24] sm:$0xf] }
  0x16   : >> { %v421_v17 = vpack.c.b16 %v420_v11, %v420_v11  ;;  %v589_v22 = vpack.c.b16 %v588_v20, %v588_v20  ;;  %v791_v26 = vunpack.c.l.b16 %v1484_v23  ;;  %v756_v27 = vunpack.c.l.b16 %v1487_v24  ;;  %v1336_v50 = vld [vmem:[%s1640_s1 + $0x48] sm:$0xff]  ;;  %v1333_v61 = vld [vmem:[%s1640_s1 + $0x30] sm:$0xff]  ;;  %v1335_v62 = vld [vmem:[%s1640_s1 + $0x40] sm:$0xff]  ;;  %s1355_s8 = sshll.u32 %s1393_s26, 3  ;;  %s179_s26 = sadd.s32 1, %s1393_s26  }
  0x17   : >> { %254 = vrot.lane.b32.xlu0 %v253_v8, %s1395_s29  ;;  %321 = vrot.lane.b32.xlu1 %v253_v8, %s1396_s30  ;;  %v624_v25 = vpack.c.b16 %v623_v21, %v623_v21  ;;  %v924_v32 = vunpack.c.l.b16 %v1495_v30  ;;  %v959_v33 = vunpack.c.l.b16 %v1498_v31  ;;  %v393_v43 = vsel %vm200_vm0, %v1457_v4, 0  ;;  %v1341_v4 = vld [vmem:[%s1640_s1 + $0x68] sm:$0xff]  ;;  %v1334_v7 = vld [vmem:[%s1640_s1 + $0x38] sm:$0xff]  ;;  %s1038_s9 = scalar_lea.vmem %s1444_s25, %s1355_s8  ;;  %p176_p4 = scmp.ge.s32.totalorder %s179_s26, 56  }
  0x18   : >> { %457 = vrot.lane.b32.xlu2 %v456_v9, %s1395_s29  ;;  %1138 = vmatmul.msk.bf16.vlgmr.msra.gmra.mxu0 %vm196_vm1, %v1327_v14  ;;  %v792_v28 = vpack.c.b16 %v791_v26, %v791_v26  ;;  %v757_v29 = vpack.c.b16 %v756_v27, %v756_v27  ;;  %v531_v49 = vsel %vm200_vm0, %v1206_v18, 0  ;;  %v561_v58 = vsel %vm200_vm0, %v1475_v19, 0  ;;  %v1338_v10 = vld [vmem:[%s1640_s1 + $0x50] sm:$0xff]  ;;  %v1340_v11 = vld [vmem:[%s1640_s1 + $0x60] sm:$0xff]  ;;  %v1346_v14 = vld [vmem:[%s1640_s1 + $0x88] sm:$0xff] }
  0x19   : >> { %1143 = vmatmul.msk.bf16.vlgmr.msra.gmra.mxu1 %vm196_vm1, %v1326_v15  ;;  %v925_v34 = vpack.c.b16 %v924_v32, %v924_v32  ;;  %v960_v35 = vpack.c.b16 %v959_v33, %v959_v33  ;;  %v729_v3 = vsel %vm200_vm0, %v1484_v23, 0  ;;  %v699_v8 = vsel %vm200_vm0, %v1487_v24, 0  ;;  %v1342_v21 = vld [vmem:[%s1640_s1 + $0x70] sm:$0xff]  ;;  %v1344_v27 = vld [vmem:[%s1640_s1 + $0x78] sm:$0xff] }
  0x1a   : >> { %372 = vmatpush.bf16.msrb.mxu1 %v363_v36  ;;  %v867_v13 = vsel %vm200_vm0, %v1495_v30, 0  ;;  %v897_v18 = vsel %vm200_vm0, %v1498_v31, 0  ;;  %v1347_v30 = vld [vmem:[%s1640_s1 + $0x90] sm:$0xff]  ;;  %v1350_v31 = vld [vmem:[%s1640_s1 + $0xa0] sm:$0xff]  ;;  %v1348_v32 = vld [vmem:[%s1640_s1 + $0x98] sm:$0xff] }
  0x1b   : >> { %v1352_v33 = vld [vmem:[%s1640_s1 + $0xb0] sm:$0xff] }
  0x1f   : >> { %289 = vrot.lane.b32.xlu0 %v288_v16, %s1395_s29  ;;  %422 = vrot.lane.b32.xlu1 %v421_v17, %s1395_s29  ;;  %v1339_v16 = vld [vmem:[%s1640_s1 + $0x58] sm:$0xff] }
  0x20   : >> { %489 = vrot.lane.b32.xlu2 %v421_v17, %s1396_s30 }
  0x27   : >> { %590 = vrot.lane.b32.xlu0 %v589_v22, %s1395_s29  ;;  %657 = vrot.lane.b32.xlu1 %v589_v22, %s1396_s30  ;;  %v1345_v22 = vld [vmem:[%s1640_s1 + $0x80] sm:$0xff] }
  0x28   : >> { %625 = vrot.lane.b32.xlu2 %v624_v25, %s1395_s29  ;;  %v1351_v25 = vld [vmem:[%s1640_s1 + $0xa8] sm:$0xff] }
  0x29   : >> { %1175 = vmatmul.msk.bf16.vlgmr.msrb.gmra.mxu1 %vm196_vm1, %v1332_v38 }
  0x2f   : >> { %793 = vrot.lane.b32.xlu0 %v792_v28, %s1395_s29  ;;  %825 = vrot.lane.b32.xlu1 %v757_v29, %s1396_s30 }
  0x30   : >> { %758 = vrot.lane.b32.xlu2 %v757_v29, %s1395_s29  ;;  %v1397_v29 = vmov 0  }
  0x31   : >> { %1377 = vset.pattern.permute.xlu0 %v1397_v29  ;;  %1378 = vset.pattern.permute.xlu1 %v1397_v29 }
  0x37   : >> { %926 = vrot.lane.b32.xlu0 %v925_v34, %s1395_s29  ;;  %961 = vrot.lane.b32.xlu1 %v960_v35, %s1395_s29  ;;  %v1353_v35 = vld [vmem:[%s1640_s1 + $0xb8] sm:$0xff] }
  0x38   : >> { %993 = vrot.lane.b32.xlu2 %v925_v34, %s1396_s30  ;;  %v1354_v34 = vld [vmem:[%s1640_s1 + $0xc0] sm:$0xff] }
  0x3f   : >> { %1019 = vperm.xlu0 %1377, %v1429_v0   ;;  %1024 = vperm.xlu1 %1378, %v1434_v1  }
  0x72   : >> { %v458_v37 = vpop.permute.xlu2 %457 }
  0x73   : >> { %v463_v44 = vsel %vm200_vm0, %v458_v37, 0 }
  0x7a   : >> { %v490_v39 = vpop.permute.xlu2 %489 }
  0x7b   : >> { %v495_v40 = vsel %vm200_vm0, %v490_v39, 0 }
  0x7c   : >> { %504 = vmatpush.bf16.msra.mxu1 %v495_v40 }
  0x7f   : >> { %1203 = vmatmul.msk.bf16.vlgmr.msra.gmra.mxu1 %vm196_vm1, %v1336_v50 }
  0x82   : >> { %v626_v51 = vpop.permute.xlu2 %625 }
  0x83   : >> { %v631_v52 = vsel %vm200_vm0, %v626_v51, 0 }
  0x84   : >> { %640 = vmatpush.bf16.msrb.mxu1 %v631_v52 }
  0x89   : >> { %v255_v41 = vpop.permute.xlu0 %254  ;;  %v322_v42 = vpop.permute.xlu1 %321 }
  0x8a   : >> { %v260_v45 = vsel %vm200_vm0, %v255_v41, 0  ;;  %v327_v47 = vsel %vm200_vm0, %v322_v42, 0  ;;  %v759_v5 = vpop.permute.xlu2 %758 }
  0x8b   : >> { %269 = vmatpush.bf16.msra.mxu2 %v260_v45  ;;  %336 = vmatpush.bf16.msrb.mxu0 %v327_v47  ;;  %v764_v6 = vsel %vm200_vm0, %v759_v5, 0 }
  0x8c   : >> { %773 = vmatpush.bf16.msra.mxu1 %v764_v6 }
  0x8e   : >> { %1150 = vmatmul.msk.bf16.vlgmr.msra.gmra.mxu2 %vm196_vm1, %v1328_v46  ;;  %1164 = vmatmul.msk.bf16.vlgmr.msrb.gmra.mxu0 %vm196_vm1, %v1330_v48 }
  0x8f   : >> { %402 = vmatpush.bf16.msrb.mxu2 %v393_v43  ;;  %472 = vmatpush.bf16.msra.mxu0 %v463_v44 }
  0x90   : >> { %1235 = vmatmul.msk.bf16.vlgmr.msrb.gmra.mxu1 %vm196_vm1, %v1341_v4 }
  0x91   : >> { %v290_v53 = vpop.permute.xlu0 %289  ;;  %v423_v54 = vpop.permute.xlu1 %422  ;;  %906 = vmatpush.bf16.msrb.mxu1 %v897_v18 }
  0x92   : >> { %v295_v55 = vsel %vm200_vm0, %v290_v53, 0  ;;  %v428_v57 = vsel %vm200_vm0, %v423_v54, 0  ;;  %v994_v20 = vpop.permute.xlu2 %993 }
  0x93   : >> { %540 = vmatpush.bf16.msra.mxu2 %v531_v49  ;;  %304 = vmatpush.bf16.msra.mxu3 %v295_v55  ;;  %v999_v24 = vsel %vm200_vm0, %v994_v20, 0 }
  0x95   : >> { %v213_v36 = vpop.f32.mrf.mxu0 }
  0x96   : >> { %1157 = vmatmul.msk.bf16.vlgmr.msra.gmra.mxu3 %vm196_vm1, %v1329_v56  ;;  %v238_v37 = vpop.f32.mrf.mxu1 }
  0x97   : >> { %437 = vmatpush.bf16.msrb.mxu3 %v428_v57  ;;  %v239_v54 = vadd.f32 %v238_v37, %v213_v36 }
  0x99   : >> { %v591_v59 = vpop.permute.xlu0 %590  ;;  %v658_v60 = vpop.permute.xlu1 %657 }
  0x9a   : >> { %v596_v63 = vsel %vm200_vm0, %v591_v59, 0  ;;  %v663_v2 = vsel %vm200_vm0, %v658_v60, 0 }
  0x9b   : >> { %570 = vmatpush.bf16.msra.mxu3 %v561_v58  ;;  %605 = vmatpush.bf16.msrb.mxu0 %v596_v63 }
  0x9d   : >> { %v215_v38 = vpop.f32.mrf.mxu0 }
  0x9e   : >> { %1182 = vmatmul.msk.bf16.vlgmr.msrb.gmra.mxu2 %vm196_vm1, %v1333_v61  ;;  %1196 = vmatmul.msk.bf16.vlgmr.msra.gmra.mxu0 %vm196_vm1, %v1335_v62  ;;  %v240_v39 = vpop.f32.mrf.mxu1 }
  0x9f   : >> { %672 = vmatpush.bf16.msrb.mxu2 %v663_v2  ;;  %738 = vmatpush.bf16.msra.mxu0 %v729_v3  ;;  %v241_v61 = vadd.f32 %v240_v39, %v215_v38 }
  0xa0   : >> { %1267 = vmatmul.msk.bf16.vlgmr.msra.gmra.mxu1 %vm196_vm1, %v1346_v14 }
  0xa1   : >> { %v794_v9 = vpop.permute.xlu0 %793  ;;  %v826_v15 = vpop.permute.xlu1 %825 }
  0xa2   : >> { %v799_v12 = vsel %vm200_vm0, %v794_v9, 0  ;;  %v831_v17 = vsel %vm200_vm0, %v826_v15, 0 }
  0xa6   : >> { %1189 = vmatmul.msk.bf16.vlgmr.msrb.gmra.mxu3 %vm196_vm1, %v1334_v7  ;;  %v374_v41 = vpop.f32.mrf.mxu1 }
  0xa7   : >> { %708 = vmatpush.bf16.msrb.mxu3 %v699_v8 }
  0xa9   : >> { %v927_v19 = vpop.permute.xlu0 %926  ;;  %v962_v26 = vpop.permute.xlu1 %961 }
  0xaa   : >> { %v932_v23 = vsel %vm200_vm0, %v927_v19, 0  ;;  %v967_v28 = vsel %vm200_vm0, %v962_v26, 0 }
  0xae   : >> { %1214 = vmatmul.msk.bf16.vlgmr.msra.gmra.mxu2 %vm196_vm1, %v1338_v10  ;;  %1228 = vmatmul.msk.bf16.vlgmr.msrb.gmra.mxu0 %vm196_vm1, %v1340_v11  ;;  %v376_v46 = vpop.f32.mrf.mxu1 }
  0xaf   : >> { %808 = vmatpush.bf16.msra.mxu2 %v799_v12  ;;  %876 = vmatpush.bf16.msrb.mxu0 %v867_v13 }
  0xb0   : >> { %1299 = vmatmul.msk.bf16.vlgmr.msrb.gmra.mxu1 %vm196_vm1, %v1351_v25 }
  0xb6   : >> { %1221 = vmatmul.msk.bf16.vlgmr.msra.gmra.mxu3 %vm196_vm1, %v1339_v16 }
  0xb7   : >> { %840 = vmatpush.bf16.msra.mxu3 %v831_v17 }
  0xbe   : >> { %1242 = vmatmul.msk.bf16.vlgmr.msrb.gmra.mxu2 %vm196_vm1, %v1342_v21  ;;  %1260 = vmatmul.msk.bf16.vlgmr.msra.gmra.mxu0 %vm196_vm1, %v1345_v22 }
  0xbf   : >> { %941 = vmatpush.bf16.msrb.mxu2 %v932_v23  ;;  %1008 = vmatpush.bf16.msra.mxu0 %v999_v24 }
  0xc6   : >> { %1253 = vmatmul.msk.bf16.vlgmr.msrb.gmra.mxu3 %vm196_vm1, %v1344_v27 }
  0xc7   : >> { %976 = vmatpush.bf16.msrb.mxu3 %v967_v28 }
  0xce   : >> { %1274 = vmatmul.msk.bf16.vlgmr.msra.gmra.mxu2 %vm196_vm1, %v1347_v30  ;;  %1292 = vmatmul.msk.bf16.vlgmr.msrb.gmra.mxu0 %vm196_vm1, %v1350_v31 }
  0xd6   : >> { %1281 = vmatmul.msk.bf16.vlgmr.msra.gmra.mxu3 %vm196_vm1, %v1348_v32 }
  0xde   : >> { %1306 = vmatmul.msk.bf16.vlgmr.msrb.gmra.mxu2 %vm196_vm1, %v1352_v33  ;;  %1320 = vmatmul.msk.bf16.vlgmr.msra.gmra.mxu0 %vm196_vm1, %v1354_v34 }
  0xe6   : >> { %1313 = vmatmul.msk.bf16.vlgmr.msrb.gmra.mxu3 %vm196_vm1, %v1353_v35 }
  0xfc   : >> { %v506_v51 = vpop.f32.mrf.mxu1 }
 0x104   : >> { %v508_v58 = vpop.f32.mrf.mxu1 }
 0x10b   : >> { %v338_v40 = vpop.f32.mrf.mxu0 }
 0x10d   : >> { %v642_v6 = vpop.f32.mrf.mxu1 }
 0x111   : >> { %v271_v42 = vpop.f32.mrf.mxu2 }
 0x112   : >> { %v276_v55 = vadd.f32 %v271_v42, %v239_v54 }
 0x113   : >> { %v340_v43 = vpop.f32.mrf.mxu0 }
 0x115   : >> { %v644_v19 = vpop.f32.mrf.mxu1 }
 0x119   : >> { %v273_v44 = vpop.f32.mrf.mxu2  ;;  %v306_v45 = vpop.f32.mrf.mxu3 }
 0x11a   : >> { %v311_v57 = vadd.f32 %v306_v45, %v276_v55  ;;  %v277_v63 = vadd.f32 %v273_v44, %v241_v61 }
 0x11b   : >> { %v474_v47 = vpop.f32.mrf.mxu0 }
 0x11c   : >> { %v343_v62 = vadd.f32 %v338_v40, %v311_v57 }
 0x11d   : >> { %v775_v29 = vpop.f32.mrf.mxu1 }
 0x11e   : >> { %v379_v2 = vadd.f32 %v374_v41, %v343_v62 }
 0x121   : >> { %v308_v48 = vpop.f32.mrf.mxu3  ;;  %v404_v49 = vpop.f32.mrf.mxu2 }
 0x122   : >> { %v312_v3 = vadd.f32 %v308_v48, %v277_v63  ;;  %v409_v5 = vadd.f32 %v404_v49, %v379_v2  ;;  %v1020_v2 = vpop.permute.xlu0 %1019 }
 0x123   : >> { %v476_v50 = vpop.f32.mrf.mxu0 }
 0x124   : >> { %v344_v9 = vadd.f32 %v340_v43, %v312_v3 }
 0x125   : >> { %v777_v40 = vpop.f32.mrf.mxu1 }
 0x126   : >> { %v380_v11 = vadd.f32 %v376_v46, %v344_v9 }
 0x129   : >> { %v406_v52 = vpop.f32.mrf.mxu2  ;;  %v439_v53 = vpop.f32.mrf.mxu3 }
 0x12a   : >> { %v444_v10 = vadd.f32 %v439_v53, %v409_v5  ;;  %v410_v13 = vadd.f32 %v406_v52, %v380_v11 }
 0x12b   : >> { %v607_v56 = vpop.f32.mrf.mxu0 }
 0x12c   : >> { %v479_v12 = vadd.f32 %v474_v47, %v444_v10 }
 0x12e   : >> { %v511_v17 = vadd.f32 %v506_v51, %v479_v12 }
 0x131   : >> { %v441_v59 = vpop.f32.mrf.mxu3  ;;  %v542_v60 = vpop.f32.mrf.mxu2 }
 0x132   : >> { %v445_v18 = vadd.f32 %v441_v59, %v410_v13  ;;  %v547_v20 = vadd.f32 %v542_v60, %v511_v17 }
 0x133   : >> { %v609_v4 = vpop.f32.mrf.mxu0 }
 0x134   : >> { %v480_v21 = vadd.f32 %v476_v50, %v445_v18  ;;  %v908_v50 = vpop.f32.mrf.mxu1 }
 0x136   : >> { %v512_v25 = vadd.f32 %v508_v58, %v480_v21 }
 0x139   : >> { %v544_v7 = vpop.f32.mrf.mxu2  ;;  %v572_v8 = vpop.f32.mrf.mxu3 }
 0x13a   : >> { %v577_v22 = vadd.f32 %v572_v8, %v547_v20  ;;  %v548_v28 = vadd.f32 %v544_v7, %v512_v25 }
 0x13b   : >> { %v740_v14 = vpop.f32.mrf.mxu0 }
 0x13c   : >> { %v612_v26 = vadd.f32 %v607_v56, %v577_v22  ;;  %v910_v63 = vpop.f32.mrf.mxu1 }
 0x13e   : >> { %v647_v30 = vadd.f32 %v642_v6, %v612_v26 }
 0x141   : >> { %v574_v15 = vpop.f32.mrf.mxu3  ;;  %v674_v16 = vpop.f32.mrf.mxu2 }
 0x142   : >> { %v578_v31 = vadd.f32 %v574_v15, %v548_v28  ;;  %v679_v32 = vadd.f32 %v674_v16, %v647_v30 }
 0x143   : >> { %v742_v27 = vpop.f32.mrf.mxu0 }
 0x144   : >> { %v613_v35 = vadd.f32 %v609_v4, %v578_v31 }
 0x146   : >> { %v648_v38 = vadd.f32 %v644_v19, %v613_v35 }
 0x149   : >> { %v676_v23 = vpop.f32.mrf.mxu2  ;;  %v710_v24 = vpop.f32.mrf.mxu3 }
 0x14a   : >> { %v715_v36 = vadd.f32 %v710_v24, %v679_v32  ;;  %v680_v41 = vadd.f32 %v676_v23, %v648_v38 }
 0x14b   : >> { %v878_v37 = vpop.f32.mrf.mxu0 }
 0x14c   : >> { %v745_v39 = vadd.f32 %v740_v14, %v715_v36  ;;  %v1025_v14 = vpop.permute.xlu1 %1024 }
 0x14e   : >> { %v780_v44 = vadd.f32 %v775_v29, %v745_v39 }
 0x151   : >> { %v712_v33 = vpop.f32.mrf.mxu3  ;;  %v810_v34 = vpop.f32.mrf.mxu2 }
 0x152   : >> { %v716_v45 = vadd.f32 %v712_v33, %v680_v41  ;;  %v815_v46 = vadd.f32 %v810_v34, %v780_v44 }
 0x153   : >> { %v880_v49 = vpop.f32.mrf.mxu0 }
 0x154   : >> { %v746_v47 = vadd.f32 %v742_v27, %v716_v45 }
 0x156   : >> { %v781_v52 = vadd.f32 %v777_v40, %v746_v47 }
 0x159   : >> { %v812_v42 = vpop.f32.mrf.mxu2  ;;  %v842_v43 = vpop.f32.mrf.mxu3 }
 0x15a   : >> { %v847_v48 = vadd.f32 %v842_v43, %v815_v46  ;;  %v816_v55 = vadd.f32 %v812_v42, %v781_v52 }
 0x15b   : >> { %v1010_v59 = vpop.f32.mrf.mxu0 }
 0x15c   : >> { %v883_v53 = vadd.f32 %v878_v37, %v847_v48 }
 0x15e   : >> { %v913_v56 = vadd.f32 %v908_v50, %v883_v53 }
 0x161   : >> { %v844_v51 = vpop.f32.mrf.mxu3  ;;  %v943_v54 = vpop.f32.mrf.mxu2 }
 0x162   : >> { %v848_v57 = vadd.f32 %v844_v51, %v816_v55  ;;  %v948_v58 = vadd.f32 %v943_v54, %v913_v56 }
 0x163   : >> { %v1012_v12 = vpop.f32.mrf.mxu0 }
 0x164   : >> { %v884_v61 = vadd.f32 %v880_v49, %v848_v57 }
 0x166   : >> { %v914_v5 = vadd.f32 %v910_v63, %v884_v61 }
 0x169   : >> { %v978_v60 = vpop.f32.mrf.mxu3  ;;  %v945_v4 = vpop.f32.mrf.mxu2 }
 0x16a   : >> { %v983_v62 = vadd.f32 %v978_v60, %v948_v58  ;;  %v949_v7 = vadd.f32 %v945_v4, %v914_v5 }
 0x16c   : >> { %v1015_v3 = vadd.f32 %v1010_v59, %v983_v62 }
 0x16e   : >> { %v1027_v6 = vadd.f32 %v1020_v2, %v1015_v3 }
 0x170   : >> { %vm1029_vm2 = vcmp.ge.f32.partialorder %v1027_v6, 0.0  ;;  %v1031_v8 = vmul.f32 0.2, %v1027_v6 }
 0x171   : >> { %v980_v9 = vpop.f32.mrf.mxu3 }
 0x172   : >> { %v1033_v10 = vsel %vm1029_vm2, %v1027_v6, %v1031_v8  ;;  %v984_v11 = vadd.f32 %v980_v9, %v949_v7 }
 0x173   : >> { %v1035_v13 = vpack.c.bf16 %v1033_v10, %v1033_v10 }
 0x174   : >> { %v1016_v15 = vadd.f32 %v1012_v12, %v984_v11 }
 0x175   : >> { %1040 = vst.msk [vmem:[%s1038_s9] sm:$0xf] %vm1039_vm3, %v1035_v13 }
 0x176   : >> { %v1028_v16 = vadd.f32 %v1025_v14, %v1016_v15 }
 0x178   : >> { %vm1030_vm4 = vcmp.ge.f32.partialorder %v1028_v16, 0.0  ;;  %v1032_v17 = vmul.f32 0.2, %v1028_v16 }
 0x179   : > { %178 = sbr.rel (!%p176_p4) target bundleno = 16 (0x10), region = 99 }
 0x17a   : >> { %v1034_v18 = vsel %vm1030_vm4, %v1028_v16, %v1032_v17 }
 0x17b   : >> { %v1036_v19 = vpack.c.bf16 %v1034_v18, %v1034_v18 }
 0x17d   : >> { %1041 = vst.msk [vmem:[%s1038_s9 + $0x4] sm:$0xf] %vm1039_vm3, %v1036_v19 }
 0x17e PF: > { %s13_s12 = sadd.s32 1, %s1389_s12  }
 0x17f   : > { %p10_p5 = scmp.ge.s32.totalorder %s13_s12, 4  }
 0x181   :  { %12 = sbr.rel (!%p10_p5) target bundleno = 1 (0x1), region = 110 }

// kernel: discriminator_forward.8
= control target key start
LH: loop header
LB: loop body
LE: loop exit
PB: predicated region body
PF: predicated region fallthrough
CT: control target
= control target key end

     0   :  { %s1455_s12 = smov 0   ;;  %s1612_s0 = inlined_call_operand.vmem [shape: bf16[2,60,2,16,30], index: 0, kind: input, shape index: {}]   ;;  %s1613_s1 = inlined_call_operand.vmem [shape: bf16[25,16,16], index: 1, kind: input, shape index: {}]   ;;  %s1614_s2 = inlined_call_operand.vmem [shape: f32[16,1], index: 2, kind: input, shape index: {}]   ;;  %s1615_s3 = inlined_call_operand.vmem [shape: bf16[2,28,16,28], index: 3, kind: output, shape index: {}]  }
   0x1 LB: > { %s1101_s13 = sadd.s32 4294967295, %s1426_s12   ;;  %p1105_p0 = scmp.ge.s32.totalorder %s1426_s12, 1  ;;  %s1426_s12 = sphi %s1455_s12, %s13_s12  }
   0x2   : > { %p137_p1 = scmp.lt.s32.totalorder %s1426_s12, 3 }
   0x4   : > { %p138_p2 = pnand %p1105_p0, %p137_p1 }
   0x5   : > { %p161_p3 = scmp.lt.s32.totalorder (!%p138_p2), %s1101_s13, 1  ;;  %s1483_s26 = smov (!%p138_p2), 0  }
   0x6   : > { %141 = sbr.rel (%p138_p2) target bundleno = 377 (0x179), region = 32 }
   0xb   : > { %v1466_v0 = vld [vmem:[%s1614_s2] sm:$0xff]  ;;  %v1471_v1 = vld [vmem:[%s1614_s2 + $0x8] sm:$0xff]  ;;  %s1617_s13 = smov (!%p161_p3, %s1101_s13), 1 }
   0xc   : > { %s1393_s18 = smul.u32 960, %s1617_s13 }
   0xd   : > { %s1394_s19 = smul.u32 224, %s1617_s13 }
   0xe   : > { %s1476_s22 = scalar_lea.vmem %s1612_s0, %s1393_s18 }
   0xf   : > { %s1481_s25 = scalar_lea.vmem %s1615_s3, %s1394_s19 }
  0x10 LB: >> { %s1352_s27 = sshll.u32 %s1430_s26, 5  ;;  %s1432_s29 = smov 127   ;;  %v1356_v6 = vld [vmem:[%s1613_s1 + $0x8] sm:$0xff]  ;;  %vm204_vm0 = vcmask 130048   ;;  %v1355_v7 = vld [vmem:[%s1613_s1] sm:$0xff]  ;;  %v1357_v19 = vld [vmem:[%s1613_s1 + $0x10] sm:$0xff]  ;;  %s1430_s26 = sphi %s1483_s26, %s179_s26  }
  0x11   : >> { %s1490_s28 = scalar_lea.vmem %s1476_s22, %s1352_s27  ;;  %s1433_s30 = smov 126   ;;  %v1363_v15 = vld [vmem:[%s1613_s1 + $0x28] sm:$0xff]  ;;  %v1359_v20 = vld [vmem:[%s1613_s1 + $0x20] sm:$0xff]  ;;  %v1358_v24 = vld [vmem:[%s1613_s1 + $0x18] sm:$0xff]  ;;  %v1434_v46 = vmov 0   ;;  %vm1018_vm2 = vcmask 224256  }
  0x12   : >> { %v1353_v2 = vld [vmem:[%s1490_s28] sm:$0xff]  ;;  %v1354_v3 = vld [vmem:[%s1490_s28 + $0x8] sm:$0xff]  ;;  %v1362_v4 = vld [vmem:[%s1490_s28 + $0x18] sm:$0xff]  ;;  %1414 = vset.pattern.permute.xlu0 %v1434_v46  ;;  %1415 = vset.pattern.permute.xlu1 %v1434_v46  ;;  %s1392_s8 = sshll.u32 %s1430_s26, 3  ;;  %s179_s26 = sadd.s32 1, %s1430_s26  }
  0x13   : >> { %258 = vrot.lane.b32.xlu0 %v1353_v2, %s1432_s29  ;;  %318 = vrot.lane.b32.xlu1 %v1353_v2, %s1433_s30  ;;  %v1361_v5 = vld [vmem:[%s1490_s28 + $0x10] sm:$0xff]  ;;  %v1369_v8 = vld [vmem:[%s1490_s28 + $0x20] sm:$0xff]  ;;  %s1017_s9 = scalar_lea.vmem %s1481_s25, %s1392_s8  ;;  %p176_p4 = scmp.ge.s32.totalorder %s179_s26, 28  }
  0x14   : >> { %452 = vrot.lane.b32.xlu2 %v1362_v4, %s1432_s29  ;;  %215 = vmatpush.bf16.msra.mxu0 %v1354_v3  ;;  %v1370_v9 = vld [vmem:[%s1490_s28 + $0x28] sm:$0xff]  ;;  %v1378_v10 = vld [vmem:[%s1490_s28 + $0x38] sm:$0xff]  ;;  %v1377_v11 = vld [vmem:[%s1490_s28 + $0x30] sm:$0xff] }
  0x15   : >> { %243 = vmatpush.bf16.msra.mxu1 %v1353_v2  ;;  %v1385_v12 = vld [vmem:[%s1490_s28 + $0x40] sm:$0xff]  ;;  %v1386_v13 = vld [vmem:[%s1490_s28 + $0x48] sm:$0xff]  ;;  %v1364_v26 = vld [vmem:[%s1613_s1 + $0x30] sm:$0xff] }
  0x16   : >> { %v1367_v21 = vld [vmem:[%s1613_s1 + $0x48] sm:$0xff]  ;;  %v1366_v27 = vld [vmem:[%s1613_s1 + $0x40] sm:$0xff]  ;;  %v1365_v31 = vld [vmem:[%s1613_s1 + $0x38] sm:$0xff] }
  0x17   : >> { %1121 = vmatmul.msk.bf16.vlgmr.msra.gmra.mxu0 %vm204_vm0, %v1356_v6  ;;  %v1374_v30 = vld [vmem:[%s1613_s1 + $0x68] sm:$0xff]  ;;  %v1371_v33 = vld [vmem:[%s1613_s1 + $0x50] sm:$0xff]  ;;  %v1373_v34 = vld [vmem:[%s1613_s1 + $0x60] sm:$0xff] }
  0x18   : >> { %1130 = vmatmul.msk.bf16.vlgmr.msra.gmra.mxu1 %vm204_vm0, %v1355_v7  ;;  %v1381_v36 = vld [vmem:[%s1613_s1 + $0x88] sm:$0xff]  ;;  %v1372_v37 = vld [vmem:[%s1613_s1 + $0x58] sm:$0xff]  ;;  %v1375_v39 = vld [vmem:[%s1613_s1 + $0x70] sm:$0xff] }
  0x19   : >> { %372 = vmatpush.bf16.msrb.mxu1 %v1361_v5  ;;  %v1380_v40 = vld [vmem:[%s1613_s1 + $0x80] sm:$0xff]  ;;  %v1388_v43 = vld [vmem:[%s1613_s1 + $0xa8] sm:$0xff]  ;;  %v1379_v44 = vld [vmem:[%s1613_s1 + $0x78] sm:$0xff] }
  0x1a   : >> { %v1382_v47 = vld [vmem:[%s1613_s1 + $0x90] sm:$0xff]  ;;  %v1387_v48 = vld [vmem:[%s1613_s1 + $0xa0] sm:$0xff]  ;;  %v1383_v49 = vld [vmem:[%s1613_s1 + $0x98] sm:$0xff] }
  0x1b   : >> { %288 = vrot.lane.b32.xlu0 %v1354_v3, %s1432_s29  ;;  %422 = vrot.lane.b32.xlu1 %v1361_v5, %s1432_s29  ;;  %v1389_v50 = vld [vmem:[%s1613_s1 + $0xb0] sm:$0xff]  ;;  %v1391_v51 = vld [vmem:[%s1613_s1 + $0xc0] sm:$0xff] }
  0x1c   : >> { %482 = vrot.lane.b32.xlu2 %v1361_v5, %s1433_s30  ;;  %v1390_v52 = vld [vmem:[%s1613_s1 + $0xb8] sm:$0xff] }
  0x23   : >> { %586 = vrot.lane.b32.xlu0 %v1369_v8, %s1432_s29  ;;  %646 = vrot.lane.b32.xlu1 %v1369_v8, %s1433_s30 }
  0x24   : >> { %616 = vrot.lane.b32.xlu2 %v1370_v9, %s1432_s29 }
  0x28   : >> { %1168 = vmatmul.msk.bf16.vlgmr.msrb.gmra.mxu1 %vm204_vm0, %v1363_v15 }
  0x2b   : >> { %780 = vrot.lane.b32.xlu0 %v1378_v10, %s1432_s29  ;;  %810 = vrot.lane.b32.xlu1 %v1377_v11, %s1433_s30 }
  0x2c   : >> { %750 = vrot.lane.b32.xlu2 %v1377_v11, %s1432_s29 }
  0x33   : >> { %914 = vrot.lane.b32.xlu0 %v1385_v12, %s1432_s29  ;;  %944 = vrot.lane.b32.xlu1 %v1386_v13, %s1432_s29 }
  0x34   : >> { %974 = vrot.lane.b32.xlu2 %v1385_v12, %s1433_s30 }
  0x3b   : >> { %998 = vperm.xlu0 %1414, %v1466_v0   ;;  %1003 = vperm.xlu1 %1415, %v1471_v1  }
  0x6e   : >> { %v453_v14 = vpop.permute.xlu2 %452 }
  0x76   : >> { %v483_v16 = vpop.permute.xlu2 %482 }
  0x77   : >> { %495 = vmatpush.bf16.msra.mxu1 %v483_v16 }
  0x7a   : >> { %1200 = vmatmul.msk.bf16.vlgmr.msra.gmra.mxu1 %vm204_vm0, %v1367_v21 }
  0x7e   : >> { %v617_v25 = vpop.permute.xlu2 %616 }
  0x7f   : >> { %629 = vmatpush.bf16.msrb.mxu1 %v617_v25 }
  0x85   : >> { %v259_v17 = vpop.permute.xlu0 %258  ;;  %v319_v18 = vpop.permute.xlu1 %318 }
  0x86   : >> { %271 = vmatpush.bf16.msra.mxu2 %v259_v17  ;;  %331 = vmatpush.bf16.msrb.mxu0 %v319_v18  ;;  %v751_v32 = vpop.permute.xlu2 %750 }
  0x87   : >> { %763 = vmatpush.bf16.msra.mxu1 %v751_v32 }
  0x89   : >> { %1137 = vmatmul.msk.bf16.vlgmr.msra.gmra.mxu2 %vm204_vm0, %v1357_v19  ;;  %1151 = vmatmul.msk.bf16.vlgmr.msrb.gmra.mxu0 %vm204_vm0, %v1359_v20 }
  0x8a   : >> { %405 = vmatpush.bf16.msrb.mxu2 %v1362_v4  ;;  %465 = vmatpush.bf16.msra.mxu0 %v453_v14 }
  0x8b   : >> { %1242 = vmatmul.msk.bf16.vlgmr.msrb.gmra.mxu1 %vm204_vm0, %v1374_v30 }
  0x8c   : >> { %897 = vmatpush.bf16.msrb.mxu1 %v1386_v13 }
  0x8d   : >> { %v289_v22 = vpop.permute.xlu0 %288  ;;  %v423_v23 = vpop.permute.xlu1 %422 }
  0x8e   : >> { %536 = vmatpush.bf16.msra.mxu2 %v1369_v8  ;;  %301 = vmatpush.bf16.msra.mxu3 %v289_v22  ;;  %v975_v42 = vpop.permute.xlu2 %974 }
  0x91   : >> { %1144 = vmatmul.msk.bf16.vlgmr.msra.gmra.mxu3 %vm204_vm0, %v1358_v24 }
  0x92   : >> { %435 = vmatpush.bf16.msrb.mxu3 %v423_v23 }
  0x94   : >> { %v217_v53 = vpop.f32.mrf.mxu0 }
  0x95   : >> { %v587_v28 = vpop.permute.xlu0 %586  ;;  %v647_v29 = vpop.permute.xlu1 %646 }
  0x96   : >> { %569 = vmatpush.bf16.msra.mxu3 %v1370_v9  ;;  %599 = vmatpush.bf16.msrb.mxu0 %v587_v28  ;;  %v245_v54 = vpop.f32.mrf.mxu1 }
  0x97   : >> { %v246_v9 = vadd.f32 %v245_v54, %v217_v53 }
  0x99   : >> { %1179 = vmatmul.msk.bf16.vlgmr.msrb.gmra.mxu2 %vm204_vm0, %v1364_v26  ;;  %1193 = vmatmul.msk.bf16.vlgmr.msra.gmra.mxu0 %vm204_vm0, %v1366_v27 }
  0x9a   : >> { %659 = vmatpush.bf16.msrb.mxu2 %v647_v29  ;;  %733 = vmatpush.bf16.msra.mxu0 %v1378_v10 }
  0x9b   : >> { %1284 = vmatmul.msk.bf16.vlgmr.msra.gmra.mxu1 %vm204_vm0, %v1381_v36 }
  0x9c   : >> { %v219_v55 = vpop.f32.mrf.mxu0 }
  0x9d   : >> { %v781_v35 = vpop.permute.xlu0 %780  ;;  %v811_v38 = vpop.permute.xlu1 %810 }
  0x9e   : >> { %v247_v56 = vpop.f32.mrf.mxu1 }
  0x9f   : >> { %v248_v16 = vadd.f32 %v247_v56, %v219_v55 }
  0xa1   : >> { %1186 = vmatmul.msk.bf16.vlgmr.msrb.gmra.mxu3 %vm204_vm0, %v1365_v31 }
  0xa2   : >> { %700 = vmatpush.bf16.msrb.mxu3 %v1377_v11 }
  0xa5   : >> { %v915_v41 = vpop.permute.xlu0 %914  ;;  %v945_v45 = vpop.permute.xlu1 %944 }
  0xa6   : >> { %v374_v58 = vpop.f32.mrf.mxu1 }
  0xa9   : >> { %1217 = vmatmul.msk.bf16.vlgmr.msra.gmra.mxu2 %vm204_vm0, %v1371_v33  ;;  %1235 = vmatmul.msk.bf16.vlgmr.msrb.gmra.mxu0 %vm204_vm0, %v1373_v34 }
  0xaa   : >> { %793 = vmatpush.bf16.msra.mxu2 %v781_v35  ;;  %864 = vmatpush.bf16.msrb.mxu0 %v1385_v12 }
  0xab   : >> { %1326 = vmatmul.msk.bf16.vlgmr.msrb.gmra.mxu1 %vm204_vm0, %v1388_v43 }
  0xae   : >> { %v376_v63 = vpop.f32.mrf.mxu1 }
  0xb1   : >> { %1228 = vmatmul.msk.bf16.vlgmr.msra.gmra.mxu3 %vm204_vm0, %v1372_v37 }
  0xb2   : >> { %823 = vmatpush.bf16.msra.mxu3 %v811_v38 }
  0xb9   : >> { %1249 = vmatmul.msk.bf16.vlgmr.msrb.gmra.mxu2 %vm204_vm0, %v1375_v39  ;;  %1277 = vmatmul.msk.bf16.vlgmr.msra.gmra.mxu0 %vm204_vm0, %v1380_v40 }
  0xba   : >> { %927 = vmatpush.bf16.msrb.mxu2 %v915_v41  ;;  %987 = vmatpush.bf16.msra.mxu0 %v975_v42 }
  0xc1   : >> { %1266 = vmatmul.msk.bf16.vlgmr.msrb.gmra.mxu3 %vm204_vm0, %v1379_v44 }
  0xc2   : >> { %957 = vmatpush.bf16.msrb.mxu3 %v945_v45 }
  0xc9   : >> { %1291 = vmatmul.msk.bf16.vlgmr.msra.gmra.mxu2 %vm204_vm0, %v1382_v47  ;;  %1315 = vmatmul.msk.bf16.vlgmr.msrb.gmra.mxu0 %vm204_vm0, %v1387_v48 }
  0xd1   : >> { %1298 = vmatmul.msk.bf16.vlgmr.msra.gmra.mxu3 %vm204_vm0, %v1383_v49 }
  0xd9   : >> { %1333 = vmatmul.msk.bf16.vlgmr.msrb.gmra.mxu2 %vm204_vm0, %v1389_v50  ;;  %1347 = vmatmul.msk.bf16.vlgmr.msra.gmra.mxu0 %vm204_vm0, %v1391_v51 }
  0xe1   : >> { %1340 = vmatmul.msk.bf16.vlgmr.msrb.gmra.mxu3 %vm204_vm0, %v1390_v52 }
  0xf7   : >> { %v497_v6 = vpop.f32.mrf.mxu1 }
  0xff   : >> { %v499_v13 = vpop.f32.mrf.mxu1 }
 0x106   : >> { %v333_v57 = vpop.f32.mrf.mxu0 }
 0x108   : >> { %v631_v23 = vpop.f32.mrf.mxu1 }
 0x10c   : >> { %v273_v59 = vpop.f32.mrf.mxu2 }
 0x10d   : >> { %v278_v10 = vadd.f32 %v273_v59, %v246_v9 }
 0x10e   : >> { %v335_v60 = vpop.f32.mrf.mxu0 }
 0x110   : >> { %v633_v36 = vpop.f32.mrf.mxu1 }
 0x114   : >> { %v275_v61 = vpop.f32.mrf.mxu2  ;;  %v303_v62 = vpop.f32.mrf.mxu3 }
 0x115   : >> { %v308_v12 = vadd.f32 %v303_v62, %v278_v10  ;;  %v279_v18 = vadd.f32 %v275_v61, %v248_v16 }
 0x116   : >> { %v467_v2 = vpop.f32.mrf.mxu0 }
 0x117   : >> { %v338_v17 = vadd.f32 %v333_v57, %v308_v12 }
 0x118   : >> { %v765_v46 = vpop.f32.mrf.mxu1 }
 0x119   : >> { %v379_v19 = vadd.f32 %v374_v58, %v338_v17 }
 0x11c   : >> { %v305_v3 = vpop.f32.mrf.mxu3  ;;  %v407_v4 = vpop.f32.mrf.mxu2 }
 0x11d   : >> { %v309_v20 = vadd.f32 %v305_v3, %v279_v18  ;;  %v412_v22 = vadd.f32 %v407_v4, %v379_v19  ;;  %v999_v19 = vpop.permute.xlu0 %998 }
 0x11e   : >> { %v469_v5 = vpop.f32.mrf.mxu0 }
 0x11f   : >> { %v339_v26 = vadd.f32 %v335_v60, %v309_v20 }
 0x120   : >> { %v767_v57 = vpop.f32.mrf.mxu1 }
 0x121   : >> { %v380_v28 = vadd.f32 %v376_v63, %v339_v26 }
 0x124   : >> { %v409_v7 = vpop.f32.mrf.mxu2  ;;  %v437_v8 = vpop.f32.mrf.mxu3 }
 0x125   : >> { %v442_v27 = vadd.f32 %v437_v8, %v412_v22  ;;  %v413_v30 = vadd.f32 %v409_v7, %v380_v28 }
 0x126   : >> { %v601_v11 = vpop.f32.mrf.mxu0 }
 0x127   : >> { %v472_v29 = vadd.f32 %v467_v2, %v442_v27 }
 0x129   : >> { %v502_v34 = vadd.f32 %v497_v6, %v472_v29 }
 0x12c   : >> { %v439_v14 = vpop.f32.mrf.mxu3  ;;  %v538_v15 = vpop.f32.mrf.mxu2 }
 0x12d   : >> { %v443_v35 = vadd.f32 %v439_v14, %v413_v30  ;;  %v543_v37 = vadd.f32 %v538_v15, %v502_v34 }
 0x12e   : >> { %v603_v21 = vpop.f32.mrf.mxu0 }
 0x12f   : >> { %v473_v38 = vadd.f32 %v469_v5, %v443_v35  ;;  %v899_v5 = vpop.f32.mrf.mxu1 }
 0x131   : >> { %v503_v42 = vadd.f32 %v499_v13, %v473_v38 }
 0x134   : >> { %v540_v24 = vpop.f32.mrf.mxu2  ;;  %v571_v25 = vpop.f32.mrf.mxu3 }
 0x135   : >> { %v576_v39 = vadd.f32 %v571_v25, %v543_v37  ;;  %v544_v45 = vadd.f32 %v540_v24, %v503_v42 }
 0x136   : >> { %v735_v31 = vpop.f32.mrf.mxu0 }
 0x137   : >> { %v606_v43 = vadd.f32 %v601_v11, %v576_v39  ;;  %v901_v18 = vpop.f32.mrf.mxu1 }
 0x139   : >> { %v636_v47 = vadd.f32 %v631_v23, %v606_v43 }
 0x13c   : >> { %v573_v32 = vpop.f32.mrf.mxu3  ;;  %v661_v33 = vpop.f32.mrf.mxu2 }
 0x13d   : >> { %v577_v48 = vadd.f32 %v573_v32, %v544_v45  ;;  %v666_v49 = vadd.f32 %v661_v33, %v636_v47 }
 0x13e   : >> { %v737_v44 = vpop.f32.mrf.mxu0 }
 0x13f   : >> { %v607_v52 = vadd.f32 %v603_v21, %v577_v48 }
 0x141   : >> { %v637_v55 = vadd.f32 %v633_v36, %v607_v52 }
 0x144   : >> { %v663_v40 = vpop.f32.mrf.mxu2  ;;  %v702_v41 = vpop.f32.mrf.mxu3 }
 0x145   : >> { %v707_v53 = vadd.f32 %v702_v41, %v666_v49  ;;  %v667_v58 = vadd.f32 %v663_v40, %v637_v55 }
 0x146   : >> { %v866_v54 = vpop.f32.mrf.mxu0 }
 0x147   : >> { %v740_v56 = vadd.f32 %v735_v31, %v707_v53  ;;  %v1004_v31 = vpop.permute.xlu1 %1003 }
 0x149   : >> { %v770_v61 = vadd.f32 %v765_v46, %v740_v56 }
 0x14c   : >> { %v704_v50 = vpop.f32.mrf.mxu3  ;;  %v795_v51 = vpop.f32.mrf.mxu2 }
 0x14d   : >> { %v708_v62 = vadd.f32 %v704_v50, %v667_v58  ;;  %v800_v63 = vadd.f32 %v795_v51, %v770_v61 }
 0x14e   : >> { %v868_v4 = vpop.f32.mrf.mxu0 }
 0x14f   : >> { %v741_v2 = vadd.f32 %v737_v44, %v708_v62 }
 0x151   : >> { %v771_v7 = vadd.f32 %v767_v57, %v741_v2 }
 0x154   : >> { %v797_v59 = vpop.f32.mrf.mxu2  ;;  %v825_v60 = vpop.f32.mrf.mxu3 }
 0x155   : >> { %v830_v3 = vadd.f32 %v825_v60, %v800_v63  ;;  %v801_v10 = vadd.f32 %v797_v59, %v771_v7 }
 0x156   : >> { %v989_v14 = vpop.f32.mrf.mxu0 }
 0x157   : >> { %v871_v8 = vadd.f32 %v866_v54, %v830_v3 }
 0x159   : >> { %v904_v11 = vadd.f32 %v899_v5, %v871_v8 }
 0x15c   : >> { %v827_v6 = vpop.f32.mrf.mxu3  ;;  %v929_v9 = vpop.f32.mrf.mxu2 }
 0x15d   : >> { %v831_v12 = vadd.f32 %v827_v6, %v801_v10  ;;  %v934_v13 = vadd.f32 %v929_v9, %v904_v11 }
 0x15e   : >> { %v991_v29 = vpop.f32.mrf.mxu0 }
 0x15f   : >> { %v872_v16 = vadd.f32 %v868_v4, %v831_v12 }
 0x161   : >> { %v905_v22 = vadd.f32 %v901_v18, %v872_v16 }
 0x164   : >> { %v959_v15 = vpop.f32.mrf.mxu3  ;;  %v931_v21 = vpop.f32.mrf.mxu2 }
 0x165   : >> { %v964_v17 = vadd.f32 %v959_v15, %v934_v13  ;;  %v935_v24 = vadd.f32 %v931_v21, %v905_v22 }
 0x167   : >> { %v994_v20 = vadd.f32 %v989_v14, %v964_v17 }
 0x169   : >> { %v1006_v23 = vadd.f32 %v999_v19, %v994_v20 }
 0x16b   : >> { %vm1008_vm1 = vcmp.ge.f32.partialorder %v1006_v23, 0.0  ;;  %v1010_v25 = vmul.f32 0.2, %v1006_v23 }
 0x16c   : >> { %v961_v26 = vpop.f32.mrf.mxu3 }
 0x16d   : >> { %v1012_v27 = vsel %vm1008_vm1, %v1006_v23, %v1010_v25  ;;  %v965_v28 = vadd.f32 %v961_v26, %v935_v24 }
 0x16e   : >> { %v1014_v30 = vpack.c.bf16 %v1012_v27, %v1012_v27 }
 0x16f   : >> { %v995_v32 = vadd.f32 %v991_v29, %v965_v28 }
 0x170   : >> { %1019 = vst.msk [vmem:[%s1017_s9] sm:$0xf] %vm1018_vm2, %v1014_v30 }
 0x171   : >> { %v1007_v33 = vadd.f32 %v1004_v31, %v995_v32 }
 0x173   : >> { %vm1009_vm3 = vcmp.ge.f32.partialorder %v1007_v33, 0.0  ;;  %v1011_v34 = vmul.f32 0.2, %v1007_v33 }
 0x174   : > { %178 = sbr.rel (!%p176_p4) target bundleno = 16 (0x10), region = 99 }
 0x175   : >> { %v1013_v35 = vsel %vm1009_vm3, %v1007_v33, %v1011_v34 }
 0x176   : >> { %v1015_v36 = vpack.c.bf16 %v1013_v35, %v1013_v35 }
 0x178   : >> { %1020 = vst.msk [vmem:[%s1017_s9 + $0x4] sm:$0xf] %vm1018_vm2, %v1015_v36 }
 0x179 PF: > { %s13_s12 = sadd.s32 1, %s1426_s12  }
 0x17a   : > { %p10_p5 = scmp.ge.s32.totalorder %s13_s12, 4  }
 0x17c   :  { %12 = sbr.rel (!%p10_p5) target bundleno = 1 (0x1), region = 110 }

// kernel: discriminator_forward.9
= control target key start
LH: loop header
LB: loop body
LE: loop exit
PB: predicated region body
PF: predicated region fallthrough
CT: control target
= control target key end

     0   :  { %s2103_s12 = smov 0   ;;  %s2412_s0 = inlined_call_operand.vmem [shape: bf16[2,32,2,16,16], index: 0, kind: input, shape index: {}]   ;;  %s2413_s1 = inlined_call_operand.vmem [shape: bf16[25,32,16], index: 1, kind: input, shape index: {}]   ;;  %s2414_s2 = inlined_call_operand.vmem [shape: f32[32,1], index: 2, kind: input, shape index: {}]   ;;  %s2415_s3 = inlined_call_operand.vmem [shape: bf16[2,14,32,14], index: 3, kind: output, shape index: {}]  }
   0x1 LB: > { %s1547_s13 = sadd.s32 4294967295, %s2074_s12   ;;  %p1551_p0 = scmp.ge.s32.totalorder %s2074_s12, 1  ;;  %s2074_s12 = sphi %s2103_s12, %s13_s12  }
   0x2   : > { %p137_p1 = scmp.lt.s32.totalorder %s2074_s12, 3 }
   0x4   : > { %p138_p2 = pnand %p1551_p0, %p137_p1 }
   0x5   : > { %p161_p3 = scmp.lt.s32.totalorder (!%p138_p2), %s1547_s13, 1  ;;  %s2141_s30 = smov (!%p138_p2), 0  }
   0x6   : > { %141 = sbr.rel (%p138_p2) target bundleno = 472 (0x1d8), region = 32 }
   0xb   : > { %v2114_v0 = vld [vmem:[%s2414_s2] sm:$0xff]  ;;  %v2119_v1 = vld [vmem:[%s2414_s2 + $0x8] sm:$0xff]  ;;  %v2124_v2 = vld [vmem:[%s2414_s2 + $0x10] sm:$0xff]  ;;  %s2417_s13 = smov (!%p161_p3, %s1547_s13), 1 }
   0xc   : > { %v2129_v3 = vld [vmem:[%s2414_s2 + $0x18] sm:$0xff]  ;;  %s1972_s22 = sshll.u32 %s2417_s13, 9  ;;  %s2041_s23 = smul.u32 224, %s2417_s13 }
   0xd   : > { %s2134_s26 = scalar_lea.vmem %s2412_s0, %s1972_s22 }
   0xe   : > { %s2139_s29 = scalar_lea.vmem %s2415_s3, %s2041_s23 }
   0xf LB: >> { %s1974_s4 = sshll.u32 %s2078_s30, 5  ;;  %s2080_s6 = smov 127   ;;  %v1980_v7 = vld [vmem:[%s2413_s1 + $0x18] sm:$0xff]  ;;  %vm215_vm0 = vcmask 130048   ;;  %v1979_v9 = vld [vmem:[%s2413_s1 + $0x10] sm:$0xff]  ;;  %v1977_v12 = vld [vmem:[%s2413_s1] sm:$0xff]  ;;  %s2078_s30 = sphi %s2141_s30, %s181_s30  }
  0x10   : >> { %s2148_s5 = scalar_lea.vmem %s2134_s26, %s1974_s4  ;;  %s2081_s7 = smov 126   ;;  %v1978_v15 = vld [vmem:[%s2413_s1 + $0x8] sm:$0xff]  ;;  %v1990_v16 = vld [vmem:[%s2413_s1 + $0x50] sm:$0xff]  ;;  %v1981_v22 = vld [vmem:[%s2413_s1 + $0x20] sm:$0xff]  ;;  %vm1462_vm2 = vcmask 109568  }
  0x11   : >> { %v1975_v4 = vld [vmem:[%s2148_s5] sm:$0xff]  ;;  %v1976_v5 = vld [vmem:[%s2148_s5 + $0x8] sm:$0xff]  ;;  %v1989_v6 = vld [vmem:[%s2148_s5 + $0x18] sm:$0xff]  ;;  %s2039_s17 = sshll.u32 %s2078_s30, 4  ;;  %s181_s30 = sadd.s32 1, %s2078_s30  }
  0x12   : >> { %297 = vrot.lane.b32.xlu0 %v1975_v4, %s2080_s6  ;;  %391 = vrot.lane.b32.xlu1 %v1975_v4, %s2081_s7  ;;  %v1988_v8 = vld [vmem:[%s2148_s5 + $0x10] sm:$0xff]  ;;  %v2001_v10 = vld [vmem:[%s2148_s5 + $0x20] sm:$0xff]  ;;  %s2396_s18 = scalar_lea.vmem %s2139_s29, %s2039_s17  ;;  %p178_p4 = scmp.ge.s32.totalorder %s181_s30, 14  }
  0x13   : >> { %593 = vrot.lane.b32.xlu2 %v1989_v6, %s2080_s6  ;;  %2040 = vmatpush.bf16.msra.mxu1 %v1976_v5  ;;  %v2002_v11 = vld [vmem:[%s2148_s5 + $0x28] sm:$0xff]  ;;  %v2015_v13 = vld [vmem:[%s2148_s5 + $0x38] sm:$0xff]  ;;  %v2014_v14 = vld [vmem:[%s2148_s5 + $0x30] sm:$0xff] }
  0x14   : >> { %229 = vmatpush.bf16.msra.mxu0 %v1976_v5  ;;  %v2190_v17 = vld [vmem:[%s2148_s5 + $0x40] sm:$0xff]  ;;  %v2193_v18 = vld [vmem:[%s2148_s5 + $0x48] sm:$0xff]  ;;  %v1991_v24 = vld [vmem:[%s2413_s1 + $0x58] sm:$0xff] }
  0x15   : >> { %v1985_v23 = vld [vmem:[%s2413_s1 + $0x40] sm:$0xff]  ;;  %v1983_v27 = vld [vmem:[%s2413_s1 + $0x30] sm:$0xff]  ;;  %v1982_v29 = vld [vmem:[%s2413_s1 + $0x28] sm:$0xff] }
  0x16   : >> { %1575 = vmatmul.msk.bf16.vlgmr.msra.gmra.mxu1 %vm215_vm0, %v1980_v7  ;;  %v1986_v30 = vld [vmem:[%s2413_s1 + $0x48] sm:$0xff]  ;;  %v1998_v32 = vld [vmem:[%s2413_s1 + $0x90] sm:$0xff]  ;;  %v1984_v33 = vld [vmem:[%s2413_s1 + $0x38] sm:$0xff] }
  0x17   : >> { %270 = vmatpush.bf16.msrb.mxu1 %v1975_v4  ;;  %1574 = vmatmul.msk.bf16.vlgmr.msra.gmra.mxu0 %vm215_vm0, %v1979_v9  ;;  %v1992_v34 = vld [vmem:[%s2413_s1 + $0x60] sm:$0xff]  ;;  %v1999_v36 = vld [vmem:[%s2413_s1 + $0x98] sm:$0xff]  ;;  %v1994_v38 = vld [vmem:[%s2413_s1 + $0x70] sm:$0xff] }
  0x18   : >> { %v1996_v35 = vld [vmem:[%s2413_s1 + $0x80] sm:$0xff]  ;;  %v1993_v41 = vld [vmem:[%s2413_s1 + $0x68] sm:$0xff]  ;;  %v2009_v43 = vld [vmem:[%s2413_s1 + $0xd0] sm:$0xff] }
  0x19   : >> { %v1997_v42 = vld [vmem:[%s2413_s1 + $0x88] sm:$0xff]  ;;  %v1995_v45 = vld [vmem:[%s2413_s1 + $0x78] sm:$0xff]  ;;  %v2003_v47 = vld [vmem:[%s2413_s1 + $0xa0] sm:$0xff] }
  0x1a   : >> { %344 = vrot.lane.b32.xlu0 %v1976_v5, %s2080_s6  ;;  %546 = vrot.lane.b32.xlu1 %v1988_v8, %s2080_s6  ;;  %v2007_v48 = vld [vmem:[%s2413_s1 + $0xc0] sm:$0xff]  ;;  %v2010_v49 = vld [vmem:[%s2413_s1 + $0xd8] sm:$0xff] }
  0x1b   : >> { %465 = vmatpush.bf16.msra.mxu1 %v1988_v8  ;;  %640 = vrot.lane.b32.xlu2 %v1988_v8, %s2081_s7  ;;  %v2005_v52 = vld [vmem:[%s2413_s1 + $0xb0] sm:$0xff]  ;;  %v2004_v57 = vld [vmem:[%s2413_s1 + $0xa8] sm:$0xff]  ;;  %v2006_v62 = vld [vmem:[%s2413_s1 + $0xb8] sm:$0xff] }
  0x1c   : >> { %v2008_v58 = vld [vmem:[%s2413_s1 + $0xc8] sm:$0xff]  ;;  %v2020_v59 = vld [vmem:[%s2413_s1 + $0x110] sm:$0xff]  ;;  %v2011_v63 = vld [vmem:[%s2413_s1 + $0xe0] sm:$0xff] }
  0x1d   : >> { %v2018_v4 = vld [vmem:[%s2413_s1 + $0x100] sm:$0xff]  ;;  %v2021_v5 = vld [vmem:[%s2413_s1 + $0x118] sm:$0xff]  ;;  %v2012_v9 = vld [vmem:[%s2413_s1 + $0xe8] sm:$0xff] }
  0x22   : >> { %795 = vrot.lane.b32.xlu0 %v2001_v10, %s2080_s6  ;;  %889 = vrot.lane.b32.xlu1 %v2001_v10, %s2081_s7 }
  0x23   : >> { %842 = vrot.lane.b32.xlu2 %v2002_v11, %s2080_s6 }
  0x26   : >> { %1588 = vmatmul.msk.bf16.vlgmr.msrb.gmra.mxu1 %vm215_vm0, %v1977_v12  ;;  %v2031_v12 = vld [vmem:[%s2413_s1 + $0x150] sm:$0xff] }
  0x2a   : >> { %1091 = vrot.lane.b32.xlu0 %v2015_v13, %s2080_s6  ;;  %1138 = vrot.lane.b32.xlu1 %v2014_v14, %s2081_s7 }
  0x2b   : >> { %1044 = vrot.lane.b32.xlu2 %v2014_v14, %s2080_s6 }
  0x32   : >> { %1293 = vrot.lane.b32.xlu0 %v2190_v17, %s2080_s6  ;;  %1340 = vrot.lane.b32.xlu1 %v2193_v18, %s2080_s6 }
  0x33   : >> { %1387 = vrot.lane.b32.xlu2 %v2190_v17, %s2081_s7 }
  0x36   : >> { %1589 = vmatmul.msk.bf16.gmra.mxu1 %vm215_vm0, %v1978_v15 }
  0x46   : >> { %1654 = vmatmul.msk.bf16.vlgmr.msra.gmra.mxu1 %vm215_vm0, %v1990_v16  ;;  %v2022_v16 = vld [vmem:[%s2413_s1 + $0x120] sm:$0xff] }
  0x56   : >> { %1655 = vmatmul.msk.bf16.gmra.mxu1 %vm215_vm0, %v1991_v24 }
  0x6d   : >> { %v594_v19 = vpop.permute.xlu2 %593 }
  0x75   : >> { %v641_v28 = vpop.permute.xlu2 %640 }
  0x76   : >> { %656 = vmatpush.bf16.msrb.mxu1 %v641_v28 }
  0x79   : >> { %1714 = vmatmul.msk.bf16.vlgmr.msrb.gmra.mxu1 %vm215_vm0, %v1998_v32  ;;  %v2030_v32 = vld [vmem:[%s2413_s1 + $0x148] sm:$0xff] }
  0x7d   : >> { %v843_v39 = vpop.permute.xlu2 %842 }
  0x7e   : >> { %858 = vmatpush.bf16.msra.mxu1 %v843_v39 }
  0x84   : >> { %v298_v20 = vpop.permute.xlu0 %297  ;;  %v392_v21 = vpop.permute.xlu1 %391 }
  0x85   : >> { %313 = vmatpush.bf16.msra.mxu2 %v298_v20  ;;  %407 = vmatpush.bf16.msrb.mxu0 %v392_v21  ;;  %v1045_v54 = vpop.permute.xlu2 %1044  ;;  %v2032_v20 = vld [vmem:[%s2413_s1 + $0x158] sm:$0xff] }
  0x86   : >> { %1060 = vmatpush.bf16.msrb.mxu1 %v1045_v54  ;;  %v2082_v54 = vmov 0  }
  0x87   : >> { %2061 = vset.pattern.permute.xlu0 %v2082_v54  ;;  %2062 = vset.pattern.permute.xlu1 %v2082_v54 }
  0x88   : >> { %1602 = vmatmul.msk.bf16.vlgmr.msra.gmra.mxu2 %vm215_vm0, %v1981_v22  ;;  %1630 = vmatmul.msk.bf16.vlgmr.msrb.gmra.mxu0 %vm215_vm0, %v1985_v23  ;;  %v2024_v23 = vld [vmem:[%s2413_s1 + $0x130] sm:$0xff] }
  0x89   : >> { %515 = vmatpush.bf16.msrb.mxu2 %v1989_v6  ;;  %609 = vmatpush.bf16.msra.mxu0 %v594_v19  ;;  %v2016_v6 = vld [vmem:[%s2413_s1 + $0xf0] sm:$0xff] }
  0x8a   : >> { %1715 = vmatmul.msk.bf16.gmra.mxu1 %vm215_vm0, %v1999_v36  ;;  %1421 = vperm.xlu0 %2061, %v2114_v0  }
  0x8b   : >> { %1426 = vperm.xlu1 %2062, %v2119_v1   ;;  %2063 = vset.pattern.permute.xlu2 %v2082_v54 }
  0x8c   : >> { %v345_v25 = vpop.permute.xlu0 %344  ;;  %v547_v26 = vpop.permute.xlu1 %546  ;;  %1431 = vperm.xlu2 %2063, %v2124_v2  }
  0x8d   : >> { %714 = vmatpush.bf16.msra.mxu2 %v2001_v10  ;;  %360 = vmatpush.bf16.msra.mxu3 %v345_v25  ;;  %v2019_v10 = vld [vmem:[%s2413_s1 + $0x108] sm:$0xff] }
  0x90   : >> { %1616 = vmatmul.msk.bf16.vlgmr.msra.gmra.mxu3 %vm215_vm0, %v1983_v27 }
  0x91   : >> { %562 = vmatpush.bf16.msrb.mxu3 %v547_v26 }
  0x93   : >> { %v236_v40 = vpop.f32.mrf.mxu1  ;;  %1436 = vperm.xlu1 %2062, %v2129_v3  }
  0x94   : >> { %v796_v31 = vpop.permute.xlu0 %795  ;;  %v890_v37 = vpop.permute.xlu1 %889 }
  0x95   : >> { %764 = vmatpush.bf16.msra.mxu3 %v2002_v11  ;;  %811 = vmatpush.bf16.msrb.mxu0 %v796_v31  ;;  %v231_v60 = vpop.f32.mrf.mxu0  ;;  %v1388_v11 = vpop.permute.xlu2 %1387  ;;  %v2023_v31 = vld [vmem:[%s2413_s1 + $0x128] sm:$0xff] }
  0x98   : >> { %1603 = vmatmul.msk.bf16.gmra.mxu2 %vm215_vm0, %v1982_v29  ;;  %1631 = vmatmul.msk.bf16.gmra.mxu0 %vm215_vm0, %v1986_v30 }
  0x9a   : >> { %1784 = vmatmul.msk.bf16.vlgmr.msra.gmra.mxu1 %vm215_vm0, %v2009_v43 }
  0x9b   : >> { %v2261_v44 = vpop.f32.mrf.mxu1  ;;  %1262 = vmatpush.bf16.msra.mxu1 %v2193_v18 }
  0x9c   : >> { %v1092_v50 = vpop.permute.xlu0 %1091  ;;  %v1139_v53 = vpop.permute.xlu1 %1138 }
  0xa0   : >> { %1617 = vmatmul.msk.bf16.gmra.mxu3 %vm215_vm0, %v1984_v33 }
  0xa3   : >> { %v272_v46 = vpop.f32.mrf.mxu1 }
  0xa4   : >> { %v273_v61 = vadd.f32 %v272_v46, %v231_v60  ;;  %v1294_v7 = vpop.permute.xlu0 %1293  ;;  %v1341_v8 = vpop.permute.xlu1 %1340 }
  0xa8   : >> { %1672 = vmatmul.msk.bf16.vlgmr.msrb.gmra.mxu2 %vm215_vm0, %v1992_v34  ;;  %1700 = vmatmul.msk.bf16.vlgmr.msra.gmra.mxu0 %vm215_vm0, %v1996_v35 }
  0xa9   : >> { %905 = vmatpush.bf16.msrb.mxu2 %v890_v37  ;;  %1013 = vmatpush.bf16.msra.mxu0 %v2015_v13  ;;  %v233_v13 = vpop.f32.mrf.mxu0 }
  0xaa   : >> { %1785 = vmatmul.msk.bf16.gmra.mxu1 %vm215_vm0, %v2010_v49 }
  0xab   : >> { %v274_v51 = vpop.f32.mrf.mxu1 }
  0xac   : >> { %v275_v26 = vadd.f32 %v274_v51, %v233_v13  ;;  %v2033_v51 = vld [vmem:[%s2413_s1 + $0x160] sm:$0xff] }
  0xb0   : >> { %1686 = vmatmul.msk.bf16.vlgmr.msrb.gmra.mxu3 %vm215_vm0, %v1994_v38 }
  0xb1   : >> { %963 = vmatpush.bf16.msrb.mxu3 %v2014_v14  ;;  %v2017_v14 = vld [vmem:[%s2413_s1 + $0xf8] sm:$0xff] }
  0xb3   : >> { %v277_v55 = vpop.f32.mrf.mxu1 }
  0xb4   : >> { %v2285_v56 = vadd.f32 %v277_v55, %v236_v40 }
  0xb8   : >> { %1673 = vmatmul.msk.bf16.gmra.mxu2 %vm215_vm0, %v1993_v41  ;;  %1701 = vmatmul.msk.bf16.gmra.mxu0 %vm215_vm0, %v1997_v42  ;;  %v2025_v41 = vld [vmem:[%s2413_s1 + $0x138] sm:$0xff] }
  0xba   : >> { %1854 = vmatmul.msk.bf16.vlgmr.msrb.gmra.mxu1 %vm215_vm0, %v2020_v59 }
  0xbb   : >> { %v279_v15 = vpop.f32.mrf.mxu1 }
  0xbc   : >> { %v280_v46 = vadd.f32 %v279_v15, %v2261_v44 }
  0xc0   : >> { %1687 = vmatmul.msk.bf16.gmra.mxu3 %vm215_vm0, %v1995_v45 }
  0xc3   : >> { %v467_v19 = vpop.f32.mrf.mxu1 }
  0xc8   : >> { %1738 = vmatmul.msk.bf16.vlgmr.msra.gmra.mxu2 %vm215_vm0, %v2003_v47  ;;  %1770 = vmatmul.msk.bf16.vlgmr.msrb.gmra.mxu0 %vm215_vm0, %v2007_v48 }
  0xc9   : >> { %1107 = vmatpush.bf16.msra.mxu2 %v1092_v50  ;;  %1212 = vmatpush.bf16.msrb.mxu0 %v2190_v17  ;;  %v2029_v17 = vld [vmem:[%s2413_s1 + $0x140] sm:$0xff] }
  0xca   : >> { %1855 = vmatmul.msk.bf16.gmra.mxu1 %vm215_vm0, %v2021_v5 }
  0xcb   : >> { %v469_v25 = vpop.f32.mrf.mxu1 }
  0xd0   : >> { %1756 = vmatmul.msk.bf16.vlgmr.msra.gmra.mxu3 %vm215_vm0, %v2005_v52 }
  0xd1   : >> { %1154 = vmatpush.bf16.msra.mxu3 %v1139_v53  ;;  %v2037_v53 = vld [vmem:[%s2413_s1 + $0x180] sm:$0xff] }
  0xd3   : >> { %v472_v36 = vpop.f32.mrf.mxu1 }
  0xd8   : >> { %1739 = vmatmul.msk.bf16.gmra.mxu2 %vm215_vm0, %v2004_v57  ;;  %1771 = vmatmul.msk.bf16.gmra.mxu0 %vm215_vm0, %v2008_v58 }
  0xda   : >> { %1924 = vmatmul.msk.bf16.vlgmr.msra.gmra.mxu1 %vm215_vm0, %v2031_v12 }
  0xdb   : >> { %v474_v52 = vpop.f32.mrf.mxu1 }
  0xe0   : >> { %1757 = vmatmul.msk.bf16.gmra.mxu3 %vm215_vm0, %v2006_v62 }
  0xe8   : >> { %1798 = vmatmul.msk.bf16.vlgmr.msrb.gmra.mxu2 %vm215_vm0, %v2011_v63  ;;  %1840 = vmatmul.msk.bf16.vlgmr.msra.gmra.mxu0 %vm215_vm0, %v2018_v4 }
  0xe9   : >> { %1309 = vmatpush.bf16.msrb.mxu2 %v1294_v7  ;;  %1403 = vmatpush.bf16.msra.mxu0 %v1388_v11  ;;  %v2038_v11 = vld [vmem:[%s2413_s1 + $0x188] sm:$0xff] }
  0xea   : >> { %1925 = vmatmul.msk.bf16.gmra.mxu1 %vm215_vm0, %v2032_v20  ;;  %v2036_v20 = vld [vmem:[%s2413_s1 + $0x178] sm:$0xff] }
  0xf0   : >> { %1822 = vmatmul.msk.bf16.vlgmr.msrb.gmra.mxu3 %vm215_vm0, %v2016_v6 }
  0xf1   : >> { %1356 = vmatpush.bf16.msrb.mxu3 %v1341_v8 }
  0xf6   : >> { %v658_v4 = vpop.f32.mrf.mxu1 }
  0xf8   : >> { %1799 = vmatmul.msk.bf16.gmra.mxu2 %vm215_vm0, %v2012_v9  ;;  %1841 = vmatmul.msk.bf16.gmra.mxu0 %vm215_vm0, %v2019_v10  ;;  %v2034_v10 = vld [vmem:[%s2413_s1 + $0x168] sm:$0xff] }
  0xfe   : >> { %v660_v15 = vpop.f32.mrf.mxu1 }
 0x100   : >> { %1823 = vmatmul.msk.bf16.gmra.mxu3 %vm215_vm0, %v2017_v14 }
 0x105   : >> { %v409_v18 = vpop.f32.mrf.mxu0 }
 0x108   : >> { %1868 = vmatmul.msk.bf16.vlgmr.msra.gmra.mxu2 %vm215_vm0, %v2022_v16  ;;  %1906 = vmatmul.msk.bf16.vlgmr.msrb.gmra.mxu0 %vm215_vm0, %v2029_v17 }
 0x10b   : >> { %v315_v21 = vpop.f32.mrf.mxu2 }
 0x10c   : >> { %v325_v22 = vadd.f32 %v315_v21, %v273_v61  ;;  %v2035_v61 = vld [vmem:[%s2413_s1 + $0x170] sm:$0xff] }
 0x10d   : >> { %v411_v24 = vpop.f32.mrf.mxu0 }
 0x110   : >> { %1882 = vmatmul.msk.bf16.vlgmr.msra.gmra.mxu3 %vm215_vm0, %v2024_v23 }
 0x113   : >> { %v317_v27 = vpop.f32.mrf.mxu2  ;;  %v362_v28 = vpop.f32.mrf.mxu3 }
 0x114   : >> { %v326_v29 = vadd.f32 %v317_v27, %v275_v26  ;;  %v372_v30 = vadd.f32 %v362_v28, %v325_v22 }
 0x115   : >> { %v414_v33 = vpop.f32.mrf.mxu0 }
 0x116   : >> { %v419_v34 = vadd.f32 %v409_v18, %v372_v30 }
 0x118   : >> { %v477_v35 = vadd.f32 %v467_v19, %v419_v34  ;;  %1869 = vmatmul.msk.bf16.gmra.mxu2 %vm215_vm0, %v2023_v31  ;;  %1907 = vmatmul.msk.bf16.gmra.mxu0 %vm215_vm0, %v2030_v32 }
 0x11b   : >> { %v320_v37 = vpop.f32.mrf.mxu2  ;;  %v364_v38 = vpop.f32.mrf.mxu3 }
 0x11c   : >> { %v327_v39 = vadd.f32 %v320_v37, %v2285_v56  ;;  %v373_v40 = vadd.f32 %v364_v38, %v326_v29 }
 0x11d   : >> { %v416_v42 = vpop.f32.mrf.mxu0 }
 0x11e   : >> { %v420_v43 = vadd.f32 %v411_v24, %v373_v40  ;;  %v663_v24 = vpop.f32.mrf.mxu1 }
 0x120   : >> { %v478_v45 = vadd.f32 %v469_v25, %v420_v43  ;;  %1883 = vmatmul.msk.bf16.gmra.mxu3 %vm215_vm0, %v2025_v41 }
 0x123   : >> { %v322_v47 = vpop.f32.mrf.mxu2  ;;  %v367_v48 = vpop.f32.mrf.mxu3 }
 0x124   : >> { %v328_v49 = vadd.f32 %v322_v47, %v280_v46  ;;  %v374_v50 = vadd.f32 %v367_v48, %v327_v39 }
 0x125   : >> { %v611_v55 = vpop.f32.mrf.mxu0 }
 0x126   : >> { %v421_v44 = vadd.f32 %v414_v33, %v374_v50 }
 0x128   : >> { %v479_v56 = vadd.f32 %v472_v36, %v421_v44  ;;  %1938 = vmatmul.msk.bf16.vlgmr.msrb.gmra.mxu2 %vm215_vm0, %v2033_v51  ;;  %1966 = vmatmul.msk.bf16.vlgmr.msra.gmra.mxu0 %vm215_vm0, %v2037_v53  ;;  %v665_v36 = vpop.f32.mrf.mxu1 }
 0x12b   : >> { %v369_v57 = vpop.f32.mrf.mxu3  ;;  %v517_v58 = vpop.f32.mrf.mxu2 }
 0x12c   : >> { %v375_v59 = vadd.f32 %v369_v57, %v328_v49  ;;  %v527_v60 = vadd.f32 %v517_v58, %v477_v35 }
 0x12d   : >> { %v613_v62 = vpop.f32.mrf.mxu0 }
 0x12e   : >> { %v422_v63 = vadd.f32 %v416_v42, %v375_v59 }
 0x130   : >> { %v480_v5 = vadd.f32 %v474_v52, %v422_v63  ;;  %1952 = vmatmul.msk.bf16.vlgmr.msrb.gmra.mxu3 %vm215_vm0, %v2035_v61  ;;  %v860_v47 = vpop.f32.mrf.mxu1 }
 0x133   : >> { %v519_v6 = vpop.f32.mrf.mxu2  ;;  %v564_v7 = vpop.f32.mrf.mxu3 }
 0x134   : >> { %v528_v8 = vadd.f32 %v519_v6, %v478_v45  ;;  %v574_v9 = vadd.f32 %v564_v7, %v527_v60 }
 0x135   : >> { %v616_v12 = vpop.f32.mrf.mxu0 }
 0x136   : >> { %v621_v13 = vadd.f32 %v611_v55, %v574_v9 }
 0x138   : >> { %v668_v14 = vadd.f32 %v658_v4, %v621_v13  ;;  %1939 = vmatmul.msk.bf16.gmra.mxu2 %vm215_vm0, %v2034_v10  ;;  %1967 = vmatmul.msk.bf16.gmra.mxu0 %vm215_vm0, %v2038_v11  ;;  %v862_v54 = vpop.f32.mrf.mxu1 }
 0x13b   : >> { %v522_v16 = vpop.f32.mrf.mxu2  ;;  %v566_v17 = vpop.f32.mrf.mxu3 }
 0x13c   : >> { %v529_v18 = vadd.f32 %v522_v16, %v479_v56  ;;  %v575_v19 = vadd.f32 %v566_v17, %v528_v8 }
 0x13d   : >> { %v618_v21 = vpop.f32.mrf.mxu0 }
 0x13e   : >> { %v622_v22 = vadd.f32 %v613_v62, %v575_v19 }
 0x140   : >> { %v669_v23 = vadd.f32 %v660_v15, %v622_v22  ;;  %1953 = vmatmul.msk.bf16.gmra.mxu3 %vm215_vm0, %v2036_v20  ;;  %v865_v60 = vpop.f32.mrf.mxu1 }
 0x143   : >> { %v524_v25 = vpop.f32.mrf.mxu2  ;;  %v569_v26 = vpop.f32.mrf.mxu3 }
 0x144   : >> { %v530_v27 = vadd.f32 %v524_v25, %v480_v5  ;;  %v576_v28 = vadd.f32 %v569_v26, %v529_v18 }
 0x145   : >> { %v813_v29 = vpop.f32.mrf.mxu0 }
 0x146   : >> { %v623_v30 = vadd.f32 %v616_v12, %v576_v28 }
 0x148   : >> { %v670_v31 = vadd.f32 %v663_v24, %v623_v30  ;;  %v867_v8 = vpop.f32.mrf.mxu1 }
 0x14b   : >> { %v571_v32 = vpop.f32.mrf.mxu3  ;;  %v716_v33 = vpop.f32.mrf.mxu2 }
 0x14c   : >> { %v577_v34 = vadd.f32 %v571_v32, %v530_v27  ;;  %v726_v35 = vadd.f32 %v716_v33, %v668_v14 }
 0x14d   : >> { %v815_v37 = vpop.f32.mrf.mxu0 }
 0x14e   : >> { %v624_v38 = vadd.f32 %v618_v21, %v577_v34 }
 0x150   : >> { %v671_v39 = vadd.f32 %v665_v36, %v624_v38  ;;  %v1062_v13 = vpop.f32.mrf.mxu1 }
 0x153   : >> { %v718_v40 = vpop.f32.mrf.mxu2  ;;  %v766_v41 = vpop.f32.mrf.mxu3 }
 0x154   : >> { %v727_v42 = vadd.f32 %v718_v40, %v669_v23  ;;  %v776_v43 = vadd.f32 %v766_v41, %v726_v35 }
 0x155   : >> { %v818_v45 = vpop.f32.mrf.mxu0 }
 0x156   : >> { %v823_v46 = vadd.f32 %v813_v29, %v776_v43 }
 0x158   : >> { %v1064_v17 = vpop.f32.mrf.mxu1  ;;  %v870_v24 = vadd.f32 %v860_v47, %v823_v46 }
 0x15b   : >> { %v721_v48 = vpop.f32.mrf.mxu2  ;;  %v768_v49 = vpop.f32.mrf.mxu3 }
 0x15c   : >> { %v728_v50 = vadd.f32 %v721_v48, %v670_v31  ;;  %v777_v51 = vadd.f32 %v768_v49, %v727_v42 }
 0x15d   : >> { %v820_v52 = vpop.f32.mrf.mxu0 }
 0x15e   : >> { %v824_v53 = vadd.f32 %v815_v37, %v777_v51 }
 0x160   : >> { %v1067_v21 = vpop.f32.mrf.mxu1  ;;  %v871_v31 = vadd.f32 %v862_v54, %v824_v53 }
 0x163   : >> { %v723_v55 = vpop.f32.mrf.mxu2  ;;  %v771_v44 = vpop.f32.mrf.mxu3 }
 0x164   : >> { %v729_v56 = vadd.f32 %v723_v55, %v671_v39  ;;  %v778_v57 = vadd.f32 %v771_v44, %v728_v50 }
 0x165   : >> { %v1015_v58 = vpop.f32.mrf.mxu0 }
 0x166   : >> { %v825_v59 = vadd.f32 %v818_v45, %v778_v57 }
 0x168   : >> { %v1069_v30 = vpop.f32.mrf.mxu1  ;;  %v872_v41 = vadd.f32 %v865_v60, %v825_v59 }
 0x16b   : >> { %v773_v61 = vpop.f32.mrf.mxu3  ;;  %v907_v62 = vpop.f32.mrf.mxu2 }
 0x16c   : >> { %v779_v63 = vadd.f32 %v773_v61, %v729_v56  ;;  %v917_v25 = vadd.f32 %v907_v62, %v870_v24 }
 0x16d   : >> { %v1017_v4 = vpop.f32.mrf.mxu0 }
 0x16e   : >> { %v826_v5 = vadd.f32 %v820_v52, %v779_v63 }
 0x170   : >> { %v1264_v40 = vpop.f32.mrf.mxu1  ;;  %v873_v52 = vadd.f32 %v867_v8, %v826_v5 }
 0x173   : >> { %v909_v6 = vpop.f32.mrf.mxu2  ;;  %v965_v7 = vpop.f32.mrf.mxu3 }
 0x174   : >> { %v975_v29 = vadd.f32 %v965_v7, %v917_v25  ;;  %v918_v33 = vadd.f32 %v909_v6, %v871_v31  ;;  %v1422_v6 = vpop.permute.xlu0 %1421 }
 0x175   : >> { %v1020_v9 = vpop.f32.mrf.mxu0 }
 0x176   : >> { %v1025_v32 = vadd.f32 %v1015_v58, %v975_v29 }
 0x178   : >> { %v1072_v36 = vadd.f32 %v1062_v13, %v1025_v32  ;;  %v1266_v57 = vpop.f32.mrf.mxu1 }
 0x17b   : >> { %v912_v10 = vpop.f32.mrf.mxu2  ;;  %v967_v11 = vpop.f32.mrf.mxu3 }
 0x17c   : >> { %v976_v37 = vadd.f32 %v967_v11, %v918_v33  ;;  %v919_v45 = vadd.f32 %v912_v10, %v872_v41 }
 0x17d   : >> { %v1022_v12 = vpop.f32.mrf.mxu0 }
 0x17e   : >> { %v1026_v42 = vadd.f32 %v1017_v4, %v976_v37 }
 0x180   : >> { %v1073_v48 = vadd.f32 %v1064_v17, %v1026_v42  ;;  %v1269_v17 = vpop.f32.mrf.mxu1 }
 0x183   : >> { %v914_v14 = vpop.f32.mrf.mxu2  ;;  %v970_v15 = vpop.f32.mrf.mxu3 }
 0x184   : >> { %v977_v49 = vadd.f32 %v970_v15, %v919_v45  ;;  %v920_v56 = vadd.f32 %v914_v14, %v873_v52 }
 0x185   : >> { %v1214_v16 = vpop.f32.mrf.mxu0 }
 0x186   : >> { %v1027_v54 = vadd.f32 %v1020_v9, %v977_v49 }
 0x188   : >> { %v1074_v62 = vadd.f32 %v1067_v21, %v1027_v54  ;;  %v1271_v37 = vpop.f32.mrf.mxu1 }
 0x18b   : >> { %v972_v18 = vpop.f32.mrf.mxu3  ;;  %v1109_v19 = vpop.f32.mrf.mxu2 }
 0x18c   : >> { %v1119_v39 = vadd.f32 %v1109_v19, %v1072_v36  ;;  %v978_v61 = vadd.f32 %v972_v18, %v920_v56 }
 0x18d   : >> { %v1216_v20 = vpop.f32.mrf.mxu0 }
 0x18e   : >> { %v1028_v11 = vadd.f32 %v1022_v12, %v978_v61 }
 0x193   : >> { %v1111_v22 = vpop.f32.mrf.mxu2  ;;  %v1156_v23 = vpop.f32.mrf.mxu3 }
 0x194   : >> { %v1166_v43 = vadd.f32 %v1156_v23, %v1119_v39  ;;  %v1120_v51 = vadd.f32 %v1111_v22, %v1073_v48  ;;  %v1427_v23 = vpop.permute.xlu1 %1426 }
 0x195   : >> { %v1219_v26 = vpop.f32.mrf.mxu0 }
 0x196   : >> { %v1224_v50 = vadd.f32 %v1214_v16, %v1166_v43  ;;  %v1075_v16 = vadd.f32 %v1069_v30, %v1028_v11 }
 0x198   : >> { %v1274_v55 = vadd.f32 %v1264_v40, %v1224_v50  ;;  %v1432_v40 = vpop.permute.xlu2 %1431 }
 0x19b   : >> { %v1114_v27 = vpop.f32.mrf.mxu2  ;;  %v1158_v28 = vpop.f32.mrf.mxu3 }
 0x19c   : >> { %v1167_v44 = vadd.f32 %v1158_v28, %v1120_v51  ;;  %v1121_v7 = vadd.f32 %v1114_v27, %v1074_v62  ;;  %v1437_v52 = vpop.permute.xlu1 %1436 }
 0x19d   : >> { %v1221_v38 = vpop.f32.mrf.mxu0 }
 0x19e   : >> { %v1225_v63 = vadd.f32 %v1216_v20, %v1167_v44 }
 0x1a0   : >> { %v1275_v5 = vadd.f32 %v1266_v57, %v1225_v63 }
 0x1a3   : >> { %v1116_v34 = vpop.f32.mrf.mxu2  ;;  %v1161_v35 = vpop.f32.mrf.mxu3 }
 0x1a4   : >> { %v1168_v8 = vadd.f32 %v1161_v35, %v1121_v7  ;;  %v1122_v24 = vadd.f32 %v1116_v34, %v1075_v16 }
 0x1a5   : >> { %v1405_v53 = vpop.f32.mrf.mxu0 }
 0x1a6   : >> { %v1226_v19 = vadd.f32 %v1219_v26, %v1168_v8 }
 0x1a8   : >> { %v1276_v27 = vadd.f32 %v1269_v17, %v1226_v19 }
 0x1ab   : >> { %v1163_v46 = vpop.f32.mrf.mxu3  ;;  %v1311_v47 = vpop.f32.mrf.mxu2 }
 0x1ac   : >> { %v1321_v58 = vadd.f32 %v1311_v47, %v1274_v55  ;;  %v1169_v28 = vadd.f32 %v1163_v46, %v1122_v24 }
 0x1ad   : >> { %v1407_v13 = vpop.f32.mrf.mxu0 }
 0x1ae   : >> { %v1227_v33 = vadd.f32 %v1221_v38, %v1169_v28 }
 0x1b0   : >> { %v1277_v42 = vadd.f32 %v1271_v37, %v1227_v33 }
 0x1b3   : >> { %v1313_v59 = vpop.f32.mrf.mxu2  ;;  %v1358_v60 = vpop.f32.mrf.mxu3 }
 0x1b4   : >> { %v1368_v4 = vadd.f32 %v1358_v60, %v1321_v58  ;;  %v1322_v14 = vadd.f32 %v1313_v59, %v1275_v5 }
 0x1b5   : >> { %v1410_v31 = vpop.f32.mrf.mxu0 }
 0x1b6   : >> { %v1415_v10 = vadd.f32 %v1405_v53, %v1368_v4 }
 0x1b8   : >> { %v1439_v9 = vadd.f32 %v1422_v6, %v1415_v10 }
 0x1ba   : >> { %vm1443_vm1 = vcmp.ge.f32.partialorder %v1439_v9, 0.0  ;;  %v1447_v15 = vmul.f32 0.2, %v1439_v9 }
 0x1bb   : >> { %v1360_v18 = vpop.f32.mrf.mxu3  ;;  %v1316_v12 = vpop.f32.mrf.mxu2 }
 0x1bc   : >> { %v1451_v20 = vsel %vm1443_vm1, %v1439_v9, %v1447_v15  ;;  %v1369_v21 = vadd.f32 %v1360_v18, %v1322_v14  ;;  %v1323_v30 = vadd.f32 %v1316_v12, %v1276_v27 }
 0x1bd   : >> { %v1455_v22 = vpack.c.bf16 %v1451_v20, %v1451_v20  ;;  %v1412_v38 = vpop.f32.mrf.mxu0 }
 0x1be   : >> { %v1416_v25 = vadd.f32 %v1407_v13, %v1369_v21 }
 0x1bf   : >> { %1463 = vst.msk [vmem:[%s2396_s18] sm:$0xf] %vm1462_vm2, %v1455_v22 }
 0x1c0   : >> { %v1440_v29 = vadd.f32 %v1427_v23, %v1416_v25 }
 0x1c2   : >> { %vm1444_vm3 = vcmp.ge.f32.partialorder %v1440_v29, 0.0  ;;  %v1448_v26 = vmul.f32 0.2, %v1440_v29 }
 0x1c3   : >> { %v1363_v32 = vpop.f32.mrf.mxu3  ;;  %v1318_v41 = vpop.f32.mrf.mxu2 }
 0x1c4   : >> { %v1452_v35 = vsel %vm1444_vm3, %v1440_v29, %v1448_v26  ;;  %v1370_v36 = vadd.f32 %v1363_v32, %v1323_v30  ;;  %v1324_v45 = vadd.f32 %v1318_v41, %v1277_v42 }
 0x1c5   : >> { %v1456_v39 = vpack.c.bf16 %v1452_v35, %v1452_v35 }
 0x1c6   : >> { %v1417_v34 = vadd.f32 %v1410_v31, %v1370_v36 }
 0x1c7   : >> { %1464 = vst.msk [vmem:[%s2396_s18 + $0x4] sm:$0xf] %vm1462_vm2, %v1456_v39 }
 0x1c8   : >> { %v1441_v43 = vadd.f32 %v1432_v40, %v1417_v34 }
 0x1ca   : >> { %vm1445_vm4 = vcmp.ge.f32.partialorder %v1441_v43, 0.0  ;;  %v1449_v46 = vmul.f32 0.2, %v1441_v43 }
 0x1cb   : >> { %v1365_v47 = vpop.f32.mrf.mxu3 }
 0x1cc   : >> { %v1453_v48 = vsel %vm1445_vm4, %v1441_v43, %v1449_v46  ;;  %v1371_v49 = vadd.f32 %v1365_v47, %v1324_v45 }
 0x1cd   : >> { %v1457_v50 = vpack.c.bf16 %v1453_v48, %v1453_v48 }
 0x1ce   : >> { %v1418_v51 = vadd.f32 %v1412_v38, %v1371_v49 }
 0x1cf   : >> { %1465 = vst.msk [vmem:[%s2396_s18 + $0x8] sm:$0xf] %vm1462_vm2, %v1457_v50 }
 0x1d0   : >> { %v1442_v53 = vadd.f32 %v1437_v52, %v1418_v51 }
 0x1d2   : >> { %vm1446_vm5 = vcmp.ge.f32.partialorder %v1442_v53, 0.0  ;;  %v1450_v54 = vmul.f32 0.2, %v1442_v53 }
 0x1d3   : > { %180 = sbr.rel (!%p178_p4) target bundleno = 15 (0xf), region = 99 }
 0x1d4   : >> { %v1454_v55 = vsel %vm1446_vm5, %v1442_v53, %v1450_v54 }
 0x1d5   : >> { %v1458_v44 = vpack.c.bf16 %v1454_v55, %v1454_v55 }
 0x1d7   : >> { %1466 = vst.msk [vmem:[%s2396_s18 + $0xc] sm:$0xf] %vm1462_vm2, %v1458_v44 }
 0x1d8 PF: > { %s13_s12 = sadd.s32 1, %s2074_s12  }
 0x1d9   : > { %p10_p5 = scmp.ge.s32.totalorder %s13_s12, 4  }
 0x1db   :  { %12 = sbr.rel (!%p10_p5) target bundleno = 1 (0x1), region = 110 }

// kernel: discriminator_forward.11
= control target key start
LH: loop header
LB: loop body
LE: loop exit
PB: predicated region body
PF: predicated region fallthrough
CT: control target
= control target key end

     0   :  { %vm79_vm0 = vcmask 1041408   ;;  %vm81_vm1 = vcmask 1045508   ;;  %vm83_vm2 = vcmask 1043456   ;;  %vm225_vm3 = vcmask 517120   ;;  %s335_s1 = inlined_call_operand.vmem [shape: f32[1,3136], index: 1, kind: input, shape index: {}]   ;;  %s336_s2 = inlined_call_operand.<no memory space> [shape: f32[1,1], index: 2, kind: input, shape index: {}]   ;;  %s337_s0 = inlined_call_operand.vmem [shape: bf16[2,3136], index: 0, kind: input, shape index: {}]   ;;  %s338_s3 = inlined_call_operand.vmem [shape: f32[2,1], index: 3, kind: output, shape index: {}]  }
   0x1   :  { %v8_v0 = vstv %s336_s2  ;;  %v27_v1 = vld [vmem:[%s335_s1] sm:$0xff]  ;;  %v28_v9 = vld [vmem:[%s335_s1 + $0x8] sm:$0xff]  ;;  %v29_v34 = vld [vmem:[%s335_s1 + $0x10] sm:$0xff]  ;;  %vm235_vm4 = vcmask 1024  }
   0x2   :  { %9 = vst [vmem:[#allocation2] sm:$0x1] %v8_v0  ;;  %v36_v2 = vperm.slane %v27_v1, 1  ;;  %v37_v3 = vperm.slane %v27_v1, 2  ;;  %v38_v4 = vperm.slane %v27_v1, 3  ;;  %v40_v5 = vperm.slane %v27_v1, 5 }
   0x3   :  { %v41_v6 = vperm.slane %v27_v1, 6  ;;  %v42_v7 = vperm.slane %v27_v1, 7  ;;  %v16_v8 = vld [vmem:[%s337_s0] sm:$0xff]  ;;  %v35_v10 = vperm.slane %v27_v1, 0  ;;  %v39_v11 = vperm.slane %v27_v1, 4  ;;  %v17_v43 = vld [vmem:[%s337_s0 + $0x8] sm:$0xff] }
   0x4   :  { %v61_v12 = vrot.slane %v36_v2, 6  ;;  %v62_v13 = vrot.slane %v37_v3, 4  ;;  %v63_v14 = vrot.slane %v38_v4, 2  ;;  %v64_v15 = vrot.slane %v40_v5, 6 }
   0x5   :  { %v65_v16 = vrot.slane %v41_v6, 4  ;;  %v66_v17 = vrot.slane %v42_v7, 2  ;;  %v20_v18 = vunpack.c.l.bf16 %v16_v8  ;;  %v21_v19 = vunpack.c.h.bf16 %v16_v8 }
   0x6   :  { %v44_v20 = vperm.slane %v28_v9, 1  ;;  %v45_v21 = vperm.slane %v28_v9, 2  ;;  %v46_v22 = vperm.slane %v28_v9, 3  ;;  %v48_v23 = vperm.slane %v28_v9, 5 }
   0x7   :  { %v49_v24 = vperm.slane %v28_v9, 6  ;;  %v50_v25 = vperm.slane %v28_v9, 7  ;;  %v80_v26 = vsel %vm79_vm0, %v35_v10, %v61_v12  ;;  %v82_v27 = vsel %vm81_vm1, %v62_v13, %v63_v14  ;;  %v18_v12 = vld [vmem:[%s337_s0 + $0x10] sm:$0xff] }
   0x8   :  { %v85_v28 = vsel %vm79_vm0, %v39_v11, %v64_v15  ;;  %v84_v29 = vsel %vm83_vm2, %v80_v26, %v82_v27  ;;  %v86_v30 = vsel %vm81_vm1, %v65_v16, %v66_v17  ;;  %v43_v31 = vperm.slane %v28_v9, 0 }
   0x9   :  { %v47_v32 = vperm.slane %v28_v9, 4  ;;  %v87_v33 = vsel %vm83_vm2, %v85_v28, %v86_v30  ;;  %v67_v35 = vrot.slane %v44_v20, 6  ;;  %v68_v36 = vrot.slane %v45_v21, 4 }
   0xa   :  { %v69_v37 = vrot.slane %v46_v22, 2  ;;  %v70_v38 = vrot.slane %v48_v23, 6  ;;  %v71_v39 = vrot.slane %v49_v24, 4  ;;  %v72_v40 = vrot.slane %v50_v25, 2 }
   0xb   :  { %v106_v41 = vmul.f32 %v84_v29, %v20_v18  ;;  %v107_v42 = vmul.f32 %v87_v33, %v21_v19  ;;  %v52_v44 = vperm.slane %v29_v34, 1  ;;  %v53_v45 = vperm.slane %v29_v34, 2 }
   0xc   :  { %v54_v46 = vperm.slane %v29_v34, 3  ;;  %v56_v47 = vperm.slane %v29_v34, 5  ;;  %v88_v48 = vsel %vm79_vm0, %v43_v31, %v67_v35  ;;  %v89_v49 = vsel %vm81_vm1, %v68_v36, %v69_v37 }
   0xd   :  { %120 = vst [vmem:[#allocation1] ss:$4 sm:$0xff] %v106_v41  ;;  %v57_v50 = vperm.slane %v29_v34, 6  ;;  %v58_v51 = vperm.slane %v29_v34, 7  ;;  %v91_v52 = vsel %vm79_vm0, %v47_v32, %v70_v38  ;;  %v92_v53 = vsel %vm81_vm1, %v71_v39, %v72_v40  ;;  %v19_v38 = vld [vmem:[%s337_s0 + $0x18] sm:$0x1] }
   0xe   :  { %122 = vst [vmem:[#allocation1 + $0x20] ss:$4 sm:$0xff] %v107_v42  ;;  %v22_v54 = vunpack.c.l.bf16 %v17_v43  ;;  %v23_v55 = vunpack.c.h.bf16 %v17_v43  ;;  %v51_v56 = vperm.slane %v29_v34, 0  ;;  %v90_v57 = vsel %vm83_vm2, %v88_v48, %v89_v49  ;;  %v241_v49 = vld [vmem:[%s335_s1 + $0x18] ss:$0 sm:$0xff] }
   0xf   :  { %v55_v58 = vperm.slane %v29_v34, 4  ;;  %v73_v59 = vrot.slane %v52_v44, 6  ;;  %v74_v60 = vrot.slane %v53_v45, 4  ;;  %v93_v61 = vsel %vm83_vm2, %v91_v52, %v92_v53 }
  0x10   :  { %v75_v62 = vrot.slane %v54_v46, 2  ;;  %v76_v63 = vrot.slane %v56_v47, 6  ;;  %v77_v0 = vrot.slane %v57_v50, 4  ;;  %v78_v1 = vrot.slane %v58_v51, 2 }
  0x11   :  { %v108_v2 = vmul.f32 %v90_v57, %v22_v54  ;;  %v109_v5 = vmul.f32 %v93_v61, %v23_v55  ;;  %v94_v16 = vsel %vm79_vm0, %v51_v56, %v73_v59  ;;  %v24_v22 = vunpack.c.l.bf16 %v18_v12 }
  0x12   :  { %v95_v17 = vsel %vm81_vm1, %v74_v60, %v75_v62  ;;  %v97_v19 = vsel %vm79_vm0, %v55_v58, %v76_v63  ;;  %v98_v20 = vsel %vm81_vm1, %v77_v0, %v78_v1  ;;  %v25_v24 = vunpack.c.h.bf16 %v18_v12 }
  0x13   :  { %v96_v25 = vsel %vm83_vm2, %v94_v16, %v95_v17  ;;  %v99_v27 = vsel %vm83_vm2, %v97_v19, %v98_v20  ;;  %v26_v48 = vunpack.c.l.bf16 %v19_v38 }
  0x14   :  { %v123_v3 = vld.sshfl [vmem:[#allocation1] sm:$0xff pattern:$0x73625140]  ;;  %v124_v4 = vld.sshfl [vmem:[#allocation1 + $0x8] sm:$0xff pattern:$0x73625140]  ;;  %v110_v30 = vmul.f32 %v96_v25, %v24_v22  ;;  %v111_v35 = vmul.f32 %v99_v27, %v25_v24 }
  0x15   :  { %v125_v6 = vld.sshfl [vmem:[#allocation1 + $0x10] sm:$0xff pattern:$0x73625140]  ;;  %v126_v7 = vld.sshfl [vmem:[#allocation1 + $0x18] sm:$0xff pattern:$0x73625140]  ;;  %v112_v54 = vmul.f32 %v241_v49, %v26_v48 }
  0x16   :  { %v127_v8 = vld.sshfl [vmem:[#allocation1 + $0x20] sm:$0xff pattern:$0x73625140]  ;;  %v128_v9 = vld.sshfl [vmem:[#allocation1 + $0x28] sm:$0xff pattern:$0x73625140] }
  0x17   :  { %v129_v10 = vld.sshfl [vmem:[#allocation1 + $0x30] sm:$0xff pattern:$0x73625140]  ;;  %v130_v11 = vld.sshfl [vmem:[#allocation1 + $0x38] sm:$0xff pattern:$0x73625140] }
  0x18   :  { %131 = vst [vmem:[#allocation1] ss:$4 sm:$0xff] %v108_v2  ;;  %v178_v13 = vsel %vm79_vm0, %v123_v3, 0.0  ;;  %v179_v14 = vsel %vm79_vm0, %v124_v4, 0.0  ;;  %v181_v15 = vsel %vm79_vm0, %v125_v6, 0.0  ;;  %v183_v21 = vsel %vm79_vm0, %v126_v7, 0.0 }
  0x19   :  { %132 = vst [vmem:[#allocation1 + $0x20] ss:$4 sm:$0xff] %v109_v5  ;;  %v180_v18 = vadd.f32 %v179_v14, %v178_v13  ;;  %v185_v26 = vsel %vm79_vm0, %v127_v8, 0.0  ;;  %v187_v29 = vsel %vm79_vm0, %v128_v9, 0.0  ;;  %v189_v33 = vsel %vm79_vm0, %v129_v10, 0.0 }
  0x1a   :  { %v191_v34 = vsel %vm79_vm0, %v130_v11, 0.0 }
  0x1b   :  { %v182_v23 = vadd.f32 %v181_v15, %v180_v18 }
  0x1d   :  { %v184_v28 = vadd.f32 %v183_v21, %v182_v23 }
  0x1f   :  { %v133_v31 = vld.sshfl [vmem:[#allocation1] sm:$0xff pattern:$0x73625140]  ;;  %v186_v32 = vadd.f32 %v185_v26, %v184_v28  ;;  %v134_v36 = vld.sshfl [vmem:[#allocation1 + $0x8] sm:$0xff pattern:$0x73625140] }
  0x20   :  { %v135_v37 = vld.sshfl [vmem:[#allocation1 + $0x10] sm:$0xff pattern:$0x73625140]  ;;  %v136_v39 = vld.sshfl [vmem:[#allocation1 + $0x18] sm:$0xff pattern:$0x73625140] }
  0x21   :  { %v137_v40 = vld.sshfl [vmem:[#allocation1 + $0x20] sm:$0xff pattern:$0x73625140]  ;;  %v188_v41 = vadd.f32 %v187_v29, %v186_v32  ;;  %v138_v42 = vld.sshfl [vmem:[#allocation1 + $0x28] sm:$0xff pattern:$0x73625140] }
  0x22   :  { %v139_v43 = vld.sshfl [vmem:[#allocation1 + $0x30] sm:$0xff pattern:$0x73625140]  ;;  %v140_v44 = vld.sshfl [vmem:[#allocation1 + $0x38] sm:$0xff pattern:$0x73625140] }
  0x23   :  { %141 = vst [vmem:[#allocation1] ss:$4 sm:$0xff] %v110_v30  ;;  %v190_v45 = vadd.f32 %v189_v33, %v188_v41  ;;  %v193_v46 = vsel %vm79_vm0, %v133_v31, 0.0  ;;  %v195_v50 = vsel %vm79_vm0, %v134_v36, 0.0  ;;  %v197_v52 = vsel %vm79_vm0, %v135_v37, 0.0 }
  0x24   :  { %142 = vst [vmem:[#allocation1 + $0x20] ss:$4 sm:$0xff] %v111_v35  ;;  %v199_v55 = vsel %vm79_vm0, %v136_v39, 0.0  ;;  %v201_v57 = vsel %vm79_vm0, %v137_v40, 0.0  ;;  %v203_v63 = vsel %vm79_vm0, %v138_v42, 0.0  ;;  %v205_v1 = vsel %vm79_vm0, %v139_v43, 0.0 }
  0x25   :  { %v192_v47 = vadd.f32 %v191_v34, %v190_v45  ;;  %v207_v3 = vsel %vm79_vm0, %v140_v44, 0.0  ;;  %v242_v29 = vld [vmem:[#allocation2] ss:$0 sm:$0xff] }
  0x27   :  { %v194_v51 = vadd.f32 %v193_v46, %v192_v47 }
  0x29   :  { %v196_v53 = vadd.f32 %v195_v50, %v194_v51 }
  0x2a   :  { %v143_v58 = vld.sshfl [vmem:[#allocation1] sm:$0xff pattern:$0x73625140]  ;;  %v144_v59 = vld.sshfl [vmem:[#allocation1 + $0x8] sm:$0xff pattern:$0x73625140] }
  0x2b   :  { %v198_v56 = vadd.f32 %v197_v52, %v196_v53  ;;  %v145_v60 = vld.sshfl [vmem:[#allocation1 + $0x10] sm:$0xff pattern:$0x73625140]  ;;  %v146_v61 = vld.sshfl [vmem:[#allocation1 + $0x18] sm:$0xff pattern:$0x73625140] }
  0x2c   :  { %151 = vst [vmem:[#allocation1] ss:$4 sm:$0xff] %v112_v54  ;;  %v209_v5 = vsel %vm79_vm0, %v143_v58, 0.0  ;;  %v211_v7 = vsel %vm79_vm0, %v144_v59, 0.0  ;;  %v213_v9 = vsel %vm79_vm0, %v145_v60, 0.0  ;;  %v215_v12 = vsel %vm79_vm0, %v146_v61, 0.0 }
  0x2d   :  { %v200_v62 = vadd.f32 %v199_v55, %v198_v56  ;;  %v147_v10 = vld.sshfl [vmem:[#allocation1 + $0x20] sm:$0xff pattern:$0x73625140]  ;;  %v148_v13 = vld.sshfl [vmem:[#allocation1 + $0x28] sm:$0xff pattern:$0x73625140] }
  0x2e   :  { %v217_v15 = vsel %vm79_vm0, %v147_v10, 0.0  ;;  %v149_v16 = vld.sshfl [vmem:[#allocation1 + $0x30] sm:$0xff pattern:$0x73625140]  ;;  %v219_v18 = vsel %vm79_vm0, %v148_v13, 0.0 }
  0x2f   :  { %v202_v0 = vadd.f32 %v201_v57, %v200_v62  ;;  %v150_v19 = vld.sshfl [vmem:[#allocation1 + $0x38] sm:$0xff pattern:$0x73625140]  ;;  %v221_v21 = vsel %vm79_vm0, %v149_v16, 0.0 }
  0x30   :  { %v223_v24 = vsel %vm79_vm0, %v150_v19, 0.0 }
  0x31   :  { %v204_v2 = vadd.f32 %v203_v63, %v202_v0 }
  0x33   :  { %v206_v4 = vadd.f32 %v205_v1, %v204_v2  ;;  %v152_v22 = vld.sshfl [vmem:[#allocation1] sm:$0xff pattern:$0x73625140] }
  0x34   :  { %v226_v26 = vsel %vm225_vm3, %v152_v22, 0.0 }
  0x35   :  { %v208_v6 = vadd.f32 %v207_v3, %v206_v4 }
  0x37   :  { %v210_v8 = vadd.f32 %v209_v5, %v208_v6 }
  0x39   :  { %v212_v11 = vadd.f32 %v211_v7, %v210_v8 }
  0x3b   :  { %v214_v14 = vadd.f32 %v213_v9, %v212_v11 }
  0x3d   :  { %v216_v17 = vadd.f32 %v215_v12, %v214_v14 }
  0x3f   :  { %v218_v20 = vadd.f32 %v217_v15, %v216_v17 }
  0x41   :  { %v220_v23 = vadd.f32 %v219_v18, %v218_v20 }
  0x43   :  { %v222_v25 = vadd.f32 %v221_v21, %v220_v23 }
  0x45   :  { %v224_v27 = vadd.f32 %v223_v24, %v222_v25 }
  0x47   :  { %v227_v28 = vadd.f32 %v226_v26, %v224_v27 }
  0x49   :  { %228 = vadd.xlane.f32.xlu0 %v227_v28 }
  0xbc   :  { %v229_v30 = vpop.xlane.xlu0 %228 }
  0xbd   :  { %v234_v31 = vadd.f32 %v242_v29, %v229_v30 }
  0xbf   :  { %236 = vst.msk [vmem:[%s338_s3] sm:$0x3] %vm235_vm4, %v234_v31 }

// kernel: discriminator_forward.10
= control target key start
LH: loop header
LB: loop body
LE: loop exit
PB: predicated region body
PF: predicated region fallthrough
CT: control target
= control target key end

     0   :  { %s3584_s12 = smov 0   ;;  %s4340_s0 = inlined_call_operand.vmem [shape: bf16[2,18,2,32,9], index: 0, kind: input, shape index: {}]   ;;  %s4341_s1 = inlined_call_operand.vmem [shape: bf16[25,64,32], index: 1, kind: input, shape index: {}]   ;;  %s4342_s2 = inlined_call_operand.vmem [shape: f32[64,1], index: 2, kind: input, shape index: {}]   ;;  %s4343_s3 = inlined_call_operand.vmem [shape: bf16[2,7,64,7], index: 3, kind: output, shape index: {}]  }
   0x1 LB: > { %s2562_s13 = sadd.s32 4294967295, %s3555_s12   ;;  %p2566_p0 = scmp.ge.s32.totalorder %s3555_s12, 1  ;;  %s3555_s12 = sphi %s3584_s12, %s13_s12  }
   0x2   : > { %p137_p1 = scmp.lt.s32.totalorder %s3555_s12, 3 }
   0x4   : > { %p138_p2 = pnand %p2566_p0, %p137_p1 }
   0x5   : > { %p161_p3 = scmp.lt.s32.totalorder (!%p138_p2), %s2562_s13, 1  ;;  %s3642_s11 = smov (!%p138_p2), 0  }
   0x6   : > { %141 = sbr.rel (%p138_p2) target bundleno = 669 (0x29d), region = 32 }
   0xb   : > { %v3595_v0 = vld [vmem:[%s4342_s2] sm:$0xff]  ;;  %v3600_v1 = vld [vmem:[%s4342_s2 + $0x8] sm:$0xff]  ;;  %v3605_v2 = vld [vmem:[%s4342_s2 + $0x10] sm:$0xff]  ;;  %s4349_s13 = smov (!%p161_p3, %s2562_s13), 1 }
   0xc   : > { %4344 = vst [vmem:[#allocation2_spill] sm:$0xff] %v3595_v0  ;;  %v3610_v3 = vld [vmem:[%s4342_s2 + $0x18] sm:$0xff]  ;;  %v3615_v4 = vld [vmem:[%s4342_s2 + $0x20] sm:$0xff]  ;;  %v3620_v5 = vld [vmem:[%s4342_s2 + $0x28] sm:$0xff]  ;;  %s3521_s30 = smul.u32 576, %s4349_s13 }
   0xd   : > { %4345 = vst [vmem:[#allocation3_spill] sm:$0xff] %v3600_v1  ;;  %v3625_v6 = vld [vmem:[%s4342_s2 + $0x30] sm:$0xff]  ;;  %v3630_v7 = vld [vmem:[%s4342_s2 + $0x38] sm:$0xff]  ;;  %s3522_s4 = smul.u32 224, %s4349_s13 }
   0xe   : > { %s3635_s7 = scalar_lea.vmem %s4340_s0, %s3521_s30 }
   0xf   : > { %s3640_s10 = scalar_lea.vmem %s4343_s3, %s3522_s4 }
  0x10 LB: >> { %s3389_s13 = sshll.u32 %s3559_s11, 6  ;;  %s3561_s15 = smov 127   ;;  %v3399_v12 = vld [vmem:[%s4341_s1 + $0x28] sm:$0xff]  ;;  %vm247_vm0 = vcmask 261120   ;;  %v3394_v17 = vld [vmem:[%s4341_s1] sm:$0xff]  ;;  %v3400_v18 = vld [vmem:[%s4341_s1 + $0x30] sm:$0xff]  ;;  %s3559_s11 = sphi %s3642_s11, %s185_s11  }
  0x11   : >> { %s3649_s14 = scalar_lea.vmem %s3635_s7, %s3389_s13  ;;  %s3562_s16 = smov 126   ;;  %v3401_v19 = vld [vmem:[%s4341_s1 + $0x38] sm:$0xff]  ;;  %v3395_v21 = vld [vmem:[%s4341_s1 + $0x8] sm:$0xff]  ;;  %v3396_v22 = vld [vmem:[%s4341_s1 + $0x10] sm:$0xff]  ;;  %vm2473_vm2 = vcmask 52224  }
  0x12   : >> { %v3391_v8 = vld [vmem:[%s3649_s14 + $0x8] sm:$0xff]  ;;  %v3390_v9 = vld [vmem:[%s3649_s14] sm:$0xff]  ;;  %v3393_v10 = vld [vmem:[%s3649_s14 + $0x18] sm:$0xff]  ;;  %s3514_s25 = sshll.u32 %s3559_s11, 5  ;;  %s185_s11 = sadd.s32 1, %s3559_s11  }
  0x13   : >> { %393 = vrot.lane.b32.xlu0 %v3391_v8, %s3561_s15  ;;  %391 = vrot.lane.b32.xlu1 %v3390_v9, %s3561_s15  ;;  %v3392_v11 = vld [vmem:[%s3649_s14 + $0x10] sm:$0xff]  ;;  %v3416_v13 = vld [vmem:[%s3649_s14 + $0x28] sm:$0xff]  ;;  %v4346_v0 = vld [vmem:[#allocation2_spill] sm:$0xff]  ;;  %s4295_s26 = scalar_lea.vmem %s3640_s10, %s3514_s25  ;;  %p182_p4 = scmp.ge.s32.totalorder %s185_s11, 7  }
  0x14   : >> { %561 = vrot.lane.b32.xlu2 %v3391_v8, %s3562_s16  ;;  %3515 = vmatpush.bf16.msra.mxu1 %v3393_v10  ;;  %v3415_v14 = vld [vmem:[%s3649_s14 + $0x20] sm:$0xff]  ;;  %v3418_v15 = vld [vmem:[%s3649_s14 + $0x38] sm:$0xff]  ;;  %v3417_v16 = vld [vmem:[%s3649_s14 + $0x30] sm:$0xff] }
  0x15   : >> { %3516 = vmatpush.bf16.msra.mxu2 %v3393_v10  ;;  %3517 = vmatpush.bf16.msra.mxu3 %v3393_v10  ;;  %v3441_v20 = vld [vmem:[%s3649_s14 + $0x48] sm:$0xff]  ;;  %v3397_v23 = vld [vmem:[%s4341_s1 + $0x18] sm:$0xff]  ;;  %v3398_v24 = vld [vmem:[%s4341_s1 + $0x20] sm:$0xff] }
  0x16   : >> { %266 = vmatpush.bf16.msra.mxu0 %v3393_v10  ;;  %v3440_v26 = vld [vmem:[%s3649_s14 + $0x40] sm:$0xff]  ;;  %v3443_v30 = vld [vmem:[%s3649_s14 + $0x58] sm:$0xff]  ;;  %v3411_v34 = vld [vmem:[%s4341_s1 + $0x88] sm:$0xff] }
  0x17   : >> { %v3410_v28 = vld [vmem:[%s4341_s1 + $0x80] sm:$0xff]  ;;  %v3420_v37 = vld [vmem:[%s4341_s1 + $0xa8] sm:$0xff]  ;;  %v3412_v41 = vld [vmem:[%s4341_s1 + $0x90] sm:$0xff] }
  0x18   : >> { %3518 = vmatpush.bf16.msra.mxu1 %v3392_v11  ;;  %v3419_v29 = vld [vmem:[%s4341_s1 + $0xa0] sm:$0xff]  ;;  %v3403_v42 = vld [vmem:[%s4341_s1 + $0x48] sm:$0xff]  ;;  %v3421_v44 = vld [vmem:[%s4341_s1 + $0xb0] sm:$0xff] }
  0x19   : >> { %3519 = vmatpush.bf16.msra.mxu2 %v3392_v11  ;;  %3520 = vmatpush.bf16.msra.mxu3 %v3392_v11  ;;  %v3402_v35 = vld [vmem:[%s4341_s1 + $0x40] sm:$0xff]  ;;  %v3442_v45 = vld [vmem:[%s3649_s14 + $0x50] sm:$0xff]  ;;  %v3407_v48 = vld [vmem:[%s4341_s1 + $0x68] sm:$0xff] }
  0x1a   : >> { %267 = vmatpush.bf16.msra.mxu0 %v3392_v11  ;;  %v3406_v39 = vld [vmem:[%s4341_s1 + $0x60] sm:$0xff]  ;;  %v3413_v49 = vld [vmem:[%s4341_s1 + $0x98] sm:$0xff]  ;;  %v3404_v51 = vld [vmem:[%s4341_s1 + $0x50] sm:$0xff] }
  0x1b   : >> { %477 = vrot.lane.b32.xlu0 %v3393_v10, %s3561_s15  ;;  %475 = vrot.lane.b32.xlu1 %v3392_v11, %s3561_s15  ;;  %v3422_v52 = vld [vmem:[%s4341_s1 + $0xb8] sm:$0xff]  ;;  %v3408_v54 = vld [vmem:[%s4341_s1 + $0x70] sm:$0xff]  ;;  %v4347_v1 = vld [vmem:[#allocation3_spill] sm:$0xff] }
  0x1c   : >> { %339 = vmatpush.bf16.msrb.mxu1 %v3391_v8  ;;  %559 = vrot.lane.b32.xlu2 %v3390_v9, %s3562_s16  ;;  %v3431_v56 = vld [vmem:[%s4341_s1 + $0x100] sm:$0xff]  ;;  %v3405_v59 = vld [vmem:[%s4341_s1 + $0x58] sm:$0xff]  ;;  %v3466_v10 = vld [vmem:[%s3649_s14 + $0x68] sm:$0xff] }
  0x1d   : >> { %2605 = vmatmul.msk.bf16.vlgmr.msra.gmra.mxu1 %vm247_vm0, %v3399_v12  ;;  %2606 = vmatmul.msk.bf16.vlgmr.msra.gmra.mxu2 %vm247_vm0, %v3400_v18  ;;  %v3435_v60 = vld [vmem:[%s4341_s1 + $0x120] sm:$0xff]  ;;  %v3409_v63 = vld [vmem:[%s4341_s1 + $0x78] sm:$0xff]  ;;  %v3432_v11 = vld [vmem:[%s4341_s1 + $0x108] sm:$0xff] }
  0x1e   : >> { %2607 = vmatmul.msk.bf16.vlgmr.msra.gmra.mxu3 %vm247_vm0, %v3401_v19  ;;  %2604 = vmatmul.msk.bf16.vlgmr.msra.gmra.mxu0 %vm247_vm0, %v3398_v24  ;;  %v3468_v8 = vld [vmem:[%s3649_s14 + $0x78] sm:$0xff]  ;;  %v3424_v18 = vld [vmem:[%s4341_s1 + $0xc8] sm:$0xff] }
  0x1f   : >> { %v3428_v24 = vld [vmem:[%s4341_s1 + $0xe8] sm:$0xff] }
  0x20   : >> { %340 = vmatpush.bf16.msrb.mxu1 %v3390_v9 }
  0x23   : >> { %837 = vrot.lane.b32.xlu0 %v3416_v13, %s3561_s15  ;;  %835 = vrot.lane.b32.xlu1 %v3415_v14, %s3561_s15 }
  0x24   : >> { %685 = vmatpush.bf16.msra.mxu1 %v3416_v13  ;;  %921 = vrot.lane.b32.xlu2 %v3418_v15, %s3561_s15 }
  0x28   : >> { %686 = vmatpush.bf16.msra.mxu1 %v3415_v14 }
  0x2b   : >> { %919 = vrot.lane.b32.xlu0 %v3417_v16, %s3561_s15  ;;  %1005 = vrot.lane.b32.xlu1 %v3416_v13, %s3562_s16  ;;  %v3423_v13 = vld [vmem:[%s4341_s1 + $0xc0] sm:$0xff] }
  0x2c   : >> { %1003 = vrot.lane.b32.xlu2 %v3415_v14, %s3562_s16  ;;  %v3436_v14 = vld [vmem:[%s4341_s1 + $0x128] sm:$0xff] }
  0x2d   : >> { %2632 = vmatmul.msk.bf16.vlgmr.msrb.gmra.mxu1 %vm247_vm0, %v3394_v17  ;;  %v3433_v17 = vld [vmem:[%s4341_s1 + $0x110] sm:$0xff] }
  0x33   : >> { %1281 = vrot.lane.b32.xlu0 %v3441_v20, %s3561_s15  ;;  %1279 = vrot.lane.b32.xlu1 %v3440_v26, %s3561_s15 }
  0x34   : >> { %1449 = vrot.lane.b32.xlu2 %v3441_v20, %s3562_s16 }
  0x3b   : >> { %1447 = vrot.lane.b32.xlu1 %v3440_v26, %s3562_s16  ;;  %1365 = vrot.lane.b32.xlu0 %v3443_v30, %s3561_s15 }
  0x3c   : >> { %1363 = vrot.lane.b32.xlu2 %v3442_v45, %s3561_s15 }
  0x3d   : >> { %2633 = vmatmul.msk.bf16.gmra.mxu1 %vm247_vm0, %v3395_v21 }
  0x43   : >> { %1809 = vrot.lane.b32.xlu0 %v3468_v8, %s3561_s15  ;;  %1893 = vrot.lane.b32.xlu1 %v3466_v10, %s3562_s16 }
  0x44   : >> { %1725 = vrot.lane.b32.xlu2 %v3466_v10, %s3561_s15 }
  0x4d   : >> { %2634 = vmatmul.msk.bf16.gmra.mxu1 %vm247_vm0, %v3396_v22  ;;  %v3465_v22 = vld [vmem:[%s3649_s14 + $0x60] sm:$0xff] }
  0x4e   : >> { %1723 = vrot.lane.b32.xlu2 %v3465_v22, %s3561_s15  ;;  %1891 = vrot.lane.b32.xlu1 %v3465_v22, %s3562_s16 }
  0x5d   : >> { %2635 = vmatmul.msk.bf16.gmra.mxu1 %vm247_vm0, %v3397_v23 }
  0x6d   : >> { %2762 = vmatmul.msk.bf16.vlgmr.msra.gmra.mxu1 %vm247_vm0, %v3419_v29 }
  0x6e   : >> { %v562_v25 = vpop.permute.xlu2 %561 }
  0x6f   : >> { %583 = vmatpush.bf16.msrb.mxu0 %v562_v25 }
  0x76   : >> { %v560_v27 = vpop.permute.xlu2 %559 }
  0x77   : >> { %584 = vmatpush.bf16.msrb.mxu0 %v560_v27 }
  0x7a   : >> { %2716 = vmatmul.msk.bf16.vlgmr.msrb.gmra.mxu0 %vm247_vm0, %v3410_v28  ;;  %v3467_v28 = vld [vmem:[%s3649_s14 + $0x70] sm:$0xff] }
  0x7b   : >> { %1807 = vrot.lane.b32.xlu0 %v3467_v28, %s3561_s15 }
  0x7d   : >> { %2763 = vmatmul.msk.bf16.gmra.mxu1 %vm247_vm0, %v3420_v37  ;;  %v3429_v37 = vld [vmem:[%s4341_s1 + $0xf0] sm:$0xff] }
  0x7e   : >> { %v922_v31 = vpop.permute.xlu2 %921 }
  0x7f   : >> { %943 = vmatpush.bf16.msra.mxu0 %v922_v31 }
  0x85   : >> { %v394_v32 = vpop.permute.xlu0 %393  ;;  %v392_v33 = vpop.permute.xlu1 %391 }
  0x86   : >> { %415 = vmatpush.bf16.msrb.mxu2 %v394_v32  ;;  %v1004_v57 = vpop.permute.xlu2 %1003  ;;  %v3434_v32 = vld [vmem:[%s4341_s1 + $0x118] sm:$0xff] }
  0x8a   : >> { %416 = vmatpush.bf16.msrb.mxu2 %v392_v33  ;;  %2717 = vmatmul.msk.bf16.gmra.mxu0 %vm247_vm0, %v3411_v34  ;;  %v3425_v33 = vld [vmem:[%s4341_s1 + $0xd0] sm:$0xff] }
  0x8d   : >> { %v478_v36 = vpop.permute.xlu0 %477  ;;  %2660 = vmatmul.msk.bf16.vlgmr.msrb.gmra.mxu2 %vm247_vm0, %v3402_v35  ;;  %v476_v38 = vpop.permute.xlu1 %475  ;;  %2764 = vmatmul.msk.bf16.gmra.mxu1 %vm247_vm0, %v3421_v44 }
  0x8e   : >> { %775 = vmatpush.bf16.msra.mxu2 %v3418_v15  ;;  %499 = vmatpush.bf16.msrb.mxu3 %v478_v36  ;;  %v3438_v36 = vld [vmem:[%s4341_s1 + $0x138] sm:$0xff] }
  0x92   : >> { %776 = vmatpush.bf16.msra.mxu2 %v3417_v16  ;;  %500 = vmatpush.bf16.msrb.mxu3 %v476_v38  ;;  %v3427_v16 = vld [vmem:[%s4341_s1 + $0xe0] sm:$0xff]  ;;  %v1450_v38 = vpop.permute.xlu2 %1449 }
  0x95   : >> { %2688 = vmatmul.msk.bf16.vlgmr.msrb.gmra.mxu3 %vm247_vm0, %v3406_v39  ;;  %v838_v40 = vpop.permute.xlu0 %837  ;;  %v836_v43 = vpop.permute.xlu1 %835 }
  0x96   : >> { %1129 = vmatpush.bf16.msrb.mxu2 %v3441_v20  ;;  %859 = vmatpush.bf16.msra.mxu3 %v838_v40  ;;  %v3437_v20 = vld [vmem:[%s4341_s1 + $0x130] sm:$0xff] }
  0x9a   : >> { %1130 = vmatpush.bf16.msrb.mxu2 %v3440_v26  ;;  %2718 = vmatmul.msk.bf16.gmra.mxu0 %vm247_vm0, %v3412_v41  ;;  %v274_v47 = vpop.f32.mrf.mxu1  ;;  %v3452_v41 = vld [vmem:[%s4341_s1 + $0x180] sm:$0xff]  ;;  %v1364_v44 = vpop.permute.xlu2 %1363 }
  0x9b   : >> { %860 = vmatpush.bf16.msra.mxu3 %v836_v43  ;;  %v269_v25 = vpop.f32.mrf.mxu0  ;;  %v3426_v43 = vld [vmem:[%s4341_s1 + $0xd8] sm:$0xff] }
  0x9d   : >> { %2661 = vmatmul.msk.bf16.gmra.mxu2 %vm247_vm0, %v3403_v42  ;;  %v920_v46 = vpop.permute.xlu0 %919  ;;  %2765 = vmatmul.msk.bf16.gmra.mxu1 %vm247_vm0, %v3422_v52  ;;  %v1006_v55 = vpop.permute.xlu1 %1005 }
  0x9e   : >> { %944 = vmatpush.bf16.msra.mxu0 %v920_v46  ;;  %1027 = vmatpush.bf16.msrb.mxu1 %v1006_v55  ;;  %v3456_v46 = vld [vmem:[%s4341_s1 + $0x1a0] sm:$0xff]  ;;  %v3491_v55 = vld [vmem:[%s3649_s14 + $0x88] sm:$0xff] }
  0x9f   : >> { %1219 = vmatpush.bf16.msrb.mxu3 %v3443_v30  ;;  %2169 = vrot.lane.b32.xlu0 %v3491_v55, %s3561_s15 }
  0xa0   : >> { %v279_v21 = vpop.f32.mrf.mxu2 }
  0xa1   : >> { %v284_v26 = vpop.f32.mrf.mxu3 }
  0xa2   : >> { %v3756_v50 = vpop.f32.mrf.mxu1  ;;  %1028 = vmatpush.bf16.msrb.mxu1 %v1004_v57 }
  0xa3   : >> { %1220 = vmatpush.bf16.msrb.mxu3 %v3442_v45  ;;  %v271_v34 = vpop.f32.mrf.mxu0 }
  0xa5   : >> { %2689 = vmatmul.msk.bf16.gmra.mxu3 %vm247_vm0, %v3407_v48  ;;  %v1282_v61 = vpop.permute.xlu0 %1281  ;;  %v1280_v31 = vpop.permute.xlu1 %1279  ;;  %v3430_v48 = vld [vmem:[%s4341_s1 + $0xf8] sm:$0xff] }
  0xa6   : >> { %1303 = vmatpush.bf16.msrb.mxu0 %v1282_v61 }
  0xaa   : >> { %2719 = vmatmul.msk.bf16.gmra.mxu0 %vm247_vm0, %v3413_v49  ;;  %v342_v53 = vpop.f32.mrf.mxu1 }
  0xab   : >> { %v343_v30 = vadd.f32 %v342_v53, %v269_v25  ;;  %1304 = vmatpush.bf16.msrb.mxu0 %v1280_v31  ;;  %v3876_v53 = vpop.f32.mrf.mxu2  ;;  %v3449_v31 = vld [vmem:[%s4341_s1 + $0x168] sm:$0xff] }
  0xad   : >> { %2662 = vmatmul.msk.bf16.gmra.mxu2 %vm247_vm0, %v3404_v51  ;;  %2882 = vmatmul.msk.bf16.vlgmr.msrb.gmra.mxu1 %vm247_vm0, %v3435_v60  ;;  %v1366_v40 = vpop.permute.xlu0 %1365  ;;  %v3453_v51 = vld [vmem:[%s4341_s1 + $0x188] sm:$0xff]  ;;  %v3894_v60 = vpop.f32.mrf.mxu3 }
  0xae   : >> { %1387 = vmatpush.bf16.msra.mxu1 %v1366_v40 }
  0xb2   : >> { %v344_v58 = vpop.f32.mrf.mxu1  ;;  %1388 = vmatpush.bf16.msra.mxu1 %v1364_v44  ;;  %v3492_v44 = vld [vmem:[%s3649_s14 + $0x90] sm:$0xff] }
  0xb3   : >> { %v345_v35 = vadd.f32 %v344_v58, %v271_v34  ;;  %v3457_v58 = vld [vmem:[%s4341_s1 + $0x1a8] sm:$0xff]  ;;  %2251 = vrot.lane.b32.xlu0 %v3492_v44, %s3561_s15 }
  0xb5   : >> { %2690 = vmatmul.msk.bf16.gmra.mxu3 %vm247_vm0, %v3408_v54  ;;  %v3444_v54 = vld [vmem:[%s4341_s1 + $0x140] sm:$0xff] }
  0xba   : >> { %2854 = vmatmul.msk.bf16.vlgmr.msra.gmra.mxu0 %vm247_vm0, %v3431_v56  ;;  %v347_v62 = vpop.f32.mrf.mxu1  ;;  %v3885_v56 = vld [vmem:[%s3649_s14 + $0x98] sm:$0xff] }
  0xbb   : >> { %v3788_v9 = vadd.f32 %v347_v62, %v274_v47  ;;  %1663 = vmatpush.bf16.msra.mxu0 %v3468_v8  ;;  %2253 = vrot.lane.b32.xlu1 %v3885_v56, %s3561_s15 }
  0xbd   : >> { %2663 = vmatmul.msk.bf16.gmra.mxu2 %vm247_vm0, %v3405_v59  ;;  %2883 = vmatmul.msk.bf16.gmra.mxu1 %vm247_vm0, %v3436_v14 }
  0xbf   : >> { %1664 = vmatpush.bf16.msra.mxu0 %v3467_v28 }
  0xc2   : >> { %v3796_v12 = vpop.f32.mrf.mxu1 }
  0xc3   : >> { %2337 = vrot.lane.b32.xlu1 %v3491_v55, %s3562_s16 }
  0xc5   : >> { %2691 = vmatmul.msk.bf16.gmra.mxu3 %vm247_vm0, %v3409_v63  ;;  %v3448_v63 = vld [vmem:[%s4341_s1 + $0x160] sm:$0xff] }
  0xca   : >> { %2855 = vmatmul.msk.bf16.gmra.mxu0 %vm247_vm0, %v3432_v11  ;;  %v352_v15 = vpop.f32.mrf.mxu1 }
  0xcb   : >> { %v3826_v23 = vadd.f32 %v352_v15, %v279_v21 }
  0xcd   : >> { %2798 = vmatmul.msk.bf16.vlgmr.msra.gmra.mxu2 %vm247_vm0, %v3423_v13  ;;  %2884 = vmatmul.msk.bf16.gmra.mxu1 %vm247_vm0, %v3437_v20  ;;  %v1448_v20 = vpop.permute.xlu1 %1447 }
  0xce   : >> { %1471 = vmatpush.bf16.msra.mxu2 %v1450_v38 }
  0xd2   : >> { %v3819_v19 = vpop.f32.mrf.mxu1  ;;  %1472 = vmatpush.bf16.msra.mxu2 %v1448_v20 }
  0xd5   : >> { %2826 = vmatmul.msk.bf16.vlgmr.msra.gmra.mxu3 %vm247_vm0, %v3427_v16 }
  0xd6   : >> { %1573 = vmatpush.bf16.msra.mxu3 %v3466_v10  ;;  %v3454_v10 = vld [vmem:[%s4341_s1 + $0x190] sm:$0xff] }
  0xda   : >> { %2856 = vmatmul.msk.bf16.gmra.mxu0 %vm247_vm0, %v3433_v17  ;;  %1574 = vmatpush.bf16.msra.mxu3 %v3465_v22  ;;  %v357_v27 = vpop.f32.mrf.mxu1  ;;  %v3445_v17 = vld [vmem:[%s4341_s1 + $0x148] sm:$0xff] }
  0xdb   : >> { %v3836_v29 = vadd.f32 %v357_v27, %v284_v26 }
  0xdd   : >> { %2799 = vmatmul.msk.bf16.gmra.mxu2 %vm247_vm0, %v3424_v18  ;;  %2885 = vmatmul.msk.bf16.gmra.mxu1 %vm247_vm0, %v3438_v36 }
  0xe2   : >> { %v3854_v39 = vpop.f32.mrf.mxu1 }
  0xe5   : >> { %2827 = vmatmul.msk.bf16.gmra.mxu3 %vm247_vm0, %v3428_v24  ;;  %v3458_v24 = vld [vmem:[%s4341_s1 + $0x1b0] sm:$0xff] }
  0xea   : >> { %2857 = vmatmul.msk.bf16.gmra.mxu0 %vm247_vm0, %v3434_v32  ;;  %v688_v45 = vpop.f32.mrf.mxu1 }
  0xed   : >> { %2800 = vmatmul.msk.bf16.gmra.mxu2 %vm247_vm0, %v3425_v33  ;;  %3020 = vmatmul.msk.bf16.vlgmr.msra.gmra.mxu1 %vm247_vm0, %v3456_v46 }
  0xf2   : >> { %v690_v49 = vpop.f32.mrf.mxu1 }
  0xf5   : >> { %2828 = vmatmul.msk.bf16.gmra.mxu3 %vm247_vm0, %v3429_v37 }
  0xf7   : >> { %v586_v42 = vpop.f32.mrf.mxu0 }
  0xfa   : >> { %2992 = vmatmul.msk.bf16.vlgmr.msrb.gmra.mxu0 %vm247_vm0, %v3452_v41  ;;  %v693_v57 = vpop.f32.mrf.mxu1 }
  0xfb   : >> { %2017 = vmatpush.bf16.msrb.mxu0 %v3491_v55  ;;  %v1726_v55 = vpop.permute.xlu2 %1725 }
  0xfc   : >> { %1747 = vmatpush.bf16.msrb.mxu1 %v1726_v55 }
  0xfd   : >> { %2801 = vmatmul.msk.bf16.gmra.mxu2 %vm247_vm0, %v3426_v43  ;;  %3021 = vmatmul.msk.bf16.gmra.mxu1 %vm247_vm0, %v3457_v58 }
  0xff   : >> { %v588_v47 = vpop.f32.mrf.mxu0 }
 0x102   : >> { %v695_v8 = vpop.f32.mrf.mxu1 }
 0x105   : >> { %2829 = vmatmul.msk.bf16.gmra.mxu3 %vm247_vm0, %v3430_v48 }
 0x107   : >> { %v591_v52 = vpop.f32.mrf.mxu0 }
 0x10a   : >> { %2993 = vmatmul.msk.bf16.gmra.mxu0 %vm247_vm0, %v3453_v51  ;;  %v698_v21 = vpop.f32.mrf.mxu1 }
 0x10d   : >> { %2928 = vmatmul.msk.bf16.vlgmr.msrb.gmra.mxu2 %vm247_vm0, %v3444_v54  ;;  %3022 = vmatmul.msk.bf16.gmra.mxu1 %vm247_vm0, %v3458_v24 }
 0x10f   : >> { %v593_v59 = vpop.f32.mrf.mxu0 }
 0x110   : >> { %v418_v61 = vpop.f32.mrf.mxu2 }
 0x111   : >> { %v438_v62 = vadd.f32 %v418_v61, %v343_v30  ;;  %v3473_v61 = vld [vmem:[%s4341_s1 + $0x200] sm:$0xff] }
 0x112   : >> { %v3923_v33 = vpop.f32.mrf.mxu1 }
 0x115   : >> { %2964 = vmatmul.msk.bf16.vlgmr.msrb.gmra.mxu3 %vm247_vm0, %v3448_v63 }
 0x117   : >> { %v3904_v11 = vpop.f32.mrf.mxu0 }
 0x118   : >> { %v420_v13 = vpop.f32.mrf.mxu2  ;;  %v502_v14 = vpop.f32.mrf.mxu3 }
 0x119   : >> { %v439_v15 = vadd.f32 %v420_v13, %v345_v35  ;;  %v522_v16 = vadd.f32 %v502_v14, %v438_v62  ;;  %v3455_v35 = vld [vmem:[%s4341_s1 + $0x198] sm:$0xff] }
 0x11a   : >> { %2994 = vmatmul.msk.bf16.gmra.mxu0 %vm247_vm0, %v3454_v10 }
 0x11b   : >> { %v606_v18 = vadd.f32 %v586_v42, %v522_v16  ;;  %v3446_v42 = vld [vmem:[%s4341_s1 + $0x150] sm:$0xff]  ;;  %v1724_v16 = vpop.permute.xlu2 %1723 }
 0x11c   : >> { %1748 = vmatpush.bf16.msrb.mxu1 %v1724_v16  ;;  %v3470_v16 = vld [vmem:[%s4341_s1 + $0x1e8] sm:$0xff] }
 0x11d   : >> { %v3910_v22 = vadd.f32 %v688_v45, %v606_v18  ;;  %2929 = vmatmul.msk.bf16.gmra.mxu2 %vm247_vm0, %v3445_v17  ;;  %v3940_v45 = vpop.f32.mrf.mxu1  ;;  %v3477_v18 = vld [vmem:[%s4341_s1 + $0x220] sm:$0xff] }
 0x11f   : >> { %v3917_v25 = vpop.f32.mrf.mxu0 }
 0x120   : >> { %v423_v26 = vpop.f32.mrf.mxu2  ;;  %v504_v27 = vpop.f32.mrf.mxu3  ;;  %2107 = vmatpush.bf16.msra.mxu1 %v3885_v56 }
 0x121   : >> { %v440_v28 = vadd.f32 %v423_v26, %v3788_v9  ;;  %v523_v30 = vadd.f32 %v504_v27, %v439_v15  ;;  %v350_v9 = vadd.f32 %v3796_v12, %v3756_v50  ;;  %v3459_v50 = vld [vmem:[%s4341_s1 + $0x1b8] sm:$0xff]  ;;  %v1810_v15 = vpop.permute.xlu0 %1809 }
 0x122   : >> { %3023 = vmatmul.msk.bf16.gmra.mxu1 %vm247_vm0, %v3459_v50  ;;  %1831 = vmatpush.bf16.msrb.mxu2 %v1810_v15  ;;  %v3451_v27 = vld [vmem:[%s4341_s1 + $0x178] sm:$0xff] }
 0x123   : >> { %v607_v32 = vadd.f32 %v588_v47, %v523_v30 }
 0x124   : >> { %2108 = vmatpush.bf16.msra.mxu1 %v3492_v44 }
 0x125   : >> { %v3925_v34 = vadd.f32 %v690_v49, %v607_v32  ;;  %2965 = vmatmul.msk.bf16.gmra.mxu3 %vm247_vm0, %v3449_v31 }
 0x127   : >> { %v3933_v36 = vpop.f32.mrf.mxu0 }
 0x128   : >> { %v425_v37 = vpop.f32.mrf.mxu2  ;;  %v507_v38 = vpop.f32.mrf.mxu3 }
 0x129   : >> { %v441_v40 = vadd.f32 %v425_v37, %v350_v9  ;;  %v524_v41 = vadd.f32 %v507_v38, %v440_v28  ;;  %v3490_v28 = vld [vmem:[%s3649_s14 + $0x80] sm:$0xff] }
 0x12a   : >> { %2995 = vmatmul.msk.bf16.gmra.mxu0 %vm247_vm0, %v3455_v35  ;;  %2167 = vrot.lane.b32.xlu2 %v3490_v28, %s3561_s15 }
 0x12b   : >> { %v608_v43 = vadd.f32 %v591_v52, %v524_v41  ;;  %v3450_v52 = vld [vmem:[%s4341_s1 + $0x170] sm:$0xff]  ;;  %2018 = vmatpush.bf16.msrb.mxu0 %v3490_v28 }
 0x12d   : >> { %v3942_v46 = vadd.f32 %v693_v57, %v608_v43  ;;  %2930 = vmatmul.msk.bf16.gmra.mxu2 %vm247_vm0, %v3446_v42  ;;  %v3956_v57 = vpop.f32.mrf.mxu1  ;;  %v3478_v42 = vld [vmem:[%s4341_s1 + $0x228] sm:$0xff] }
 0x12f   : >> { %v3950_v12 = vpop.f32.mrf.mxu0 }
 0x130   : >> { %v428_v47 = vpop.f32.mrf.mxu2  ;;  %v509_v48 = vpop.f32.mrf.mxu3 }
 0x131   : >> { %v442_v49 = vadd.f32 %v428_v47, %v3826_v23  ;;  %v525_v51 = vadd.f32 %v509_v48, %v441_v40  ;;  %v355_v23 = vadd.f32 %v3819_v19, %v3876_v53  ;;  %v1894_v53 = vpop.permute.xlu1 %1893  ;;  %v360_v40 = vadd.f32 %v3854_v39, %v3894_v60  ;;  %v3469_v39 = vld [vmem:[%s4341_s1 + $0x1e0] sm:$0xff] }
 0x132   : >> { %1915 = vmatpush.bf16.msrb.mxu3 %v1894_v53  ;;  %3158 = vmatmul.msk.bf16.vlgmr.msrb.gmra.mxu1 %vm247_vm0, %v3477_v18  ;;  %v3476_v18 = vld [vmem:[%s4341_s1 + $0x218] sm:$0xff] }
 0x133   : >> { %v609_v54 = vadd.f32 %v593_v59, %v525_v51  ;;  %2335 = vrot.lane.b32.xlu2 %v3490_v28, %s3562_s16  ;;  %v3475_v51 = vld [vmem:[%s4341_s1 + $0x210] sm:$0xff] }
 0x135   : >> { %v3958_v58 = vadd.f32 %v695_v8, %v609_v54  ;;  %2966 = vmatmul.msk.bf16.gmra.mxu3 %vm247_vm0, %v3450_v52  ;;  %v3447_v8 = vld [vmem:[%s4341_s1 + $0x158] sm:$0xff]  ;;  %v1030_v17 = vpop.f32.mrf.mxu1 }
 0x137   : >> { %v3966_v62 = vpop.f32.mrf.mxu0 }
 0x138   : >> { %v430_v63 = vpop.f32.mrf.mxu2  ;;  %v512_v10 = vpop.f32.mrf.mxu3 }
 0x139   : >> { %v443_v59 = vadd.f32 %v430_v63, %v355_v23  ;;  %v526_v13 = vadd.f32 %v512_v10, %v442_v49  ;;  %v1808_v23 = vpop.permute.xlu0 %1807  ;;  %v1892_v10 = vpop.permute.xlu1 %1891 }
 0x13a   : >> { %3130 = vmatmul.msk.bf16.vlgmr.msra.gmra.mxu0 %vm247_vm0, %v3473_v61  ;;  %1832 = vmatpush.bf16.msrb.mxu2 %v1808_v23  ;;  %v3495_v23 = vld [vmem:[%s4341_s1 + $0x288] sm:$0xff] }
 0x13b   : >> { %v610_v14 = vadd.f32 %v3904_v11, %v526_v13  ;;  %1916 = vmatpush.bf16.msrb.mxu3 %v1892_v10 }
 0x13d   : >> { %v3973_v19 = vadd.f32 %v698_v21, %v610_v14  ;;  %2931 = vmatmul.msk.bf16.gmra.mxu2 %vm247_vm0, %v3447_v8  ;;  %v1032_v56 = vpop.f32.mrf.mxu1 }
 0x13f   : >> { %v3981_v11 = vpop.f32.mrf.mxu0 }
 0x140   : >> { %v433_v20 = vpop.f32.mrf.mxu2  ;;  %v514_v24 = vpop.f32.mrf.mxu3 }
 0x141   : >> { %v444_v26 = vadd.f32 %v433_v20, %v3836_v29  ;;  %v527_v21 = vadd.f32 %v514_v24, %v443_v59  ;;  %v3474_v29 = vld [vmem:[%s4341_s1 + $0x208] sm:$0xff] }
 0x142   : >> { %3159 = vmatmul.msk.bf16.gmra.mxu1 %vm247_vm0, %v3478_v42 }
 0x143   : >> { %v611_v30 = vadd.f32 %v3917_v25, %v527_v21  ;;  %v3460_v25 = vld [vmem:[%s4341_s1 + $0x1c0] sm:$0xff] }
 0x145   : >> { %v3991_v31 = vadd.f32 %v3923_v33, %v611_v30  ;;  %2967 = vmatmul.msk.bf16.gmra.mxu3 %vm247_vm0, %v3451_v27  ;;  %v1035_v33 = vpop.f32.mrf.mxu1  ;;  %v3462_v27 = vld [vmem:[%s4341_s1 + $0x1d0] sm:$0xff] }
 0x147   : >> { %v951_v32 = vpop.f32.mrf.mxu0 }
 0x148   : >> { %v435_v35 = vpop.f32.mrf.mxu2  ;;  %v517_v9 = vpop.f32.mrf.mxu3 }
 0x149   : >> { %v528_v37 = vadd.f32 %v517_v9, %v444_v26  ;;  %v445_v43 = vadd.f32 %v435_v35, %v360_v40  ;;  %v3494_v40 = vld [vmem:[%s4341_s1 + $0x280] sm:$0xff] }
 0x14a   : >> { %3131 = vmatmul.msk.bf16.gmra.mxu0 %vm247_vm0, %v3474_v29 }
 0x14b   : >> { %v612_v38 = vadd.f32 %v3933_v36, %v528_v37 }
 0x14d   : >> { %v4006_v41 = vadd.f32 %v3940_v45, %v612_v38  ;;  %3048 = vmatmul.msk.bf16.vlgmr.msra.gmra.mxu2 %vm247_vm0, %v3460_v25  ;;  %v1037_v49 = vpop.f32.mrf.mxu1 }
 0x14f   : >> { %v953_v44 = vpop.f32.mrf.mxu0 }
 0x150   : >> { %v519_v36 = vpop.f32.mrf.mxu3  ;;  %v778_v50 = vpop.f32.mrf.mxu2 }
 0x151   : >> { %v529_v47 = vadd.f32 %v519_v36, %v445_v43  ;;  %v798_v48 = vadd.f32 %v778_v50, %v3910_v22 }
 0x153   : >> { %v613_v60 = vadd.f32 %v3950_v12, %v529_v47  ;;  %v3461_v12 = vld [vmem:[%s4341_s1 + $0x1c8] sm:$0xff]  ;;  %v3463_v47 = vld [vmem:[%s4341_s1 + $0x1d8] sm:$0xff] }
 0x155   : >> { %v4019_v45 = vadd.f32 %v3956_v57, %v613_v60  ;;  %3094 = vmatmul.msk.bf16.vlgmr.msra.gmra.mxu3 %vm247_vm0, %v3469_v39  ;;  %v1040_v59 = vpop.f32.mrf.mxu1  ;;  %v2170_v39 = vpop.permute.xlu0 %2169  ;;  %v3498_v60 = vld [vmem:[%s4341_s1 + $0x2a0] sm:$0xff] }
 0x156   : >> { %2191 = vmatpush.bf16.msra.mxu2 %v2170_v39 }
 0x157   : >> { %v956_v52 = vpop.f32.mrf.mxu0 }
 0x158   : >> { %v780_v54 = vpop.f32.mrf.mxu2  ;;  %v862_v55 = vpop.f32.mrf.mxu3 }
 0x159   : >> { %v799_v22 = vadd.f32 %v780_v54, %v3925_v34  ;;  %v882_v61 = vadd.f32 %v862_v55, %v798_v48  ;;  %v3479_v34 = vld [vmem:[%s4341_s1 + $0x230] sm:$0xff] }
 0x15a   : >> { %3132 = vmatmul.msk.bf16.gmra.mxu0 %vm247_vm0, %v3475_v51  ;;  %3160 = vmatmul.msk.bf16.gmra.mxu1 %vm247_vm0, %v3479_v34 }
 0x15b   : >> { %v966_v57 = vadd.f32 %v3966_v62, %v882_v61  ;;  %v3472_v61 = vld [vmem:[%s4341_s1 + $0x1f8] sm:$0xff] }
 0x15d   : >> { %v4031_v63 = vadd.f32 %v1030_v17, %v966_v57  ;;  %3049 = vmatmul.msk.bf16.gmra.mxu2 %vm247_vm0, %v3461_v12  ;;  %v1042_v28 = vpop.f32.mrf.mxu1 }
 0x15f   : >> { %v958_v13 = vpop.f32.mrf.mxu0 }
 0x160   : >> { %v783_v8 = vpop.f32.mrf.mxu2  ;;  %v864_v14 = vpop.f32.mrf.mxu3 }
 0x161   : >> { %v800_v62 = vadd.f32 %v783_v8, %v3942_v46  ;;  %v883_v15 = vadd.f32 %v864_v14, %v799_v22 }
 0x163   : >> { %v967_v17 = vadd.f32 %v3981_v11, %v883_v15 }
 0x165   : >> { %v4043_v53 = vadd.f32 %v1032_v56, %v967_v17  ;;  %3095 = vmatmul.msk.bf16.gmra.mxu3 %vm247_vm0, %v3470_v16  ;;  %v3480_v56 = vld [vmem:[%s4341_s1 + $0x238] sm:$0xff]  ;;  %v1045_v38 = vpop.f32.mrf.mxu1  ;;  %v3499_v17 = vld [vmem:[%s4341_s1 + $0x2a8] sm:$0xff] }
 0x167   : >> { %v961_v20 = vpop.f32.mrf.mxu0 }
 0x168   : >> { %v785_v24 = vpop.f32.mrf.mxu2  ;;  %v867_v26 = vpop.f32.mrf.mxu3 }
 0x169   : >> { %v801_v46 = vadd.f32 %v785_v24, %v3958_v58  ;;  %v884_v21 = vadd.f32 %v867_v26, %v800_v62 }
 0x16a   : >> { %3133 = vmatmul.msk.bf16.gmra.mxu0 %vm247_vm0, %v3476_v18  ;;  %3161 = vmatmul.msk.bf16.gmra.mxu1 %vm247_vm0, %v3480_v56 }
 0x16b   : >> { %v968_v11 = vadd.f32 %v951_v32, %v884_v21  ;;  %v3471_v32 = vld [vmem:[%s4341_s1 + $0x1f0] sm:$0xff] }
 0x16d   : >> { %v4054_v30 = vadd.f32 %v1035_v33, %v968_v11  ;;  %3050 = vmatmul.msk.bf16.gmra.mxu2 %vm247_vm0, %v3462_v27  ;;  %v3496_v11 = vld [vmem:[%s4341_s1 + $0x290] sm:$0xff] }
 0x16f   : >> { %v963_v58 = vpop.f32.mrf.mxu0 }
 0x170   : >> { %v788_v29 = vpop.f32.mrf.mxu2  ;;  %v869_v35 = vpop.f32.mrf.mxu3 }
 0x171   : >> { %v802_v9 = vadd.f32 %v788_v29, %v3973_v19  ;;  %v885_v37 = vadd.f32 %v869_v35, %v801_v46 }
 0x173   : >> { %v969_v25 = vadd.f32 %v953_v44, %v885_v37  ;;  %v3482_v37 = vld [vmem:[%s4341_s1 + $0x248] sm:$0xff] }
 0x175   : >> { %v4065_v33 = vadd.f32 %v1037_v49, %v969_v25  ;;  %3096 = vmatmul.msk.bf16.gmra.mxu3 %vm247_vm0, %v3471_v32  ;;  %v1047_v49 = vpop.f32.mrf.mxu1 }
 0x177   : >> { %v1306_v42 = vpop.f32.mrf.mxu0 }
 0x178   : >> { %v790_v43 = vpop.f32.mrf.mxu2  ;;  %v872_v36 = vpop.f32.mrf.mxu3 }
 0x179   : >> { %v803_v19 = vadd.f32 %v790_v43, %v3991_v31  ;;  %v886_v50 = vadd.f32 %v872_v36, %v802_v9  ;;  %v2254_v31 = vpop.permute.xlu1 %2253 }
 0x17a   : >> { %3260 = vmatmul.msk.bf16.vlgmr.msrb.gmra.mxu0 %vm247_vm0, %v3494_v40  ;;  %3296 = vmatmul.msk.bf16.vlgmr.msra.gmra.mxu1 %vm247_vm0, %v3498_v60 }
 0x17b   : >> { %v970_v44 = vadd.f32 %v956_v52, %v886_v50  ;;  %2275 = vmatpush.bf16.msra.mxu3 %v2254_v31 }
 0x17d   : >> { %v4076_v48 = vadd.f32 %v1040_v59, %v970_v44  ;;  %3051 = vmatmul.msk.bf16.gmra.mxu2 %vm247_vm0, %v3463_v47  ;;  %v1390_v62 = vpop.f32.mrf.mxu1  ;;  %v3486_v47 = vld [vmem:[%s4341_s1 + $0x268] sm:$0xff] }
 0x17f   : >> { %v1308_v51 = vpop.f32.mrf.mxu0 }
 0x180   : >> { %v793_v54 = vpop.f32.mrf.mxu2  ;;  %v874_v55 = vpop.f32.mrf.mxu3 }
 0x181   : >> { %v804_v52 = vadd.f32 %v793_v54, %v4006_v41  ;;  %v887_v22 = vadd.f32 %v874_v55, %v803_v19  ;;  %v2338_v10 = vpop.permute.xlu1 %2337 }
 0x182   : >> { %2359 = vmatpush.bf16.msra.mxu0 %v2338_v10 }
 0x183   : >> { %v971_v12 = vadd.f32 %v958_v13, %v887_v22  ;;  %v3481_v13 = vld [vmem:[%s4341_s1 + $0x240] sm:$0xff] }
 0x184   : >> { %v2168_v25 = vpop.permute.xlu2 %2167 }
 0x185   : >> { %v4087_v57 = vadd.f32 %v1042_v28, %v971_v12  ;;  %3097 = vmatmul.msk.bf16.gmra.mxu3 %vm247_vm0, %v3472_v61  ;;  %v1392_v27 = vpop.f32.mrf.mxu1  ;;  %2192 = vmatpush.bf16.msra.mxu2 %v2168_v25 }
 0x187   : >> { %v1311_v34 = vpop.f32.mrf.mxu0 }
 0x188   : >> { %v795_v59 = vpop.f32.mrf.mxu2  ;;  %v877_v8 = vpop.f32.mrf.mxu3 }
 0x189   : >> { %v805_v41 = vadd.f32 %v795_v59, %v4019_v45  ;;  %v888_v14 = vadd.f32 %v877_v8, %v804_v52 }
 0x18a   : >> { %3261 = vmatmul.msk.bf16.gmra.mxu0 %vm247_vm0, %v3495_v23  ;;  %3297 = vmatmul.msk.bf16.gmra.mxu1 %vm247_vm0, %v3499_v17  ;;  %v3501_v23 = vld [vmem:[%s4341_s1 + $0x2b8] sm:$0xff] }
 0x18b   : >> { %v972_v15 = vadd.f32 %v961_v20, %v888_v14  ;;  %v3485_v20 = vld [vmem:[%s4341_s1 + $0x260] sm:$0xff] }
 0x18d   : >> { %v4098_v16 = vadd.f32 %v1045_v38, %v972_v15  ;;  %3186 = vmatmul.msk.bf16.vlgmr.msrb.gmra.mxu2 %vm247_vm0, %v3481_v13  ;;  %v3500_v38 = vld [vmem:[%s4341_s1 + $0x2b0] sm:$0xff]  ;;  %v1395_v40 = vpop.f32.mrf.mxu1  ;;  %v2336_v60 = vpop.permute.xlu2 %2335  ;;  %v3510_v15 = vld [vmem:[%s4341_s1 + $0x300] sm:$0xff] }
 0x18e   : >> { %2360 = vmatpush.bf16.msra.mxu0 %v2336_v60 }
 0x18f   : >> { %v1313_v45 = vpop.f32.mrf.mxu0 }
 0x190   : >> { %v879_v18 = vpop.f32.mrf.mxu3  ;;  %v1132_v24 = vpop.f32.mrf.mxu2 }
 0x191   : >> { %v889_v26 = vadd.f32 %v879_v18, %v805_v41  ;;  %v1152_v46 = vadd.f32 %v1132_v24, %v4031_v63 }
 0x193   : >> { %v973_v21 = vadd.f32 %v963_v58, %v889_v26 }
 0x195   : >> { %v4109_v28 = vadd.f32 %v1047_v49, %v973_v21  ;;  %3214 = vmatmul.msk.bf16.vlgmr.msrb.gmra.mxu3 %vm247_vm0, %v3485_v20  ;;  %v3497_v49 = vld [vmem:[%s4341_s1 + $0x298] sm:$0xff]  ;;  %v1397_v22 = vpop.f32.mrf.mxu1 }
 0x197   : >> { %v1316_v56 = vpop.f32.mrf.mxu0 }
 0x198   : >> { %v1134_v29 = vpop.f32.mrf.mxu2  ;;  %v1222_v35 = vpop.f32.mrf.mxu3 }
 0x199   : >> { %v1153_v9 = vadd.f32 %v1134_v29, %v4043_v53  ;;  %v1242_v63 = vadd.f32 %v1222_v35, %v1152_v46  ;;  %v2252_v53 = vpop.permute.xlu0 %2251  ;;  %v3484_v46 = vld [vmem:[%s4341_s1 + $0x258] sm:$0xff] }
 0x19a   : >> { %3262 = vmatmul.msk.bf16.gmra.mxu0 %vm247_vm0, %v3496_v11  ;;  %3298 = vmatmul.msk.bf16.gmra.mxu1 %vm247_vm0, %v3500_v38 }
 0x19b   : >> { %v1326_v58 = vadd.f32 %v1306_v42, %v1242_v63  ;;  %2276 = vmatpush.bf16.msra.mxu3 %v2252_v53 }
 0x19d   : >> { %v4120_v32 = vadd.f32 %v1390_v62, %v1326_v58  ;;  %3187 = vmatmul.msk.bf16.gmra.mxu2 %vm247_vm0, %v3482_v37  ;;  %v1400_v13 = vpop.f32.mrf.mxu1 }
 0x19f   : >> { %v1318_v43 = vpop.f32.mrf.mxu0 }
 0x1a0   : >> { %v1137_v36 = vpop.f32.mrf.mxu2  ;;  %v1224_v19 = vpop.f32.mrf.mxu3 }
 0x1a1   : >> { %v1154_v42 = vadd.f32 %v1137_v36, %v4054_v30  ;;  %v1243_v50 = vadd.f32 %v1224_v19, %v1153_v9  ;;  %v3502_v36 = vld [vmem:[%s4341_s1 + $0x2c0] sm:$0xff] }
 0x1a3   : >> { %v1327_v44 = vadd.f32 %v1308_v51, %v1243_v50  ;;  %v3483_v51 = vld [vmem:[%s4341_s1 + $0x250] sm:$0xff] }
 0x1a5   : >> { %v4131_v39 = vadd.f32 %v1392_v27, %v1327_v44  ;;  %3215 = vmatmul.msk.bf16.gmra.mxu3 %vm247_vm0, %v3486_v47  ;;  %v1402_v21 = vpop.f32.mrf.mxu1 }
 0x1a7   : >> { %v1321_v31 = vpop.f32.mrf.mxu0 }
 0x1a8   : >> { %v1139_v54 = vpop.f32.mrf.mxu2  ;;  %v1227_v55 = vpop.f32.mrf.mxu3 }
 0x1a9   : >> { %v1155_v30 = vadd.f32 %v1139_v54, %v4065_v33  ;;  %v1244_v52 = vadd.f32 %v1227_v55, %v1154_v42 }
 0x1aa   : >> { %3263 = vmatmul.msk.bf16.gmra.mxu0 %vm247_vm0, %v3497_v49  ;;  %3299 = vmatmul.msk.bf16.gmra.mxu1 %vm247_vm0, %v3501_v23  ;;  %v3506_v49 = vld [vmem:[%s4341_s1 + $0x2e0] sm:$0xff]  ;;  %v3503_v23 = vld [vmem:[%s4341_s1 + $0x2c8] sm:$0xff] }
 0x1ab   : >> { %v1328_v61 = vadd.f32 %v1311_v34, %v1244_v52  ;;  %v3487_v34 = vld [vmem:[%s4341_s1 + $0x270] sm:$0xff] }
 0x1ad   : >> { %v4142_v12 = vadd.f32 %v1395_v40, %v1328_v61  ;;  %3188 = vmatmul.msk.bf16.gmra.mxu2 %vm247_vm0, %v3483_v51  ;;  %v1405_v58 = vpop.f32.mrf.mxu1 }
 0x1af   : >> { %v1323_v33 = vpop.f32.mrf.mxu0 }
 0x1b0   : >> { %v1142_v10 = vpop.f32.mrf.mxu2  ;;  %v1229_v59 = vpop.f32.mrf.mxu3 }
 0x1b1   : >> { %v1156_v8 = vadd.f32 %v1142_v10, %v4076_v48  ;;  %v1245_v41 = vadd.f32 %v1229_v59, %v1155_v30  ;;  %v3512_v30 = vld [vmem:[%s4341_s1 + $0x310] sm:$0xff] }
 0x1b3   : >> { %v1329_v14 = vadd.f32 %v1313_v45, %v1245_v41 }
 0x1b5   : >> { %v4153_v62 = vadd.f32 %v1397_v22, %v1329_v14  ;;  %3216 = vmatmul.msk.bf16.gmra.mxu3 %vm247_vm0, %v3487_v34  ;;  %v3507_v34 = vld [vmem:[%s4341_s1 + $0x2e8] sm:$0xff] }
 0x1b7   : >> { %v1666_v17 = vpop.f32.mrf.mxu0 }
 0x1b8   : >> { %v1144_v18 = vpop.f32.mrf.mxu2  ;;  %v1232_v24 = vpop.f32.mrf.mxu3 }
 0x1b9   : >> { %v1157_v48 = vadd.f32 %v1144_v18, %v4087_v57  ;;  %v1246_v26 = vadd.f32 %v1232_v24, %v1156_v8  ;;  %v3488_v57 = vld [vmem:[%s4341_s1 + $0x278] sm:$0xff] }
 0x1ba   : >> { %3380 = vmatmul.msk.bf16.vlgmr.msra.gmra.mxu0 %vm247_vm0, %v3510_v15 }
 0x1bb   : >> { %v1330_v45 = vadd.f32 %v1316_v56, %v1246_v26  ;;  %v3511_v56 = vld [vmem:[%s4341_s1 + $0x308] sm:$0xff] }
 0x1bd   : >> { %v4164_v20 = vadd.f32 %v1400_v13, %v1330_v45  ;;  %3189 = vmatmul.msk.bf16.gmra.mxu2 %vm247_vm0, %v3484_v46  ;;  %v3513_v13 = vld [vmem:[%s4341_s1 + $0x318] sm:$0xff] }
 0x1bf   : >> { %v1668_v27 = vpop.f32.mrf.mxu0 }
 0x1c0   : >> { %v1147_v11 = vpop.f32.mrf.mxu2  ;;  %v1234_v29 = vpop.f32.mrf.mxu3 }
 0x1c1   : >> { %v1158_v35 = vadd.f32 %v1147_v11, %v4098_v16  ;;  %v1247_v9 = vadd.f32 %v1234_v29, %v1157_v48 }
 0x1c3   : >> { %v1331_v63 = vadd.f32 %v1318_v43, %v1247_v9  ;;  %v3563_v43 = vmov 0  }
 0x1c4   : >> { %3542 = vset.pattern.permute.xlu0 %v3563_v43  ;;  %3543 = vset.pattern.permute.xlu1 %v3563_v43 }
 0x1c5   : >> { %v4171_v37 = vadd.f32 %v1402_v21, %v1331_v63  ;;  %3217 = vmatmul.msk.bf16.gmra.mxu3 %vm247_vm0, %v3488_v57  ;;  %2392 = vperm.xlu0 %3542, %v4346_v0  }
 0x1c6   : >> { %2397 = vperm.xlu1 %3543, %v4347_v1   ;;  %3544 = vset.pattern.permute.xlu2 %v3563_v43 }
 0x1c7   : >> { %v1671_v25 = vpop.f32.mrf.mxu0  ;;  %2402 = vperm.xlu2 %3544, %v3605_v2  }
 0x1c8   : >> { %v1149_v38 = vpop.f32.mrf.mxu2  ;;  %v1237_v40 = vpop.f32.mrf.mxu3 }
 0x1c9   : >> { %v1159_v16 = vadd.f32 %v1149_v38, %v4109_v28  ;;  %v1248_v53 = vadd.f32 %v1237_v40, %v1158_v35 }
 0x1ca   : >> { %3381 = vmatmul.msk.bf16.gmra.mxu0 %vm247_vm0, %v3511_v56 }
 0x1cb   : >> { %v1332_v19 = vadd.f32 %v1321_v31, %v1248_v53  ;;  %v1407_v31 = vpop.f32.mrf.mxu1 }
 0x1cd   : >> { %v4185_v42 = vadd.f32 %v1405_v58, %v1332_v19  ;;  %3324 = vmatmul.msk.bf16.vlgmr.msra.gmra.mxu2 %vm247_vm0, %v3502_v36  ;;  %2417 = vperm.xlu0 %3542, %v3620_v5  }
 0x1ce   : >> { %2407 = vperm.xlu1 %3543, %v3610_v3  }
 0x1cf   : >> { %v1673_v28 = vpop.f32.mrf.mxu0  ;;  %2412 = vperm.xlu2 %3544, %v3615_v4  }
 0x1d0   : >> { %v1239_v50 = vpop.f32.mrf.mxu3  ;;  %v1474_v47 = vpop.f32.mrf.mxu2 }
 0x1d1   : >> { %v1249_v44 = vadd.f32 %v1239_v50, %v1159_v16  ;;  %v1494_v60 = vadd.f32 %v1474_v47, %v4120_v32 }
 0x1d3   : >> { %v1333_v54 = vadd.f32 %v1323_v33, %v1249_v44  ;;  %v1750_v29 = vpop.f32.mrf.mxu1 }
 0x1d5   : >> { %v1417_v55 = vadd.f32 %v1407_v31, %v1333_v54  ;;  %3352 = vmatmul.msk.bf16.vlgmr.msra.gmra.mxu3 %vm247_vm0, %v3506_v49 }
 0x1d6   : >> { %2422 = vperm.xlu1 %3543, %v3625_v6  }
 0x1d7   : >> { %v1676_v32 = vpop.f32.mrf.mxu0  ;;  %2427 = vperm.xlu2 %3544, %v3630_v7  }
 0x1d8   : >> { %v1476_v52 = vpop.f32.mrf.mxu2  ;;  %v1576_v51 = vpop.f32.mrf.mxu3 }
 0x1d9   : >> { %v1495_v22 = vadd.f32 %v1476_v52, %v4131_v39  ;;  %v1596_v61 = vadd.f32 %v1576_v51, %v1494_v60 }
 0x1da   : >> { %3382 = vmatmul.msk.bf16.gmra.mxu0 %vm247_vm0, %v3512_v30 }
 0x1db   : >> { %v4204_v33 = vadd.f32 %v1666_v17, %v1596_v61  ;;  %v1752_v38 = vpop.f32.mrf.mxu1 }
 0x1dd   : >> { %3325 = vmatmul.msk.bf16.gmra.mxu2 %vm247_vm0, %v3503_v23 }
 0x1df   : >> { %v1678_v10 = vpop.f32.mrf.mxu0 }
 0x1e0   : >> { %v1479_v59 = vpop.f32.mrf.mxu2  ;;  %v1578_v8 = vpop.f32.mrf.mxu3 }
 0x1e1   : >> { %v1496_v39 = vadd.f32 %v1479_v59, %v4142_v12  ;;  %v1597_v41 = vadd.f32 %v1578_v8, %v1495_v22  ;;  %v3504_v12 = vld [vmem:[%s4341_s1 + $0x2d0] sm:$0xff] }
 0x1e3   : >> { %v4213_v14 = vadd.f32 %v1668_v27, %v1597_v41 }
 0x1e5   : >> { %3353 = vmatmul.msk.bf16.gmra.mxu3 %vm247_vm0, %v3507_v34 }
 0x1e7   : >> { %v1681_v15 = vpop.f32.mrf.mxu0 }
 0x1e8   : >> { %v1481_v17 = vpop.f32.mrf.mxu2  ;;  %v1581_v18 = vpop.f32.mrf.mxu3 }
 0x1e9   : >> { %v1497_v24 = vadd.f32 %v1481_v17, %v4153_v62  ;;  %v1598_v48 = vadd.f32 %v1581_v18, %v1496_v39  ;;  %v3508_v62 = vld [vmem:[%s4341_s1 + $0x2f0] sm:$0xff] }
 0x1ea   : >> { %3383 = vmatmul.msk.bf16.gmra.mxu0 %vm247_vm0, %v3513_v13 }
 0x1eb   : >> { %v4224_v26 = vadd.f32 %v1671_v25, %v1598_v48 }
 0x1ed   : >> { %3326 = vmatmul.msk.bf16.gmra.mxu2 %vm247_vm0, %v3504_v12 }
 0x1ef   : >> { %v1683_v11 = vpop.f32.mrf.mxu0 }
 0x1f0   : >> { %v1484_v46 = vpop.f32.mrf.mxu2  ;;  %v1583_v45 = vpop.f32.mrf.mxu3 }
 0x1f1   : >> { %v1498_v21 = vadd.f32 %v1484_v46, %v4164_v20  ;;  %v1599_v27 = vadd.f32 %v1583_v45, %v1497_v24  ;;  %v3505_v20 = vld [vmem:[%s4341_s1 + $0x2d8] sm:$0xff] }
 0x1f3   : >> { %v4231_v35 = vadd.f32 %v1673_v28, %v1599_v27  ;;  %v1755_v28 = vpop.f32.mrf.mxu1 }
 0x1f5   : >> { %3354 = vmatmul.msk.bf16.gmra.mxu3 %vm247_vm0, %v3508_v62 }
 0x1f7   : >> { %v2020_v25 = vpop.f32.mrf.mxu0 }
 0x1f8   : >> { %v1486_v9 = vpop.f32.mrf.mxu2  ;;  %v1586_v57 = vpop.f32.mrf.mxu3 }
 0x1f9   : >> { %v1499_v63 = vadd.f32 %v1486_v9, %v4171_v37  ;;  %v1600_v56 = vadd.f32 %v1586_v57, %v1498_v21  ;;  %v3509_v37 = vld [vmem:[%s4341_s1 + $0x2f8] sm:$0xff]  ;;  %v1770_v9 = vadd.f32 %v1750_v29, %v4204_v33  ;;  %v1772_v33 = vadd.f32 %v1755_v28, %v4224_v26 }
 0x1fb   : >> { %v4238_v58 = vadd.f32 %v1676_v32, %v1600_v56  ;;  %v1757_v30 = vpop.f32.mrf.mxu1 }
 0x1fd   : >> { %3327 = vmatmul.msk.bf16.gmra.mxu2 %vm247_vm0, %v3505_v20 }
 0x1ff   : >> { %v2022_v19 = vpop.f32.mrf.mxu0 }
 0x200   : >> { %v1489_v40 = vpop.f32.mrf.mxu2  ;;  %v1588_v16 = vpop.f32.mrf.mxu3 }
 0x201   : >> { %v1500_v53 = vadd.f32 %v1489_v40, %v4185_v42  ;;  %v1601_v36 = vadd.f32 %v1588_v16, %v1499_v63 }
 0x203   : >> { %v4245_v43 = vadd.f32 %v1678_v10, %v1601_v36  ;;  %v4256_v23 = vpop.f32.mrf.mxu1 }
 0x205   : >> { %3355 = vmatmul.msk.bf16.gmra.mxu3 %vm247_vm0, %v3509_v37 }
 0x207   : >> { %v4250_v31 = vpop.f32.mrf.mxu0 }
 0x208   : >> { %v1491_v50 = vpop.f32.mrf.mxu2  ;;  %v1591_v47 = vpop.f32.mrf.mxu3 }
 0x209   : >> { %v1501_v44 = vadd.f32 %v1491_v50, %v1417_v55  ;;  %v1602_v60 = vadd.f32 %v1591_v47, %v1500_v53  ;;  %v1771_v53 = vadd.f32 %v1752_v38, %v4213_v14 }
 0x20b   : >> { %v4248_v49 = vadd.f32 %v1681_v15, %v1602_v60  ;;  %v4260_v8 = vpop.f32.mrf.mxu1 }
 0x20f   : >> { %v4254_v61 = vpop.f32.mrf.mxu0 }
 0x210   : >> { %v1593_v42 = vpop.f32.mrf.mxu3  ;;  %v1834_v54 = vpop.f32.mrf.mxu2 }
 0x211   : >> { %v1603_v32 = vadd.f32 %v1593_v42, %v1501_v44  ;;  %v1854_v57 = vadd.f32 %v1834_v54, %v1770_v9 }
 0x213   : >> { %v4252_v52 = vadd.f32 %v1683_v11, %v1603_v32  ;;  %v4264_v13 = vpop.f32.mrf.mxu1 }
 0x217   : >> { %v4258_v55 = vpop.f32.mrf.mxu0 }
 0x218   : >> { %v1836_v51 = vpop.f32.mrf.mxu2  ;;  %v1918_v22 = vpop.f32.mrf.mxu3 }
 0x219   : >> { %v1938_v56 = vadd.f32 %v1918_v22, %v1854_v57  ;;  %v1855_v37 = vadd.f32 %v1836_v51, %v1771_v53 }
 0x21b   : >> { %v4274_v12 = vpop.f32.mrf.mxu1  ;;  %v2040_v36 = vadd.f32 %v2020_v25, %v1938_v56 }
 0x21f   : >> { %v4262_v34 = vpop.f32.mrf.mxu0 }
 0x220   : >> { %v1839_v10 = vpop.f32.mrf.mxu2  ;;  %v1920_v59 = vpop.f32.mrf.mxu3 }
 0x221   : >> { %v1939_v47 = vadd.f32 %v1920_v59, %v1855_v37  ;;  %v1856_v9 = vadd.f32 %v1839_v10, %v1772_v33 }
 0x223   : >> { %v2110_v27 = vpop.f32.mrf.mxu1  ;;  %v2041_v29 = vadd.f32 %v2022_v19, %v1939_v47 }
 0x224   : >> { %v2130_v50 = vadd.f32 %v2110_v27, %v2040_v36  ;;  %v1773_v27 = vadd.f32 %v1757_v30, %v4231_v35 }
 0x227   : >> { %v4268_v18 = vpop.f32.mrf.mxu0 }
 0x228   : >> { %v1841_v39 = vpop.f32.mrf.mxu2  ;;  %v1923_v41 = vpop.f32.mrf.mxu3 }
 0x229   : >> { %v1940_v14 = vadd.f32 %v1923_v41, %v1856_v9 }
 0x22b   : >> { %v2112_v20 = vpop.f32.mrf.mxu1  ;;  %v2042_v26 = vadd.f32 %v4250_v31, %v1940_v14  ;;  %v1775_v14 = vadd.f32 %v4260_v8, %v4245_v43 }
 0x22c   : >> { %v2131_v1 = vadd.f32 %v2112_v20, %v2041_v29 }
 0x22f   : >> { %v4280_v21 = vpop.f32.mrf.mxu0 }
 0x230   : >> { %v4266_v15 = vpop.f32.mrf.mxu2  ;;  %v1925_v17 = vpop.f32.mrf.mxu3 }
 0x233   : >> { %v2115_v60 = vpop.f32.mrf.mxu1 }
 0x234   : >> { %v2132_v20 = vadd.f32 %v2115_v60, %v2042_v26 }
 0x237   : >> { %v2362_v63 = vpop.f32.mrf.mxu0  ;;  %v2393_v22 = vpop.permute.xlu0 %2392 }
 0x238   : >> { %v4270_v24 = vpop.f32.mrf.mxu2  ;;  %v4272_v48 = vpop.f32.mrf.mxu3 }
 0x239   : >> { %v2398_v41 = vpop.permute.xlu1 %2397 }
 0x23b   : >> { %v2117_v28 = vpop.f32.mrf.mxu1 }
 0x23f   : >> { %v2364_v44 = vpop.f32.mrf.mxu0 }
 0x240   : >> { %v4276_v46 = vpop.f32.mrf.mxu2  ;;  %v4278_v45 = vpop.f32.mrf.mxu3 }
 0x243   : >> { %v2120_v29 = vpop.f32.mrf.mxu1 }
 0x247   : >> { %v2367_v59 = vpop.f32.mrf.mxu0 }
 0x248   : >> { %v4282_v62 = vpop.f32.mrf.mxu2  ;;  %v4284_v11 = vpop.f32.mrf.mxu3 }
 0x24f   : >> { %v2369_v33 = vpop.f32.mrf.mxu0 }
 0x250   : >> { %v4287_v40 = vpop.f32.mrf.mxu3  ;;  %v2194_v16 = vpop.f32.mrf.mxu2 }
 0x251   : >> { %v2214_v42 = vadd.f32 %v2194_v16, %v2130_v50  ;;  %v1774_v50 = vadd.f32 %v4256_v23, %v4238_v58 }
 0x253   : >> { %v1858_v60 = vadd.f32 %v4266_v15, %v1774_v50  ;;  %v1777_v50 = vadd.f32 %v4274_v12, %v4252_v52 }
 0x258   : >> { %v2196_v32 = vpop.f32.mrf.mxu2  ;;  %v2278_v0 = vpop.f32.mrf.mxu3 }
 0x259   : >> { %v2298_v54 = vadd.f32 %v2278_v0, %v2214_v42  ;;  %v2215_v38 = vadd.f32 %v2196_v32, %v2131_v1 }
 0x25b   : >> { %v2382_v57 = vadd.f32 %v2362_v63, %v2298_v54  ;;  %v1857_v63 = vadd.f32 %v1841_v39, %v1773_v27  ;;  %v1859_v27 = vadd.f32 %v4270_v24, %v1775_v14 }
 0x25d   : >> { %v2430_v25 = vadd.f32 %v2393_v22, %v2382_v57  ;;  %v1941_v53 = vadd.f32 %v1925_v17, %v1857_v63  ;;  %v1942_v22 = vadd.f32 %v4272_v48, %v1858_v60  ;;  %v2372_v48 = vpop.f32.mrf.mxu0  ;;  %v1943_v26 = vadd.f32 %v4278_v45, %v1859_v27 }
 0x25f   : >> { %vm2438_vm1 = vcmp.ge.f32.partialorder %v2430_v25, 0.0  ;;  %v2446_v51 = vmul.f32 0.2, %v2430_v25  ;;  %v2043_v47 = vadd.f32 %v4254_v61, %v1941_v53  ;;  %v2045_v24 = vadd.f32 %v4262_v34, %v1943_v26 }
 0x260   : >> { %v2199_v56 = vpop.f32.mrf.mxu2  ;;  %v2280_v16 = vpop.f32.mrf.mxu3 }
 0x261   : >> { %v2454_v0 = vsel %vm2438_vm1, %v2430_v25, %v2446_v51  ;;  %v2299_v19 = vadd.f32 %v2280_v16, %v2215_v38  ;;  %v2216_v30 = vadd.f32 %v2199_v56, %v2132_v20  ;;  %v2133_v54 = vadd.f32 %v2117_v28, %v2043_v47 }
 0x262   : >> { %v2462_v10 = vpack.c.bf16 %v2454_v0, %v2454_v0  ;;  %v2044_v25 = vadd.f32 %v4258_v55, %v1942_v22 }
 0x263   : >> { %v2383_v1 = vadd.f32 %v2364_v44, %v2299_v19  ;;  %v2403_v44 = vpop.permute.xlu2 %2402  ;;  %v2122_v19 = vpop.f32.mrf.mxu1 }
 0x264   : >> { %2474 = vst.msk [vmem:[%s4295_s26] sm:$0xf] %vm2473_vm2, %v2462_v10  ;;  %v2134_v16 = vadd.f32 %v2120_v29, %v2044_v25  ;;  %v1776_v10 = vadd.f32 %v4264_v13, %v4248_v49 }
 0x265   : >> { %v2431_v35 = vadd.f32 %v2398_v41, %v2383_v1 }
 0x266   : >> { %v1860_v53 = vadd.f32 %v4276_v46, %v1776_v10 }
 0x267   : >> { %vm2439_vm3 = vcmp.ge.f32.partialorder %v2431_v35, 0.0  ;;  %v2447_v31 = vmul.f32 0.2, %v2431_v35 }
 0x268   : >> { %v2201_v36 = vpop.f32.mrf.mxu2  ;;  %v2283_v37 = vpop.f32.mrf.mxu3 }
 0x269   : >> { %v2455_v42 = vsel %vm2439_vm3, %v2431_v35, %v2447_v31  ;;  %v2300_v32 = vadd.f32 %v2283_v37, %v2216_v30  ;;  %v2217_v57 = vadd.f32 %v2201_v36, %v2133_v54  ;;  %v2135_v35 = vadd.f32 %v2122_v19, %v2045_v24  ;;  %v2374_v36 = vpop.f32.mrf.mxu0 }
 0x26a   : >> { %v2463_v39 = vpack.c.bf16 %v2455_v42, %v2455_v42  ;;  %v1944_v30 = vadd.f32 %v4284_v11, %v1860_v53  ;;  %v1861_v11 = vadd.f32 %v4282_v62, %v1777_v50 }
 0x26b   : >> { %v2384_v17 = vadd.f32 %v2367_v59, %v2300_v32  ;;  %v2408_v59 = vpop.permute.xlu1 %2407  ;;  %v2413_v20 = vpop.permute.xlu2 %2412 }
 0x26c   : >> { %2475 = vst.msk [vmem:[%s4295_s26 + $0x4] sm:$0xf] %vm2473_vm2, %v2463_v39  ;;  %v2125_v13 = vpop.f32.mrf.mxu1  ;;  %v2046_v47 = vadd.f32 %v4268_v18, %v1944_v30 }
 0x26d   : >> { %v2432_v9 = vadd.f32 %v2403_v44, %v2384_v17  ;;  %v2418_v44 = vpop.permute.xlu0 %2417  ;;  %v1945_v17 = vadd.f32 %v4287_v40, %v1861_v11 }
 0x26e   : >> { %v2136_v60 = vadd.f32 %v2125_v13, %v2046_v47 }
 0x26f   : >> { %vm2440_vm4 = vcmp.ge.f32.partialorder %v2432_v9, 0.0  ;;  %v2448_v58 = vmul.f32 0.2, %v2432_v9  ;;  %v2047_v22 = vadd.f32 %v4280_v21, %v1945_v17 }
 0x270   : >> { %v2204_v61 = vpop.f32.mrf.mxu2  ;;  %v2285_v23 = vpop.f32.mrf.mxu3 }
 0x271   : >> { %v2456_v15 = vsel %vm2440_vm4, %v2432_v9, %v2448_v58  ;;  %v2301_v38 = vadd.f32 %v2285_v23, %v2217_v57  ;;  %v2218_v28 = vadd.f32 %v2204_v61, %v2134_v16  ;;  %v2377_v18 = vpop.f32.mrf.mxu0 }
 0x272   : >> { %v2464_v51 = vpack.c.bf16 %v2456_v15, %v2456_v15 }
 0x273   : >> { %v2385_v56 = vadd.f32 %v2369_v33, %v2301_v38  ;;  %v2423_v14 = vpop.permute.xlu1 %2422  ;;  %v2428_v16 = vpop.permute.xlu2 %2427 }
 0x274   : >> { %2476 = vst.msk [vmem:[%s4295_s26 + $0x8] sm:$0xf] %vm2473_vm2, %v2464_v51  ;;  %v2127_v58 = vpop.f32.mrf.mxu1 }
 0x275   : >> { %v2433_v0 = vadd.f32 %v2408_v59, %v2385_v56  ;;  %v2137_v25 = vadd.f32 %v2127_v58, %v2047_v22 }
 0x277   : >> { %vm2441_vm5 = vcmp.ge.f32.partialorder %v2433_v0, 0.0  ;;  %v2449_v43 = vmul.f32 0.2, %v2433_v0 }
 0x278   : >> { %v2206_v55 = vpop.f32.mrf.mxu2  ;;  %v2288_v8 = vpop.f32.mrf.mxu3 }
 0x279   : >> { %v2457_v41 = vsel %vm2441_vm5, %v2433_v0, %v2449_v43  ;;  %v2302_v63 = vadd.f32 %v2288_v8, %v2218_v28  ;;  %v2219_v37 = vadd.f32 %v2206_v55, %v2135_v35  ;;  %v2379_v56 = vpop.f32.mrf.mxu0 }
 0x27a   : >> { %v2465_v1 = vpack.c.bf16 %v2457_v41, %v2457_v41 }
 0x27b   : >> { %v2386_v45 = vadd.f32 %v2372_v48, %v2302_v63 }
 0x27c   : >> { %2477 = vst.msk [vmem:[%s4295_s26 + $0xc] sm:$0xf] %vm2473_vm2, %v2465_v1 }
 0x27d   : >> { %v2434_v31 = vadd.f32 %v2413_v20, %v2386_v45 }
 0x27f   : >> { %vm2442_vm6 = vcmp.ge.f32.partialorder %v2434_v31, 0.0  ;;  %v2450_v49 = vmul.f32 0.2, %v2434_v31 }
 0x280   : >> { %v2290_v34 = vpop.f32.mrf.mxu3  ;;  %v2209_v39 = vpop.f32.mrf.mxu2 }
 0x281   : >> { %v2458_v46 = vsel %vm2442_vm6, %v2434_v31, %v2450_v49  ;;  %v2303_v42 = vadd.f32 %v2290_v34, %v2219_v37  ;;  %v2220_v54 = vadd.f32 %v2209_v39, %v2136_v60 }
 0x282   : >> { %v2466_v32 = vpack.c.bf16 %v2458_v46, %v2458_v46 }
 0x283   : >> { %v2387_v33 = vadd.f32 %v2374_v36, %v2303_v42 }
 0x284   : >> { %2478 = vst.msk [vmem:[%s4295_s26 + $0x10] sm:$0xf] %vm2473_vm2, %v2466_v32 }
 0x285   : >> { %v2435_v29 = vadd.f32 %v2418_v44, %v2387_v33 }
 0x287   : >> { %vm2443_vm7 = vcmp.ge.f32.partialorder %v2435_v29, 0.0  ;;  %v2451_v52 = vmul.f32 0.2, %v2435_v29 }
 0x288   : >> { %v2293_v12 = vpop.f32.mrf.mxu3  ;;  %v2211_v23 = vpop.f32.mrf.mxu2 }
 0x289   : >> { %v2459_v9 = vsel %vm2443_vm7, %v2435_v29, %v2451_v52  ;;  %v2304_v57 = vadd.f32 %v2293_v12, %v2220_v54  ;;  %v2221_v15 = vadd.f32 %v2211_v23, %v2137_v25 }
 0x28a   : >> { %v2467_v61 = vpack.c.bf16 %v2459_v9, %v2459_v9 }
 0x28b   : >> { %v2388_v62 = vadd.f32 %v2377_v18, %v2304_v57 }
 0x28c   : >> { %2479 = vst.msk [vmem:[%s4295_s26 + $0x14] sm:$0xf] %vm2473_vm2, %v2467_v61 }
 0x28d   : >> { %v2436_v40 = vadd.f32 %v2423_v14, %v2388_v62 }
 0x28f   : >> { %vm2444_vm8 = vcmp.ge.f32.partialorder %v2436_v40, 0.0  ;;  %v2452_v38 = vmul.f32 0.2, %v2436_v40 }
 0x290   : >> { %v2295_v51 = vpop.f32.mrf.mxu3 }
 0x291   : >> { %v2460_v59 = vsel %vm2444_vm8, %v2436_v40, %v2452_v38  ;;  %v2305_v27 = vadd.f32 %v2295_v51, %v2221_v15 }
 0x292   : >> { %v2468_v21 = vpack.c.bf16 %v2460_v59, %v2460_v59 }
 0x293   : >> { %v2389_v48 = vadd.f32 %v2379_v56, %v2305_v27 }
 0x294   : >> { %2480 = vst.msk [vmem:[%s4295_s26 + $0x18] sm:$0xf] %vm2473_vm2, %v2468_v21 }
 0x295   : >> { %v2437_v26 = vadd.f32 %v2428_v16, %v2389_v48 }
 0x297   : >> { %vm2445_vm9 = vcmp.ge.f32.partialorder %v2437_v26, 0.0  ;;  %v2453_v0 = vmul.f32 0.2, %v2437_v26 }
 0x298   : > { %184 = sbr.rel (!%p182_p4) target bundleno = 16 (0x10), region = 99 }
 0x299   : >> { %v2461_v19 = vsel %vm2445_vm9, %v2437_v26, %v2453_v0 }
 0x29a   : >> { %v2469_v28 = vpack.c.bf16 %v2461_v19, %v2461_v19 }
 0x29c   : >> { %2481 = vst.msk [vmem:[%s4295_s26 + $0x1c] sm:$0xf] %vm2473_vm2, %v2469_v28 }
 0x29d PF: > { %s13_s12 = sadd.s32 1, %s3555_s12  }
 0x29e   : > { %p10_p5 = scmp.ge.s32.totalorder %s13_s12, 4  }
 0x2a0   :  { %12 = sbr.rel (!%p10_p5) target bundleno = 1 (0x1), region = 110 }

</bundles_post_ra>
